<compile_context>
chip_gen: v7x
topology: tpu7x:2x2x1
jax: 0.10.0
libtpu: 0.0.40
codegen_flags: <defaults>
</compile_context>

<pallas_src>
import functools
import math

import jax
import jax.numpy as jnp
import numpy as np
from jax import lax
from jax.experimental import pallas as pl
from jax.experimental.pallas import tpu as pltpu

_ATTN_KEYS = ('wq', 'wk', 'wv', 'bq', 'bk', 'bv', 'wo', 'bo', 'lnw', 'lnb')
_FFN_KEYS = ('w1', 'b1', 'w2', 'b2', 'lnw', 'lnb')
_LAYERS = ('sp_cross', 'sp_self', 'sp_ffn', 'ch_cross', 'ch_self', 'ch_ffn')
_LN_EPS = 1e-5


# ----------------------------------------------------------------------------
# In-kernel building blocks (operate on VMEM-resident values, not refs)
# ----------------------------------------------------------------------------
def _layer_norm(x, w, b):
    mu = jnp.mean(x, axis=-1, keepdims=True)
    var = jnp.mean(x * x, axis=-1, keepdims=True) - mu * mu   # single pass
    return (x - mu) * lax.rsqrt(var + _LN_EPS) * w + b


def _mha_block(tgt, mem, qpos, kpos, mask, p, num_heads):
    """Post-norm multi-head attention sub-layer.  tgt: (B,L,d), mem: (B,S,d)."""
    B, L, d = tgt.shape
    S = mem.shape[1]
    hd = d // num_heads
    scale = 1.0 / math.sqrt(hd)

    q_in = tgt if qpos is None else tgt + qpos
    k_in = mem if kpos is None else mem + kpos

    # Dense projections on row-flattened operands (batch folded into sublanes),
    # weights already in (in, out) layout -> no in-kernel transposes.
    q = (jnp.dot(q_in.reshape(B * L, d), p['wq'],
                 preferred_element_type=jnp.float32) + p['bq']).reshape(B, L, d)
    k = (jnp.dot(k_in.reshape(B * S, d), p['wk'],
                 preferred_element_type=jnp.float32) + p['bk']).reshape(B, S, d)
    v = (jnp.dot(mem.reshape(B * S, d), p['wv'],
                 preferred_element_type=jnp.float32) + p['bv']).reshape(B, S, d)

    lane = lax.broadcasted_iota(jnp.int32, (1, 1, d), 2)
    attn = jnp.zeros((B, L, d), jnp.float32)
    for h in range(num_heads):                      # static loop, no slicing
        in_head = (lane >= h * hd) & (lane < (h + 1) * hd)
        hmask = jnp.where(in_head, 1.0, 0.0)        # (1, 1, d) lane mask
        s = jnp.einsum('bld,bsd->bls', q * (hmask * scale), k,
                       preferred_element_type=jnp.float32)
        if mask is not None:
            s = s + mask                            # mask is (1, L, S)
        m = jnp.max(s, axis=-1, keepdims=True)
        e = jnp.exp(s - m)
        pr = e * pl.reciprocal(jnp.sum(e, axis=-1, keepdims=True), approx=True)
        # head output lands directly in its own lanes -> no concatenate
        attn = attn + jnp.einsum('bls,bsd->bld', pr, v * hmask,
                                 preferred_element_type=jnp.float32)

    o = jnp.dot(attn.reshape(B * L, d), p['wo'],
                preferred_element_type=jnp.float32) + p['bo']
    x = tgt.reshape(B * L, d) + o                   # residual + post-LayerNorm
    return _layer_norm(x, p['lnw'], p['lnb']).reshape(B, L, d)


def _ffn_block(x, p):
    B, L, d = x.shape
    xf = x.reshape(B * L, d)
    h = jnp.maximum(jnp.dot(xf, p['w1'], preferred_element_type=jnp.float32)
                    + p['b1'], 0.0)
    y = jnp.dot(h, p['w2'], preferred_element_type=jnp.float32) + p['b2']
    return _layer_norm(xf + y, p['lnw'], p['lnb']).reshape(B, L, d)


# ----------------------------------------------------------------------------
# Fused kernel: entire SpaticalNChannelAttn forward in one pallas_call
# ----------------------------------------------------------------------------
def _fused_kernel(*refs, num_heads, cross_first, has_cmask, has_smask):
    refs = list(refs)
    res_ref = refs.pop()                            # output ref is last
    it = iter(refs)
    out_bf = next(it)[...]                          # (B, L, D)
    src_bf = next(it)[...]                          # (B, S, D)
    pos_bf = next(it)[...]                          # (B, S, D)
    qpos_bf = next(it)[...]                         # (B, L, D)
    cmask = next(it)[...] if has_cmask else None    # (1, L, S)
    smask = next(it)[...] if has_smask else None    # (1, L, L)

    def take(keys):
        return {k: next(it)[...] for k in keys}

    sp_cross = take(_ATTN_KEYS)
    sp_self = take(_ATTN_KEYS)
    sp_ffn = take(_FFN_KEYS)
    ch_cross = take(_ATTN_KEYS)
    ch_self = take(_ATTN_KEYS)
    ch_ffn = take(_FFN_KEYS)

    # Channel branch works in the permuted (B, D, L) layout; swap the minor
    # two dims of the VMEM-resident tiles in-kernel (no wrapper-level HBM
    # relayout).
    out_ch = jnp.swapaxes(out_bf, 1, 2)
    src_ch = jnp.swapaxes(src_bf, 1, 2)
    pos_ch = jnp.swapaxes(pos_bf, 1, 2)

    if cross_first:
        sp = _mha_block(out_bf, src_bf, qpos_bf, pos_bf, cmask, sp_cross, num_heads)
        sp = _mha_block(sp, sp, qpos_bf, qpos_bf, smask, sp_self, num_heads)
        sp = _ffn_block(sp, sp_ffn)
        co = _mha_block(out_ch, src_ch, None, pos_ch, None, ch_cross, num_heads)
        co = _mha_block(co, co, None, None, None, ch_self, num_heads)
        co = _ffn_block(co, ch_ffn)
    else:
        sp = _mha_block(out_bf, out_bf, qpos_bf, qpos_bf, smask, sp_self, num_heads)
        sp = _mha_block(sp, src_bf, qpos_bf, pos_bf, cmask, sp_cross, num_heads)
        sp = _ffn_block(sp, sp_ffn)
        co = _mha_block(out_ch, out_ch, None, None, None, ch_self, num_heads)
        co = _mha_block(co, src_ch, None, pos_ch, None, ch_cross, num_heads)
        co = _ffn_block(co, ch_ffn)

    res_ref[...] = sp + jnp.swapaxes(co, 1, 2)


# ----------------------------------------------------------------------------
# Wrapper
# ----------------------------------------------------------------------------
def _flatten_params(params):
    flat = []
    for name in _LAYERS:
        keys = _FFN_KEYS if name.endswith('ffn') else _ATTN_KEYS
        flat.extend(params[name][k] for k in keys)
    return flat


def spatial_n_channel_attn(output, src, crossattn_mask, selfattn_mask, pos,
                           spatial_query_pos, params, num_heads,
                           cross_first=True):
    """PyTorch seq-first layout: output/spatial_query_pos (L,B,D), src/pos
    (S,B,D), masks (L,S)/(L,L).  Returns (L,B,D)."""
    L, B, D = output.shape
    to_bf = lambda x: jnp.transpose(x, (1, 0, 2))   # seq-first -> batch-first
    out_bf, src_bf = to_bf(output), to_bf(src)
    pos_bf, qpos_bf = to_bf(pos), to_bf(spatial_query_pos)

    args = [out_bf, src_bf, pos_bf, qpos_bf]
    has_cmask = crossattn_mask is not None
    has_smask = selfattn_mask is not None
    if has_cmask:
        args.append(crossattn_mask.astype(jnp.float32)[None])   # (1, L, S)
    if has_smask:
        args.append(selfattn_mask.astype(jnp.float32)[None])    # (1, L, L)
    args.extend(_flatten_params(params))

    kern = functools.partial(_fused_kernel, num_heads=num_heads,
                             cross_first=cross_first,
                             has_cmask=has_cmask, has_smask=has_smask)
    vmem = pl.BlockSpec(memory_space=pltpu.MemorySpace.VMEM)
    res_bf = pl.pallas_call(
        kern,
        out_shape=jax.ShapeDtypeStruct((B, L, D), jnp.float32),
        in_specs=[vmem] * len(args),
        out_specs=vmem,
        compiler_params=pltpu.CompilerParams(vmem_limit_bytes=32 * 1024 * 1024),
    )(*args)
    return jnp.transpose(res_bf, (1, 0, 2))         # back to (L, B, D)


# ----------------------------------------------------------------------------
# Deterministic parameter init (pre-transposed to (in, out) layout)
# ----------------------------------------------------------------------------
def _xavier(key, shape):
    fan_out, fan_in = shape
    a = math.sqrt(6.0 / (fan_in + fan_out))
    return jax.random.uniform(key, shape, jnp.float32, -a, a)


def make_attn_params(key, d):
    k0, k1, k2, k3, k4 = jax.random.split(key, 5)
    in_proj = _xavier(k0, (3 * d, d))    # nn.MultiheadAttention in_proj_weight
    return dict(
        wq=in_proj[:d].T, wk=in_proj[d:2 * d].T, wv=in_proj[2 * d:].T,
        bq=0.02 * jax.random.normal(k2, (1, d), jnp.float32),
        bk=0.02 * jax.random.normal(k4, (1, d), jnp.float32),
        bv=0.02 * jax.random.normal(k3, (1, d), jnp.float32),
        wo=_xavier(k1, (d, d)).T,
        bo=jnp.zeros((1, d), jnp.float32),
        lnw=jnp.ones((1, d), jnp.float32),
        lnb=jnp.zeros((1, d), jnp.float32),
    )


def make_ffn_params(key, d, dff):
    k0, k1, k2, k3 = jax.random.split(key, 4)
    return dict(
        w1=_xavier(k0, (dff, d)).T,      # (d, dff)
        b1=0.02 * jax.random.normal(k1, (1, dff), jnp.float32),
        w2=_xavier(k2, (d, dff)).T,      # (dff, d)
        b2=0.02 * jax.random.normal(k3, (1, d), jnp.float32),
        lnw=jnp.ones((1, d), jnp.float32),
        lnb=jnp.zeros((1, d), jnp.float32),
    )


# ----------------------------------------------------------------------------
# Pure-JAX reference (independent math) for correctness check
# ----------------------------------------------------------------------------
def _ref_mha(tgt, mem, qpos, kpos, mask, p, H):
    B, L, d = tgt.shape
    S = mem.shape[1]
    hd = d // H
    q_in = tgt if qpos is None else tgt + qpos
    k_in = mem if kpos is None else mem + kpos
    q = q_in @ p['wq'] + p['bq'][0]
    k = k_in @ p['wk'] + p['bk'][0]
    v = mem @ p['wv'] + p['bv'][0]
    qh = q.reshape(B, L, H, hd).transpose(0, 2, 1, 3)
    kh = k.reshape(B, S, H, hd).transpose(0, 2, 1, 3)
    vh = v.reshape(B, S, H, hd).transpose(0, 2, 1, 3)
    s = jnp.einsum('bhqd,bhkd->bhqk', qh, kh) / math.sqrt(hd)
    if mask is not None:
        s = s + mask
    a = jax.nn.softmax(s, axis=-1)
    o = jnp.einsum('bhqk,bhkd->bhqd', a, vh).transpose(0, 2, 1, 3).reshape(B, L, d)
    o = o @ p['wo'] + p['bo'][0]
    x = tgt + o
    mu = x.mean(-1, keepdims=True)
    var = ((x - mu) ** 2).mean(-1, keepdims=True)
    return (x - mu) / jnp.sqrt(var + _LN_EPS) * p['lnw'][0] + p['lnb'][0]


def _ref_ffn(x, p):
    h = jnp.maximum(x @ p['w1'] + p['b1'][0], 0.0)
    z = x + (h @ p['w2'] + p['b2'][0])
    mu = z.mean(-1, keepdims=True)
    var = ((z - mu) ** 2).mean(-1, keepdims=True)
    return (z - mu) / jnp.sqrt(var + _LN_EPS) * p['lnw'][0] + p['lnb'][0]


def _ref_forward(output, src, cmask, smask, pos, qpos, params, H, cross_first):
    to_bf = lambda x: jnp.transpose(x, (1, 0, 2))
    out_bf, src_bf, pos_bf, qpos_bf = map(to_bf, (output, src, pos, qpos))
    ch = lambda x: jnp.transpose(x, (0, 2, 1))
    if cross_first:
        sp = _ref_mha(out_bf, src_bf, qpos_bf, pos_bf, cmask, params['sp_cross'], H)
        sp = _ref_mha(sp, sp, qpos_bf, qpos_bf, smask, params['sp_self'], H)
        sp = _ref_ffn(sp, params['sp_ffn'])
        co = _ref_mha(ch(out_bf), ch(src_bf), None, ch(pos_bf), None,
                      params['ch_cross'], H)
        co = _ref_mha(co, co, None, None, None, params['ch_self'], H)
        co = _ref_ffn(co, params['ch_ffn'])
    else:
        sp = _ref_mha(out_bf, out_bf, qpos_bf, qpos_bf, smask, params['sp_self'], H)
        sp = _ref_mha(sp, src_bf, qpos_bf, pos_bf, cmask, params['sp_cross'], H)
        sp = _ref_ffn(sp, params['sp_ffn'])
        co = _ref_mha(ch(out_bf), ch(out_bf), None, None, None,
                      params['ch_self'], H)
        co = _ref_mha(co, ch(src_bf), None, ch(pos_bf), None,
                      params['ch_cross'], H)
        co = _ref_ffn(co, params['ch_ffn'])
    return jnp.transpose(sp + ch(co), (1, 0, 2))


# ----------------------------------------------------------------------------
if __name__ == "__main__":
    # channel_hdim (d_model of the channel branch) must equal num_queries L
    # and the memory length S (the module's permute((2,1,0)) requires this).
    B, L, S, D, H, DFF = 2, 8, 8, 32, 4, 64
    N = L                                          # channel_hdim

    key = jax.random.PRNGKey(0)
    ks = jax.random.split(key, 12)
    output = jax.random.normal(ks[0], (L, B, D), jnp.float32)
    src = jax.random.normal(ks[1], (S, B, D), jnp.float32)
    pos = jax.random.normal(ks[2], (S, B, D), jnp.float32)
    spatial_query_pos = jax.random.normal(ks[3], (L, B, D), jnp.float32)
    crossattn_mask = jnp.where(jax.random.bernoulli(ks[4], 0.2, (L, S)),
                               -1e4, 0.0).astype(jnp.float32)
    selfattn_mask = jnp.where(jax.random.bernoulli(ks[5], 0.2, (L, L)),
                              -1e4, 0.0).astype(jnp.float32)

    params = {
        'sp_cross': make_attn_params(ks[6], D),
        'sp_self':  make_attn_params(ks[7], D),
        'sp_ffn':   make_ffn_params(ks[8], D, DFF),
        'ch_cross': make_attn_params(ks[9], N),
        'ch_self':  make_attn_params(ks[10], N),
        'ch_ffn':   make_ffn_params(ks[11], N, DFF),
    }

    out = spatial_n_channel_attn(output, src, crossattn_mask, selfattn_mask,
                                 pos, spatial_query_pos, params, H,
                                 cross_first=True)
    out = jax.block_until_ready(out)
    assert out.shape == (L, B, D)

    ref = _ref_forward(output, src, crossattn_mask, selfattn_mask, pos,
                       spatial_query_pos, params, H, cross_first=True)
    # tolerance covers pl.reciprocal(approx=True) in the softmax denominator
    np.testing.assert_allclose(np.asarray(out), np.asarray(ref),
                               rtol=5e-3, atol=2e-3)
    print("KERNEL_OK")
</pallas_src>

<mosaic_0001>
module attributes {stable_mosaic.version = 11 : i64} {
  func.func @_fused_kernel(%arg0: memref<2x8x32xf32, #tpu.memory_space<vmem>>, %arg1: memref<2x8x32xf32, #tpu.memory_space<vmem>>, %arg2: memref<2x8x32xf32, #tpu.memory_space<vmem>>, %arg3: memref<2x8x32xf32, #tpu.memory_space<vmem>>, %arg4: memref<1x8x8xf32, #tpu.memory_space<vmem>>, %arg5: memref<1x8x8xf32, #tpu.memory_space<vmem>>, %arg6: memref<32x32xf32, #tpu.memory_space<vmem>>, %arg7: memref<32x32xf32, #tpu.memory_space<vmem>>, %arg8: memref<32x32xf32, #tpu.memory_space<vmem>>, %arg9: memref<1x32xf32, #tpu.memory_space<vmem>>, %arg10: memref<1x32xf32, #tpu.memory_space<vmem>>, %arg11: memref<1x32xf32, #tpu.memory_space<vmem>>, %arg12: memref<32x32xf32, #tpu.memory_space<vmem>>, %arg13: memref<1x32xf32, #tpu.memory_space<vmem>>, %arg14: memref<1x32xf32, #tpu.memory_space<vmem>>, %arg15: memref<1x32xf32, #tpu.memory_space<vmem>>, %arg16: memref<32x32xf32, #tpu.memory_space<vmem>>, %arg17: memref<32x32xf32, #tpu.memory_space<vmem>>, %arg18: memref<32x32xf32, #tpu.memory_space<vmem>>, %arg19: memref<1x32xf32, #tpu.memory_space<vmem>>, %arg20: memref<1x32xf32, #tpu.memory_space<vmem>>, %arg21: memref<1x32xf32, #tpu.memory_space<vmem>>, %arg22: memref<32x32xf32, #tpu.memory_space<vmem>>, %arg23: memref<1x32xf32, #tpu.memory_space<vmem>>, %arg24: memref<1x32xf32, #tpu.memory_space<vmem>>, %arg25: memref<1x32xf32, #tpu.memory_space<vmem>>, %arg26: memref<32x64xf32, #tpu.memory_space<vmem>>, %arg27: memref<1x64xf32, #tpu.memory_space<vmem>>, %arg28: memref<64x32xf32, #tpu.memory_space<vmem>>, %arg29: memref<1x32xf32, #tpu.memory_space<vmem>>, %arg30: memref<1x32xf32, #tpu.memory_space<vmem>>, %arg31: memref<1x32xf32, #tpu.memory_space<vmem>>, %arg32: memref<8x8xf32, #tpu.memory_space<vmem>>, %arg33: memref<8x8xf32, #tpu.memory_space<vmem>>, %arg34: memref<8x8xf32, #tpu.memory_space<vmem>>, %arg35: memref<1x8xf32, #tpu.memory_space<vmem>>, %arg36: memref<1x8xf32, #tpu.memory_space<vmem>>, %arg37: memref<1x8xf32, #tpu.memory_space<vmem>>, %arg38: memref<8x8xf32, #tpu.memory_space<vmem>>, %arg39: memref<1x8xf32, #tpu.memory_space<vmem>>, %arg40: memref<1x8xf32, #tpu.memory_space<vmem>>, %arg41: memref<1x8xf32, #tpu.memory_space<vmem>>, %arg42: memref<8x8xf32, #tpu.memory_space<vmem>>, %arg43: memref<8x8xf32, #tpu.memory_space<vmem>>, %arg44: memref<8x8xf32, #tpu.memory_space<vmem>>, %arg45: memref<1x8xf32, #tpu.memory_space<vmem>>, %arg46: memref<1x8xf32, #tpu.memory_space<vmem>>, %arg47: memref<1x8xf32, #tpu.memory_space<vmem>>, %arg48: memref<8x8xf32, #tpu.memory_space<vmem>>, %arg49: memref<1x8xf32, #tpu.memory_space<vmem>>, %arg50: memref<1x8xf32, #tpu.memory_space<vmem>>, %arg51: memref<1x8xf32, #tpu.memory_space<vmem>>, %arg52: memref<8x64xf32, #tpu.memory_space<vmem>>, %arg53: memref<1x64xf32, #tpu.memory_space<vmem>>, %arg54: memref<64x8xf32, #tpu.memory_space<vmem>>, %arg55: memref<1x8xf32, #tpu.memory_space<vmem>>, %arg56: memref<1x8xf32, #tpu.memory_space<vmem>>, %arg57: memref<1x8xf32, #tpu.memory_space<vmem>>, %arg58: memref<2x8x32xf32, #tpu.memory_space<vmem>>) attributes {dimension_semantics = [], scalar_prefetch = 0 : i64, scratch_operands = 0 : i64, tpu.core_type = #tpu.core_type<tc>} {
    %c0 = arith.constant 0 : index
    %c0_0 = arith.constant 0 : index
    %c0_1 = arith.constant 0 : index
    %0 = vector.load %arg0[%c0, %c0_0, %c0_1] : memref<2x8x32xf32, #tpu.memory_space<vmem>>, vector<2x8x32xf32>
    %c0_2 = arith.constant 0 : index
    %c0_3 = arith.constant 0 : index
    %c0_4 = arith.constant 0 : index
    %1 = vector.load %arg1[%c0_2, %c0_3, %c0_4] : memref<2x8x32xf32, #tpu.memory_space<vmem>>, vector<2x8x32xf32>
    %c0_5 = arith.constant 0 : index
    %c0_6 = arith.constant 0 : index
    %c0_7 = arith.constant 0 : index
    %2 = vector.load %arg2[%c0_5, %c0_6, %c0_7] : memref<2x8x32xf32, #tpu.memory_space<vmem>>, vector<2x8x32xf32>
    %c0_8 = arith.constant 0 : index
    %c0_9 = arith.constant 0 : index
    %c0_10 = arith.constant 0 : index
    %3 = vector.load %arg3[%c0_8, %c0_9, %c0_10] : memref<2x8x32xf32, #tpu.memory_space<vmem>>, vector<2x8x32xf32>
    %c0_11 = arith.constant 0 : index
    %c0_12 = arith.constant 0 : index
    %c0_13 = arith.constant 0 : index
    %4 = vector.load %arg4[%c0_11, %c0_12, %c0_13] : memref<1x8x8xf32, #tpu.memory_space<vmem>>, vector<1x8x8xf32>
    %c0_14 = arith.constant 0 : index
    %c0_15 = arith.constant 0 : index
    %c0_16 = arith.constant 0 : index
    %5 = vector.load %arg5[%c0_14, %c0_15, %c0_16] : memref<1x8x8xf32, #tpu.memory_space<vmem>>, vector<1x8x8xf32>
    %c0_17 = arith.constant 0 : index
    %c0_18 = arith.constant 0 : index
    %6 = vector.load %arg6[%c0_17, %c0_18] : memref<32x32xf32, #tpu.memory_space<vmem>>, vector<32x32xf32>
    %c0_19 = arith.constant 0 : index
    %c0_20 = arith.constant 0 : index
    %7 = vector.load %arg7[%c0_19, %c0_20] : memref<32x32xf32, #tpu.memory_space<vmem>>, vector<32x32xf32>
    %c0_21 = arith.constant 0 : index
    %c0_22 = arith.constant 0 : index
    %8 = vector.load %arg8[%c0_21, %c0_22] : memref<32x32xf32, #tpu.memory_space<vmem>>, vector<32x32xf32>
    %c0_23 = arith.constant 0 : index
    %c0_24 = arith.constant 0 : index
    %9 = vector.load %arg9[%c0_23, %c0_24] : memref<1x32xf32, #tpu.memory_space<vmem>>, vector<1x32xf32>
    %c0_25 = arith.constant 0 : index
    %c0_26 = arith.constant 0 : index
    %10 = vector.load %arg10[%c0_25, %c0_26] : memref<1x32xf32, #tpu.memory_space<vmem>>, vector<1x32xf32>
    %c0_27 = arith.constant 0 : index
    %c0_28 = arith.constant 0 : index
    %11 = vector.load %arg11[%c0_27, %c0_28] : memref<1x32xf32, #tpu.memory_space<vmem>>, vector<1x32xf32>
    %c0_29 = arith.constant 0 : index
    %c0_30 = arith.constant 0 : index
    %12 = vector.load %arg12[%c0_29, %c0_30] : memref<32x32xf32, #tpu.memory_space<vmem>>, vector<32x32xf32>
    %c0_31 = arith.constant 0 : index
    %c0_32 = arith.constant 0 : index
    %13 = vector.load %arg13[%c0_31, %c0_32] : memref<1x32xf32, #tpu.memory_space<vmem>>, vector<1x32xf32>
    %c0_33 = arith.constant 0 : index
    %c0_34 = arith.constant 0 : index
    %14 = vector.load %arg14[%c0_33, %c0_34] : memref<1x32xf32, #tpu.memory_space<vmem>>, vector<1x32xf32>
    %c0_35 = arith.constant 0 : index
    %c0_36 = arith.constant 0 : index
    %15 = vector.load %arg15[%c0_35, %c0_36] : memref<1x32xf32, #tpu.memory_space<vmem>>, vector<1x32xf32>
    %c0_37 = arith.constant 0 : index
    %c0_38 = arith.constant 0 : index
    %16 = vector.load %arg16[%c0_37, %c0_38] : memref<32x32xf32, #tpu.memory_space<vmem>>, vector<32x32xf32>
    %c0_39 = arith.constant 0 : index
    %c0_40 = arith.constant 0 : index
    %17 = vector.load %arg17[%c0_39, %c0_40] : memref<32x32xf32, #tpu.memory_space<vmem>>, vector<32x32xf32>
    %c0_41 = arith.constant 0 : index
    %c0_42 = arith.constant 0 : index
    %18 = vector.load %arg18[%c0_41, %c0_42] : memref<32x32xf32, #tpu.memory_space<vmem>>, vector<32x32xf32>
    %c0_43 = arith.constant 0 : index
    %c0_44 = arith.constant 0 : index
    %19 = vector.load %arg19[%c0_43, %c0_44] : memref<1x32xf32, #tpu.memory_space<vmem>>, vector<1x32xf32>
    %c0_45 = arith.constant 0 : index
    %c0_46 = arith.constant 0 : index
    %20 = vector.load %arg20[%c0_45, %c0_46] : memref<1x32xf32, #tpu.memory_space<vmem>>, vector<1x32xf32>
    %c0_47 = arith.constant 0 : index
    %c0_48 = arith.constant 0 : index
    %21 = vector.load %arg21[%c0_47, %c0_48] : memref<1x32xf32, #tpu.memory_space<vmem>>, vector<1x32xf32>
    %c0_49 = arith.constant 0 : index
    %c0_50 = arith.constant 0 : index
    %22 = vector.load %arg22[%c0_49, %c0_50] : memref<32x32xf32, #tpu.memory_space<vmem>>, vector<32x32xf32>
    %c0_51 = arith.constant 0 : index
    %c0_52 = arith.constant 0 : index
    %23 = vector.load %arg23[%c0_51, %c0_52] : memref<1x32xf32, #tpu.memory_space<vmem>>, vector<1x32xf32>
    %c0_53 = arith.constant 0 : index
    %c0_54 = arith.constant 0 : index
    %24 = vector.load %arg24[%c0_53, %c0_54] : memref<1x32xf32, #tpu.memory_space<vmem>>, vector<1x32xf32>
    %c0_55 = arith.constant 0 : index
    %c0_56 = arith.constant 0 : index
    %25 = vector.load %arg25[%c0_55, %c0_56] : memref<1x32xf32, #tpu.memory_space<vmem>>, vector<1x32xf32>
    %c0_57 = arith.constant 0 : index
    %c0_58 = arith.constant 0 : index
    %26 = vector.load %arg26[%c0_57, %c0_58] : memref<32x64xf32, #tpu.memory_space<vmem>>, vector<32x64xf32>
    %c0_59 = arith.constant 0 : index
    %c0_60 = arith.constant 0 : index
    %27 = vector.load %arg27[%c0_59, %c0_60] : memref<1x64xf32, #tpu.memory_space<vmem>>, vector<1x64xf32>
    %c0_61 = arith.constant 0 : index
    %c0_62 = arith.constant 0 : index
    %28 = vector.load %arg28[%c0_61, %c0_62] : memref<64x32xf32, #tpu.memory_space<vmem>>, vector<64x32xf32>
    %c0_63 = arith.constant 0 : index
    %c0_64 = arith.constant 0 : index
    %29 = vector.load %arg29[%c0_63, %c0_64] : memref<1x32xf32, #tpu.memory_space<vmem>>, vector<1x32xf32>
    %c0_65 = arith.constant 0 : index
    %c0_66 = arith.constant 0 : index
    %30 = vector.load %arg30[%c0_65, %c0_66] : memref<1x32xf32, #tpu.memory_space<vmem>>, vector<1x32xf32>
    %c0_67 = arith.constant 0 : index
    %c0_68 = arith.constant 0 : index
    %31 = vector.load %arg31[%c0_67, %c0_68] : memref<1x32xf32, #tpu.memory_space<vmem>>, vector<1x32xf32>
    %c0_69 = arith.constant 0 : index
    %c0_70 = arith.constant 0 : index
    %32 = vector.load %arg32[%c0_69, %c0_70] : memref<8x8xf32, #tpu.memory_space<vmem>>, vector<8x8xf32>
    %c0_71 = arith.constant 0 : index
    %c0_72 = arith.constant 0 : index
    %33 = vector.load %arg33[%c0_71, %c0_72] : memref<8x8xf32, #tpu.memory_space<vmem>>, vector<8x8xf32>
    %c0_73 = arith.constant 0 : index
    %c0_74 = arith.constant 0 : index
    %34 = vector.load %arg34[%c0_73, %c0_74] : memref<8x8xf32, #tpu.memory_space<vmem>>, vector<8x8xf32>
    %c0_75 = arith.constant 0 : index
    %c0_76 = arith.constant 0 : index
    %35 = vector.load %arg35[%c0_75, %c0_76] : memref<1x8xf32, #tpu.memory_space<vmem>>, vector<1x8xf32>
    %c0_77 = arith.constant 0 : index
    %c0_78 = arith.constant 0 : index
    %36 = vector.load %arg36[%c0_77, %c0_78] : memref<1x8xf32, #tpu.memory_space<vmem>>, vector<1x8xf32>
    %c0_79 = arith.constant 0 : index
    %c0_80 = arith.constant 0 : index
    %37 = vector.load %arg37[%c0_79, %c0_80] : memref<1x8xf32, #tpu.memory_space<vmem>>, vector<1x8xf32>
    %c0_81 = arith.constant 0 : index
    %c0_82 = arith.constant 0 : index
    %38 = vector.load %arg38[%c0_81, %c0_82] : memref<8x8xf32, #tpu.memory_space<vmem>>, vector<8x8xf32>
    %c0_83 = arith.constant 0 : index
    %c0_84 = arith.constant 0 : index
    %39 = vector.load %arg39[%c0_83, %c0_84] : memref<1x8xf32, #tpu.memory_space<vmem>>, vector<1x8xf32>
    %c0_85 = arith.constant 0 : index
    %c0_86 = arith.constant 0 : index
    %40 = vector.load %arg40[%c0_85, %c0_86] : memref<1x8xf32, #tpu.memory_space<vmem>>, vector<1x8xf32>
    %c0_87 = arith.constant 0 : index
    %c0_88 = arith.constant 0 : index
    %41 = vector.load %arg41[%c0_87, %c0_88] : memref<1x8xf32, #tpu.memory_space<vmem>>, vector<1x8xf32>
    %c0_89 = arith.constant 0 : index
    %c0_90 = arith.constant 0 : index
    %42 = vector.load %arg42[%c0_89, %c0_90] : memref<8x8xf32, #tpu.memory_space<vmem>>, vector<8x8xf32>
    %c0_91 = arith.constant 0 : index
    %c0_92 = arith.constant 0 : index
    %43 = vector.load %arg43[%c0_91, %c0_92] : memref<8x8xf32, #tpu.memory_space<vmem>>, vector<8x8xf32>
    %c0_93 = arith.constant 0 : index
    %c0_94 = arith.constant 0 : index
    %44 = vector.load %arg44[%c0_93, %c0_94] : memref<8x8xf32, #tpu.memory_space<vmem>>, vector<8x8xf32>
    %c0_95 = arith.constant 0 : index
    %c0_96 = arith.constant 0 : index
    %45 = vector.load %arg45[%c0_95, %c0_96] : memref<1x8xf32, #tpu.memory_space<vmem>>, vector<1x8xf32>
    %c0_97 = arith.constant 0 : index
    %c0_98 = arith.constant 0 : index
    %46 = vector.load %arg46[%c0_97, %c0_98] : memref<1x8xf32, #tpu.memory_space<vmem>>, vector<1x8xf32>
    %c0_99 = arith.constant 0 : index
    %c0_100 = arith.constant 0 : index
    %47 = vector.load %arg47[%c0_99, %c0_100] : memref<1x8xf32, #tpu.memory_space<vmem>>, vector<1x8xf32>
    %c0_101 = arith.constant 0 : index
    %c0_102 = arith.constant 0 : index
    %48 = vector.load %arg48[%c0_101, %c0_102] : memref<8x8xf32, #tpu.memory_space<vmem>>, vector<8x8xf32>
    %c0_103 = arith.constant 0 : index
    %c0_104 = arith.constant 0 : index
    %49 = vector.load %arg49[%c0_103, %c0_104] : memref<1x8xf32, #tpu.memory_space<vmem>>, vector<1x8xf32>
    %c0_105 = arith.constant 0 : index
    %c0_106 = arith.constant 0 : index
    %50 = vector.load %arg50[%c0_105, %c0_106] : memref<1x8xf32, #tpu.memory_space<vmem>>, vector<1x8xf32>
    %c0_107 = arith.constant 0 : index
    %c0_108 = arith.constant 0 : index
    %51 = vector.load %arg51[%c0_107, %c0_108] : memref<1x8xf32, #tpu.memory_space<vmem>>, vector<1x8xf32>
    %c0_109 = arith.constant 0 : index
    %c0_110 = arith.constant 0 : index
    %52 = vector.load %arg52[%c0_109, %c0_110] : memref<8x64xf32, #tpu.memory_space<vmem>>, vector<8x64xf32>
    %c0_111 = arith.constant 0 : index
    %c0_112 = arith.constant 0 : index
    %53 = vector.load %arg53[%c0_111, %c0_112] : memref<1x64xf32, #tpu.memory_space<vmem>>, vector<1x64xf32>
    %c0_113 = arith.constant 0 : index
    %c0_114 = arith.constant 0 : index
    %54 = vector.load %arg54[%c0_113, %c0_114] : memref<64x8xf32, #tpu.memory_space<vmem>>, vector<64x8xf32>
    %c0_115 = arith.constant 0 : index
    %c0_116 = arith.constant 0 : index
    %55 = vector.load %arg55[%c0_115, %c0_116] : memref<1x8xf32, #tpu.memory_space<vmem>>, vector<1x8xf32>
    %c0_117 = arith.constant 0 : index
    %c0_118 = arith.constant 0 : index
    %56 = vector.load %arg56[%c0_117, %c0_118] : memref<1x8xf32, #tpu.memory_space<vmem>>, vector<1x8xf32>
    %c0_119 = arith.constant 0 : index
    %c0_120 = arith.constant 0 : index
    %57 = vector.load %arg57[%c0_119, %c0_120] : memref<1x8xf32, #tpu.memory_space<vmem>>, vector<1x8xf32>
    %58 = tpu.transpose %0, [0, 2, 1] : vector<2x8x32xf32> -> vector<2x32x8xf32>
    %59 = tpu.transpose %1, [0, 2, 1] : vector<2x8x32xf32> -> vector<2x32x8xf32>
    %60 = tpu.transpose %2, [0, 2, 1] : vector<2x8x32xf32> -> vector<2x32x8xf32>
    %61 = arith.addf %0, %3 : vector<2x8x32xf32>
    %62 = arith.addf %1, %2 : vector<2x8x32xf32>
    %63 = vector.shape_cast %61 : vector<2x8x32xf32> to vector<16x32xf32>
    %cst = arith.constant dense<0.000000e+00> : vector<16x32xf32>
    %64 = tpu.matmul %63, %6, %cst {dimension_numbers = #tpu.dot_dimension_numbers<[1], [0], [0], [1], [0, 0, 1, 1], [], []>} : vector<16x32xf32>, vector<32x32xf32>, vector<16x32xf32> -> vector<16x32xf32>
    %65 = vector.broadcast %9 : vector<1x32xf32> to vector<16x32xf32>
    %66 = arith.addf %64, %65 : vector<16x32xf32>
    %67 = vector.shape_cast %66 : vector<16x32xf32> to vector<2x8x32xf32>
    %68 = vector.shape_cast %62 : vector<2x8x32xf32> to vector<16x32xf32>
    %cst_121 = arith.constant dense<0.000000e+00> : vector<16x32xf32>
    %69 = tpu.matmul %68, %7, %cst_121 {dimension_numbers = #tpu.dot_dimension_numbers<[1], [0], [0], [1], [0, 0, 1, 1], [], []>} : vector<16x32xf32>, vector<32x32xf32>, vector<16x32xf32> -> vector<16x32xf32>
    %70 = vector.broadcast %10 : vector<1x32xf32> to vector<16x32xf32>
    %71 = arith.addf %69, %70 : vector<16x32xf32>
    %72 = vector.shape_cast %71 : vector<16x32xf32> to vector<2x8x32xf32>
    %73 = vector.shape_cast %1 : vector<2x8x32xf32> to vector<16x32xf32>
    %cst_122 = arith.constant dense<0.000000e+00> : vector<16x32xf32>
    %74 = tpu.matmul %73, %8, %cst_122 {dimension_numbers = #tpu.dot_dimension_numbers<[1], [0], [0], [1], [0, 0, 1, 1], [], []>} : vector<16x32xf32>, vector<32x32xf32>, vector<16x32xf32> -> vector<16x32xf32>
    %75 = vector.broadcast %11 : vector<1x32xf32> to vector<16x32xf32>
    %76 = arith.addf %74, %75 : vector<16x32xf32>
    %77 = vector.shape_cast %76 : vector<16x32xf32> to vector<2x8x32xf32>
    %78 = tpu.iota {dimensions = array<i32: 2>} : vector<1x1x32xi32>
    %cst_123 = arith.constant 0.000000e+00 : f32
    %79 = vector.broadcast %cst_123 : f32 to vector<2x8x32xf32>
    %c0_i32 = arith.constant 0 : i32
    %80 = vector.broadcast %c0_i32 : i32 to vector<1x1x32xi32>
    %81 = arith.cmpi sge, %78, %80 : vector<1x1x32xi32>
    %c8_i32 = arith.constant 8 : i32
    %82 = vector.broadcast %c8_i32 : i32 to vector<1x1x32xi32>
    %83 = arith.cmpi slt, %78, %82 : vector<1x1x32xi32>
    %84 = arith.andi %81, %83 : vector<1x1x32xi1>
    %cst_124 = arith.constant 1.000000e+00 : f32
    %cst_125 = arith.constant 0.000000e+00 : f32
    %85 = vector.broadcast %cst_124 : f32 to vector<1x1x32xf32>
    %86 = vector.broadcast %cst_125 : f32 to vector<1x1x32xf32>
    %87 = arith.select %84, %85, %86 : vector<1x1x32xi1>, vector<1x1x32xf32>
    %cst_126 = arith.constant 0.353553385 : f32
    %88 = vector.broadcast %cst_126 : f32 to vector<1x1x32xf32>
    %89 = arith.mulf %87, %88 : vector<1x1x32xf32>
    %90 = vector.broadcast %89 : vector<1x1x32xf32> to vector<2x8x32xf32>
    %91 = arith.mulf %67, %90 : vector<2x8x32xf32>
    "tpu.trace_start"() <{level = 10 : i32, message = "bld,bsd->bls"}> : () -> ()
    %cst_127 = arith.constant dense<0.000000e+00> : vector<2x8x8xf32>
    %92 = tpu.matmul %91, %72, %cst_127 {dimension_numbers = #tpu.dot_dimension_numbers<[2], [2], [1], [1], [0, 0, 0, 1, 1, 1], [0], [0]>} : vector<2x8x32xf32>, vector<2x8x32xf32>, vector<2x8x8xf32> -> vector<2x8x8xf32>
    "tpu.trace_stop"() : () -> ()
    %93 = vector.broadcast %4 : vector<1x8x8xf32> to vector<2x8x8xf32>
    %94 = arith.addf %92, %93 : vector<2x8x8xf32>
    %cst_128 = arith.constant dense<0xFF800000> : vector<2x8xf32>
    %95 = vector.multi_reduction <maximumf>, %94, %cst_128 [2] : vector<2x8x8xf32> to vector<2x8xf32>
    %96 = vector.shape_cast %95 : vector<2x8xf32> to vector<2x8x1xf32>
    %97 = vector.broadcast %96 : vector<2x8x1xf32> to vector<2x8x8xf32>
    %98 = arith.subf %94, %97 : vector<2x8x8xf32>
    %99 = math.exp %98 : vector<2x8x8xf32>
    %cst_129 = arith.constant dense<0.000000e+00> : vector<2x8xf32>
    %100 = vector.multi_reduction <add>, %99, %cst_129 [2] : vector<2x8x8xf32> to vector<2x8xf32>
    %101 = vector.shape_cast %100 : vector<2x8xf32> to vector<2x8x1xf32>
    %102 = tpu.reciprocal %101 {approx = true} : vector<2x8x1xf32> -> vector<2x8x1xf32>
    %103 = vector.broadcast %102 : vector<2x8x1xf32> to vector<2x8x8xf32>
    %104 = arith.mulf %99, %103 : vector<2x8x8xf32>
    %105 = vector.broadcast %87 : vector<1x1x32xf32> to vector<2x8x32xf32>
    %106 = arith.mulf %77, %105 : vector<2x8x32xf32>
    "tpu.trace_start"() <{level = 10 : i32, message = "bls,bsd->bld"}> : () -> ()
    %cst_130 = arith.constant dense<0.000000e+00> : vector<2x8x32xf32>
    %107 = tpu.matmul %104, %106, %cst_130 {dimension_numbers = #tpu.dot_dimension_numbers<[2], [1], [1], [2], [0, 0, 0, 1, 1, 2], [0], [0]>} : vector<2x8x8xf32>, vector<2x8x32xf32>, vector<2x8x32xf32> -> vector<2x8x32xf32>
    "tpu.trace_stop"() : () -> ()
    %108 = arith.addf %79, %107 : vector<2x8x32xf32>
    %c8_i32_131 = arith.constant 8 : i32
    %109 = vector.broadcast %c8_i32_131 : i32 to vector<1x1x32xi32>
    %110 = arith.cmpi sge, %78, %109 : vector<1x1x32xi32>
    %c16_i32 = arith.constant 16 : i32
    %111 = vector.broadcast %c16_i32 : i32 to vector<1x1x32xi32>
    %112 = arith.cmpi slt, %78, %111 : vector<1x1x32xi32>
    %113 = arith.andi %110, %112 : vector<1x1x32xi1>
    %cst_132 = arith.constant 1.000000e+00 : f32
    %cst_133 = arith.constant 0.000000e+00 : f32
    %114 = vector.broadcast %cst_132 : f32 to vector<1x1x32xf32>
    %115 = vector.broadcast %cst_133 : f32 to vector<1x1x32xf32>
    %116 = arith.select %113, %114, %115 : vector<1x1x32xi1>, vector<1x1x32xf32>
    %cst_134 = arith.constant 0.353553385 : f32
    %117 = vector.broadcast %cst_134 : f32 to vector<1x1x32xf32>
    %118 = arith.mulf %116, %117 : vector<1x1x32xf32>
    %119 = vector.broadcast %118 : vector<1x1x32xf32> to vector<2x8x32xf32>
    %120 = arith.mulf %67, %119 : vector<2x8x32xf32>
    "tpu.trace_start"() <{level = 10 : i32, message = "bld,bsd->bls"}> : () -> ()
    %cst_135 = arith.constant dense<0.000000e+00> : vector<2x8x8xf32>
    %121 = tpu.matmul %120, %72, %cst_135 {dimension_numbers = #tpu.dot_dimension_numbers<[2], [2], [1], [1], [0, 0, 0, 1, 1, 1], [0], [0]>} : vector<2x8x32xf32>, vector<2x8x32xf32>, vector<2x8x8xf32> -> vector<2x8x8xf32>
    "tpu.trace_stop"() : () -> ()
    %122 = vector.broadcast %4 : vector<1x8x8xf32> to vector<2x8x8xf32>
    %123 = arith.addf %121, %122 : vector<2x8x8xf32>
    %cst_136 = arith.constant dense<0xFF800000> : vector<2x8xf32>
    %124 = vector.multi_reduction <maximumf>, %123, %cst_136 [2] : vector<2x8x8xf32> to vector<2x8xf32>
    %125 = vector.shape_cast %124 : vector<2x8xf32> to vector<2x8x1xf32>
    %126 = vector.broadcast %125 : vector<2x8x1xf32> to vector<2x8x8xf32>
    %127 = arith.subf %123, %126 : vector<2x8x8xf32>
    %128 = math.exp %127 : vector<2x8x8xf32>
    %cst_137 = arith.constant dense<0.000000e+00> : vector<2x8xf32>
    %129 = vector.multi_reduction <add>, %128, %cst_137 [2] : vector<2x8x8xf32> to vector<2x8xf32>
    %130 = vector.shape_cast %129 : vector<2x8xf32> to vector<2x8x1xf32>
    %131 = tpu.reciprocal %130 {approx = true} : vector<2x8x1xf32> -> vector<2x8x1xf32>
    %132 = vector.broadcast %131 : vector<2x8x1xf32> to vector<2x8x8xf32>
    %133 = arith.mulf %128, %132 : vector<2x8x8xf32>
    %134 = vector.broadcast %116 : vector<1x1x32xf32> to vector<2x8x32xf32>
    %135 = arith.mulf %77, %134 : vector<2x8x32xf32>
    "tpu.trace_start"() <{level = 10 : i32, message = "bls,bsd->bld"}> : () -> ()
    %cst_138 = arith.constant dense<0.000000e+00> : vector<2x8x32xf32>
    %136 = tpu.matmul %133, %135, %cst_138 {dimension_numbers = #tpu.dot_dimension_numbers<[2], [1], [1], [2], [0, 0, 0, 1, 1, 2], [0], [0]>} : vector<2x8x8xf32>, vector<2x8x32xf32>, vector<2x8x32xf32> -> vector<2x8x32xf32>
    "tpu.trace_stop"() : () -> ()
    %137 = arith.addf %108, %136 : vector<2x8x32xf32>
    %c16_i32_139 = arith.constant 16 : i32
    %138 = vector.broadcast %c16_i32_139 : i32 to vector<1x1x32xi32>
    %139 = arith.cmpi sge, %78, %138 : vector<1x1x32xi32>
    %c24_i32 = arith.constant 24 : i32
    %140 = vector.broadcast %c24_i32 : i32 to vector<1x1x32xi32>
    %141 = arith.cmpi slt, %78, %140 : vector<1x1x32xi32>
    %142 = arith.andi %139, %141 : vector<1x1x32xi1>
    %cst_140 = arith.constant 1.000000e+00 : f32
    %cst_141 = arith.constant 0.000000e+00 : f32
    %143 = vector.broadcast %cst_140 : f32 to vector<1x1x32xf32>
    %144 = vector.broadcast %cst_141 : f32 to vector<1x1x32xf32>
    %145 = arith.select %142, %143, %144 : vector<1x1x32xi1>, vector<1x1x32xf32>
    %cst_142 = arith.constant 0.353553385 : f32
    %146 = vector.broadcast %cst_142 : f32 to vector<1x1x32xf32>
    %147 = arith.mulf %145, %146 : vector<1x1x32xf32>
    %148 = vector.broadcast %147 : vector<1x1x32xf32> to vector<2x8x32xf32>
    %149 = arith.mulf %67, %148 : vector<2x8x32xf32>
    "tpu.trace_start"() <{level = 10 : i32, message = "bld,bsd->bls"}> : () -> ()
    %cst_143 = arith.constant dense<0.000000e+00> : vector<2x8x8xf32>
    %150 = tpu.matmul %149, %72, %cst_143 {dimension_numbers = #tpu.dot_dimension_numbers<[2], [2], [1], [1], [0, 0, 0, 1, 1, 1], [0], [0]>} : vector<2x8x32xf32>, vector<2x8x32xf32>, vector<2x8x8xf32> -> vector<2x8x8xf32>
    "tpu.trace_stop"() : () -> ()
    %151 = vector.broadcast %4 : vector<1x8x8xf32> to vector<2x8x8xf32>
    %152 = arith.addf %150, %151 : vector<2x8x8xf32>
    %cst_144 = arith.constant dense<0xFF800000> : vector<2x8xf32>
    %153 = vector.multi_reduction <maximumf>, %152, %cst_144 [2] : vector<2x8x8xf32> to vector<2x8xf32>
    %154 = vector.shape_cast %153 : vector<2x8xf32> to vector<2x8x1xf32>
    %155 = vector.broadcast %154 : vector<2x8x1xf32> to vector<2x8x8xf32>
    %156 = arith.subf %152, %155 : vector<2x8x8xf32>
    %157 = math.exp %156 : vector<2x8x8xf32>
    %cst_145 = arith.constant dense<0.000000e+00> : vector<2x8xf32>
    %158 = vector.multi_reduction <add>, %157, %cst_145 [2] : vector<2x8x8xf32> to vector<2x8xf32>
    %159 = vector.shape_cast %158 : vector<2x8xf32> to vector<2x8x1xf32>
    %160 = tpu.reciprocal %159 {approx = true} : vector<2x8x1xf32> -> vector<2x8x1xf32>
    %161 = vector.broadcast %160 : vector<2x8x1xf32> to vector<2x8x8xf32>
    %162 = arith.mulf %157, %161 : vector<2x8x8xf32>
    %163 = vector.broadcast %145 : vector<1x1x32xf32> to vector<2x8x32xf32>
    %164 = arith.mulf %77, %163 : vector<2x8x32xf32>
    "tpu.trace_start"() <{level = 10 : i32, message = "bls,bsd->bld"}> : () -> ()
    %cst_146 = arith.constant dense<0.000000e+00> : vector<2x8x32xf32>
    %165 = tpu.matmul %162, %164, %cst_146 {dimension_numbers = #tpu.dot_dimension_numbers<[2], [1], [1], [2], [0, 0, 0, 1, 1, 2], [0], [0]>} : vector<2x8x8xf32>, vector<2x8x32xf32>, vector<2x8x32xf32> -> vector<2x8x32xf32>
    "tpu.trace_stop"() : () -> ()
    %166 = arith.addf %137, %165 : vector<2x8x32xf32>
    %c24_i32_147 = arith.constant 24 : i32
    %167 = vector.broadcast %c24_i32_147 : i32 to vector<1x1x32xi32>
    %168 = arith.cmpi sge, %78, %167 : vector<1x1x32xi32>
    %c32_i32 = arith.constant 32 : i32
    %169 = vector.broadcast %c32_i32 : i32 to vector<1x1x32xi32>
    %170 = arith.cmpi slt, %78, %169 : vector<1x1x32xi32>
    %171 = arith.andi %168, %170 : vector<1x1x32xi1>
    %cst_148 = arith.constant 1.000000e+00 : f32
    %cst_149 = arith.constant 0.000000e+00 : f32
    %172 = vector.broadcast %cst_148 : f32 to vector<1x1x32xf32>
    %173 = vector.broadcast %cst_149 : f32 to vector<1x1x32xf32>
    %174 = arith.select %171, %172, %173 : vector<1x1x32xi1>, vector<1x1x32xf32>
    %cst_150 = arith.constant 0.353553385 : f32
    %175 = vector.broadcast %cst_150 : f32 to vector<1x1x32xf32>
    %176 = arith.mulf %174, %175 : vector<1x1x32xf32>
    %177 = vector.broadcast %176 : vector<1x1x32xf32> to vector<2x8x32xf32>
    %178 = arith.mulf %67, %177 : vector<2x8x32xf32>
    "tpu.trace_start"() <{level = 10 : i32, message = "bld,bsd->bls"}> : () -> ()
    %cst_151 = arith.constant dense<0.000000e+00> : vector<2x8x8xf32>
    %179 = tpu.matmul %178, %72, %cst_151 {dimension_numbers = #tpu.dot_dimension_numbers<[2], [2], [1], [1], [0, 0, 0, 1, 1, 1], [0], [0]>} : vector<2x8x32xf32>, vector<2x8x32xf32>, vector<2x8x8xf32> -> vector<2x8x8xf32>
    "tpu.trace_stop"() : () -> ()
    %180 = vector.broadcast %4 : vector<1x8x8xf32> to vector<2x8x8xf32>
    %181 = arith.addf %179, %180 : vector<2x8x8xf32>
    %cst_152 = arith.constant dense<0xFF800000> : vector<2x8xf32>
    %182 = vector.multi_reduction <maximumf>, %181, %cst_152 [2] : vector<2x8x8xf32> to vector<2x8xf32>
    %183 = vector.shape_cast %182 : vector<2x8xf32> to vector<2x8x1xf32>
    %184 = vector.broadcast %183 : vector<2x8x1xf32> to vector<2x8x8xf32>
    %185 = arith.subf %181, %184 : vector<2x8x8xf32>
    %186 = math.exp %185 : vector<2x8x8xf32>
    %cst_153 = arith.constant dense<0.000000e+00> : vector<2x8xf32>
    %187 = vector.multi_reduction <add>, %186, %cst_153 [2] : vector<2x8x8xf32> to vector<2x8xf32>
    %188 = vector.shape_cast %187 : vector<2x8xf32> to vector<2x8x1xf32>
    %189 = tpu.reciprocal %188 {approx = true} : vector<2x8x1xf32> -> vector<2x8x1xf32>
    %190 = vector.broadcast %189 : vector<2x8x1xf32> to vector<2x8x8xf32>
    %191 = arith.mulf %186, %190 : vector<2x8x8xf32>
    %192 = vector.broadcast %174 : vector<1x1x32xf32> to vector<2x8x32xf32>
    %193 = arith.mulf %77, %192 : vector<2x8x32xf32>
    "tpu.trace_start"() <{level = 10 : i32, message = "bls,bsd->bld"}> : () -> ()
    %cst_154 = arith.constant dense<0.000000e+00> : vector<2x8x32xf32>
    %194 = tpu.matmul %191, %193, %cst_154 {dimension_numbers = #tpu.dot_dimension_numbers<[2], [1], [1], [2], [0, 0, 0, 1, 1, 2], [0], [0]>} : vector<2x8x8xf32>, vector<2x8x32xf32>, vector<2x8x32xf32> -> vector<2x8x32xf32>
    "tpu.trace_stop"() : () -> ()
    %195 = arith.addf %166, %194 : vector<2x8x32xf32>
    %196 = vector.shape_cast %195 : vector<2x8x32xf32> to vector<16x32xf32>
    %cst_155 = arith.constant dense<0.000000e+00> : vector<16x32xf32>
    %197 = tpu.matmul %196, %12, %cst_155 {dimension_numbers = #tpu.dot_dimension_numbers<[1], [0], [0], [1], [0, 0, 1, 1], [], []>} : vector<16x32xf32>, vector<32x32xf32>, vector<16x32xf32> -> vector<16x32xf32>
    %198 = vector.broadcast %13 : vector<1x32xf32> to vector<16x32xf32>
    %199 = arith.addf %197, %198 : vector<16x32xf32>
    %200 = vector.shape_cast %0 : vector<2x8x32xf32> to vector<16x32xf32>
    %201 = arith.addf %200, %199 : vector<16x32xf32>
    %cst_156 = arith.constant dense<0.000000e+00> : vector<16xf32>
    %202 = vector.multi_reduction <add>, %201, %cst_156 [1] : vector<16x32xf32> to vector<16xf32>
    %203 = vector.shape_cast %202 : vector<16xf32> to vector<16x1xf32>
    %cst_157 = arith.constant 3.200000e+01 : f32
    %204 = vector.broadcast %cst_157 : f32 to vector<16x1xf32>
    %205 = arith.divf %203, %204 : vector<16x1xf32>
    %206 = arith.mulf %201, %201 : vector<16x32xf32>
    %cst_158 = arith.constant dense<0.000000e+00> : vector<16xf32>
    %207 = vector.multi_reduction <add>, %206, %cst_158 [1] : vector<16x32xf32> to vector<16xf32>
    %208 = vector.shape_cast %207 : vector<16xf32> to vector<16x1xf32>
    %cst_159 = arith.constant 3.200000e+01 : f32
    %209 = vector.broadcast %cst_159 : f32 to vector<16x1xf32>
    %210 = arith.divf %208, %209 : vector<16x1xf32>
    %211 = arith.mulf %205, %205 : vector<16x1xf32>
    %212 = arith.subf %210, %211 : vector<16x1xf32>
    %213 = vector.broadcast %205 : vector<16x1xf32> to vector<16x32xf32>
    %214 = arith.subf %201, %213 : vector<16x32xf32>
    %cst_160 = arith.constant 9.99999974E-6 : f32
    %215 = vector.broadcast %cst_160 : f32 to vector<16x1xf32>
    %216 = arith.addf %212, %215 : vector<16x1xf32>
    %217 = math.rsqrt %216 : vector<16x1xf32>
    %218 = vector.broadcast %217 : vector<16x1xf32> to vector<16x32xf32>
    %219 = arith.mulf %214, %218 : vector<16x32xf32>
    %220 = vector.broadcast %14 : vector<1x32xf32> to vector<16x32xf32>
    %221 = arith.mulf %219, %220 : vector<16x32xf32>
    %222 = vector.broadcast %15 : vector<1x32xf32> to vector<16x32xf32>
    %223 = arith.addf %221, %222 : vector<16x32xf32>
    %224 = vector.shape_cast %223 : vector<16x32xf32> to vector<2x8x32xf32>
    %225 = arith.addf %224, %3 : vector<2x8x32xf32>
    %226 = arith.addf %224, %3 : vector<2x8x32xf32>
    %227 = vector.shape_cast %225 : vector<2x8x32xf32> to vector<16x32xf32>
    %cst_161 = arith.constant dense<0.000000e+00> : vector<16x32xf32>
    %228 = tpu.matmul %227, %16, %cst_161 {dimension_numbers = #tpu.dot_dimension_numbers<[1], [0], [0], [1], [0, 0, 1, 1], [], []>} : vector<16x32xf32>, vector<32x32xf32>, vector<16x32xf32> -> vector<16x32xf32>
    %229 = vector.broadcast %19 : vector<1x32xf32> to vector<16x32xf32>
    %230 = arith.addf %228, %229 : vector<16x32xf32>
    %231 = vector.shape_cast %230 : vector<16x32xf32> to vector<2x8x32xf32>
    %232 = vector.shape_cast %226 : vector<2x8x32xf32> to vector<16x32xf32>
    %cst_162 = arith.constant dense<0.000000e+00> : vector<16x32xf32>
    %233 = tpu.matmul %232, %17, %cst_162 {dimension_numbers = #tpu.dot_dimension_numbers<[1], [0], [0], [1], [0, 0, 1, 1], [], []>} : vector<16x32xf32>, vector<32x32xf32>, vector<16x32xf32> -> vector<16x32xf32>
    %234 = vector.broadcast %20 : vector<1x32xf32> to vector<16x32xf32>
    %235 = arith.addf %233, %234 : vector<16x32xf32>
    %236 = vector.shape_cast %235 : vector<16x32xf32> to vector<2x8x32xf32>
    %237 = vector.shape_cast %224 : vector<2x8x32xf32> to vector<16x32xf32>
    %cst_163 = arith.constant dense<0.000000e+00> : vector<16x32xf32>
    %238 = tpu.matmul %237, %18, %cst_163 {dimension_numbers = #tpu.dot_dimension_numbers<[1], [0], [0], [1], [0, 0, 1, 1], [], []>} : vector<16x32xf32>, vector<32x32xf32>, vector<16x32xf32> -> vector<16x32xf32>
    %239 = vector.broadcast %21 : vector<1x32xf32> to vector<16x32xf32>
    %240 = arith.addf %238, %239 : vector<16x32xf32>
    %241 = vector.shape_cast %240 : vector<16x32xf32> to vector<2x8x32xf32>
    %242 = tpu.iota {dimensions = array<i32: 2>} : vector<1x1x32xi32>
    %cst_164 = arith.constant 0.000000e+00 : f32
    %243 = vector.broadcast %cst_164 : f32 to vector<2x8x32xf32>
    %c0_i32_165 = arith.constant 0 : i32
    %244 = vector.broadcast %c0_i32_165 : i32 to vector<1x1x32xi32>
    %245 = arith.cmpi sge, %242, %244 : vector<1x1x32xi32>
    %c8_i32_166 = arith.constant 8 : i32
    %246 = vector.broadcast %c8_i32_166 : i32 to vector<1x1x32xi32>
    %247 = arith.cmpi slt, %242, %246 : vector<1x1x32xi32>
    %248 = arith.andi %245, %247 : vector<1x1x32xi1>
    %cst_167 = arith.constant 1.000000e+00 : f32
    %cst_168 = arith.constant 0.000000e+00 : f32
    %249 = vector.broadcast %cst_167 : f32 to vector<1x1x32xf32>
    %250 = vector.broadcast %cst_168 : f32 to vector<1x1x32xf32>
    %251 = arith.select %248, %249, %250 : vector<1x1x32xi1>, vector<1x1x32xf32>
    %cst_169 = arith.constant 0.353553385 : f32
    %252 = vector.broadcast %cst_169 : f32 to vector<1x1x32xf32>
    %253 = arith.mulf %251, %252 : vector<1x1x32xf32>
    %254 = vector.broadcast %253 : vector<1x1x32xf32> to vector<2x8x32xf32>
    %255 = arith.mulf %231, %254 : vector<2x8x32xf32>
    "tpu.trace_start"() <{level = 10 : i32, message = "bld,bsd->bls"}> : () -> ()
    %cst_170 = arith.constant dense<0.000000e+00> : vector<2x8x8xf32>
    %256 = tpu.matmul %255, %236, %cst_170 {dimension_numbers = #tpu.dot_dimension_numbers<[2], [2], [1], [1], [0, 0, 0, 1, 1, 1], [0], [0]>} : vector<2x8x32xf32>, vector<2x8x32xf32>, vector<2x8x8xf32> -> vector<2x8x8xf32>
    "tpu.trace_stop"() : () -> ()
    %257 = vector.broadcast %5 : vector<1x8x8xf32> to vector<2x8x8xf32>
    %258 = arith.addf %256, %257 : vector<2x8x8xf32>
    %cst_171 = arith.constant dense<0xFF800000> : vector<2x8xf32>
    %259 = vector.multi_reduction <maximumf>, %258, %cst_171 [2] : vector<2x8x8xf32> to vector<2x8xf32>
    %260 = vector.shape_cast %259 : vector<2x8xf32> to vector<2x8x1xf32>
    %261 = vector.broadcast %260 : vector<2x8x1xf32> to vector<2x8x8xf32>
    %262 = arith.subf %258, %261 : vector<2x8x8xf32>
    %263 = math.exp %262 : vector<2x8x8xf32>
    %cst_172 = arith.constant dense<0.000000e+00> : vector<2x8xf32>
    %264 = vector.multi_reduction <add>, %263, %cst_172 [2] : vector<2x8x8xf32> to vector<2x8xf32>
    %265 = vector.shape_cast %264 : vector<2x8xf32> to vector<2x8x1xf32>
    %266 = tpu.reciprocal %265 {approx = true} : vector<2x8x1xf32> -> vector<2x8x1xf32>
    %267 = vector.broadcast %266 : vector<2x8x1xf32> to vector<2x8x8xf32>
    %268 = arith.mulf %263, %267 : vector<2x8x8xf32>
    %269 = vector.broadcast %251 : vector<1x1x32xf32> to vector<2x8x32xf32>
    %270 = arith.mulf %241, %269 : vector<2x8x32xf32>
    "tpu.trace_start"() <{level = 10 : i32, message = "bls,bsd->bld"}> : () -> ()
    %cst_173 = arith.constant dense<0.000000e+00> : vector<2x8x32xf32>
    %271 = tpu.matmul %268, %270, %cst_173 {dimension_numbers = #tpu.dot_dimension_numbers<[2], [1], [1], [2], [0, 0, 0, 1, 1, 2], [0], [0]>} : vector<2x8x8xf32>, vector<2x8x32xf32>, vector<2x8x32xf32> -> vector<2x8x32xf32>
    "tpu.trace_stop"() : () -> ()
    %272 = arith.addf %243, %271 : vector<2x8x32xf32>
    %c8_i32_174 = arith.constant 8 : i32
    %273 = vector.broadcast %c8_i32_174 : i32 to vector<1x1x32xi32>
    %274 = arith.cmpi sge, %242, %273 : vector<1x1x32xi32>
    %c16_i32_175 = arith.constant 16 : i32
    %275 = vector.broadcast %c16_i32_175 : i32 to vector<1x1x32xi32>
    %276 = arith.cmpi slt, %242, %275 : vector<1x1x32xi32>
    %277 = arith.andi %274, %276 : vector<1x1x32xi1>
    %cst_176 = arith.constant 1.000000e+00 : f32
    %cst_177 = arith.constant 0.000000e+00 : f32
    %278 = vector.broadcast %cst_176 : f32 to vector<1x1x32xf32>
    %279 = vector.broadcast %cst_177 : f32 to vector<1x1x32xf32>
    %280 = arith.select %277, %278, %279 : vector<1x1x32xi1>, vector<1x1x32xf32>
    %cst_178 = arith.constant 0.353553385 : f32
    %281 = vector.broadcast %cst_178 : f32 to vector<1x1x32xf32>
    %282 = arith.mulf %280, %281 : vector<1x1x32xf32>
    %283 = vector.broadcast %282 : vector<1x1x32xf32> to vector<2x8x32xf32>
    %284 = arith.mulf %231, %283 : vector<2x8x32xf32>
    "tpu.trace_start"() <{level = 10 : i32, message = "bld,bsd->bls"}> : () -> ()
    %cst_179 = arith.constant dense<0.000000e+00> : vector<2x8x8xf32>
    %285 = tpu.matmul %284, %236, %cst_179 {dimension_numbers = #tpu.dot_dimension_numbers<[2], [2], [1], [1], [0, 0, 0, 1, 1, 1], [0], [0]>} : vector<2x8x32xf32>, vector<2x8x32xf32>, vector<2x8x8xf32> -> vector<2x8x8xf32>
    "tpu.trace_stop"() : () -> ()
    %286 = vector.broadcast %5 : vector<1x8x8xf32> to vector<2x8x8xf32>
    %287 = arith.addf %285, %286 : vector<2x8x8xf32>
    %cst_180 = arith.constant dense<0xFF800000> : vector<2x8xf32>
    %288 = vector.multi_reduction <maximumf>, %287, %cst_180 [2] : vector<2x8x8xf32> to vector<2x8xf32>
    %289 = vector.shape_cast %288 : vector<2x8xf32> to vector<2x8x1xf32>
    %290 = vector.broadcast %289 : vector<2x8x1xf32> to vector<2x8x8xf32>
    %291 = arith.subf %287, %290 : vector<2x8x8xf32>
    %292 = math.exp %291 : vector<2x8x8xf32>
    %cst_181 = arith.constant dense<0.000000e+00> : vector<2x8xf32>
    %293 = vector.multi_reduction <add>, %292, %cst_181 [2] : vector<2x8x8xf32> to vector<2x8xf32>
    %294 = vector.shape_cast %293 : vector<2x8xf32> to vector<2x8x1xf32>
    %295 = tpu.reciprocal %294 {approx = true} : vector<2x8x1xf32> -> vector<2x8x1xf32>
    %296 = vector.broadcast %295 : vector<2x8x1xf32> to vector<2x8x8xf32>
    %297 = arith.mulf %292, %296 : vector<2x8x8xf32>
    %298 = vector.broadcast %280 : vector<1x1x32xf32> to vector<2x8x32xf32>
    %299 = arith.mulf %241, %298 : vector<2x8x32xf32>
    "tpu.trace_start"() <{level = 10 : i32, message = "bls,bsd->bld"}> : () -> ()
    %cst_182 = arith.constant dense<0.000000e+00> : vector<2x8x32xf32>
    %300 = tpu.matmul %297, %299, %cst_182 {dimension_numbers = #tpu.dot_dimension_numbers<[2], [1], [1], [2], [0, 0, 0, 1, 1, 2], [0], [0]>} : vector<2x8x8xf32>, vector<2x8x32xf32>, vector<2x8x32xf32> -> vector<2x8x32xf32>
    "tpu.trace_stop"() : () -> ()
    %301 = arith.addf %272, %300 : vector<2x8x32xf32>
    %c16_i32_183 = arith.constant 16 : i32
    %302 = vector.broadcast %c16_i32_183 : i32 to vector<1x1x32xi32>
    %303 = arith.cmpi sge, %242, %302 : vector<1x1x32xi32>
    %c24_i32_184 = arith.constant 24 : i32
    %304 = vector.broadcast %c24_i32_184 : i32 to vector<1x1x32xi32>
    %305 = arith.cmpi slt, %242, %304 : vector<1x1x32xi32>
    %306 = arith.andi %303, %305 : vector<1x1x32xi1>
    %cst_185 = arith.constant 1.000000e+00 : f32
    %cst_186 = arith.constant 0.000000e+00 : f32
    %307 = vector.broadcast %cst_185 : f32 to vector<1x1x32xf32>
    %308 = vector.broadcast %cst_186 : f32 to vector<1x1x32xf32>
    %309 = arith.select %306, %307, %308 : vector<1x1x32xi1>, vector<1x1x32xf32>
    %cst_187 = arith.constant 0.353553385 : f32
    %310 = vector.broadcast %cst_187 : f32 to vector<1x1x32xf32>
    %311 = arith.mulf %309, %310 : vector<1x1x32xf32>
    %312 = vector.broadcast %311 : vector<1x1x32xf32> to vector<2x8x32xf32>
    %313 = arith.mulf %231, %312 : vector<2x8x32xf32>
    "tpu.trace_start"() <{level = 10 : i32, message = "bld,bsd->bls"}> : () -> ()
    %cst_188 = arith.constant dense<0.000000e+00> : vector<2x8x8xf32>
    %314 = tpu.matmul %313, %236, %cst_188 {dimension_numbers = #tpu.dot_dimension_numbers<[2], [2], [1], [1], [0, 0, 0, 1, 1, 1], [0], [0]>} : vector<2x8x32xf32>, vector<2x8x32xf32>, vector<2x8x8xf32> -> vector<2x8x8xf32>
    "tpu.trace_stop"() : () -> ()
    %315 = vector.broadcast %5 : vector<1x8x8xf32> to vector<2x8x8xf32>
    %316 = arith.addf %314, %315 : vector<2x8x8xf32>
    %cst_189 = arith.constant dense<0xFF800000> : vector<2x8xf32>
    %317 = vector.multi_reduction <maximumf>, %316, %cst_189 [2] : vector<2x8x8xf32> to vector<2x8xf32>
    %318 = vector.shape_cast %317 : vector<2x8xf32> to vector<2x8x1xf32>
    %319 = vector.broadcast %318 : vector<2x8x1xf32> to vector<2x8x8xf32>
    %320 = arith.subf %316, %319 : vector<2x8x8xf32>
    %321 = math.exp %320 : vector<2x8x8xf32>
    %cst_190 = arith.constant dense<0.000000e+00> : vector<2x8xf32>
    %322 = vector.multi_reduction <add>, %321, %cst_190 [2] : vector<2x8x8xf32> to vector<2x8xf32>
    %323 = vector.shape_cast %322 : vector<2x8xf32> to vector<2x8x1xf32>
    %324 = tpu.reciprocal %323 {approx = true} : vector<2x8x1xf32> -> vector<2x8x1xf32>
    %325 = vector.broadcast %324 : vector<2x8x1xf32> to vector<2x8x8xf32>
    %326 = arith.mulf %321, %325 : vector<2x8x8xf32>
    %327 = vector.broadcast %309 : vector<1x1x32xf32> to vector<2x8x32xf32>
    %328 = arith.mulf %241, %327 : vector<2x8x32xf32>
    "tpu.trace_start"() <{level = 10 : i32, message = "bls,bsd->bld"}> : () -> ()
    %cst_191 = arith.constant dense<0.000000e+00> : vector<2x8x32xf32>
    %329 = tpu.matmul %326, %328, %cst_191 {dimension_numbers = #tpu.dot_dimension_numbers<[2], [1], [1], [2], [0, 0, 0, 1, 1, 2], [0], [0]>} : vector<2x8x8xf32>, vector<2x8x32xf32>, vector<2x8x32xf32> -> vector<2x8x32xf32>
    "tpu.trace_stop"() : () -> ()
    %330 = arith.addf %301, %329 : vector<2x8x32xf32>
    %c24_i32_192 = arith.constant 24 : i32
    %331 = vector.broadcast %c24_i32_192 : i32 to vector<1x1x32xi32>
    %332 = arith.cmpi sge, %242, %331 : vector<1x1x32xi32>
    %c32_i32_193 = arith.constant 32 : i32
    %333 = vector.broadcast %c32_i32_193 : i32 to vector<1x1x32xi32>
    %334 = arith.cmpi slt, %242, %333 : vector<1x1x32xi32>
    %335 = arith.andi %332, %334 : vector<1x1x32xi1>
    %cst_194 = arith.constant 1.000000e+00 : f32
    %cst_195 = arith.constant 0.000000e+00 : f32
    %336 = vector.broadcast %cst_194 : f32 to vector<1x1x32xf32>
    %337 = vector.broadcast %cst_195 : f32 to vector<1x1x32xf32>
    %338 = arith.select %335, %336, %337 : vector<1x1x32xi1>, vector<1x1x32xf32>
    %cst_196 = arith.constant 0.353553385 : f32
    %339 = vector.broadcast %cst_196 : f32 to vector<1x1x32xf32>
    %340 = arith.mulf %338, %339 : vector<1x1x32xf32>
    %341 = vector.broadcast %340 : vector<1x1x32xf32> to vector<2x8x32xf32>
    %342 = arith.mulf %231, %341 : vector<2x8x32xf32>
    "tpu.trace_start"() <{level = 10 : i32, message = "bld,bsd->bls"}> : () -> ()
    %cst_197 = arith.constant dense<0.000000e+00> : vector<2x8x8xf32>
    %343 = tpu.matmul %342, %236, %cst_197 {dimension_numbers = #tpu.dot_dimension_numbers<[2], [2], [1], [1], [0, 0, 0, 1, 1, 1], [0], [0]>} : vector<2x8x32xf32>, vector<2x8x32xf32>, vector<2x8x8xf32> -> vector<2x8x8xf32>
    "tpu.trace_stop"() : () -> ()
    %344 = vector.broadcast %5 : vector<1x8x8xf32> to vector<2x8x8xf32>
    %345 = arith.addf %343, %344 : vector<2x8x8xf32>
    %cst_198 = arith.constant dense<0xFF800000> : vector<2x8xf32>
    %346 = vector.multi_reduction <maximumf>, %345, %cst_198 [2] : vector<2x8x8xf32> to vector<2x8xf32>
    %347 = vector.shape_cast %346 : vector<2x8xf32> to vector<2x8x1xf32>
    %348 = vector.broadcast %347 : vector<2x8x1xf32> to vector<2x8x8xf32>
    %349 = arith.subf %345, %348 : vector<2x8x8xf32>
    %350 = math.exp %349 : vector<2x8x8xf32>
    %cst_199 = arith.constant dense<0.000000e+00> : vector<2x8xf32>
    %351 = vector.multi_reduction <add>, %350, %cst_199 [2] : vector<2x8x8xf32> to vector<2x8xf32>
    %352 = vector.shape_cast %351 : vector<2x8xf32> to vector<2x8x1xf32>
    %353 = tpu.reciprocal %352 {approx = true} : vector<2x8x1xf32> -> vector<2x8x1xf32>
    %354 = vector.broadcast %353 : vector<2x8x1xf32> to vector<2x8x8xf32>
    %355 = arith.mulf %350, %354 : vector<2x8x8xf32>
    %356 = vector.broadcast %338 : vector<1x1x32xf32> to vector<2x8x32xf32>
    %357 = arith.mulf %241, %356 : vector<2x8x32xf32>
    "tpu.trace_start"() <{level = 10 : i32, message = "bls,bsd->bld"}> : () -> ()
    %cst_200 = arith.constant dense<0.000000e+00> : vector<2x8x32xf32>
    %358 = tpu.matmul %355, %357, %cst_200 {dimension_numbers = #tpu.dot_dimension_numbers<[2], [1], [1], [2], [0, 0, 0, 1, 1, 2], [0], [0]>} : vector<2x8x8xf32>, vector<2x8x32xf32>, vector<2x8x32xf32> -> vector<2x8x32xf32>
    "tpu.trace_stop"() : () -> ()
    %359 = arith.addf %330, %358 : vector<2x8x32xf32>
    %360 = vector.shape_cast %359 : vector<2x8x32xf32> to vector<16x32xf32>
    %cst_201 = arith.constant dense<0.000000e+00> : vector<16x32xf32>
    %361 = tpu.matmul %360, %22, %cst_201 {dimension_numbers = #tpu.dot_dimension_numbers<[1], [0], [0], [1], [0, 0, 1, 1], [], []>} : vector<16x32xf32>, vector<32x32xf32>, vector<16x32xf32> -> vector<16x32xf32>
    %362 = vector.broadcast %23 : vector<1x32xf32> to vector<16x32xf32>
    %363 = arith.addf %361, %362 : vector<16x32xf32>
    %364 = vector.shape_cast %224 : vector<2x8x32xf32> to vector<16x32xf32>
    %365 = arith.addf %364, %363 : vector<16x32xf32>
    %cst_202 = arith.constant dense<0.000000e+00> : vector<16xf32>
    %366 = vector.multi_reduction <add>, %365, %cst_202 [1] : vector<16x32xf32> to vector<16xf32>
    %367 = vector.shape_cast %366 : vector<16xf32> to vector<16x1xf32>
    %cst_203 = arith.constant 3.200000e+01 : f32
    %368 = vector.broadcast %cst_203 : f32 to vector<16x1xf32>
    %369 = arith.divf %367, %368 : vector<16x1xf32>
    %370 = arith.mulf %365, %365 : vector<16x32xf32>
    %cst_204 = arith.constant dense<0.000000e+00> : vector<16xf32>
    %371 = vector.multi_reduction <add>, %370, %cst_204 [1] : vector<16x32xf32> to vector<16xf32>
    %372 = vector.shape_cast %371 : vector<16xf32> to vector<16x1xf32>
    %cst_205 = arith.constant 3.200000e+01 : f32
    %373 = vector.broadcast %cst_205 : f32 to vector<16x1xf32>
    %374 = arith.divf %372, %373 : vector<16x1xf32>
    %375 = arith.mulf %369, %369 : vector<16x1xf32>
    %376 = arith.subf %374, %375 : vector<16x1xf32>
    %377 = vector.broadcast %369 : vector<16x1xf32> to vector<16x32xf32>
    %378 = arith.subf %365, %377 : vector<16x32xf32>
    %cst_206 = arith.constant 9.99999974E-6 : f32
    %379 = vector.broadcast %cst_206 : f32 to vector<16x1xf32>
    %380 = arith.addf %376, %379 : vector<16x1xf32>
    %381 = math.rsqrt %380 : vector<16x1xf32>
    %382 = vector.broadcast %381 : vector<16x1xf32> to vector<16x32xf32>
    %383 = arith.mulf %378, %382 : vector<16x32xf32>
    %384 = vector.broadcast %24 : vector<1x32xf32> to vector<16x32xf32>
    %385 = arith.mulf %383, %384 : vector<16x32xf32>
    %386 = vector.broadcast %25 : vector<1x32xf32> to vector<16x32xf32>
    %387 = arith.addf %385, %386 : vector<16x32xf32>
    %388 = vector.shape_cast %387 : vector<16x32xf32> to vector<2x8x32xf32>
    %389 = vector.shape_cast %388 : vector<2x8x32xf32> to vector<16x32xf32>
    %cst_207 = arith.constant dense<0.000000e+00> : vector<16x64xf32>
    %390 = tpu.matmul %389, %26, %cst_207 {dimension_numbers = #tpu.dot_dimension_numbers<[1], [0], [0], [1], [0, 0, 1, 1], [], []>} : vector<16x32xf32>, vector<32x64xf32>, vector<16x64xf32> -> vector<16x64xf32>
    %391 = vector.broadcast %27 : vector<1x64xf32> to vector<16x64xf32>
    %392 = arith.addf %390, %391 : vector<16x64xf32>
    %cst_208 = arith.constant 0.000000e+00 : f32
    %393 = vector.broadcast %cst_208 : f32 to vector<16x64xf32>
    %394 = arith.maximumf %392, %393 : vector<16x64xf32>
    %cst_209 = arith.constant dense<0.000000e+00> : vector<16x32xf32>
    %395 = tpu.matmul %394, %28, %cst_209 {dimension_numbers = #tpu.dot_dimension_numbers<[1], [0], [0], [1], [0, 0, 1, 1], [], []>} : vector<16x64xf32>, vector<64x32xf32>, vector<16x32xf32> -> vector<16x32xf32>
    %396 = vector.broadcast %29 : vector<1x32xf32> to vector<16x32xf32>
    %397 = arith.addf %395, %396 : vector<16x32xf32>
    %398 = arith.addf %389, %397 : vector<16x32xf32>
    %cst_210 = arith.constant dense<0.000000e+00> : vector<16xf32>
    %399 = vector.multi_reduction <add>, %398, %cst_210 [1] : vector<16x32xf32> to vector<16xf32>
    %400 = vector.shape_cast %399 : vector<16xf32> to vector<16x1xf32>
    %cst_211 = arith.constant 3.200000e+01 : f32
    %401 = vector.broadcast %cst_211 : f32 to vector<16x1xf32>
    %402 = arith.divf %400, %401 : vector<16x1xf32>
    %403 = arith.mulf %398, %398 : vector<16x32xf32>
    %cst_212 = arith.constant dense<0.000000e+00> : vector<16xf32>
    %404 = vector.multi_reduction <add>, %403, %cst_212 [1] : vector<16x32xf32> to vector<16xf32>
    %405 = vector.shape_cast %404 : vector<16xf32> to vector<16x1xf32>
    %cst_213 = arith.constant 3.200000e+01 : f32
    %406 = vector.broadcast %cst_213 : f32 to vector<16x1xf32>
    %407 = arith.divf %405, %406 : vector<16x1xf32>
    %408 = arith.mulf %402, %402 : vector<16x1xf32>
    %409 = arith.subf %407, %408 : vector<16x1xf32>
    %410 = vector.broadcast %402 : vector<16x1xf32> to vector<16x32xf32>
    %411 = arith.subf %398, %410 : vector<16x32xf32>
    %cst_214 = arith.constant 9.99999974E-6 : f32
    %412 = vector.broadcast %cst_214 : f32 to vector<16x1xf32>
    %413 = arith.addf %409, %412 : vector<16x1xf32>
    %414 = math.rsqrt %413 : vector<16x1xf32>
    %415 = vector.broadcast %414 : vector<16x1xf32> to vector<16x32xf32>
    %416 = arith.mulf %411, %415 : vector<16x32xf32>
    %417 = vector.broadcast %30 : vector<1x32xf32> to vector<16x32xf32>
    %418 = arith.mulf %416, %417 : vector<16x32xf32>
    %419 = vector.broadcast %31 : vector<1x32xf32> to vector<16x32xf32>
    %420 = arith.addf %418, %419 : vector<16x32xf32>
    %421 = vector.shape_cast %420 : vector<16x32xf32> to vector<2x8x32xf32>
    %422 = arith.addf %59, %60 : vector<2x32x8xf32>
    %423 = vector.shape_cast %58 : vector<2x32x8xf32> to vector<64x8xf32>
    %cst_215 = arith.constant dense<0.000000e+00> : vector<64x8xf32>
    %424 = tpu.matmul %423, %32, %cst_215 {dimension_numbers = #tpu.dot_dimension_numbers<[1], [0], [0], [1], [0, 0, 1, 1], [], []>} : vector<64x8xf32>, vector<8x8xf32>, vector<64x8xf32> -> vector<64x8xf32>
    %425 = vector.broadcast %35 : vector<1x8xf32> to vector<64x8xf32>
    %426 = arith.addf %424, %425 : vector<64x8xf32>
    %427 = vector.shape_cast %426 : vector<64x8xf32> to vector<2x32x8xf32>
    %428 = vector.shape_cast %422 : vector<2x32x8xf32> to vector<64x8xf32>
    %cst_216 = arith.constant dense<0.000000e+00> : vector<64x8xf32>
    %429 = tpu.matmul %428, %33, %cst_216 {dimension_numbers = #tpu.dot_dimension_numbers<[1], [0], [0], [1], [0, 0, 1, 1], [], []>} : vector<64x8xf32>, vector<8x8xf32>, vector<64x8xf32> -> vector<64x8xf32>
    %430 = vector.broadcast %36 : vector<1x8xf32> to vector<64x8xf32>
    %431 = arith.addf %429, %430 : vector<64x8xf32>
    %432 = vector.shape_cast %431 : vector<64x8xf32> to vector<2x32x8xf32>
    %433 = vector.shape_cast %59 : vector<2x32x8xf32> to vector<64x8xf32>
    %cst_217 = arith.constant dense<0.000000e+00> : vector<64x8xf32>
    %434 = tpu.matmul %433, %34, %cst_217 {dimension_numbers = #tpu.dot_dimension_numbers<[1], [0], [0], [1], [0, 0, 1, 1], [], []>} : vector<64x8xf32>, vector<8x8xf32>, vector<64x8xf32> -> vector<64x8xf32>
    %435 = vector.broadcast %37 : vector<1x8xf32> to vector<64x8xf32>
    %436 = arith.addf %434, %435 : vector<64x8xf32>
    %437 = vector.shape_cast %436 : vector<64x8xf32> to vector<2x32x8xf32>
    %438 = tpu.iota {dimensions = array<i32: 2>} : vector<1x1x8xi32>
    %cst_218 = arith.constant 0.000000e+00 : f32
    %439 = vector.broadcast %cst_218 : f32 to vector<2x32x8xf32>
    %c0_i32_219 = arith.constant 0 : i32
    %440 = vector.broadcast %c0_i32_219 : i32 to vector<1x1x8xi32>
    %441 = arith.cmpi sge, %438, %440 : vector<1x1x8xi32>
    %c2_i32 = arith.constant 2 : i32
    %442 = vector.broadcast %c2_i32 : i32 to vector<1x1x8xi32>
    %443 = arith.cmpi slt, %438, %442 : vector<1x1x8xi32>
    %444 = arith.andi %441, %443 : vector<1x1x8xi1>
    %cst_220 = arith.constant 1.000000e+00 : f32
    %cst_221 = arith.constant 0.000000e+00 : f32
    %445 = vector.broadcast %cst_220 : f32 to vector<1x1x8xf32>
    %446 = vector.broadcast %cst_221 : f32 to vector<1x1x8xf32>
    %447 = arith.select %444, %445, %446 : vector<1x1x8xi1>, vector<1x1x8xf32>
    %cst_222 = arith.constant 0.707106769 : f32
    %448 = vector.broadcast %cst_222 : f32 to vector<1x1x8xf32>
    %449 = arith.mulf %447, %448 : vector<1x1x8xf32>
    %450 = vector.broadcast %449 : vector<1x1x8xf32> to vector<2x32x8xf32>
    %451 = arith.mulf %427, %450 : vector<2x32x8xf32>
    "tpu.trace_start"() <{level = 10 : i32, message = "bld,bsd->bls"}> : () -> ()
    %cst_223 = arith.constant dense<0.000000e+00> : vector<2x32x32xf32>
    %452 = tpu.matmul %451, %432, %cst_223 {dimension_numbers = #tpu.dot_dimension_numbers<[2], [2], [1], [1], [0, 0, 0, 1, 1, 1], [0], [0]>} : vector<2x32x8xf32>, vector<2x32x8xf32>, vector<2x32x32xf32> -> vector<2x32x32xf32>
    "tpu.trace_stop"() : () -> ()
    %cst_224 = arith.constant dense<0xFF800000> : vector<2x32xf32>
    %453 = vector.multi_reduction <maximumf>, %452, %cst_224 [2] : vector<2x32x32xf32> to vector<2x32xf32>
    %454 = vector.shape_cast %453 : vector<2x32xf32> to vector<2x32x1xf32>
    %455 = vector.broadcast %454 : vector<2x32x1xf32> to vector<2x32x32xf32>
    %456 = arith.subf %452, %455 : vector<2x32x32xf32>
    %457 = math.exp %456 : vector<2x32x32xf32>
    %cst_225 = arith.constant dense<0.000000e+00> : vector<2x32xf32>
    %458 = vector.multi_reduction <add>, %457, %cst_225 [2] : vector<2x32x32xf32> to vector<2x32xf32>
    %459 = vector.shape_cast %458 : vector<2x32xf32> to vector<2x32x1xf32>
    %460 = tpu.reciprocal %459 {approx = true} : vector<2x32x1xf32> -> vector<2x32x1xf32>
    %461 = vector.broadcast %460 : vector<2x32x1xf32> to vector<2x32x32xf32>
    %462 = arith.mulf %457, %461 : vector<2x32x32xf32>
    %463 = vector.broadcast %447 : vector<1x1x8xf32> to vector<2x32x8xf32>
    %464 = arith.mulf %437, %463 : vector<2x32x8xf32>
    "tpu.trace_start"() <{level = 10 : i32, message = "bls,bsd->bld"}> : () -> ()
    %cst_226 = arith.constant dense<0.000000e+00> : vector<2x32x8xf32>
    %465 = tpu.matmul %462, %464, %cst_226 {dimension_numbers = #tpu.dot_dimension_numbers<[2], [1], [1], [2], [0, 0, 0, 1, 1, 2], [0], [0]>} : vector<2x32x32xf32>, vector<2x32x8xf32>, vector<2x32x8xf32> -> vector<2x32x8xf32>
    "tpu.trace_stop"() : () -> ()
    %466 = arith.addf %439, %465 : vector<2x32x8xf32>
    %c2_i32_227 = arith.constant 2 : i32
    %467 = vector.broadcast %c2_i32_227 : i32 to vector<1x1x8xi32>
    %468 = arith.cmpi sge, %438, %467 : vector<1x1x8xi32>
    %c4_i32 = arith.constant 4 : i32
    %469 = vector.broadcast %c4_i32 : i32 to vector<1x1x8xi32>
    %470 = arith.cmpi slt, %438, %469 : vector<1x1x8xi32>
    %471 = arith.andi %468, %470 : vector<1x1x8xi1>
    %cst_228 = arith.constant 1.000000e+00 : f32
    %cst_229 = arith.constant 0.000000e+00 : f32
    %472 = vector.broadcast %cst_228 : f32 to vector<1x1x8xf32>
    %473 = vector.broadcast %cst_229 : f32 to vector<1x1x8xf32>
    %474 = arith.select %471, %472, %473 : vector<1x1x8xi1>, vector<1x1x8xf32>
    %cst_230 = arith.constant 0.707106769 : f32
    %475 = vector.broadcast %cst_230 : f32 to vector<1x1x8xf32>
    %476 = arith.mulf %474, %475 : vector<1x1x8xf32>
    %477 = vector.broadcast %476 : vector<1x1x8xf32> to vector<2x32x8xf32>
    %478 = arith.mulf %427, %477 : vector<2x32x8xf32>
    "tpu.trace_start"() <{level = 10 : i32, message = "bld,bsd->bls"}> : () -> ()
    %cst_231 = arith.constant dense<0.000000e+00> : vector<2x32x32xf32>
    %479 = tpu.matmul %478, %432, %cst_231 {dimension_numbers = #tpu.dot_dimension_numbers<[2], [2], [1], [1], [0, 0, 0, 1, 1, 1], [0], [0]>} : vector<2x32x8xf32>, vector<2x32x8xf32>, vector<2x32x32xf32> -> vector<2x32x32xf32>
    "tpu.trace_stop"() : () -> ()
    %cst_232 = arith.constant dense<0xFF800000> : vector<2x32xf32>
    %480 = vector.multi_reduction <maximumf>, %479, %cst_232 [2] : vector<2x32x32xf32> to vector<2x32xf32>
    %481 = vector.shape_cast %480 : vector<2x32xf32> to vector<2x32x1xf32>
    %482 = vector.broadcast %481 : vector<2x32x1xf32> to vector<2x32x32xf32>
    %483 = arith.subf %479, %482 : vector<2x32x32xf32>
    %484 = math.exp %483 : vector<2x32x32xf32>
    %cst_233 = arith.constant dense<0.000000e+00> : vector<2x32xf32>
    %485 = vector.multi_reduction <add>, %484, %cst_233 [2] : vector<2x32x32xf32> to vector<2x32xf32>
    %486 = vector.shape_cast %485 : vector<2x32xf32> to vector<2x32x1xf32>
    %487 = tpu.reciprocal %486 {approx = true} : vector<2x32x1xf32> -> vector<2x32x1xf32>
    %488 = vector.broadcast %487 : vector<2x32x1xf32> to vector<2x32x32xf32>
    %489 = arith.mulf %484, %488 : vector<2x32x32xf32>
    %490 = vector.broadcast %474 : vector<1x1x8xf32> to vector<2x32x8xf32>
    %491 = arith.mulf %437, %490 : vector<2x32x8xf32>
    "tpu.trace_start"() <{level = 10 : i32, message = "bls,bsd->bld"}> : () -> ()
    %cst_234 = arith.constant dense<0.000000e+00> : vector<2x32x8xf32>
    %492 = tpu.matmul %489, %491, %cst_234 {dimension_numbers = #tpu.dot_dimension_numbers<[2], [1], [1], [2], [0, 0, 0, 1, 1, 2], [0], [0]>} : vector<2x32x32xf32>, vector<2x32x8xf32>, vector<2x32x8xf32> -> vector<2x32x8xf32>
    "tpu.trace_stop"() : () -> ()
    %493 = arith.addf %466, %492 : vector<2x32x8xf32>
    %c4_i32_235 = arith.constant 4 : i32
    %494 = vector.broadcast %c4_i32_235 : i32 to vector<1x1x8xi32>
    %495 = arith.cmpi sge, %438, %494 : vector<1x1x8xi32>
    %c6_i32 = arith.constant 6 : i32
    %496 = vector.broadcast %c6_i32 : i32 to vector<1x1x8xi32>
    %497 = arith.cmpi slt, %438, %496 : vector<1x1x8xi32>
    %498 = arith.andi %495, %497 : vector<1x1x8xi1>
    %cst_236 = arith.constant 1.000000e+00 : f32
    %cst_237 = arith.constant 0.000000e+00 : f32
    %499 = vector.broadcast %cst_236 : f32 to vector<1x1x8xf32>
    %500 = vector.broadcast %cst_237 : f32 to vector<1x1x8xf32>
    %501 = arith.select %498, %499, %500 : vector<1x1x8xi1>, vector<1x1x8xf32>
    %cst_238 = arith.constant 0.707106769 : f32
    %502 = vector.broadcast %cst_238 : f32 to vector<1x1x8xf32>
    %503 = arith.mulf %501, %502 : vector<1x1x8xf32>
    %504 = vector.broadcast %503 : vector<1x1x8xf32> to vector<2x32x8xf32>
    %505 = arith.mulf %427, %504 : vector<2x32x8xf32>
    "tpu.trace_start"() <{level = 10 : i32, message = "bld,bsd->bls"}> : () -> ()
    %cst_239 = arith.constant dense<0.000000e+00> : vector<2x32x32xf32>
    %506 = tpu.matmul %505, %432, %cst_239 {dimension_numbers = #tpu.dot_dimension_numbers<[2], [2], [1], [1], [0, 0, 0, 1, 1, 1], [0], [0]>} : vector<2x32x8xf32>, vector<2x32x8xf32>, vector<2x32x32xf32> -> vector<2x32x32xf32>
    "tpu.trace_stop"() : () -> ()
    %cst_240 = arith.constant dense<0xFF800000> : vector<2x32xf32>
    %507 = vector.multi_reduction <maximumf>, %506, %cst_240 [2] : vector<2x32x32xf32> to vector<2x32xf32>
    %508 = vector.shape_cast %507 : vector<2x32xf32> to vector<2x32x1xf32>
    %509 = vector.broadcast %508 : vector<2x32x1xf32> to vector<2x32x32xf32>
    %510 = arith.subf %506, %509 : vector<2x32x32xf32>
    %511 = math.exp %510 : vector<2x32x32xf32>
    %cst_241 = arith.constant dense<0.000000e+00> : vector<2x32xf32>
    %512 = vector.multi_reduction <add>, %511, %cst_241 [2] : vector<2x32x32xf32> to vector<2x32xf32>
    %513 = vector.shape_cast %512 : vector<2x32xf32> to vector<2x32x1xf32>
    %514 = tpu.reciprocal %513 {approx = true} : vector<2x32x1xf32> -> vector<2x32x1xf32>
    %515 = vector.broadcast %514 : vector<2x32x1xf32> to vector<2x32x32xf32>
    %516 = arith.mulf %511, %515 : vector<2x32x32xf32>
    %517 = vector.broadcast %501 : vector<1x1x8xf32> to vector<2x32x8xf32>
    %518 = arith.mulf %437, %517 : vector<2x32x8xf32>
    "tpu.trace_start"() <{level = 10 : i32, message = "bls,bsd->bld"}> : () -> ()
    %cst_242 = arith.constant dense<0.000000e+00> : vector<2x32x8xf32>
    %519 = tpu.matmul %516, %518, %cst_242 {dimension_numbers = #tpu.dot_dimension_numbers<[2], [1], [1], [2], [0, 0, 0, 1, 1, 2], [0], [0]>} : vector<2x32x32xf32>, vector<2x32x8xf32>, vector<2x32x8xf32> -> vector<2x32x8xf32>
    "tpu.trace_stop"() : () -> ()
    %520 = arith.addf %493, %519 : vector<2x32x8xf32>
    %c6_i32_243 = arith.constant 6 : i32
    %521 = vector.broadcast %c6_i32_243 : i32 to vector<1x1x8xi32>
    %522 = arith.cmpi sge, %438, %521 : vector<1x1x8xi32>
    %c8_i32_244 = arith.constant 8 : i32
    %523 = vector.broadcast %c8_i32_244 : i32 to vector<1x1x8xi32>
    %524 = arith.cmpi slt, %438, %523 : vector<1x1x8xi32>
    %525 = arith.andi %522, %524 : vector<1x1x8xi1>
    %cst_245 = arith.constant 1.000000e+00 : f32
    %cst_246 = arith.constant 0.000000e+00 : f32
    %526 = vector.broadcast %cst_245 : f32 to vector<1x1x8xf32>
    %527 = vector.broadcast %cst_246 : f32 to vector<1x1x8xf32>
    %528 = arith.select %525, %526, %527 : vector<1x1x8xi1>, vector<1x1x8xf32>
    %cst_247 = arith.constant 0.707106769 : f32
    %529 = vector.broadcast %cst_247 : f32 to vector<1x1x8xf32>
    %530 = arith.mulf %528, %529 : vector<1x1x8xf32>
    %531 = vector.broadcast %530 : vector<1x1x8xf32> to vector<2x32x8xf32>
    %532 = arith.mulf %427, %531 : vector<2x32x8xf32>
    "tpu.trace_start"() <{level = 10 : i32, message = "bld,bsd->bls"}> : () -> ()
    %cst_248 = arith.constant dense<0.000000e+00> : vector<2x32x32xf32>
    %533 = tpu.matmul %532, %432, %cst_248 {dimension_numbers = #tpu.dot_dimension_numbers<[2], [2], [1], [1], [0, 0, 0, 1, 1, 1], [0], [0]>} : vector<2x32x8xf32>, vector<2x32x8xf32>, vector<2x32x32xf32> -> vector<2x32x32xf32>
    "tpu.trace_stop"() : () -> ()
    %cst_249 = arith.constant dense<0xFF800000> : vector<2x32xf32>
    %534 = vector.multi_reduction <maximumf>, %533, %cst_249 [2] : vector<2x32x32xf32> to vector<2x32xf32>
    %535 = vector.shape_cast %534 : vector<2x32xf32> to vector<2x32x1xf32>
    %536 = vector.broadcast %535 : vector<2x32x1xf32> to vector<2x32x32xf32>
    %537 = arith.subf %533, %536 : vector<2x32x32xf32>
    %538 = math.exp %537 : vector<2x32x32xf32>
    %cst_250 = arith.constant dense<0.000000e+00> : vector<2x32xf32>
    %539 = vector.multi_reduction <add>, %538, %cst_250 [2] : vector<2x32x32xf32> to vector<2x32xf32>
    %540 = vector.shape_cast %539 : vector<2x32xf32> to vector<2x32x1xf32>
    %541 = tpu.reciprocal %540 {approx = true} : vector<2x32x1xf32> -> vector<2x32x1xf32>
    %542 = vector.broadcast %541 : vector<2x32x1xf32> to vector<2x32x32xf32>
    %543 = arith.mulf %538, %542 : vector<2x32x32xf32>
    %544 = vector.broadcast %528 : vector<1x1x8xf32> to vector<2x32x8xf32>
    %545 = arith.mulf %437, %544 : vector<2x32x8xf32>
    "tpu.trace_start"() <{level = 10 : i32, message = "bls,bsd->bld"}> : () -> ()
    %cst_251 = arith.constant dense<0.000000e+00> : vector<2x32x8xf32>
    %546 = tpu.matmul %543, %545, %cst_251 {dimension_numbers = #tpu.dot_dimension_numbers<[2], [1], [1], [2], [0, 0, 0, 1, 1, 2], [0], [0]>} : vector<2x32x32xf32>, vector<2x32x8xf32>, vector<2x32x8xf32> -> vector<2x32x8xf32>
    "tpu.trace_stop"() : () -> ()
    %547 = arith.addf %520, %546 : vector<2x32x8xf32>
    %548 = vector.shape_cast %547 : vector<2x32x8xf32> to vector<64x8xf32>
    %cst_252 = arith.constant dense<0.000000e+00> : vector<64x8xf32>
    %549 = tpu.matmul %548, %38, %cst_252 {dimension_numbers = #tpu.dot_dimension_numbers<[1], [0], [0], [1], [0, 0, 1, 1], [], []>} : vector<64x8xf32>, vector<8x8xf32>, vector<64x8xf32> -> vector<64x8xf32>
    %550 = vector.broadcast %39 : vector<1x8xf32> to vector<64x8xf32>
    %551 = arith.addf %549, %550 : vector<64x8xf32>
    %552 = vector.shape_cast %58 : vector<2x32x8xf32> to vector<64x8xf32>
    %553 = arith.addf %552, %551 : vector<64x8xf32>
    %cst_253 = arith.constant dense<0.000000e+00> : vector<64xf32>
    %554 = vector.multi_reduction <add>, %553, %cst_253 [1] : vector<64x8xf32> to vector<64xf32>
    %555 = vector.shape_cast %554 : vector<64xf32> to vector<64x1xf32>
    %cst_254 = arith.constant 8.000000e+00 : f32
    %556 = vector.broadcast %cst_254 : f32 to vector<64x1xf32>
    %557 = arith.divf %555, %556 : vector<64x1xf32>
    %558 = arith.mulf %553, %553 : vector<64x8xf32>
    %cst_255 = arith.constant dense<0.000000e+00> : vector<64xf32>
    %559 = vector.multi_reduction <add>, %558, %cst_255 [1] : vector<64x8xf32> to vector<64xf32>
    %560 = vector.shape_cast %559 : vector<64xf32> to vector<64x1xf32>
    %cst_256 = arith.constant 8.000000e+00 : f32
    %561 = vector.broadcast %cst_256 : f32 to vector<64x1xf32>
    %562 = arith.divf %560, %561 : vector<64x1xf32>
    %563 = arith.mulf %557, %557 : vector<64x1xf32>
    %564 = arith.subf %562, %563 : vector<64x1xf32>
    %565 = vector.broadcast %557 : vector<64x1xf32> to vector<64x8xf32>
    %566 = arith.subf %553, %565 : vector<64x8xf32>
    %cst_257 = arith.constant 9.99999974E-6 : f32
    %567 = vector.broadcast %cst_257 : f32 to vector<64x1xf32>
    %568 = arith.addf %564, %567 : vector<64x1xf32>
    %569 = math.rsqrt %568 : vector<64x1xf32>
    %570 = vector.broadcast %569 : vector<64x1xf32> to vector<64x8xf32>
    %571 = arith.mulf %566, %570 : vector<64x8xf32>
    %572 = vector.broadcast %40 : vector<1x8xf32> to vector<64x8xf32>
    %573 = arith.mulf %571, %572 : vector<64x8xf32>
    %574 = vector.broadcast %41 : vector<1x8xf32> to vector<64x8xf32>
    %575 = arith.addf %573, %574 : vector<64x8xf32>
    %576 = vector.shape_cast %575 : vector<64x8xf32> to vector<2x32x8xf32>
    %577 = vector.shape_cast %576 : vector<2x32x8xf32> to vector<64x8xf32>
    %cst_258 = arith.constant dense<0.000000e+00> : vector<64x8xf32>
    %578 = tpu.matmul %577, %42, %cst_258 {dimension_numbers = #tpu.dot_dimension_numbers<[1], [0], [0], [1], [0, 0, 1, 1], [], []>} : vector<64x8xf32>, vector<8x8xf32>, vector<64x8xf32> -> vector<64x8xf32>
    %579 = vector.broadcast %45 : vector<1x8xf32> to vector<64x8xf32>
    %580 = arith.addf %578, %579 : vector<64x8xf32>
    %581 = vector.shape_cast %580 : vector<64x8xf32> to vector<2x32x8xf32>
    %582 = vector.shape_cast %576 : vector<2x32x8xf32> to vector<64x8xf32>
    %cst_259 = arith.constant dense<0.000000e+00> : vector<64x8xf32>
    %583 = tpu.matmul %582, %43, %cst_259 {dimension_numbers = #tpu.dot_dimension_numbers<[1], [0], [0], [1], [0, 0, 1, 1], [], []>} : vector<64x8xf32>, vector<8x8xf32>, vector<64x8xf32> -> vector<64x8xf32>
    %584 = vector.broadcast %46 : vector<1x8xf32> to vector<64x8xf32>
    %585 = arith.addf %583, %584 : vector<64x8xf32>
    %586 = vector.shape_cast %585 : vector<64x8xf32> to vector<2x32x8xf32>
    %587 = vector.shape_cast %576 : vector<2x32x8xf32> to vector<64x8xf32>
    %cst_260 = arith.constant dense<0.000000e+00> : vector<64x8xf32>
    %588 = tpu.matmul %587, %44, %cst_260 {dimension_numbers = #tpu.dot_dimension_numbers<[1], [0], [0], [1], [0, 0, 1, 1], [], []>} : vector<64x8xf32>, vector<8x8xf32>, vector<64x8xf32> -> vector<64x8xf32>
    %589 = vector.broadcast %47 : vector<1x8xf32> to vector<64x8xf32>
    %590 = arith.addf %588, %589 : vector<64x8xf32>
    %591 = vector.shape_cast %590 : vector<64x8xf32> to vector<2x32x8xf32>
    %592 = tpu.iota {dimensions = array<i32: 2>} : vector<1x1x8xi32>
    %cst_261 = arith.constant 0.000000e+00 : f32
    %593 = vector.broadcast %cst_261 : f32 to vector<2x32x8xf32>
    %c0_i32_262 = arith.constant 0 : i32
    %594 = vector.broadcast %c0_i32_262 : i32 to vector<1x1x8xi32>
    %595 = arith.cmpi sge, %592, %594 : vector<1x1x8xi32>
    %c2_i32_263 = arith.constant 2 : i32
    %596 = vector.broadcast %c2_i32_263 : i32 to vector<1x1x8xi32>
    %597 = arith.cmpi slt, %592, %596 : vector<1x1x8xi32>
    %598 = arith.andi %595, %597 : vector<1x1x8xi1>
    %cst_264 = arith.constant 1.000000e+00 : f32
    %cst_265 = arith.constant 0.000000e+00 : f32
    %599 = vector.broadcast %cst_264 : f32 to vector<1x1x8xf32>
    %600 = vector.broadcast %cst_265 : f32 to vector<1x1x8xf32>
    %601 = arith.select %598, %599, %600 : vector<1x1x8xi1>, vector<1x1x8xf32>
    %cst_266 = arith.constant 0.707106769 : f32
    %602 = vector.broadcast %cst_266 : f32 to vector<1x1x8xf32>
    %603 = arith.mulf %601, %602 : vector<1x1x8xf32>
    %604 = vector.broadcast %603 : vector<1x1x8xf32> to vector<2x32x8xf32>
    %605 = arith.mulf %581, %604 : vector<2x32x8xf32>
    "tpu.trace_start"() <{level = 10 : i32, message = "bld,bsd->bls"}> : () -> ()
    %cst_267 = arith.constant dense<0.000000e+00> : vector<2x32x32xf32>
    %606 = tpu.matmul %605, %586, %cst_267 {dimension_numbers = #tpu.dot_dimension_numbers<[2], [2], [1], [1], [0, 0, 0, 1, 1, 1], [0], [0]>} : vector<2x32x8xf32>, vector<2x32x8xf32>, vector<2x32x32xf32> -> vector<2x32x32xf32>
    "tpu.trace_stop"() : () -> ()
    %cst_268 = arith.constant dense<0xFF800000> : vector<2x32xf32>
    %607 = vector.multi_reduction <maximumf>, %606, %cst_268 [2] : vector<2x32x32xf32> to vector<2x32xf32>
    %608 = vector.shape_cast %607 : vector<2x32xf32> to vector<2x32x1xf32>
    %609 = vector.broadcast %608 : vector<2x32x1xf32> to vector<2x32x32xf32>
    %610 = arith.subf %606, %609 : vector<2x32x32xf32>
    %611 = math.exp %610 : vector<2x32x32xf32>
    %cst_269 = arith.constant dense<0.000000e+00> : vector<2x32xf32>
    %612 = vector.multi_reduction <add>, %611, %cst_269 [2] : vector<2x32x32xf32> to vector<2x32xf32>
    %613 = vector.shape_cast %612 : vector<2x32xf32> to vector<2x32x1xf32>
    %614 = tpu.reciprocal %613 {approx = true} : vector<2x32x1xf32> -> vector<2x32x1xf32>
    %615 = vector.broadcast %614 : vector<2x32x1xf32> to vector<2x32x32xf32>
    %616 = arith.mulf %611, %615 : vector<2x32x32xf32>
    %617 = vector.broadcast %601 : vector<1x1x8xf32> to vector<2x32x8xf32>
    %618 = arith.mulf %591, %617 : vector<2x32x8xf32>
    "tpu.trace_start"() <{level = 10 : i32, message = "bls,bsd->bld"}> : () -> ()
    %cst_270 = arith.constant dense<0.000000e+00> : vector<2x32x8xf32>
    %619 = tpu.matmul %616, %618, %cst_270 {dimension_numbers = #tpu.dot_dimension_numbers<[2], [1], [1], [2], [0, 0, 0, 1, 1, 2], [0], [0]>} : vector<2x32x32xf32>, vector<2x32x8xf32>, vector<2x32x8xf32> -> vector<2x32x8xf32>
    "tpu.trace_stop"() : () -> ()
    %620 = arith.addf %593, %619 : vector<2x32x8xf32>
    %c2_i32_271 = arith.constant 2 : i32
    %621 = vector.broadcast %c2_i32_271 : i32 to vector<1x1x8xi32>
    %622 = arith.cmpi sge, %592, %621 : vector<1x1x8xi32>
    %c4_i32_272 = arith.constant 4 : i32
    %623 = vector.broadcast %c4_i32_272 : i32 to vector<1x1x8xi32>
    %624 = arith.cmpi slt, %592, %623 : vector<1x1x8xi32>
    %625 = arith.andi %622, %624 : vector<1x1x8xi1>
    %cst_273 = arith.constant 1.000000e+00 : f32
    %cst_274 = arith.constant 0.000000e+00 : f32
    %626 = vector.broadcast %cst_273 : f32 to vector<1x1x8xf32>
    %627 = vector.broadcast %cst_274 : f32 to vector<1x1x8xf32>
    %628 = arith.select %625, %626, %627 : vector<1x1x8xi1>, vector<1x1x8xf32>
    %cst_275 = arith.constant 0.707106769 : f32
    %629 = vector.broadcast %cst_275 : f32 to vector<1x1x8xf32>
    %630 = arith.mulf %628, %629 : vector<1x1x8xf32>
    %631 = vector.broadcast %630 : vector<1x1x8xf32> to vector<2x32x8xf32>
    %632 = arith.mulf %581, %631 : vector<2x32x8xf32>
    "tpu.trace_start"() <{level = 10 : i32, message = "bld,bsd->bls"}> : () -> ()
    %cst_276 = arith.constant dense<0.000000e+00> : vector<2x32x32xf32>
    %633 = tpu.matmul %632, %586, %cst_276 {dimension_numbers = #tpu.dot_dimension_numbers<[2], [2], [1], [1], [0, 0, 0, 1, 1, 1], [0], [0]>} : vector<2x32x8xf32>, vector<2x32x8xf32>, vector<2x32x32xf32> -> vector<2x32x32xf32>
    "tpu.trace_stop"() : () -> ()
    %cst_277 = arith.constant dense<0xFF800000> : vector<2x32xf32>
    %634 = vector.multi_reduction <maximumf>, %633, %cst_277 [2] : vector<2x32x32xf32> to vector<2x32xf32>
    %635 = vector.shape_cast %634 : vector<2x32xf32> to vector<2x32x1xf32>
    %636 = vector.broadcast %635 : vector<2x32x1xf32> to vector<2x32x32xf32>
    %637 = arith.subf %633, %636 : vector<2x32x32xf32>
    %638 = math.exp %637 : vector<2x32x32xf32>
    %cst_278 = arith.constant dense<0.000000e+00> : vector<2x32xf32>
    %639 = vector.multi_reduction <add>, %638, %cst_278 [2] : vector<2x32x32xf32> to vector<2x32xf32>
    %640 = vector.shape_cast %639 : vector<2x32xf32> to vector<2x32x1xf32>
    %641 = tpu.reciprocal %640 {approx = true} : vector<2x32x1xf32> -> vector<2x32x1xf32>
    %642 = vector.broadcast %641 : vector<2x32x1xf32> to vector<2x32x32xf32>
    %643 = arith.mulf %638, %642 : vector<2x32x32xf32>
    %644 = vector.broadcast %628 : vector<1x1x8xf32> to vector<2x32x8xf32>
    %645 = arith.mulf %591, %644 : vector<2x32x8xf32>
    "tpu.trace_start"() <{level = 10 : i32, message = "bls,bsd->bld"}> : () -> ()
    %cst_279 = arith.constant dense<0.000000e+00> : vector<2x32x8xf32>
    %646 = tpu.matmul %643, %645, %cst_279 {dimension_numbers = #tpu.dot_dimension_numbers<[2], [1], [1], [2], [0, 0, 0, 1, 1, 2], [0], [0]>} : vector<2x32x32xf32>, vector<2x32x8xf32>, vector<2x32x8xf32> -> vector<2x32x8xf32>
    "tpu.trace_stop"() : () -> ()
    %647 = arith.addf %620, %646 : vector<2x32x8xf32>
    %c4_i32_280 = arith.constant 4 : i32
    %648 = vector.broadcast %c4_i32_280 : i32 to vector<1x1x8xi32>
    %649 = arith.cmpi sge, %592, %648 : vector<1x1x8xi32>
    %c6_i32_281 = arith.constant 6 : i32
    %650 = vector.broadcast %c6_i32_281 : i32 to vector<1x1x8xi32>
    %651 = arith.cmpi slt, %592, %650 : vector<1x1x8xi32>
    %652 = arith.andi %649, %651 : vector<1x1x8xi1>
    %cst_282 = arith.constant 1.000000e+00 : f32
    %cst_283 = arith.constant 0.000000e+00 : f32
    %653 = vector.broadcast %cst_282 : f32 to vector<1x1x8xf32>
    %654 = vector.broadcast %cst_283 : f32 to vector<1x1x8xf32>
    %655 = arith.select %652, %653, %654 : vector<1x1x8xi1>, vector<1x1x8xf32>
    %cst_284 = arith.constant 0.707106769 : f32
    %656 = vector.broadcast %cst_284 : f32 to vector<1x1x8xf32>
    %657 = arith.mulf %655, %656 : vector<1x1x8xf32>
    %658 = vector.broadcast %657 : vector<1x1x8xf32> to vector<2x32x8xf32>
    %659 = arith.mulf %581, %658 : vector<2x32x8xf32>
    "tpu.trace_start"() <{level = 10 : i32, message = "bld,bsd->bls"}> : () -> ()
    %cst_285 = arith.constant dense<0.000000e+00> : vector<2x32x32xf32>
    %660 = tpu.matmul %659, %586, %cst_285 {dimension_numbers = #tpu.dot_dimension_numbers<[2], [2], [1], [1], [0, 0, 0, 1, 1, 1], [0], [0]>} : vector<2x32x8xf32>, vector<2x32x8xf32>, vector<2x32x32xf32> -> vector<2x32x32xf32>
    "tpu.trace_stop"() : () -> ()
    %cst_286 = arith.constant dense<0xFF800000> : vector<2x32xf32>
    %661 = vector.multi_reduction <maximumf>, %660, %cst_286 [2] : vector<2x32x32xf32> to vector<2x32xf32>
    %662 = vector.shape_cast %661 : vector<2x32xf32> to vector<2x32x1xf32>
    %663 = vector.broadcast %662 : vector<2x32x1xf32> to vector<2x32x32xf32>
    %664 = arith.subf %660, %663 : vector<2x32x32xf32>
    %665 = math.exp %664 : vector<2x32x32xf32>
    %cst_287 = arith.constant dense<0.000000e+00> : vector<2x32xf32>
    %666 = vector.multi_reduction <add>, %665, %cst_287 [2] : vector<2x32x32xf32> to vector<2x32xf32>
    %667 = vector.shape_cast %666 : vector<2x32xf32> to vector<2x32x1xf32>
    %668 = tpu.reciprocal %667 {approx = true} : vector<2x32x1xf32> -> vector<2x32x1xf32>
    %669 = vector.broadcast %668 : vector<2x32x1xf32> to vector<2x32x32xf32>
    %670 = arith.mulf %665, %669 : vector<2x32x32xf32>
    %671 = vector.broadcast %655 : vector<1x1x8xf32> to vector<2x32x8xf32>
    %672 = arith.mulf %591, %671 : vector<2x32x8xf32>
    "tpu.trace_start"() <{level = 10 : i32, message = "bls,bsd->bld"}> : () -> ()
    %cst_288 = arith.constant dense<0.000000e+00> : vector<2x32x8xf32>
    %673 = tpu.matmul %670, %672, %cst_288 {dimension_numbers = #tpu.dot_dimension_numbers<[2], [1], [1], [2], [0, 0, 0, 1, 1, 2], [0], [0]>} : vector<2x32x32xf32>, vector<2x32x8xf32>, vector<2x32x8xf32> -> vector<2x32x8xf32>
    "tpu.trace_stop"() : () -> ()
    %674 = arith.addf %647, %673 : vector<2x32x8xf32>
    %c6_i32_289 = arith.constant 6 : i32
    %675 = vector.broadcast %c6_i32_289 : i32 to vector<1x1x8xi32>
    %676 = arith.cmpi sge, %592, %675 : vector<1x1x8xi32>
    %c8_i32_290 = arith.constant 8 : i32
    %677 = vector.broadcast %c8_i32_290 : i32 to vector<1x1x8xi32>
    %678 = arith.cmpi slt, %592, %677 : vector<1x1x8xi32>
    %679 = arith.andi %676, %678 : vector<1x1x8xi1>
    %cst_291 = arith.constant 1.000000e+00 : f32
    %cst_292 = arith.constant 0.000000e+00 : f32
    %680 = vector.broadcast %cst_291 : f32 to vector<1x1x8xf32>
    %681 = vector.broadcast %cst_292 : f32 to vector<1x1x8xf32>
    %682 = arith.select %679, %680, %681 : vector<1x1x8xi1>, vector<1x1x8xf32>
    %cst_293 = arith.constant 0.707106769 : f32
    %683 = vector.broadcast %cst_293 : f32 to vector<1x1x8xf32>
    %684 = arith.mulf %682, %683 : vector<1x1x8xf32>
    %685 = vector.broadcast %684 : vector<1x1x8xf32> to vector<2x32x8xf32>
    %686 = arith.mulf %581, %685 : vector<2x32x8xf32>
    "tpu.trace_start"() <{level = 10 : i32, message = "bld,bsd->bls"}> : () -> ()
    %cst_294 = arith.constant dense<0.000000e+00> : vector<2x32x32xf32>
    %687 = tpu.matmul %686, %586, %cst_294 {dimension_numbers = #tpu.dot_dimension_numbers<[2], [2], [1], [1], [0, 0, 0, 1, 1, 1], [0], [0]>} : vector<2x32x8xf32>, vector<2x32x8xf32>, vector<2x32x32xf32> -> vector<2x32x32xf32>
    "tpu.trace_stop"() : () -> ()
    %cst_295 = arith.constant dense<0xFF800000> : vector<2x32xf32>
    %688 = vector.multi_reduction <maximumf>, %687, %cst_295 [2] : vector<2x32x32xf32> to vector<2x32xf32>
    %689 = vector.shape_cast %688 : vector<2x32xf32> to vector<2x32x1xf32>
    %690 = vector.broadcast %689 : vector<2x32x1xf32> to vector<2x32x32xf32>
    %691 = arith.subf %687, %690 : vector<2x32x32xf32>
    %692 = math.exp %691 : vector<2x32x32xf32>
    %cst_296 = arith.constant dense<0.000000e+00> : vector<2x32xf32>
    %693 = vector.multi_reduction <add>, %692, %cst_296 [2] : vector<2x32x32xf32> to vector<2x32xf32>
    %694 = vector.shape_cast %693 : vector<2x32xf32> to vector<2x32x1xf32>
    %695 = tpu.reciprocal %694 {approx = true} : vector<2x32x1xf32> -> vector<2x32x1xf32>
    %696 = vector.broadcast %695 : vector<2x32x1xf32> to vector<2x32x32xf32>
    %697 = arith.mulf %692, %696 : vector<2x32x32xf32>
    %698 = vector.broadcast %682 : vector<1x1x8xf32> to vector<2x32x8xf32>
    %699 = arith.mulf %591, %698 : vector<2x32x8xf32>
    "tpu.trace_start"() <{level = 10 : i32, message = "bls,bsd->bld"}> : () -> ()
    %cst_297 = arith.constant dense<0.000000e+00> : vector<2x32x8xf32>
    %700 = tpu.matmul %697, %699, %cst_297 {dimension_numbers = #tpu.dot_dimension_numbers<[2], [1], [1], [2], [0, 0, 0, 1, 1, 2], [0], [0]>} : vector<2x32x32xf32>, vector<2x32x8xf32>, vector<2x32x8xf32> -> vector<2x32x8xf32>
    "tpu.trace_stop"() : () -> ()
    %701 = arith.addf %674, %700 : vector<2x32x8xf32>
    %702 = vector.shape_cast %701 : vector<2x32x8xf32> to vector<64x8xf32>
    %cst_298 = arith.constant dense<0.000000e+00> : vector<64x8xf32>
    %703 = tpu.matmul %702, %48, %cst_298 {dimension_numbers = #tpu.dot_dimension_numbers<[1], [0], [0], [1], [0, 0, 1, 1], [], []>} : vector<64x8xf32>, vector<8x8xf32>, vector<64x8xf32> -> vector<64x8xf32>
    %704 = vector.broadcast %49 : vector<1x8xf32> to vector<64x8xf32>
    %705 = arith.addf %703, %704 : vector<64x8xf32>
    %706 = vector.shape_cast %576 : vector<2x32x8xf32> to vector<64x8xf32>
    %707 = arith.addf %706, %705 : vector<64x8xf32>
    %cst_299 = arith.constant dense<0.000000e+00> : vector<64xf32>
    %708 = vector.multi_reduction <add>, %707, %cst_299 [1] : vector<64x8xf32> to vector<64xf32>
    %709 = vector.shape_cast %708 : vector<64xf32> to vector<64x1xf32>
    %cst_300 = arith.constant 8.000000e+00 : f32
    %710 = vector.broadcast %cst_300 : f32 to vector<64x1xf32>
    %711 = arith.divf %709, %710 : vector<64x1xf32>
    %712 = arith.mulf %707, %707 : vector<64x8xf32>
    %cst_301 = arith.constant dense<0.000000e+00> : vector<64xf32>
    %713 = vector.multi_reduction <add>, %712, %cst_301 [1] : vector<64x8xf32> to vector<64xf32>
    %714 = vector.shape_cast %713 : vector<64xf32> to vector<64x1xf32>
    %cst_302 = arith.constant 8.000000e+00 : f32
    %715 = vector.broadcast %cst_302 : f32 to vector<64x1xf32>
    %716 = arith.divf %714, %715 : vector<64x1xf32>
    %717 = arith.mulf %711, %711 : vector<64x1xf32>
    %718 = arith.subf %716, %717 : vector<64x1xf32>
    %719 = vector.broadcast %711 : vector<64x1xf32> to vector<64x8xf32>
    %720 = arith.subf %707, %719 : vector<64x8xf32>
    %cst_303 = arith.constant 9.99999974E-6 : f32
    %721 = vector.broadcast %cst_303 : f32 to vector<64x1xf32>
    %722 = arith.addf %718, %721 : vector<64x1xf32>
    %723 = math.rsqrt %722 : vector<64x1xf32>
    %724 = vector.broadcast %723 : vector<64x1xf32> to vector<64x8xf32>
    %725 = arith.mulf %720, %724 : vector<64x8xf32>
    %726 = vector.broadcast %50 : vector<1x8xf32> to vector<64x8xf32>
    %727 = arith.mulf %725, %726 : vector<64x8xf32>
    %728 = vector.broadcast %51 : vector<1x8xf32> to vector<64x8xf32>
    %729 = arith.addf %727, %728 : vector<64x8xf32>
    %730 = vector.shape_cast %729 : vector<64x8xf32> to vector<2x32x8xf32>
    %731 = vector.shape_cast %730 : vector<2x32x8xf32> to vector<64x8xf32>
    %cst_304 = arith.constant dense<0.000000e+00> : vector<64x64xf32>
    %732 = tpu.matmul %731, %52, %cst_304 {dimension_numbers = #tpu.dot_dimension_numbers<[1], [0], [0], [1], [0, 0, 1, 1], [], []>} : vector<64x8xf32>, vector<8x64xf32>, vector<64x64xf32> -> vector<64x64xf32>
    %733 = vector.broadcast %53 : vector<1x64xf32> to vector<64x64xf32>
    %734 = arith.addf %732, %733 : vector<64x64xf32>
    %cst_305 = arith.constant 0.000000e+00 : f32
    %735 = vector.broadcast %cst_305 : f32 to vector<64x64xf32>
    %736 = arith.maximumf %734, %735 : vector<64x64xf32>
    %cst_306 = arith.constant dense<0.000000e+00> : vector<64x8xf32>
    %737 = tpu.matmul %736, %54, %cst_306 {dimension_numbers = #tpu.dot_dimension_numbers<[1], [0], [0], [1], [0, 0, 1, 1], [], []>} : vector<64x64xf32>, vector<64x8xf32>, vector<64x8xf32> -> vector<64x8xf32>
    %738 = vector.broadcast %55 : vector<1x8xf32> to vector<64x8xf32>
    %739 = arith.addf %737, %738 : vector<64x8xf32>
    %740 = arith.addf %731, %739 : vector<64x8xf32>
    %cst_307 = arith.constant dense<0.000000e+00> : vector<64xf32>
    %741 = vector.multi_reduction <add>, %740, %cst_307 [1] : vector<64x8xf32> to vector<64xf32>
    %742 = vector.shape_cast %741 : vector<64xf32> to vector<64x1xf32>
    %cst_308 = arith.constant 8.000000e+00 : f32
    %743 = vector.broadcast %cst_308 : f32 to vector<64x1xf32>
    %744 = arith.divf %742, %743 : vector<64x1xf32>
    %745 = arith.mulf %740, %740 : vector<64x8xf32>
    %cst_309 = arith.constant dense<0.000000e+00> : vector<64xf32>
    %746 = vector.multi_reduction <add>, %745, %cst_309 [1] : vector<64x8xf32> to vector<64xf32>
    %747 = vector.shape_cast %746 : vector<64xf32> to vector<64x1xf32>
    %cst_310 = arith.constant 8.000000e+00 : f32
    %748 = vector.broadcast %cst_310 : f32 to vector<64x1xf32>
    %749 = arith.divf %747, %748 : vector<64x1xf32>
    %750 = arith.mulf %744, %744 : vector<64x1xf32>
    %751 = arith.subf %749, %750 : vector<64x1xf32>
    %752 = vector.broadcast %744 : vector<64x1xf32> to vector<64x8xf32>
    %753 = arith.subf %740, %752 : vector<64x8xf32>
    %cst_311 = arith.constant 9.99999974E-6 : f32
    %754 = vector.broadcast %cst_311 : f32 to vector<64x1xf32>
    %755 = arith.addf %751, %754 : vector<64x1xf32>
    %756 = math.rsqrt %755 : vector<64x1xf32>
    %757 = vector.broadcast %756 : vector<64x1xf32> to vector<64x8xf32>
    %758 = arith.mulf %753, %757 : vector<64x8xf32>
    %759 = vector.broadcast %56 : vector<1x8xf32> to vector<64x8xf32>
    %760 = arith.mulf %758, %759 : vector<64x8xf32>
    %761 = vector.broadcast %57 : vector<1x8xf32> to vector<64x8xf32>
    %762 = arith.addf %760, %761 : vector<64x8xf32>
    %763 = vector.shape_cast %762 : vector<64x8xf32> to vector<2x32x8xf32>
    %764 = tpu.transpose %763, [0, 2, 1] : vector<2x32x8xf32> -> vector<2x8x32xf32>
    %765 = arith.addf %421, %764 : vector<2x8x32xf32>
    %c0_312 = arith.constant 0 : index
    %c0_313 = arith.constant 0 : index
    %c0_314 = arith.constant 0 : index
    %766 = vector.load %arg58[%c0_312, %c0_313, %c0_314] : memref<2x8x32xf32, #tpu.memory_space<vmem>>, vector<2x8x32xf32>
    tpu.vector_store %arg58[%c0_312, %c0_313, %c0_314], %765 {strides = array<i32>} : memref<2x8x32xf32, #tpu.memory_space<vmem>>, vector<2x8x32xf32>,
    return
  }
}

</mosaic_0001>

<bundles_post_ra>
// kernel: tpu_custom_call.1
= control target key start
LH: loop header
LB: loop body
LE: loop exit
PB: predicated region body
PF: predicated region fallthrough
CT: control target
= control target key end

     0   :  { %s13863_s6 = smov 1   ;;  %s13864_s10 = smov 2   ;;  %s16465_s0 = inlined_call_operand.smem [shape: u32[59], index: -1, kind: input, shape index: {}] }
   0x1   :  { %s13963_s5 = sld [smem:[%s16465_s0]]   ;;  %s13865_s14 = smov 3  }
   0x2   :  { %s13968_s9 = sld [smem:[%s16465_s0 + %s13863_s6]]   ;;  %s13866_s18 = smov 4  }
   0x3   :  { %s13973_s13 = sld [smem:[%s16465_s0 + %s13864_s10]]   ;;  %s13867_s22 = smov 5  }
   0x4   :  { %s13978_s17 = sld [smem:[%s16465_s0 + %s13865_s14]]   ;;  %s13868_s26 = smov 6  }
   0x5   :  { %s13983_s21 = sld [smem:[%s16465_s0 + %s13866_s18]]   ;;  %s13869_s30 = smov 7  }
   0x6   :  { %s13988_s25 = sld [smem:[%s16465_s0 + %s13867_s22]]   ;;  %s13870_s4 = smov 8  }
   0x7   :  { %16506 = sst [smem:[#allocation64_spill]] %s13963_s5  ;;  %s13871_s10 = smov 9  }
   0x8   :  { %s13993_s29 = sld [smem:[%s16465_s0 + %s13868_s26]]   ;;  %s13872_s15 = smov 10  }
   0x9   :  { %16507 = sst [smem:[#allocation65_spill]] %s13973_s13  ;;  %s13873_s20 = smov 11  }
   0xa   :  { %s13998_s3 = sld [smem:[%s16465_s0 + %s13869_s30]]   ;;  %s13874_s26 = smov 12  }
   0xb   :  { %16508 = sst [smem:[#allocation66_spill]] %s13983_s21  ;;  %s13875_s1 = smov 13  }
   0xc   :  { %s14003_s8 = sld [smem:[%s16465_s0 + %s13870_s4]]   ;;  %s13876_s7 = smov 14  }
   0xd   :  { %s14008_s14 = sld [smem:[%s16465_s0 + %s13871_s10]]   ;;  %s13878_s22 = smov 16  }
   0xe   :  { %16509 = sst [smem:[#allocation67_spill]] %s13993_s29  ;;  %s13879_s28 = smov 17  }
   0xf   :  { %s14013_s19 = sld [smem:[%s16465_s0 + %s13872_s15]]   ;;  %s13877_s15 = smov 15  }
  0x10   :  { %16510 = sst [smem:[#allocation68_spill]] %s13998_s3 }
  0x11   :  { %s14018_s24 = sld [smem:[%s16465_s0 + %s13873_s20]]  }
  0x12   :  { %16511 = sst [smem:[#allocation69_spill]] %s14003_s8 }
  0x13   :  { %16512 = sst [smem:[#allocation70_spill]] %s14008_s14 }
  0x14   :  { %s14023_s30 = sld [smem:[%s16465_s0 + %s13874_s26]]  }
  0x15   :  { %s14028_s6 = sld [smem:[%s16465_s0 + %s13875_s1]]  }
  0x16   :  { %s14033_s12 = sld [smem:[%s16465_s0 + %s13876_s7]]   ;;  %s13880_s7 = smov 18  }
  0x17   :  { %16513 = sst [smem:[#allocation71_spill]] %s14018_s24 }
  0x18   :  { %s14038_s20 = sld [smem:[%s16465_s0 + %s13877_s15]]   ;;  %s13881_s15 = smov 19  }
  0x19   :  { %s14043_s27 = sld [smem:[%s16465_s0 + %s13878_s22]]   ;;  %s13882_s22 = smov 20  }
  0x1a   :  { %16514 = sst [smem:[#allocation72_spill]] %s14023_s30 }
  0x1b   :  { %s14048_s4 = sld [smem:[%s16465_s0 + %s13879_s28]]   ;;  %s13883_s28 = smov 21  }
  0x1c   :  { %16515 = sst [smem:[#allocation73_spill]] %s14033_s12 }
  0x1d   :  { %s14053_s30 = sld [smem:[%s16465_s0 + %s13880_s7]]   ;;  %s13884_s7 = smov 22  }
  0x1e   :  { %s14058_s8 = sld [smem:[%s16465_s0 + %s13881_s15]]   ;;  %s13885_s15 = smov 23  }
  0x1f   :  { %16516 = sst [smem:[#allocation74_spill]] %s14043_s27 }
  0x20   :  { %s14063_s27 = sld [smem:[%s16465_s0 + %s13882_s22]]   ;;  %s13886_s22 = smov 24  }
  0x21   :  { %16517 = sst [smem:[#allocation75_spill]] %s14048_s4 }
  0x22   :  { %s14068_s4 = sld [smem:[%s16465_s0 + %s13883_s28]]   ;;  %s13887_s28 = smov 25  }
  0x23   :  { %16518 = sst [smem:[#allocation76_spill]] %s14053_s30 }
  0x24   :  { %s14073_s3 = sld [smem:[%s16465_s0 + %s13884_s7]]   ;;  %s13888_s7 = smov 26  }
  0x25   :  { %s14078_s29 = sld [smem:[%s16465_s0 + %s13885_s15]]   ;;  %s13889_s15 = smov 27  }
  0x26   :  { %16519 = sst [smem:[#allocation77_spill]] %s14063_s27 }
  0x27   :  { %s14083_s27 = sld [smem:[%s16465_s0 + %s13886_s22]]   ;;  %s13890_s22 = smov 28  }
  0x28   :  { %s14088_s30 = sld [smem:[%s16465_s0 + %s13887_s28]]   ;;  %s13891_s28 = smov 29  }
  0x29   :  { %s14098_s12 = sld [smem:[%s16465_s0 + %s13889_s15]]   ;;  %s13893_s15 = smov 31  }
  0x2a   :  { %16520 = sst [smem:[#allocation78_spill]] %s14073_s3 }
  0x2b   :  { %s14093_s3 = sld [smem:[%s16465_s0 + %s13888_s7]]   ;;  %s13892_s7 = smov 30  }
  0x2c   :  { %s14108_s24 = sld [smem:[%s16465_s0 + %s13891_s28]]   ;;  %s13895_s28 = smov 33  }
  0x2d   :  { %16521 = sst [smem:[#allocation79_spill]] %s14083_s27 }
  0x2e   :  { %s14103_s27 = sld [smem:[%s16465_s0 + %s13890_s22]]   ;;  %s13894_s22 = smov 32  }
  0x2f   :  { %16523 = sst [smem:[#allocation81_spill]] %s14098_s12 }
  0x30   :  { %s14118_s12 = sld [smem:[%s16465_s0 + %s13893_s15]]   ;;  %s13897_s15 = smov 35  }
  0x31   :  { %16522 = sst [smem:[#allocation80_spill]] %s14093_s3 }
  0x32   :  { %s14113_s3 = sld [smem:[%s16465_s0 + %s13892_s7]]   ;;  %s13896_s7 = smov 34  }
  0x33   :  { %s14128_s14 = sld [smem:[%s16465_s0 + %s13895_s28]]   ;;  %s13899_s28 = smov 37  }
  0x34   :  { %16524 = sst [smem:[#allocation82_spill]] %s14103_s27 }
  0x35   :  { %s14123_s27 = sld [smem:[%s16465_s0 + %s13894_s22]]   ;;  %s13898_s22 = smov 36  }
  0x36   :  { %s14138_s21 = sld [smem:[%s16465_s0 + %s13897_s15]]   ;;  %s13901_s15 = smov 39  }
  0x38   :  { %16525 = sst [smem:[#allocation83_spill]] %s14113_s3 }
  0x39   :  { %16527 = sst [smem:[#allocation85_spill]] %s14128_s14 }
  0x3a   :  { %s14133_s3 = sld [smem:[%s16465_s0 + %s13896_s7]]   ;;  %s13900_s7 = smov 38  }
  0x3b   :  { %16526 = sst [smem:[#allocation84_spill]] %s14123_s27 }
  0x3c   :  { %16529 = sst [smem:[#allocation87_spill]] %s14138_s21 }
  0x3d   :  { %s14143_s27 = sld [smem:[%s16465_s0 + %s13898_s22]]   ;;  %s13902_s22 = smov 40  }
  0x3e   :  { %s14148_s14 = sld [smem:[%s16465_s0 + %s13899_s28]]   ;;  %s13903_s28 = smov 41  }
  0x3f   :  { %s14158_s21 = sld [smem:[%s16465_s0 + %s13901_s15]]   ;;  %s13905_s15 = smov 43  }
  0x40   :  { %16528 = sst [smem:[#allocation86_spill]] %s14133_s3 }
  0x41   :  { %s14153_s3 = sld [smem:[%s16465_s0 + %s13900_s7]]   ;;  %s13904_s7 = smov 42  }
  0x42   :  { %s14163_s13 = sld [smem:[%s16465_s0 + %s13902_s22]]   ;;  %s13906_s22 = smov 44  }
  0x44   :  { %16530 = sst [smem:[#allocation88_spill]] %s14148_s14 }
  0x45   :  { %16532 = sst [smem:[#allocation90_spill]] %s14158_s21 }
  0x46   :  { %s14168_s14 = sld [smem:[%s16465_s0 + %s13903_s28]]   ;;  %s13907_s28 = smov 45  }
  0x47   :  { %16531 = sst [smem:[#allocation89_spill]] %s14153_s3 }
  0x48   :  { %16533 = sst [smem:[#allocation91_spill]] %s14163_s13 }
  0x49   :  { %s14173_s3 = sld [smem:[%s16465_s0 + %s13904_s7]]   ;;  %s13908_s7 = smov 46  }
  0x4a   :  { %s14178_s21 = sld [smem:[%s16465_s0 + %s13905_s15]]   ;;  %s13909_s15 = smov 47  }
  0x4b   :  { %s14183_s13 = sld [smem:[%s16465_s0 + %s13906_s22]]   ;;  %s13910_s22 = smov 48  }
  0x4c   :  { %s14188_s5 = sld [smem:[%s16465_s0 + %s13907_s28]]   ;;  %s13911_s28 = smov 49  }
  0x4f   :  { %16534 = sst [smem:[#allocation92_spill]] %s14173_s3 }
  0x50   :  { %16535 = sst [smem:[#allocation93_spill]] %s14178_s21 }
  0x51   :  { %16536 = sst [smem:[#allocation94_spill]] %s14183_s13 }
  0x52   :  { %16537 = sst [smem:[#allocation95_spill]] %s14188_s5 }
  0x53   :  { %s14193_s3 = sld [smem:[%s16465_s0 + %s13908_s7]]   ;;  %s13912_s7 = smov 50  }
  0x54   :  { %s14198_s21 = sld [smem:[%s16465_s0 + %s13909_s15]]   ;;  %s13913_s15 = smov 51  }
  0x55   :  { %s14203_s13 = sld [smem:[%s16465_s0 + %s13910_s22]]   ;;  %s13914_s22 = smov 52  }
  0x56   :  { %s14208_s5 = sld [smem:[%s16465_s0 + %s13911_s28]]   ;;  %s13915_s28 = smov 53  }
  0x59   :  { %16538 = sst [smem:[#allocation96_spill]] %s14193_s3 }
  0x5a   :  { %16539 = sst [smem:[#allocation97_spill]] %s14198_s21 }
  0x5b   :  { %16540 = sst [smem:[#allocation98_spill]] %s14203_s13 }
  0x5c   :  { %16541 = sst [smem:[#allocation99_spill]] %s14208_s5 }
  0x5d   :  { %s14213_s3 = sld [smem:[%s16465_s0 + %s13912_s7]]   ;;  %s13916_s7 = smov 54  }
  0x5e   :  { %s14218_s21 = sld [smem:[%s16465_s0 + %s13913_s15]]   ;;  %s13917_s15 = smov 55  }
  0x5f   :  { %s14223_s13 = sld [smem:[%s16465_s0 + %s13914_s22]]   ;;  %s13918_s22 = smov 56  }
  0x60   :  { %s14228_s5 = sld [smem:[%s16465_s0 + %s13915_s28]]   ;;  %s13919_s28 = smov 57  }
  0x63   :  { %16542 = sst [smem:[#allocation100_spill]] %s14213_s3 }
  0x64   :  { %16543 = sst [smem:[#allocation101_spill]] %s14218_s21 }
  0x65   :  { %16544 = sst [smem:[#allocation102_spill]] %s14223_s13 }
  0x66   :  { %16545 = sst [smem:[#allocation103_spill]] %s14228_s5 }
  0x67   :  { %s14233_s3 = sld [smem:[%s16465_s0 + %s13916_s7]]   ;;  %s13920_s7 = smov 58  }
  0x68   :  { %s14238_s21 = sld [smem:[%s16465_s0 + %s13917_s15]]  }
  0x69   :  { %s14243_s13 = sld [smem:[%s16465_s0 + %s13918_s22]]  }
  0x6a   :  { %s14248_s5 = sld [smem:[%s16465_s0 + %s13919_s28]]  }
  0x6d   :  { %16546 = sst [smem:[#allocation104_spill]] %s14233_s3 }
  0x6e   :  { %s14253_s3 = sld [smem:[%s16465_s0 + %s13920_s7]]  }
  0x6f   :  { %122 = vsyncpa [#allocation3], 0 }
  0x70   :  { %123 = vsyncpa [#allocation6], 0 }
  0x71   :  { %124 = vsyncpa [#allocation9], 0 }
  0x72   :  { %125 = vsyncpa [#allocation12], 0 }
  0x73   :  { %126 = vsyncpa [#allocation15], 0 }
  0x74   :  { %127 = vsyncpa [#allocation18], 0 }
  0x75   :  { %128 = vsyncpa [#allocation21], 0 }
  0x76   :  { %129 = vsyncpa [#allocation24], 0 }
  0x77   :  { %130 = vsyncpa [#allocation27], 0 }
  0x78   :  { %131 = vsyncpa [#allocation30], 0 }
  0x79   :  { %132 = vsyncpa [#allocation33], 0 }
  0x7a   :  { %133 = vsyncpa [#allocation36], 0 }
  0x7b   :  { %134 = vsyncpa [#allocation39], 0 }
  0x7c   :  { %135 = vsyncpa [#allocation42], 0 }
  0x7d   :  { %136 = vsyncpa [#allocation45], 0 }
  0x7e   :  { %137 = vsyncpa [#allocation4], 0  ;;  %s13921_s0 = smov [#allocation5]   ;;  %s13922_s16 = smov [#allocation8]  }
  0x7f   :  { %s155_s15 = sshll.u32 %s13921_s0, 4  ;;  %s179_s18 = sshll.u32 %s13922_s16, 4  ;;  %s156_s15 = int_to_ptr.vmem [resolvable:$true] %s155_s15  ;;  %s14255_s18 = int_to_ptr.vmem [resolvable:$true] %s179_s18 }
  0x80   :  { %s13171_s22 = scalar_lea.hbm %s13968_s9, 256 }
  0x81   :  { %p13172_p0 = scmp.ne.s32.totalorder %s13968_s9, %s13171_s22  ;;  %p13175_p1 = scmp.lt.u32.totalorder %s13171_s22, %s13968_s9 }
  0x83   :  { %p13177_p2 = pnand %p13175_p1, %p13172_p0 }
  0x85   :  { %13180 = shalt.err (!%p13177_p2)
}
  0x86   :  { %s13181_s23 = scalar_lea.vmem %s156_s15, 256  ;;  %p13186_p4 = scmp.lt.s32.totalorder %s156_s15, %s156_s15 }
  0x87   :  { %p13182_p3 = scmp.ne.s32.totalorder %s156_s15, %s13181_s23  ;;  %p13187_p5 = scmp.lt.s32.totalorder %s13181_s23, %s13181_s23 }
  0x89   :  { %p13188_p6 = por %p13187_p5, %p13186_p4 }
  0x8b   :  { %p13189_p7 = pnand %p13188_p6, %p13182_p3 }
  0x8d   :  { %13192 = shalt.err (!%p13189_p7)
}
  0x8e   :  { %s13923_s26 = smov 128   ;;  %s13924_s28 = smov 8  }
  0x8f   :  { %161 = dma.hbm_to_vmem [thread:$0]  %s13968_s9, 256, %s156_s15, [#allocation6], %s13923_s26, %s13923_s26, %s13924_s28  }
  0x90   :  { %s13193_s1 = scalar_lea.hbm %s13978_s17, 256 }
  0x91   :  { %p13194_p8 = scmp.ne.s32.totalorder %s13978_s17, %s13193_s1  ;;  %p13197_p9 = scmp.lt.u32.totalorder %s13193_s1, %s13978_s17 }
  0x93   :  { %p13199_p10 = pnand %p13197_p9, %p13194_p8 }
  0x95   :  { %13202 = shalt.err (!%p13199_p10)
}
  0x96   :  { %s13203_s2 = scalar_lea.vmem %s14255_s18, 256  ;;  %p13208_p12 = scmp.lt.s32.totalorder %s14255_s18, %s14255_s18 }
  0x97   :  { %p13204_p11 = scmp.ne.s32.totalorder %s14255_s18, %s13203_s2  ;;  %p13209_p13 = scmp.lt.s32.totalorder %s13203_s2, %s13203_s2 }
  0x99   :  { %p13210_p0 = por %p13209_p13, %p13208_p12 }
  0x9b   :  { %p13211_p1 = pnand %p13210_p0, %p13204_p11 }
  0x9d   :  { %13214 = shalt.err (!%p13211_p1)
}
  0x9e   :  { %185 = dma.hbm_to_vmem [thread:$0]  %s13978_s17, 256, %s14255_s18, [#allocation9], %s13923_s26, %s13923_s26, %s13924_s28  }
  0x9f   :  { %s13925_s9 = smov [#allocation11]   ;;  %s13926_s10 = smov [#allocation14]  }
  0xa0   :  { %s202_s7 = sshll.u32 %s13925_s9, 4  ;;  %s228_s11 = sshll.u32 %s13926_s10, 4  ;;  %s203_s7 = int_to_ptr.vmem [resolvable:$true] %s202_s7  ;;  %s229_s11 = int_to_ptr.vmem [resolvable:$true] %s228_s11 }
  0xa1   :  { %s13215_s0 = scalar_lea.hbm %s13988_s25, 128 }
  0xa2   :  { %p13216_p2 = scmp.ne.s32.totalorder %s13988_s25, %s13215_s0  ;;  %p13219_p3 = scmp.lt.u32.totalorder %s13215_s0, %s13988_s25 }
  0xa4   :  { %p13221_p4 = pnand %p13219_p3, %p13216_p2 }
  0xa6   :  { %13224 = shalt.err (!%p13221_p4)
}
  0xa7   :  { %s13225_s15 = scalar_lea.vmem %s203_s7, 128  ;;  %p13230_p6 = scmp.lt.s32.totalorder %s203_s7, %s203_s7 }
  0xa8   :  { %p13226_p5 = scmp.ne.s32.totalorder %s203_s7, %s13225_s15  ;;  %p13231_p7 = scmp.lt.s32.totalorder %s13225_s15, %s13225_s15 }
  0xaa   :  { %p13232_p8 = por %p13231_p7, %p13230_p6 }
  0xac   :  { %p13233_p9 = pnand %p13232_p8, %p13226_p5 }
  0xae   :  { %13236 = shalt.err (!%p13233_p9)
}
  0xaf   :  { %205 = dma.hbm_to_vmem [thread:$0]  %s13988_s25, 128, %s203_s7, [#allocation12]  }
  0xb0   :  { %s13237_s17 = scalar_lea.hbm %s14013_s19, 16 }
  0xb1   :  { %p13238_p10 = scmp.ne.s32.totalorder %s14013_s19, %s13237_s17  ;;  %p13241_p11 = scmp.lt.u32.totalorder %s13237_s17, %s14013_s19 }
  0xb3   :  { %p13243_p12 = pnand %p13241_p11, %p13238_p10 }
  0xb5   :  { %13246 = shalt.err (!%p13243_p12)
}
  0xb6   :  { %s13247_s16 = scalar_lea.vmem %s229_s11, 16  ;;  %s13251_s18 = scalar_lea.vmem %s229_s11, 32 }
  0xb7   :  { %p13248_p13 = scmp.ne.s32.totalorder %s229_s11, %s13247_s16  ;;  %p13252_p0 = scmp.lt.s32.totalorder %s229_s11, %s229_s11 }
  0xb8   :  { %p13253_p1 = scmp.lt.s32.totalorder %s13251_s18, %s13247_s16 }
  0xba   :  { %p13254_p2 = por %p13253_p1, %p13252_p0 }
  0xbc   :  { %p13255_p3 = pnand %p13254_p2, %p13248_p13 }
  0xbe   :  { %13258 = shalt.err (!%p13255_p3)
}
  0xbf   :  { %231 = dma.hbm_to_vmem [thread:$0]  %s14013_s19, 16, %s229_s11, [#allocation15]  }
  0xc0   :  { %s13927_s22 = smov [#allocation17]   ;;  %s13928_s23 = smov [#allocation20]  }
  0xc1   :  { %s250_s25 = sshll.u32 %s13927_s22, 4  ;;  %s270_s1 = sshll.u32 %s13928_s23, 4  ;;  %s251_s25 = int_to_ptr.vmem [resolvable:$true] %s250_s25  ;;  %s271_s1 = int_to_ptr.vmem [resolvable:$true] %s270_s1 }
  0xc2   :  { %s13259_s2 = scalar_lea.hbm %s14028_s6, 16 }
  0xc3   :  { %p13260_p4 = scmp.ne.s32.totalorder %s14028_s6, %s13259_s2  ;;  %p13263_p5 = scmp.lt.u32.totalorder %s13259_s2, %s14028_s6 }
  0xc5   :  { %p13265_p6 = pnand %p13263_p5, %p13260_p4 }
  0xc7   :  { %13268 = shalt.err (!%p13265_p6)
}
  0xc8   :  { %s13269_s9 = scalar_lea.vmem %s251_s25, 16  ;;  %s13273_s7 = scalar_lea.vmem %s251_s25, 32 }
  0xc9   :  { %p13270_p7 = scmp.ne.s32.totalorder %s251_s25, %s13269_s9  ;;  %p13274_p8 = scmp.lt.s32.totalorder %s251_s25, %s251_s25 }
  0xca   :  { %p13275_p9 = scmp.lt.s32.totalorder %s13273_s7, %s13269_s9 }
  0xcc   :  { %p13276_p10 = por %p13275_p9, %p13274_p8 }
  0xce   :  { %p13277_p11 = pnand %p13276_p10, %p13270_p7 }
  0xd0   :  { %13280 = shalt.err (!%p13277_p11)
}
  0xd1   :  { %253 = dma.hbm_to_vmem [thread:$0]  %s14028_s6, 16, %s251_s25, [#allocation18]  }
  0xd2   :  { %s13281_s19 = scalar_lea.hbm %s14038_s20, 16 }
  0xd3   :  { %p13282_p12 = scmp.ne.s32.totalorder %s14038_s20, %s13281_s19  ;;  %p13285_p13 = scmp.lt.u32.totalorder %s13281_s19, %s14038_s20 }
  0xd5   :  { %p13287_p0 = pnand %p13285_p13, %p13282_p12 }
  0xd7   :  { %13290 = shalt.err (!%p13287_p0)
}
  0xd8   :  { %s13291_s10 = scalar_lea.vmem %s271_s1, 16  ;;  %s13295_s11 = scalar_lea.vmem %s271_s1, 32 }
  0xd9   :  { %p13292_p1 = scmp.ne.s32.totalorder %s271_s1, %s13291_s10  ;;  %p13296_p2 = scmp.lt.s32.totalorder %s271_s1, %s271_s1 }
  0xda   :  { %p13297_p3 = scmp.lt.s32.totalorder %s13295_s11, %s13291_s10 }
  0xdc   :  { %p13298_p4 = por %p13297_p3, %p13296_p2 }
  0xde   :  { %p13299_p5 = pnand %p13298_p4, %p13292_p1 }
  0xe0   :  { %13302 = shalt.err (!%p13299_p5)
}
  0xe1   :  { %273 = dma.hbm_to_vmem [thread:$0]  %s14038_s20, 16, %s271_s1, [#allocation21]  }
  0xe2   :  { %s13929_s0 = smov [#allocation23]   ;;  %s13930_s15 = smov [#allocation26]  }
  0xe3   :  { %s296_s6 = sshll.u32 %s13929_s0, 4  ;;  %s316_s17 = sshll.u32 %s13930_s15, 4  ;;  %s297_s6 = int_to_ptr.vmem [resolvable:$true] %s296_s6  ;;  %s317_s17 = int_to_ptr.vmem [resolvable:$true] %s316_s17 }
  0xe4   :  { %s13303_s16 = scalar_lea.hbm %s14058_s8, 16 }
  0xe5   :  { %p13304_p6 = scmp.ne.s32.totalorder %s14058_s8, %s13303_s16  ;;  %p13307_p7 = scmp.lt.u32.totalorder %s13303_s16, %s14058_s8 }
  0xe7   :  { %p13309_p8 = pnand %p13307_p7, %p13304_p6 }
  0xe9   :  { %13312 = shalt.err (!%p13309_p8)
}
  0xea   :  { %s13313_s18 = scalar_lea.vmem %s297_s6, 16  ;;  %s13317_s22 = scalar_lea.vmem %s297_s6, 32 }
  0xeb   :  { %p13314_p9 = scmp.ne.s32.totalorder %s297_s6, %s13313_s18  ;;  %p13318_p10 = scmp.lt.s32.totalorder %s297_s6, %s297_s6 }
  0xec   :  { %p13319_p11 = scmp.lt.s32.totalorder %s13317_s22, %s13313_s18 }
  0xee   :  { %p13320_p12 = por %p13319_p11, %p13318_p10 }
  0xf0   :  { %p13321_p13 = pnand %p13320_p12, %p13314_p9 }
  0xf2   :  { %13324 = shalt.err (!%p13321_p13)
}
  0xf3   :  { %299 = dma.hbm_to_vmem [thread:$0]  %s14058_s8, 16, %s297_s6, [#allocation24]  }
  0xf4   :  { %s13325_s20 = scalar_lea.hbm %s14068_s4, 16 }
  0xf5   :  { %p13326_p0 = scmp.ne.s32.totalorder %s14068_s4, %s13325_s20  ;;  %p13329_p1 = scmp.lt.u32.totalorder %s13325_s20, %s14068_s4 }
  0xf7   :  { %p13331_p2 = pnand %p13329_p1, %p13326_p0 }
  0xf9   :  { %13334 = shalt.err (!%p13331_p2)
}
  0xfa   :  { %s13335_s25 = scalar_lea.vmem %s317_s17, 16  ;;  %s13339_s23 = scalar_lea.vmem %s317_s17, 32 }
  0xfb   :  { %p13336_p3 = scmp.ne.s32.totalorder %s317_s17, %s13335_s25  ;;  %p13340_p4 = scmp.lt.s32.totalorder %s317_s17, %s317_s17 }
  0xfc   :  { %p13341_p5 = scmp.lt.s32.totalorder %s13339_s23, %s13335_s25 }
  0xfe   :  { %p13342_p6 = por %p13341_p5, %p13340_p4 }
 0x100   :  { %p13343_p7 = pnand %p13342_p6, %p13336_p3 }
 0x102   :  { %13346 = shalt.err (!%p13343_p7)
}
 0x103   :  { %319 = dma.hbm_to_vmem [thread:$0]  %s14068_s4, 16, %s317_s17, [#allocation27]  }
 0x104   :  { %s13931_s1 = smov [#allocation29]   ;;  %s13932_s2 = smov [#allocation32]  }
 0x105   :  { %s338_s8 = sshll.u32 %s13931_s1, 4  ;;  %s358_s9 = sshll.u32 %s13932_s2, 4  ;;  %s339_s8 = int_to_ptr.vmem [resolvable:$true] %s338_s8  ;;  %s359_s9 = int_to_ptr.vmem [resolvable:$true] %s358_s9 }
 0x106   :  { %s13347_s7 = scalar_lea.hbm %s14078_s29, 16 }
 0x107   :  { %p13348_p8 = scmp.ne.s32.totalorder %s14078_s29, %s13347_s7  ;;  %p13351_p9 = scmp.lt.u32.totalorder %s13347_s7, %s14078_s29 }
 0x109   :  { %p13353_p10 = pnand %p13351_p9, %p13348_p8 }
 0x10b   :  { %13356 = shalt.err (!%p13353_p10)
}
 0x10c   :  { %s13357_s19 = scalar_lea.vmem %s339_s8, 16  ;;  %s13361_s10 = scalar_lea.vmem %s339_s8, 32 }
 0x10d   :  { %p13358_p11 = scmp.ne.s32.totalorder %s339_s8, %s13357_s19  ;;  %p13362_p12 = scmp.lt.s32.totalorder %s339_s8, %s339_s8 }
 0x10e   :  { %p13363_p13 = scmp.lt.s32.totalorder %s13361_s10, %s13357_s19 }
 0x110   :  { %p13364_p0 = por %p13363_p13, %p13362_p12 }
 0x112   :  { %p13365_p1 = pnand %p13364_p0, %p13358_p11 }
 0x114   :  { %13368 = shalt.err (!%p13365_p1)
}
 0x115   :  { %341 = dma.hbm_to_vmem [thread:$0]  %s14078_s29, 16, %s339_s8, [#allocation30]  }
 0x116   :  { %s13369_s4 = scalar_lea.hbm %s14088_s30, 16 }
 0x117   :  { %p13370_p2 = scmp.ne.s32.totalorder %s14088_s30, %s13369_s4  ;;  %p13373_p3 = scmp.lt.u32.totalorder %s13369_s4, %s14088_s30 }
 0x119   :  { %p13375_p4 = pnand %p13373_p3, %p13370_p2 }
 0x11b   :  { %13378 = shalt.err (!%p13375_p4)
}
 0x11c   :  { %s13379_s11 = scalar_lea.vmem %s359_s9, 16  ;;  %s13383_s0 = scalar_lea.vmem %s359_s9, 32 }
 0x11d   :  { %p13380_p5 = scmp.ne.s32.totalorder %s359_s9, %s13379_s11  ;;  %p13384_p6 = scmp.lt.s32.totalorder %s359_s9, %s359_s9 }
 0x11e   :  { %p13385_p7 = scmp.lt.s32.totalorder %s13383_s0, %s13379_s11 }
 0x120   :  { %p13386_p8 = por %p13385_p7, %p13384_p6 }
 0x122   :  { %p13387_p9 = pnand %p13386_p8, %p13380_p5 }
 0x124   :  { %13390 = shalt.err (!%p13387_p9)
}
 0x125   :  { %361 = dma.hbm_to_vmem [thread:$0]  %s14088_s30, 16, %s359_s9, [#allocation33]  }
 0x126   :  { %s13933_s6 = smov [#allocation35]   ;;  %s13934_s15 = smov [#allocation38]  }
 0x127   :  { %s382_s29 = sshll.u32 %s13933_s6, 4  ;;  %s402_s17 = sshll.u32 %s13934_s15, 4  ;;  %s383_s29 = int_to_ptr.vmem [resolvable:$true] %s382_s29  ;;  %s403_s17 = int_to_ptr.vmem [resolvable:$true] %s402_s17 }
 0x128   :  { %s13391_s16 = scalar_lea.hbm %s14108_s24, 16 }
 0x129   :  { %p13392_p10 = scmp.ne.s32.totalorder %s14108_s24, %s13391_s16  ;;  %p13395_p11 = scmp.lt.u32.totalorder %s13391_s16, %s14108_s24 }
 0x12b   :  { %p13397_p12 = pnand %p13395_p11, %p13392_p10 }
 0x12d   :  { %13400 = shalt.err (!%p13397_p12)
}
 0x12e   :  { %s13401_s18 = scalar_lea.vmem %s383_s29, 16  ;;  %s13405_s22 = scalar_lea.vmem %s383_s29, 32 }
 0x12f   :  { %p13402_p13 = scmp.ne.s32.totalorder %s383_s29, %s13401_s18  ;;  %p13406_p0 = scmp.lt.s32.totalorder %s383_s29, %s383_s29 }
 0x130   :  { %p13407_p1 = scmp.lt.s32.totalorder %s13405_s22, %s13401_s18 }
 0x132   :  { %p13408_p2 = por %p13407_p1, %p13406_p0 }
 0x134   :  { %p13409_p3 = pnand %p13408_p2, %p13402_p13 }
 0x136   :  { %13412 = shalt.err (!%p13409_p3)
}
 0x137   :  { %385 = dma.hbm_to_vmem [thread:$0]  %s14108_s24, 16, %s383_s29, [#allocation36]  }
 0x138   :  { %s13413_s30 = scalar_lea.hbm %s14118_s12, 16 }
 0x139   :  { %p13414_p4 = scmp.ne.s32.totalorder %s14118_s12, %s13413_s30  ;;  %p13417_p5 = scmp.lt.u32.totalorder %s13413_s30, %s14118_s12 }
 0x13b   :  { %p13419_p6 = pnand %p13417_p5, %p13414_p4 }
 0x13d   :  { %13422 = shalt.err (!%p13419_p6)
}
 0x13e   :  { %s13423_s20 = scalar_lea.vmem %s403_s17, 16  ;;  %s13427_s25 = scalar_lea.vmem %s403_s17, 32 }
 0x13f   :  { %p13424_p7 = scmp.ne.s32.totalorder %s403_s17, %s13423_s20  ;;  %p13428_p8 = scmp.lt.s32.totalorder %s403_s17, %s403_s17 }
 0x140   :  { %p13429_p9 = scmp.lt.s32.totalorder %s13427_s25, %s13423_s20 }
 0x142   :  { %p13430_p10 = por %p13429_p9, %p13428_p8 }
 0x144   :  { %p13431_p11 = pnand %p13430_p10, %p13424_p7 }
 0x146   :  { %13434 = shalt.err (!%p13431_p11)
}
 0x147   :  { %405 = dma.hbm_to_vmem [thread:$0]  %s14118_s12, 16, %s403_s17, [#allocation39]  }
 0x148   :  { %s13935_s23 = smov [#allocation41]   ;;  %s13936_s1 = smov [#allocation44]  }
 0x149   :  { %s428_s24 = sshll.u32 %s13935_s23, 4  ;;  %s454_s8 = sshll.u32 %s13936_s1, 4  ;;  %s429_s24 = int_to_ptr.vmem [resolvable:$true] %s428_s24  ;;  %s455_s8 = int_to_ptr.vmem [resolvable:$true] %s454_s8 }
 0x14a   :  { %s13435_s2 = scalar_lea.hbm %s14143_s27, 16 }
 0x14b   :  { %p13436_p12 = scmp.ne.s32.totalorder %s14143_s27, %s13435_s2  ;;  %p13439_p13 = scmp.lt.u32.totalorder %s13435_s2, %s14143_s27 }
 0x14d   :  { %p13441_p0 = pnand %p13439_p13, %p13436_p12 }
 0x14f   :  { %13444 = shalt.err (!%p13441_p0)
}
 0x150   :  { %s13445_s9 = scalar_lea.vmem %s429_s24, 16  ;;  %s13449_s7 = scalar_lea.vmem %s429_s24, 32 }
 0x151   :  { %p13446_p1 = scmp.ne.s32.totalorder %s429_s24, %s13445_s9  ;;  %p13450_p2 = scmp.lt.s32.totalorder %s429_s24, %s429_s24 }
 0x152   :  { %p13451_p3 = scmp.lt.s32.totalorder %s13449_s7, %s13445_s9 }
 0x154   :  { %p13452_p4 = por %p13451_p3, %p13450_p2 }
 0x156   :  { %p13453_p5 = pnand %p13452_p4, %p13446_p1 }
 0x158   :  { %13456 = shalt.err (!%p13453_p5)
}
 0x159   :  { %431 = dma.hbm_to_vmem [thread:$0]  %s14143_s27, 16, %s429_s24, [#allocation42]  }
 0x15a   :  { %s13457_s12 = scalar_lea.hbm %s14168_s14, 16 }
 0x15b   :  { %p13458_p6 = scmp.ne.s32.totalorder %s14168_s14, %s13457_s12  ;;  %p13461_p7 = scmp.lt.u32.totalorder %s13457_s12, %s14168_s14 }
 0x15d   :  { %p13463_p8 = pnand %p13461_p7, %p13458_p6 }
 0x15f   :  { %13466 = shalt.err (!%p13463_p8)
}
 0x160   :  { %s13467_s19 = scalar_lea.vmem %s455_s8, 16  ;;  %s13471_s10 = scalar_lea.vmem %s455_s8, 32 }
 0x161   :  { %p13468_p9 = scmp.ne.s32.totalorder %s455_s8, %s13467_s19  ;;  %p13472_p10 = scmp.lt.s32.totalorder %s455_s8, %s455_s8 }
 0x162   :  { %p13473_p11 = scmp.lt.s32.totalorder %s13471_s10, %s13467_s19 }
 0x164   :  { %p13474_p12 = por %p13473_p11, %p13472_p10 }
 0x166   :  { %p13475_p13 = pnand %p13474_p12, %p13468_p9 }
 0x168   :  { %13478 = shalt.err (!%p13475_p13)
}
 0x169   :  { %s16547_s4 = sld [smem:[#allocation64_spill]]  ;;  %s13937_s11 = smov [#allocation2]  }
 0x16a   :  { %457 = dma.hbm_to_vmem [thread:$0]  %s14168_s14, 16, %s455_s8, [#allocation45]  }
 0x16b   :  { %s143_s27 = sshll.u32 %s13937_s11, 4  ;;  %s13938_s0 = smov [#allocation7]   ;;  %s144_s27 = int_to_ptr.vmem [resolvable:$true] %s143_s27 }
 0x16c   :  { %s167_s6 = sshll.u32 %s13938_s0, 4  ;;  %s14324_s6 = int_to_ptr.vmem [resolvable:$true] %s167_s6 }
 0x16f   :  { %s13479_s29 = scalar_lea.hbm %s16547_s4, 256 }
 0x170   :  { %p13480_p0 = scmp.ne.s32.totalorder %s16547_s4, %s13479_s29  ;;  %p13483_p1 = scmp.lt.u32.totalorder %s13479_s29, %s16547_s4 }
 0x172   :  { %p13485_p2 = pnand %p13483_p1, %p13480_p0 }
 0x174   :  { %13488 = shalt.err (!%p13485_p2)
}
 0x175   :  { %s13489_s15 = scalar_lea.vmem %s144_s27, 256  ;;  %p13494_p4 = scmp.lt.s32.totalorder %s144_s27, %s144_s27 }
 0x176   :  { %p13490_p3 = scmp.ne.s32.totalorder %s144_s27, %s13489_s15  ;;  %p13495_p5 = scmp.lt.s32.totalorder %s13489_s15, %s13489_s15 }
 0x178   :  { %p13496_p6 = por %p13495_p5, %p13494_p4 }
 0x17a   :  { %p13497_p7 = pnand %p13496_p6, %p13490_p3 }
 0x17c   :  { %13500 = shalt.err (!%p13497_p7)
}
 0x17d   :  { %s16548_s14 = sld [smem:[#allocation65_spill]] }
 0x17e   :  { %149 = dma.hbm_to_vmem [thread:$0]  %s16547_s4, 256, %s144_s27, [#allocation3], %s13923_s26, %s13923_s26, %s13924_s28  }
 0x183   :  { %s13501_s17 = scalar_lea.hbm %s16548_s14, 256 }
 0x184   :  { %p13502_p8 = scmp.ne.s32.totalorder %s16548_s14, %s13501_s17  ;;  %p13505_p9 = scmp.lt.u32.totalorder %s13501_s17, %s16548_s14 }
 0x186   :  { %p13507_p10 = pnand %p13505_p9, %p13502_p8 }
 0x188   :  { %13510 = shalt.err (!%p13507_p10)
}
 0x189   :  { %s13511_s16 = scalar_lea.vmem %s14324_s6, 256  ;;  %p13516_p12 = scmp.lt.s32.totalorder %s14324_s6, %s14324_s6 }
 0x18a   :  { %p13512_p11 = scmp.ne.s32.totalorder %s14324_s6, %s13511_s16  ;;  %p13517_p13 = scmp.lt.s32.totalorder %s13511_s16, %s13511_s16 }
 0x18c   :  { %p13518_p0 = por %p13517_p13, %p13516_p12 }
 0x18e   :  { %p13519_p1 = pnand %p13518_p0, %p13512_p11 }
 0x190   :  { %13522 = shalt.err (!%p13519_p1)
}
 0x191   :  { %s16549_s18 = sld [smem:[#allocation66_spill]]  ;;  %s13939_s22 = smov [#allocation10]  }
 0x192   :  { %173 = dma.hbm_to_vmem [thread:$0]  %s16548_s14, 256, %s14324_s6, [#allocation6], %s13923_s26, %s13923_s26, %s13924_s28  }
 0x193   :  { %s192_s30 = sshll.u32 %s13939_s22, 4  ;;  %s13940_s20 = smov [#allocation13]   ;;  %s193_s30 = int_to_ptr.vmem [resolvable:$true] %s192_s30 }
 0x194   :  { %s218_s25 = sshll.u32 %s13940_s20, 4  ;;  %s219_s25 = int_to_ptr.vmem [resolvable:$true] %s218_s25 }
 0x197   :  { %s13523_s23 = scalar_lea.hbm %s16549_s18, 128 }
 0x198   :  { %p13524_p2 = scmp.ne.s32.totalorder %s16549_s18, %s13523_s23  ;;  %p13527_p3 = scmp.lt.u32.totalorder %s13523_s23, %s16549_s18 }
 0x19a   :  { %p13529_p4 = pnand %p13527_p3, %p13524_p2 }
 0x19c   :  { %13532 = shalt.err (!%p13529_p4)
}
 0x19d   :  { %s13533_s24 = scalar_lea.vmem %s193_s30, 128  ;;  %p13538_p6 = scmp.lt.s32.totalorder %s193_s30, %s193_s30 }
 0x19e   :  { %p13534_p5 = scmp.ne.s32.totalorder %s193_s30, %s13533_s24  ;;  %p13539_p7 = scmp.lt.s32.totalorder %s13533_s24, %s13533_s24 }
 0x1a0   :  { %p13540_p8 = por %p13539_p7, %p13538_p6 }
 0x1a2   :  { %p13541_p9 = pnand %p13540_p8, %p13534_p5 }
 0x1a4   :  { %13544 = shalt.err (!%p13541_p9)
}
 0x1a5   :  { %s16550_s1 = sld [smem:[#allocation70_spill]] }
 0x1a6   :  { %195 = dma.hbm_to_vmem [thread:$0]  %s16549_s18, 128, %s193_s30, [#allocation9]  }
 0x1ab   :  { %s13545_s8 = scalar_lea.hbm %s16550_s1, 16 }
 0x1ac   :  { %p13546_p10 = scmp.ne.s32.totalorder %s16550_s1, %s13545_s8  ;;  %p13549_p11 = scmp.lt.u32.totalorder %s13545_s8, %s16550_s1 }
 0x1ae   :  { %p13551_p12 = pnand %p13549_p11, %p13546_p10 }
 0x1b0   :  { %13554 = shalt.err (!%p13551_p12)
}
 0x1b1   :  { %s13555_s2 = scalar_lea.vmem %s219_s25, 16  ;;  %s13559_s9 = scalar_lea.vmem %s219_s25, 32 }
 0x1b2   :  { %p13556_p13 = scmp.ne.s32.totalorder %s219_s25, %s13555_s2  ;;  %p13560_p0 = scmp.lt.s32.totalorder %s219_s25, %s219_s25 }
 0x1b3   :  { %p13561_p1 = scmp.lt.s32.totalorder %s13559_s9, %s13555_s2 }
 0x1b5   :  { %p13562_p2 = por %p13561_p1, %p13560_p0 }
 0x1b7   :  { %p13563_p3 = pnand %p13562_p2, %p13556_p13 }
 0x1b9   :  { %13566 = shalt.err (!%p13563_p3)
}
 0x1ba   :  { %s16551_s7 = sld [smem:[#allocation71_spill]]  ;;  %s13941_s12 = smov [#allocation16]  }
 0x1bb   :  { %221 = dma.hbm_to_vmem [thread:$0]  %s16550_s1, 16, %s219_s25, [#allocation12]  }
 0x1bc   :  { %s238_s19 = sshll.u32 %s13941_s12, 4  ;;  %s13942_s10 = smov [#allocation19]   ;;  %s239_s19 = int_to_ptr.vmem [resolvable:$true] %s238_s19 }
 0x1bd   :  { %s260_s4 = sshll.u32 %s13942_s10, 4  ;;  %s261_s4 = int_to_ptr.vmem [resolvable:$true] %s260_s4 }
 0x1c0   :  { %s13567_s11 = scalar_lea.hbm %s16551_s7, 16 }
 0x1c1   :  { %p13568_p4 = scmp.ne.s32.totalorder %s16551_s7, %s13567_s11  ;;  %p13571_p5 = scmp.lt.u32.totalorder %s13567_s11, %s16551_s7 }
 0x1c3   :  { %p13573_p6 = pnand %p13571_p5, %p13568_p4 }
 0x1c5   :  { %13576 = shalt.err (!%p13573_p6)
}
 0x1c6   :  { %s13577_s27 = scalar_lea.vmem %s239_s19, 16  ;;  %s13581_s0 = scalar_lea.vmem %s239_s19, 32 }
 0x1c7   :  { %p13578_p7 = scmp.ne.s32.totalorder %s239_s19, %s13577_s27  ;;  %p13582_p8 = scmp.lt.s32.totalorder %s239_s19, %s239_s19 }
 0x1c8   :  { %p13583_p9 = scmp.lt.s32.totalorder %s13581_s0, %s13577_s27 }
 0x1ca   :  { %p13584_p10 = por %p13583_p9, %p13582_p8 }
 0x1cc   :  { %p13585_p11 = pnand %p13584_p10, %p13578_p7 }
 0x1ce   :  { %13588 = shalt.err (!%p13585_p11)
}
 0x1cf   :  { %s16552_s6 = sld [smem:[#allocation73_spill]] }
 0x1d0   :  { %241 = dma.hbm_to_vmem [thread:$0]  %s16551_s7, 16, %s239_s19, [#allocation15]  }
 0x1d5   :  { %s13589_s29 = scalar_lea.hbm %s16552_s6, 16 }
 0x1d6   :  { %p13590_p12 = scmp.ne.s32.totalorder %s16552_s6, %s13589_s29  ;;  %p13593_p13 = scmp.lt.u32.totalorder %s13589_s29, %s16552_s6 }
 0x1d8   :  { %p13595_p0 = pnand %p13593_p13, %p13590_p12 }
 0x1da   :  { %13598 = shalt.err (!%p13595_p0)
}
 0x1db   :  { %s13599_s15 = scalar_lea.vmem %s261_s4, 16  ;;  %s13603_s14 = scalar_lea.vmem %s261_s4, 32 }
 0x1dc   :  { %p13600_p1 = scmp.ne.s32.totalorder %s261_s4, %s13599_s15  ;;  %p13604_p2 = scmp.lt.s32.totalorder %s261_s4, %s261_s4 }
 0x1dd   :  { %p13605_p3 = scmp.lt.s32.totalorder %s13603_s14, %s13599_s15 }
 0x1df   :  { %p13606_p4 = por %p13605_p3, %p13604_p2 }
 0x1e1   :  { %p13607_p5 = pnand %p13606_p4, %p13600_p1 }
 0x1e3   :  { %13610 = shalt.err (!%p13607_p5)
}
 0x1e4   :  { %s16553_s17 = sld [smem:[#allocation76_spill]]  ;;  %s13943_s16 = smov [#allocation22]  }
 0x1e5   :  { %263 = dma.hbm_to_vmem [thread:$0]  %s16552_s6, 16, %s261_s4, [#allocation18]  }
 0x1e6   :  { %s283_s18 = sshll.u32 %s13943_s16, 4  ;;  %s13944_s22 = smov [#allocation25]   ;;  %s284_s18 = int_to_ptr.vmem [resolvable:$true] %s283_s18 }
 0x1e7   :  { %s306_s30 = sshll.u32 %s13944_s22, 4  ;;  %s307_s30 = int_to_ptr.vmem [resolvable:$true] %s306_s30 }
 0x1ea   :  { %s13611_s20 = scalar_lea.hbm %s16553_s17, 512 }
 0x1eb   :  { %p13612_p6 = scmp.ne.s32.totalorder %s16553_s17, %s13611_s20  ;;  %p13615_p7 = scmp.lt.u32.totalorder %s13611_s20, %s16553_s17 }
 0x1ed   :  { %p13617_p8 = pnand %p13615_p7, %p13612_p6 }
 0x1ef   :  { %13620 = shalt.err (!%p13617_p8)
}
 0x1f0   :  { %s13621_s25 = scalar_lea.vmem %s284_s18, 512  ;;  %p13626_p10 = scmp.lt.s32.totalorder %s284_s18, %s284_s18 }
 0x1f1   :  { %p13622_p9 = scmp.ne.s32.totalorder %s284_s18, %s13621_s25  ;;  %p13627_p11 = scmp.lt.s32.totalorder %s13621_s25, %s13621_s25 }
 0x1f3   :  { %p13628_p12 = por %p13627_p11, %p13626_p10 }
 0x1f5   :  { %p13629_p13 = pnand %p13628_p12, %p13622_p9 }
 0x1f7   :  { %13632 = shalt.err (!%p13629_p13)
}
 0x1f8   :  { %s16554_s23 = sld [smem:[#allocation77_spill]] }
 0x1f9   :  { %289 = dma.hbm_to_vmem [thread:$0]  %s16553_s17, 512, %s284_s18, [#allocation21], %s13923_s26, %s13923_s26, %s13924_s28  }
 0x1fe   :  { %s13633_s24 = scalar_lea.hbm %s16554_s23, 16 }
 0x1ff   :  { %p13634_p0 = scmp.ne.s32.totalorder %s16554_s23, %s13633_s24  ;;  %p13637_p1 = scmp.lt.u32.totalorder %s13633_s24, %s16554_s23 }
 0x201   :  { %p13639_p2 = pnand %p13637_p1, %p13634_p0 }
 0x203   :  { %13642 = shalt.err (!%p13639_p2)
}
 0x204   :  { %s13643_s1 = scalar_lea.vmem %s307_s30, 16  ;;  %s13647_s8 = scalar_lea.vmem %s307_s30, 32 }
 0x205   :  { %p13644_p3 = scmp.ne.s32.totalorder %s307_s30, %s13643_s1  ;;  %p13648_p4 = scmp.lt.s32.totalorder %s307_s30, %s307_s30 }
 0x206   :  { %p13649_p5 = scmp.lt.s32.totalorder %s13647_s8, %s13643_s1 }
 0x208   :  { %p13650_p6 = por %p13649_p5, %p13648_p4 }
 0x20a   :  { %p13651_p7 = pnand %p13650_p6, %p13644_p3 }
 0x20c   :  { %13654 = shalt.err (!%p13651_p7)
}
 0x20d   :  { %s16555_s2 = sld [smem:[#allocation78_spill]]  ;;  %s13945_s9 = smov [#allocation28]  }
 0x20e   :  { %309 = dma.hbm_to_vmem [thread:$0]  %s16554_s23, 16, %s307_s30, [#allocation24]  }
 0x20f   :  { %s325_s7 = sshll.u32 %s13945_s9, 4  ;;  %s13946_s12 = smov [#allocation31]   ;;  %s326_s7 = int_to_ptr.vmem [resolvable:$true] %s325_s7 }
 0x210   :  { %s348_s19 = sshll.u32 %s13946_s12, 4  ;;  %s349_s19 = int_to_ptr.vmem [resolvable:$true] %s348_s19 }
 0x213   :  { %s13655_s10 = scalar_lea.hbm %s16555_s2, 512 }
 0x214   :  { %p13656_p8 = scmp.ne.s32.totalorder %s16555_s2, %s13655_s10  ;;  %p13659_p9 = scmp.lt.u32.totalorder %s13655_s10, %s16555_s2 }
 0x216   :  { %p13661_p10 = pnand %p13659_p9, %p13656_p8 }
 0x218   :  { %13664 = shalt.err (!%p13661_p10)
}
 0x219   :  { %s13665_s4 = scalar_lea.vmem %s326_s7, 512  ;;  %p13670_p12 = scmp.lt.s32.totalorder %s326_s7, %s326_s7 }
 0x21a   :  { %p13666_p11 = scmp.ne.s32.totalorder %s326_s7, %s13665_s4  ;;  %p13671_p13 = scmp.lt.s32.totalorder %s13665_s4, %s13665_s4 }
 0x21c   :  { %p13672_p0 = por %p13671_p13, %p13670_p12 }
 0x21e   :  { %p13673_p1 = pnand %p13672_p0, %p13666_p11 }
 0x220   :  { %13676 = shalt.err (!%p13673_p1)
}
 0x221   :  { %s16556_s11 = sld [smem:[#allocation79_spill]] }
 0x222   :  { %331 = dma.hbm_to_vmem [thread:$0]  %s16555_s2, 512, %s326_s7, [#allocation27], %s13923_s26, %s13923_s26, %s13924_s28  }
 0x227   :  { %s13677_s27 = scalar_lea.hbm %s16556_s11, 16 }
 0x228   :  { %p13678_p2 = scmp.ne.s32.totalorder %s16556_s11, %s13677_s27  ;;  %p13681_p3 = scmp.lt.u32.totalorder %s13677_s27, %s16556_s11 }
 0x22a   :  { %p13683_p4 = pnand %p13681_p3, %p13678_p2 }
 0x22c   :  { %13686 = shalt.err (!%p13683_p4)
}
 0x22d   :  { %s13687_s0 = scalar_lea.vmem %s349_s19, 16  ;;  %s13691_s6 = scalar_lea.vmem %s349_s19, 32 }
 0x22e   :  { %p13688_p5 = scmp.ne.s32.totalorder %s349_s19, %s13687_s0  ;;  %p13692_p6 = scmp.lt.s32.totalorder %s349_s19, %s349_s19 }
 0x22f   :  { %p13693_p7 = scmp.lt.s32.totalorder %s13691_s6, %s13687_s0 }
 0x231   :  { %p13694_p8 = por %p13693_p7, %p13692_p6 }
 0x233   :  { %p13695_p9 = pnand %p13694_p8, %p13688_p5 }
 0x235   :  { %13698 = shalt.err (!%p13695_p9)
}
 0x236   :  { %s16557_s29 = sld [smem:[#allocation81_spill]]  ;;  %s13947_s15 = smov [#allocation34]  }
 0x237   :  { %351 = dma.hbm_to_vmem [thread:$0]  %s16556_s11, 16, %s349_s19, [#allocation30]  }
 0x238   :  { %s370_s14 = sshll.u32 %s13947_s15, 4  ;;  %s13948_s17 = smov [#allocation37]   ;;  %s371_s14 = int_to_ptr.vmem [resolvable:$true] %s370_s14 }
 0x239   :  { %s392_s16 = sshll.u32 %s13948_s17, 4  ;;  %s393_s16 = int_to_ptr.vmem [resolvable:$true] %s392_s16 }
 0x23c   :  { %s13699_s18 = scalar_lea.hbm %s16557_s29, 16 }
 0x23d   :  { %p13700_p10 = scmp.ne.s32.totalorder %s16557_s29, %s13699_s18  ;;  %p13703_p11 = scmp.lt.u32.totalorder %s13699_s18, %s16557_s29 }
 0x23f   :  { %p13705_p12 = pnand %p13703_p11, %p13700_p10 }
 0x241   :  { %13708 = shalt.err (!%p13705_p12)
}
 0x242   :  { %s13709_s22 = scalar_lea.vmem %s371_s14, 16  ;;  %s13713_s30 = scalar_lea.vmem %s371_s14, 32 }
 0x243   :  { %p13710_p13 = scmp.ne.s32.totalorder %s371_s14, %s13709_s22  ;;  %p13714_p0 = scmp.lt.s32.totalorder %s371_s14, %s371_s14 }
 0x244   :  { %p13715_p1 = scmp.lt.s32.totalorder %s13713_s30, %s13709_s22 }
 0x246   :  { %p13716_p2 = por %p13715_p1, %p13714_p0 }
 0x248   :  { %p13717_p3 = pnand %p13716_p2, %p13710_p13 }
 0x24a   :  { %13720 = shalt.err (!%p13717_p3)
}
 0x24b   :  { %s16558_s20 = sld [smem:[#allocation83_spill]] }
 0x24c   :  { %373 = dma.hbm_to_vmem [thread:$0]  %s16557_s29, 16, %s371_s14, [#allocation33]  }
 0x251   :  { %s13721_s25 = scalar_lea.hbm %s16558_s20, 16 }
 0x252   :  { %p13722_p4 = scmp.ne.s32.totalorder %s16558_s20, %s13721_s25  ;;  %p13725_p5 = scmp.lt.u32.totalorder %s13721_s25, %s16558_s20 }
 0x254   :  { %p13727_p6 = pnand %p13725_p5, %p13722_p4 }
 0x256   :  { %13730 = shalt.err (!%p13727_p6)
}
 0x257   :  { %s13731_s23 = scalar_lea.vmem %s393_s16, 16  ;;  %s13735_s24 = scalar_lea.vmem %s393_s16, 32 }
 0x258   :  { %p13732_p7 = scmp.ne.s32.totalorder %s393_s16, %s13731_s23  ;;  %p13736_p8 = scmp.lt.s32.totalorder %s393_s16, %s393_s16 }
 0x259   :  { %p13737_p9 = scmp.lt.s32.totalorder %s13735_s24, %s13731_s23 }
 0x25b   :  { %p13738_p10 = por %p13737_p9, %p13736_p8 }
 0x25d   :  { %p13739_p11 = pnand %p13738_p10, %p13732_p7 }
 0x25f   :  { %13742 = shalt.err (!%p13739_p11)
}
 0x260   :  { %s16559_s1 = sld [smem:[#allocation87_spill]]  ;;  %s13949_s8 = smov [#allocation40]  }
 0x261   :  { %395 = dma.hbm_to_vmem [thread:$0]  %s16558_s20, 16, %s393_s16, [#allocation36]  }
 0x262   :  { %s418_s2 = sshll.u32 %s13949_s8, 4  ;;  %s13950_s9 = smov [#allocation43]   ;;  %s419_s2 = int_to_ptr.vmem [resolvable:$true] %s418_s2 }
 0x263   :  { %s444_s7 = sshll.u32 %s13950_s9, 4  ;;  %s445_s7 = int_to_ptr.vmem [resolvable:$true] %s444_s7 }
 0x266   :  { %s13743_s12 = scalar_lea.hbm %s16559_s1, 16 }
 0x267   :  { %p13744_p12 = scmp.ne.s32.totalorder %s16559_s1, %s13743_s12  ;;  %p13747_p13 = scmp.lt.u32.totalorder %s13743_s12, %s16559_s1 }
 0x269   :  { %p13749_p0 = pnand %p13747_p13, %p13744_p12 }
 0x26b   :  { %13752 = shalt.err (!%p13749_p0)
}
 0x26c   :  { %s13753_s19 = scalar_lea.vmem %s419_s2, 16  ;;  %s13757_s10 = scalar_lea.vmem %s419_s2, 32 }
 0x26d   :  { %p13754_p1 = scmp.ne.s32.totalorder %s419_s2, %s13753_s19  ;;  %p13758_p2 = scmp.lt.s32.totalorder %s419_s2, %s419_s2 }
 0x26e   :  { %p13759_p3 = scmp.lt.s32.totalorder %s13757_s10, %s13753_s19 }
 0x270   :  { %p13760_p4 = por %p13759_p3, %p13758_p2 }
 0x272   :  { %p13761_p5 = pnand %p13760_p4, %p13754_p1 }
 0x274   :  { %13764 = shalt.err (!%p13761_p5)
}
 0x275   :  { %s16560_s4 = sld [smem:[#allocation91_spill]] }
 0x276   :  { %421 = dma.hbm_to_vmem [thread:$0]  %s16559_s1, 16, %s419_s2, [#allocation39]  }
 0x27b   :  { %s13765_s11 = scalar_lea.hbm %s16560_s4, 16 }
 0x27c   :  { %p13766_p6 = scmp.ne.s32.totalorder %s16560_s4, %s13765_s11  ;;  %p13769_p7 = scmp.lt.u32.totalorder %s13765_s11, %s16560_s4 }
 0x27e   :  { %p13771_p8 = pnand %p13769_p7, %p13766_p6 }
 0x280   :  { %13774 = shalt.err (!%p13771_p8)
}
 0x281   :  { %s13775_s27 = scalar_lea.vmem %s445_s7, 16  ;;  %s13779_s0 = scalar_lea.vmem %s445_s7, 32 }
 0x282   :  { %p13776_p9 = scmp.ne.s32.totalorder %s445_s7, %s13775_s27  ;;  %p13780_p10 = scmp.lt.s32.totalorder %s445_s7, %s445_s7 }
 0x283   :  { %p13781_p11 = scmp.lt.s32.totalorder %s13779_s0, %s13775_s27 }
 0x285   :  { %p13782_p12 = por %p13781_p11, %p13780_p10 }
 0x287   :  { %p13783_p13 = pnand %p13782_p12, %p13776_p9 }
 0x289   :  { %13786 = shalt.err (!%p13783_p13)
}
 0x28a   :  { %s16561_s6 = sld [smem:[#allocation95_spill]]  ;;  %s13951_s29 = smov [#allocation46]  }
 0x28b   :  { %447 = dma.hbm_to_vmem [thread:$0]  %s16560_s4, 16, %s445_s7, [#allocation42]  }
 0x28c   :  { %s470_s15 = sshll.u32 %s13951_s29, 4  ;;  %s471_s15 = int_to_ptr.vmem [resolvable:$true] %s470_s15 }
 0x290   :  { %s13787_s14 = scalar_lea.hbm %s16561_s6, 16 }
 0x291   :  { %p13788_p0 = scmp.ne.s32.totalorder %s16561_s6, %s13787_s14  ;;  %p13791_p1 = scmp.lt.u32.totalorder %s13787_s14, %s16561_s6 }
 0x293   :  { %p13793_p2 = pnand %p13791_p1, %p13788_p0 }
 0x295   :  { %13796 = shalt.err (!%p13793_p2)
}
 0x296   :  { %s13797_s17 = scalar_lea.vmem %s471_s15, 16  ;;  %s13801_s16 = scalar_lea.vmem %s471_s15, 32 }
 0x297   :  { %p13798_p3 = scmp.ne.s32.totalorder %s471_s15, %s13797_s17  ;;  %p13802_p4 = scmp.lt.s32.totalorder %s471_s15, %s471_s15 }
 0x298   :  { %p13803_p5 = scmp.lt.s32.totalorder %s13801_s16, %s13797_s17 }
 0x29a   :  { %p13804_p6 = por %p13803_p5, %p13802_p4 }
 0x29c   :  { %p13805_p7 = pnand %p13804_p6, %p13798_p3 }
 0x29e   :  { %13808 = shalt.err (!%p13805_p7)
}
 0x29f   :  { %473 = dma.hbm_to_vmem [thread:$0]  %s16561_s6, 16, %s471_s15, [#allocation45]  }
 0x2a0   :  { %13831 = dma.done.wait [#allocation3], 256  }
 0x2a1   :  { %13832 = vsyncadd [#allocation3], 4294967040 }
 0x2a2   :  { %13833 = dma.done.wait [#allocation6], 512  }
 0x2a3   :  { %13834 = vsyncadd [#allocation6], 4294966784 }
 0x2a4   :  { %13835 = dma.done.wait [#allocation9], 384  }
 0x2a5   :  { %13836 = vsyncadd [#allocation9], 4294966912 }
 0x2a6   :  { %13837 = dma.done.wait [#allocation12], 144  }
 0x2a7   :  { %13838 = vsyncadd [#allocation12], 4294967152 }
 0x2a8   :  { %13839 = dma.done.wait [#allocation15], 32  }
 0x2a9   :  { %13840 = vsyncadd [#allocation15], 4294967264 }
 0x2aa   :  { %13841 = dma.done.wait [#allocation18], 32  }
 0x2ab   :  { %13842 = vsyncadd [#allocation18], 4294967264 }
 0x2ac   :  { %13843 = dma.done.wait [#allocation21], 528  }
 0x2ad   :  { %13844 = vsyncadd [#allocation21], 4294966768 }
 0x2ae   :  { %13845 = dma.done.wait [#allocation24], 32  }
 0x2af   :  { %13846 = vsyncadd [#allocation24], 4294967264 }
 0x2b0   :  { %13847 = dma.done.wait [#allocation27], 528  }
 0x2b1   :  { %13848 = vsyncadd [#allocation27], 4294966768 }
 0x2b2   :  { %13849 = dma.done.wait [#allocation30], 32  }
 0x2b3   :  { %13850 = vsyncadd [#allocation30], 4294967264 }
 0x2b4   :  { %13851 = dma.done.wait [#allocation33], 32  }
 0x2b5   :  { %13852 = vsyncadd [#allocation33], 4294967264 }
 0x2b6   :  { %13853 = dma.done.wait [#allocation36], 32  }
 0x2b7   :  { %13854 = vsyncadd [#allocation36], 4294967264 }
 0x2b8   :  { %13855 = dma.done.wait [#allocation39], 32  }
 0x2b9   :  { %13856 = vsyncadd [#allocation39], 4294967264 }
 0x2ba   :  { %13857 = dma.done.wait [#allocation42], 32  }
 0x2bb   :  { %13858 = vsyncadd [#allocation42], 4294967264 }
 0x2bc   :  { %13859 = dma.done.wait [#allocation45], 32  }
 0x2bd   :  { %13860 = vsyncadd [#allocation45], 4294967264  ;;  %s16562_s18 = sld [smem:[#allocation67_spill]]  ;;  %s16563_s22 = sld [smem:[#allocation68_spill]]  ;;  %v14407_v5 = vld [vmem:[#allocation2] sm:$0xff]  ;;  %v14409_v6 = vld [vmem:[#allocation8] sm:$0xff]  ;;  %v1146_v31 = vlaneseq }
 0x2be   :  { %s16564_s30 = sld [smem:[#allocation69_spill]]  ;;  %vm890_vm0 = vcmask 261120   ;;  %v880_v8 = vadd.f32 %v14409_v6, %v14407_v5  ;;  %v14416_v11 = vld [vmem:[#allocation2 + $0x8] sm:$0xff]  ;;  %v14418_v12 = vld [vmem:[#allocation8 + $0x8] sm:$0xff]  ;;  %v587_v13 = vld [vmem:[#allocation5] sm:$0xff]  ;;  %v13952_v27 = vmov 0.0  }
 0x2bf   :  { %v589_v15 = vld [vmem:[#allocation7] sm:$0xff]  ;;  %11347 = vmatprep.mubr.msk.f32.mxu0 %vm890_vm0, %v587_v13  ;;  %v881_v21 = vadd.f32 %v14418_v12, %v14416_v11  ;;  %v588_v24 = vld [vmem:[#allocation5 + $0x8] sm:$0xff]  ;;  %v590_v25 = vld [vmem:[#allocation7 + $0x8] sm:$0xff]  ;;  %vm13953_vm1 = vmmov 0   ;;  %v14439_v32 = vand.u32 127, %v1146_v31  ;;  %vm1307_vm6 = vcmask 64512  }
 0x2c0   :  { %11325 = vmatprep.mubr.msk.f32.mxu1 %vm890_vm0, %v880_v8  ;;  %v882_v22 = vadd.f32 %v589_v15, %v587_v13  ;;  %v883_v26 = vadd.f32 %v590_v25, %v588_v24  ;;  %v10464_v35 = vld [vmem:[#allocation13] ss:$0 sm:$0xff]  ;;  %v10467_v38 = vld [vmem:[#allocation14] ss:$0 sm:$0xff]  ;;  %v10470_v53 = vld [vmem:[#allocation16] ss:$0 sm:$0xff] }
 0x2c1   :  { %vm1332_vm2 = vcmp.ge.s32.totalorder %v14439_v32, 8  ;;  %vm1333_vm3 = vcmp.lt.s32.totalorder %v14439_v32, 16  ;;  %vm1149_vm4 = vcmp.lt.s32.totalorder %v14439_v32, 8  ;;  %v14508_v58 = vld [vmem:[#allocation10] sm:$0xff]  ;;  %vm1801_vm7 = vcmp.ge.s32.totalorder %v14439_v32, 16  ;;  %s16565_s20 = sld [smem:[#allocation72_spill]] }
 0x2c2   :  { %vm1334_vm5 = vmand %vm1332_vm2, %vm1333_vm3  ;;  %v14447_v36 = vsel %vm1149_vm4, 1.0, %v13952_v27  ;;  %vm1802_vm8 = vcmp.lt.s32.totalorder %v14439_v32, 24  ;;  %vm2126_vm10 = vcmp.ge.s32.totalorder %v14439_v32, 24  ;;  %vm2127_vm11 = vcmp.lt.s32.totalorder %v14439_v32, 32  ;;  %s16566_s25 = sld [smem:[#allocation74_spill]]  ;;  %s16567_s23 = sld [smem:[#allocation75_spill]] }
 0x2c3   :  { %v595_v0 = vld [vmem:[%s16562_s18] sm:$0xff]  ;;  %v596_v1 = vld [vmem:[%s16562_s18 + $0x8] sm:$0xff]  ;;  %v597_v2 = vld [vmem:[%s16562_s18 + $0x10] sm:$0xff]  ;;  %v14450_v37 = vsel %vm1334_vm5, 1.0, %v13952_v27  ;;  %v14453_v40 = vmul.f32 0.35355338, %v14447_v36 }
 0x2c4   :  { %v12197_v3 = vpack.c.bf16 %v596_v1, %v595_v0  ;;  %v598_v4 = vld [vmem:[%s16562_s18 + $0x18] sm:$0xff]  ;;  %v599_v9 = vld [vmem:[%s16563_s22] sm:$0xff]  ;;  %v600_v10 = vld [vmem:[%s16563_s22 + $0x8] sm:$0xff]  ;;  %v14456_v41 = vmul.f32 0.35355338, %v14450_v37  ;;  %s16568_s24 = sld [smem:[#allocation80_spill]] }
 0x2c5   :  { %v12201_v7 = vpack.c.bf16 %v598_v4, %v597_v2  ;;  %v12205_v14 = vpack.c.bf16 %v600_v10, %v599_v9  ;;  %v603_v16 = vld [vmem:[%s16564_s30] sm:$0xff]  ;;  %v604_v17 = vld [vmem:[%s16564_s30 + $0x8] sm:$0xff]  ;;  %v601_v18 = vld [vmem:[%s16563_s22 + $0x10] sm:$0xff]  ;;  %s16569_s1 = sld [smem:[#allocation84_spill]]  ;;  %s16570_s8 = sld [smem:[#allocation82_spill]]  ;;  %vm4356_vm13 = vcmask 523264  }
 0x2c6   :  { %12198 = vmatprep.subr.bf16.mxu1 %v12197_v3  ;;  %v602_v19 = vld [vmem:[%s16563_s22 + $0x18] sm:$0xff]  ;;  %v12213_v20 = vpack.c.bf16 %v604_v17, %v603_v16  ;;  %v605_v28 = vld [vmem:[%s16564_s30 + $0x10] sm:$0xff]  ;;  %vm1803_vm9 = vmand %vm1801_vm7, %vm1802_vm8  ;;  %s16571_s2 = sld [smem:[#allocation86_spill]]  ;;  %s16578_s9 = sld [smem:[#allocation85_spill]]  ;;  %vm6421_vm14 = vcmp.ge.s32.totalorder %v14439_v32, 6  ;;  %vm5225_vm15 = vcmp.ge.s32.totalorder %v14439_v32, 2 }
 0x2c7   :  { %12200 = vmatpush3.bf16.msra.mxu1 %v12197_v3  ;;  %v12209_v23 = vpack.c.bf16 %v602_v19, %v601_v18  ;;  %v606_v29 = vld [vmem:[%s16564_s30 + $0x18] sm:$0xff]  ;;  %vm2128_vm12 = vmand %vm2126_vm10, %vm2127_vm11  ;;  %s16579_s7 = sld [smem:[#allocation88_spill]]  ;;  %vm5916_vm2 = vcmp.ge.s32.totalorder %v14439_v32, 4  ;;  %vm5917_vm3 = vcmp.lt.s32.totalorder %v14439_v32, 6  ;;  %vm4899_vm7 = vcmp.lt.s32.totalorder %v14439_v32, 2  ;;  %s16588_s12 = sld [smem:[#allocation89_spill]] }
 0x2c8   :  { %12202 = vmatprep.subr.bf16.mxu1 %v12201_v7  ;;  %12214 = vmatprep.subr.bf16.mxu0 %v12213_v20  ;;  %v12217_v30 = vpack.c.bf16 %v606_v29, %v605_v28  ;;  %vm6422_vm5 = vmand %vm6421_vm14, %vm1149_vm4  ;;  %s16589_s19 = sld [smem:[#allocation90_spill]]  ;;  %s16593_s10 = sld [smem:[#allocation93_spill]] }
 0x2c9   :  { %12216 = vmatpush3.bf16.msra.mxu0 %v12213_v20  ;;  %vm15029_vm4 = vmpackc.low %vm1307_vm6, %vm1307_vm6  ;;  %s16595_s4 = sld [smem:[#allocation92_spill]]  ;;  %s16596_s11 = sld [smem:[#allocation94_spill]] }
 0x2ca   :  { %12218 = vmatprep.subr.bf16.mxu0 %v12217_v30  ;;  %s16597_s27 = sld [smem:[#allocation96_spill]]  ;;  %s16601_s0 = sld [smem:[#allocation97_spill]] }
 0x2cb   :  { %12204 = vmatpush3.bf16.msra.mxu1 %v12201_v7  ;;  %s16605_s6 = sld [smem:[#allocation98_spill]]  ;;  %s16606_s29 = sld [smem:[#allocation99_spill]] }
 0x2cc   :  { %12206 = vmatprep.subr.bf16.mxu1 %v12205_v14  ;;  %s16608_s15 = sld [smem:[#allocation102_spill]]  ;;  %s16610_s14 = sld [smem:[#allocation104_spill]] }
 0x2cd   :  { %12220 = vmatpush3.bf16.msra.mxu0 %v12217_v30  ;;  %s16611_s17 = sld [smem:[#allocation100_spill]]  ;;  %s16612_s16 = sld [smem:[#allocation101_spill]] }
 0x2ce   :  { %11326 = vmatmul.mubr.msk.f32.vlgmr.msra.gmra.mrb[0].mxu1 %vm890_vm0, %v881_v21  ;;  %11360 = vmatprep.subr.mxu0 %v13952_v27  ;;  %s16613_s18 = sld [smem:[#allocation103_spill]] }
 0x2cf   :  { %12208 = vmatpush3.bf16.msra.mxu1 %v12205_v14  ;;  %11336 = vmatprep.mubr.msk.f32.mxu1 %vm890_vm0, %v882_v22 }
 0x2d0   :  { %12210 = vmatprep.subr.bf16.mxu1 %v12209_v23  ;;  %11348 = vmatmul.mubr.msk.f32.vlgmr.msra.gmra.mrb[0].mxu0 %vm890_vm0, %v588_v24 }
 0x2d1   :  { %11362 = vmatprep.mubr.msk.f32.mxu0 %vm13953_vm1, %v13952_v27 }
 0x2d3   :  { %12212 = vmatpush3.bf16.msra.mxu1 %v12209_v23 }
 0x2d4   :  { %11350 = vmatprep.subr.mxu1 %v13952_v27 }
 0x2d6   :  { %11337 = vmatmul.mubr.msk.f32.vlgmr.msra.gmra.mrb[2].mxu1 %vm890_vm0, %v883_v26 }
 0x2d7   :  { %11352 = vmatprep.mubr.msk.f32.mxu1 %vm13953_vm1, %v13952_v27 }
 0x3a1   :  { %v11327_v33 = vpop.f32.mrb[0].mxu1 }
 0x3a2   :  { %v963_v34 = vpop.f32.mrb[1].mxu1  ;;  %v14466_v45 = vadd.f32 %v11327_v33, %v10464_v35 }
 0x3a3   :  { %v14458_v42 = vadd.f32 %v10464_v35, %v963_v34  ;;  %v11349_v51 = vpop.f32.mrb[0].mxu0 }
 0x3a4   :  { %v1154_v49 = vmul.f32 %v14453_v40, %v14466_v45  ;;  %v1338_v50 = vmul.f32 %v14456_v41, %v14466_v45  ;;  %v1137_v52 = vpop.f32.mrb[1].mxu0  ;;  %v14498_v54 = vadd.f32 %v11349_v51, %v10470_v53 }
 0x3a5   :  { %v1153_v46 = vmul.f32 %v14453_v40, %v14458_v42  ;;  %v1337_v47 = vmul.f32 %v14456_v41, %v14458_v42  ;;  %v14500_v55 = vadd.f32 %v10470_v53, %v1137_v52  ;;  %v14531_v53 = vsel %vm1803_vm9, 1.0, %v13952_v27  ;;  %vm5918_vm9 = vmand %vm5916_vm2, %vm5917_vm3 }
 0x3a6   :  { %v1508_v57 = vmul.f32 %v14450_v37, %v14498_v54 }
 0x3a7   :  { %v1507_v56 = vmul.f32 %v14450_v37, %v14500_v55  ;;  %v1330_v51 = vmul.f32 %v14447_v36, %v14500_v55 }
 0x3a9   :  { %v11338_v39 = vpop.f32.mrb[2].mxu1 }
 0x3aa   :  { %v1050_v43 = vpop.f32.mrb[3].mxu1  ;;  %v14474_v48 = vadd.f32 %v11338_v39, %v10467_v38 }
 0x3ab   :  { %v14460_v44 = vadd.f32 %v10467_v38, %v1050_v43 }
 0x3ad   :  { %11351 = vmatpush3.xpose.msk.msra.mxu1 %vm890_vm0, %v14460_v44  ;;  %11361 = vmatpush3.xpose.msk.msra.mxu0 %vm890_vm0, %v14460_v44 }
 0x3ae   :  { %11355 = vmatprep.subr.mxu1 %v13952_v27  ;;  %11370 = vmatprep.subr.mxu0 %v13952_v27 }
 0x3b0   :  { %11353 = vmatmul.mubr.msk.f32.vlgmr.msra.gmra.mrb[4].mxu1 %vm890_vm0, %v1153_v46  ;;  %11363 = vmatmul.mubr.msk.f32.vlgmr.msra.gmra.mrb[2].mxu0 %vm890_vm0, %v1337_v47 }
 0x3b1   :  { %11356 = vmatpush3.xpose.msk.msra.mxu1 %vm890_vm0, %v14474_v48  ;;  %11357 = vmatprep.mubr.msk.f32.mxu1 %vm13953_vm1, %v13952_v27 }
 0x3b2   :  { %11365 = vmatprep.subr.mxu1 %v13952_v27  ;;  %11372 = vmatprep.mubr.msk.f32.mxu0 %vm13953_vm1, %v13952_v27 }
 0x3b3   :  { %11371 = vmatpush3.msra.mxu0 %v1507_v56 }
 0x3b4   :  { %11358 = vmatmul.mubr.msk.f32.vlgmr.msra.gmra.mrb[6].mxu1 %vm890_vm0, %v1154_v49  ;;  %11380 = vmatprep.subr.mxu0 %v13952_v27 }
 0x3b5   :  { %11366 = vmatpush3.xpose.msk.msra.mxu1 %vm890_vm0, %v14474_v48  ;;  %11367 = vmatprep.mubr.msk.f32.mxu1 %vm13953_vm1, %v13952_v27 }
 0x3b6   :  { %11375 = vmatprep.subr.mxu1 %v13952_v27 }
 0x3b8   :  { %11368 = vmatmul.mubr.msk.f32.vlgmr.msra.gmra.mrb[8].mxu1 %vm890_vm0, %v1338_v50 }
 0x3b9   :  { %11377 = vmatprep.mubr.msk.f32.mxu1 %vm13953_vm1, %v13952_v27  ;;  %11376 = vmatpush3.msra.mxu1 %v1508_v57  ;;  %v14534_v57 = vmul.f32 0.35355338, %v14531_v53 }
 0x3ba   :  { %11385 = vmatprep.subr.mxu1 %v13952_v27 }
 0x483   :  { %v1227_v59 = vpop.f32.mrb[4].mxu1  ;;  %v1408_v60 = vpop.f32.mrb[2].mxu0 }
 0x484   :  { %v1228_v61 = vadd.f32 %v1227_v59, %v14508_v58  ;;  %v1409_v62 = vadd.f32 %v1408_v60, %v14508_v58  ;;  %v11354_v63 = vpop.f32.mrb[5].mxu1  ;;  %v11364_v0 = vpop.f32.mrb[3].mxu0 }
 0x485   :  { %v1976_v0 = vmul.f32 %v14531_v53, %v14500_v55 }
 0x486   :  { %v1485_v1 = vsel %vm1307_vm6, %v1409_v62, -inf  ;;  %v1308_v2 = vsel %vm1307_vm6, %v1228_v61, -inf }
 0x487   :  { %1486 = vmax.xlane.f32.xlu0 %v1485_v1  ;;  %1309 = vmax.xlane.f32.xlu1 %v1308_v2  ;;  %v1303_v3 = vpop.f32.mrb[6].mxu1  ;;  %v1807_v2 = vmul.f32 %v14534_v57, %v14466_v45 }
 0x488   :  { %v1304_v4 = vadd.f32 %v1303_v3, %v14508_v58  ;;  %v11359_v7 = vpop.f32.mrb[7].mxu1  ;;  %v1977_v3 = vmul.f32 %v14531_v53, %v14498_v54 }
 0x48a   :  { %v1311_v8 = vsel %vm1307_vm6, %v1304_v4, -inf }
 0x48b   :  { %1312 = vmax.xlane.f32.xlu1 %v1311_v8  ;;  %v1481_v9 = vpop.f32.mrb[8].mxu1 }
 0x48c   :  { %v1482_v10 = vadd.f32 %v1481_v9, %v14508_v58  ;;  %v11369_v13 = vpop.f32.mrb[9].mxu1 }
 0x48e   :  { %v1488_v14 = vsel %vm1307_vm6, %v1482_v10, -inf }
 0x48f   :  { %1489 = vmax.xlane.f32.xlu0 %v1488_v14 }
 0x514   :  { %v1487_v15 = vpop.xlane.xlu0 %1486  ;;  %v1310_v16 = vpop.xlane.xlu1 %1309 }
 0x515   :  { %v1491_v17 = vsub.f32 %v1409_v62, %v1487_v15  ;;  %v1314_v18 = vsub.f32 %v1228_v61, %v1310_v16  ;;  %v1331_v61 = vmul.f32 %v14447_v36, %v14498_v54  ;;  %v1806_v62 = vmul.f32 %v14534_v57, %v14458_v42 }
 0x517   :  { %v1493_v19 = vmul.f32 1.442695, %v1491_v17  ;;  %v1316_v20 = vmul.f32 1.442695, %v1314_v18 }
 0x518   :  { %v1313_v21 = vpop.xlane.xlu1 %1312 }
 0x519   :  { %12785 = vpow2.f32 %v1493_v19  ;;  %v1315_v22 = vsub.f32 %v1304_v4, %v1313_v21 }
 0x51a   :  { %12787 = vpow2.f32 %v1316_v20 }
 0x51b   :  { %v1318_v25 = vmul.f32 1.442695, %v1315_v22 }
 0x51c   :  { %v1490_v23 = vpop.xlane.xlu0 %1489 }
 0x51d   :  { %v1492_v24 = vsub.f32 %v1482_v10, %v1490_v23 }
 0x51f   :  { %v1495_v26 = vmul.f32 1.442695, %v1492_v24 }
 0x521   :  { %12789 = vpow2.f32 %v1495_v26 }
 0x522   :  { %12791 = vpow2.f32 %v1318_v25 }
 0x523   :  { %v12786_v28 = vpop.eup %12785 }
 0x524   :  { %v1497_v29 = vsel %vm1307_vm6, %v12786_v28, 0.0  ;;  %v12788_v30 = vpop.eup %12787 }
 0x525   :  { %1498 = vadd.xlane.f32.xlu0 %v1497_v29  ;;  %v1320_v31 = vsel %vm1307_vm6, %v12788_v30, 0.0  ;;  %v14579_v29 = vsel %vm2128_vm12, 1.0, %v13952_v27 }
 0x529   :  { %1321 = vadd.xlane.f32.xlu0 %v1320_v31  ;;  %v14582_v31 = vmul.f32 0.35355338, %v14579_v29 }
 0x52b   :  { %v12790_v33 = vpop.eup %12789 }
 0x52c   :  { %v1500_v34 = vsel %vm1307_vm6, %v12790_v33, 0.0  ;;  %v12792_v35 = vpop.eup %12791 }
 0x52d   :  { %1501 = vadd.xlane.f32.xlu1 %v1500_v34  ;;  %v1323_v38 = vsel %vm1307_vm6, %v12792_v35, 0.0  ;;  %v2131_v34 = vmul.f32 %v14582_v31, %v14458_v42  ;;  %v2132_v42 = vmul.f32 %v14582_v31, %v14466_v45 }
 0x531   :  { %1324 = vadd.xlane.f32.xlu1 %v1323_v38 }
 0x5b2   :  { %v1499_v39 = vpop.xlane.xlu0 %1498 }
 0x5b3   :  { %12793 = vrcp.f32 %v1499_v39 }
 0x5b6   :  { %v1322_v43 = vpop.xlane.xlu0 %1321 }
 0x5b7   :  { %12795 = vrcp.f32 %v1322_v43 }
 0x5ba   :  { %v1502_v46 = vpop.xlane.xlu1 %1501 }
 0x5bb   :  { %12797 = vrcp.f32 %v1502_v46 }
 0x5bd   :  { %v12794_v47 = vpop.eup %12793 }
 0x5be   :  { %v1325_v49 = vpop.xlane.xlu1 %1324  ;;  %v1505_v50 = vmul.f32 %v12794_v47, %v12786_v28 }
 0x5bf   :  { %12799 = vrcp.f32 %v1325_v49 }
 0x5c0   :  { %11373 = vmatmul.mubr.msk.f32.vlgmr.msra.gmra.mrb[4].mxu0 %vm1307_vm6, %v1505_v50 }
 0x5c1   :  { %11381 = vmatpush3.msra.mxu0 %v1330_v51  ;;  %11382 = vmatprep.mubr.msk.f32.mxu0 %vm13953_vm1, %v13952_v27  ;;  %v12796_v52 = vpop.eup %12795 }
 0x5c2   :  { %11390 = vmatprep.subr.mxu0 %v13952_v27  ;;  %v1328_v60 = vmul.f32 %v12796_v52, %v12788_v30 }
 0x5c5   :  { %v12798_v56 = vpop.eup %12797 }
 0x5c6   :  { %v1506_v59 = vmul.f32 %v12798_v56, %v12790_v33 }
 0x5c8   :  { %11378 = vmatmul.mubr.msk.f32.vlgmr.msra.gmra.mrb[10].mxu1 %vm1307_vm6, %v1506_v59  ;;  %11383 = vmatmul.mubr.msk.f32.vlgmr.msra.gmra.mrb[4].mxu0 %vm1307_vm6, %v1328_v60 }
 0x5c9   :  { %11386 = vmatpush3.msra.mxu1 %v1331_v61  ;;  %11391 = vmatpush3.xpose.msk.msra.mxu0 %vm890_vm0, %v14460_v44  ;;  %v12800_v63 = vpop.eup %12799 }
 0x5ca   :  { %11392 = vmatprep.mubr.msk.f32.mxu0 %vm13953_vm1, %v13952_v27  ;;  %11400 = vmatprep.subr.mxu0 %v13952_v27  ;;  %v1329_v1 = vmul.f32 %v12800_v63, %v12792_v35  ;;  %v2301_v35 = vmul.f32 %v14579_v29, %v14500_v55 }
 0x5cb   :  { %11387 = vmatprep.mubr.msk.f32.mxu1 %vm13953_vm1, %v13952_v27  ;;  %11395 = vmatprep.subr.mxu1 %v13952_v27 }
 0x5cc   :  { %11393 = vmatmul.mubr.msk.f32.vlgmr.msra.gmra.mrb[6].mxu0 %vm890_vm0, %v1806_v62 }
 0x5cd   :  { %11401 = vmatpush3.msra.mxu0 %v1976_v0  ;;  %11402 = vmatprep.mubr.msk.f32.mxu0 %vm13953_vm1, %v13952_v27 }
 0x5ce   :  { %11410 = vmatprep.subr.mxu0 %v13952_v27 }
 0x5d0   :  { %11388 = vmatmul.mubr.msk.f32.vlgmr.msra.gmra.mrb[10].mxu1 %vm1307_vm6, %v1329_v1 }
 0x5d1   :  { %11396 = vmatpush3.xpose.msk.msra.mxu1 %vm890_vm0, %v14474_v48  ;;  %11397 = vmatprep.mubr.msk.f32.mxu1 %vm13953_vm1, %v13952_v27 }
 0x5d2   :  { %11405 = vmatprep.subr.mxu1 %v13952_v27 }
 0x5d4   :  { %11398 = vmatmul.mubr.msk.f32.vlgmr.msra.gmra.mrb[12].mxu1 %vm890_vm0, %v1807_v2 }
 0x5d5   :  { %11406 = vmatpush3.msra.mxu1 %v1977_v3  ;;  %11407 = vmatprep.mubr.msk.f32.mxu1 %vm13953_vm1, %v13952_v27 }
 0x5d6   :  { %11415 = vmatprep.subr.mxu1 %v13952_v27 }
 0x69f   :  { %v1877_v4 = vpop.f32.mrb[6].mxu0 }
 0x6a0   :  { %v1878_v7 = vadd.f32 %v1877_v4, %v14508_v58  ;;  %v11394_v8 = vpop.f32.mrb[7].mxu0 }
 0x6a1   :  { %v610_v8 = vld [vmem:[%s16565_s20] sm:$0xff] }
 0x6a2   :  { %v1954_v9 = vsel %vm1307_vm6, %v1878_v7, -inf }
 0x6a3   :  { %1955 = vmax.xlane.f32.xlu0 %v1954_v9  ;;  %v611_v9 = vld [vmem:[%s16565_s20 + $0x8] sm:$0xff] }
 0x6a7   :  { %v1950_v10 = vpop.f32.mrb[12].mxu1 }
 0x6a8   :  { %v1951_v13 = vadd.f32 %v1950_v10, %v14508_v58  ;;  %v11399_v14 = vpop.f32.mrb[13].mxu1  ;;  %v12221_v10 = vpack.c.bf16 %v611_v9, %v610_v8 }
 0x6a9   :  { %v613_v14 = vld [vmem:[%s16565_s20 + $0x18] sm:$0xff] }
 0x6aa   :  { %v1957_v15 = vsel %vm1307_vm6, %v1951_v13, -inf }
 0x6ab   :  { %1958 = vmax.xlane.f32.xlu1 %v1957_v15 }
 0x730   :  { %v1956_v16 = vpop.xlane.xlu0 %1955 }
 0x731   :  { %v1960_v17 = vsub.f32 %v1878_v7, %v1956_v16 }
 0x733   :  { %v1962_v18 = vmul.f32 1.442695, %v1960_v17 }
 0x735   :  { %12801 = vpow2.f32 %v1962_v18 }
 0x738   :  { %v1959_v19 = vpop.xlane.xlu1 %1958 }
 0x739   :  { %v1961_v20 = vsub.f32 %v1951_v13, %v1959_v19  ;;  %v612_v13 = vld [vmem:[%s16565_s20 + $0x10] sm:$0xff] }
 0x73a   :  { %v12225_v15 = vpack.c.bf16 %v613_v14, %v612_v13  ;;  %v10500_v13 = vld [vmem:[#allocation19] ss:$0 sm:$0xff] }
 0x73b   :  { %v1964_v21 = vmul.f32 1.442695, %v1961_v20  ;;  %v10497_v20 = vld [vmem:[#allocation17] ss:$0 sm:$0xff] }
 0x73d   :  { %12803 = vpow2.f32 %v1964_v21 }
 0x73f   :  { %v12802_v22 = vpop.eup %12801 }
 0x740   :  { %v1966_v23 = vsel %vm1307_vm6, %v12802_v22, 0.0 }
 0x741   :  { %1967 = vadd.xlane.f32.xlu0 %v1966_v23 }
 0x747   :  { %v12804_v24 = vpop.eup %12803 }
 0x748   :  { %v1969_v25 = vsel %vm1307_vm6, %v12804_v24, 0.0 }
 0x749   :  { %1970 = vadd.xlane.f32.xlu1 %v1969_v25 }
 0x7ce   :  { %v1968_v26 = vpop.xlane.xlu0 %1967 }
 0x7cf   :  { %12805 = vrcp.f32 %v1968_v26 }
 0x7d6   :  { %v1971_v28 = vpop.xlane.xlu1 %1970 }
 0x7d7   :  { %12807 = vrcp.f32 %v1971_v28 }
 0x7d9   :  { %v12806_v30 = vpop.eup %12805 }
 0x7da   :  { %v1974_v33 = vmul.f32 %v12806_v30, %v12802_v22 }
 0x7dc   :  { %11403 = vmatmul.mubr.msk.f32.vlgmr.msra.gmra.mrb[4].mxu0 %vm1307_vm6, %v1974_v33 }
 0x7dd   :  { %11411 = vmatpush3.xpose.msk.msra.mxu0 %vm890_vm0, %v14460_v44  ;;  %11412 = vmatprep.mubr.msk.f32.mxu0 %vm13953_vm1, %v13952_v27  ;;  %v2302_v44 = vmul.f32 %v14579_v29, %v14498_v54 }
 0x7de   :  { %11420 = vmatprep.subr.mxu0 %v13952_v27 }
 0x7e0   :  { %11413 = vmatmul.mubr.msk.f32.vlgmr.msra.gmra.mrb[8].mxu0 %vm890_vm0, %v2131_v34 }
 0x7e1   :  { %v12808_v38 = vpop.eup %12807  ;;  %11421 = vmatpush3.msra.mxu0 %v2301_v35  ;;  %11422 = vmatprep.mubr.msk.f32.mxu0 %vm13953_vm1, %v13952_v27 }
 0x7e2   :  { %v1975_v39 = vmul.f32 %v12808_v38, %v12804_v24  ;;  %12222 = vmatprep.subr.bf16.mxu0 %v12221_v10  ;;  %v617_v38 = vld [vmem:[%s16566_s25] sm:$0xff] }
 0x7e4   :  { %11408 = vmatmul.mubr.msk.f32.vlgmr.msra.gmra.mrb[10].mxu1 %vm1307_vm6, %v1975_v39 }
 0x7e5   :  { %11416 = vmatpush3.xpose.msk.msra.mxu1 %vm890_vm0, %v14474_v48  ;;  %11417 = vmatprep.mubr.msk.f32.mxu1 %vm13953_vm1, %v13952_v27 }
 0x7e6   :  { %11425 = vmatprep.subr.mxu1 %v13952_v27 }
 0x7e8   :  { %11418 = vmatmul.mubr.msk.f32.vlgmr.msra.gmra.mrb[14].mxu1 %vm890_vm0, %v2132_v42  ;;  %v621_v42 = vld [vmem:[%s16567_s23] sm:$0xff] }
 0x7e9   :  { %11426 = vmatpush3.msra.mxu1 %v2302_v44  ;;  %11427 = vmatprep.mubr.msk.f32.mxu1 %vm13953_vm1, %v13952_v27  ;;  %v622_v44 = vld [vmem:[%s16567_s23 + $0x8] sm:$0xff] }
 0x8b3   :  { %v2202_v55 = vpop.f32.mrb[8].mxu0 }
 0x8b4   :  { %v2203_v48 = vadd.f32 %v2202_v55, %v14508_v58  ;;  %v11414_v43 = vpop.f32.mrb[9].mxu0  ;;  %v12237_v55 = vpack.c.bf16 %v622_v44, %v621_v42  ;;  %v10508_v44 = vld [vmem:[#allocation26] ss:$0 sm:$0xff] }
 0x8b5   :  { %v620_v43 = vld [vmem:[%s16566_s25 + $0x18] sm:$0xff] }
 0x8b6   :  { %v2279_v46 = vsel %vm1307_vm6, %v2203_v48, -inf }
 0x8b7   :  { %2280 = vmax.xlane.f32.xlu0 %v2279_v46  ;;  %v623_v46 = vld [vmem:[%s16567_s23 + $0x10] sm:$0xff] }
 0x8bb   :  { %v2275_v47 = vpop.f32.mrb[14].mxu1 }
 0x8bc   :  { %v2276_v45 = vadd.f32 %v2275_v47, %v14508_v58  ;;  %v11419_v49 = vpop.f32.mrb[15].mxu1 }
 0x8be   :  { %v2282_v50 = vsel %vm1307_vm6, %v2276_v45, -inf }
 0x8bf   :  { %2283 = vmax.xlane.f32.xlu1 %v2282_v50  ;;  %v625_v50 = vld [vmem:[#allocation22] sm:$0xff] }
 0x944   :  { %v2281_v54 = vpop.xlane.xlu0 %2280 }
 0x945   :  { %v2285_v51 = vsub.f32 %v2203_v48, %v2281_v54  ;;  %v619_v48 = vld [vmem:[%s16566_s25 + $0x10] sm:$0xff]  ;;  %v626_v54 = vld [vmem:[#allocation22 + $0x8] sm:$0xff] }
 0x946   :  { %v12233_v47 = vpack.c.bf16 %v620_v43, %v619_v48 }
 0x947   :  { %v2287_v52 = vmul.f32 1.442695, %v2285_v51  ;;  %v12245_v51 = vpack.c.bf16 %v626_v54, %v625_v50 }
 0x949   :  { %12809 = vpow2.f32 %v2287_v52 }
 0x94c   :  { %v2284_v56 = vpop.xlane.xlu1 %2283 }
 0x94d   :  { %v2286_v59 = vsub.f32 %v2276_v45, %v2284_v56  ;;  %v624_v45 = vld [vmem:[%s16567_s23 + $0x18] sm:$0xff] }
 0x94e   :  { %v12241_v49 = vpack.c.bf16 %v624_v45, %v623_v46 }
 0x94f   :  { %v2289_v60 = vmul.f32 1.442695, %v2286_v59 }
 0x951   :  { %12811 = vpow2.f32 %v2289_v60 }
 0x953   :  { %v12810_v61 = vpop.eup %12809 }
 0x954   :  { %v2291_v62 = vsel %vm1307_vm6, %v12810_v61, 0.0 }
 0x955   :  { %2292 = vadd.xlane.f32.xlu0 %v2291_v62 }
 0x95b   :  { %v12812_v63 = vpop.eup %12811 }
 0x95c   :  { %v2294_v58 = vsel %vm1307_vm6, %v12812_v63, 0.0 }
 0x95d   :  { %2295 = vadd.xlane.f32.xlu1 %v2294_v58 }
 0x9e2   :  { %v2293_v0 = vpop.xlane.xlu0 %2292 }
 0x9e3   :  { %12813 = vrcp.f32 %v2293_v0 }
 0x9ea   :  { %v2296_v1 = vpop.xlane.xlu1 %2295 }
 0x9eb   :  { %12815 = vrcp.f32 %v2296_v1 }
 0x9ed   :  { %v12814_v2 = vpop.eup %12813 }
 0x9ee   :  { %v2299_v3 = vmul.f32 %v12814_v2, %v12810_v61 }
 0x9f0   :  { %11423 = vmatmul.mubr.msk.f32.vlgmr.msra.gmra.mrb[4].mxu0 %vm1307_vm6, %v2299_v3 }
 0x9f1   :  { %12224 = vmatpush3.bf16.msra.mxu0 %v12221_v10 }
 0x9f2   :  { %12226 = vmatprep.subr.bf16.mxu0 %v12225_v15 }
 0x9f5   :  { %v12816_v4 = vpop.eup %12815  ;;  %12228 = vmatpush3.bf16.msra.mxu0 %v12225_v15 }
 0x9f6   :  { %v2300_v7 = vmul.f32 %v12816_v4, %v12812_v63  ;;  %12238 = vmatprep.subr.bf16.mxu0 %v12237_v55 }
 0x9f8   :  { %11428 = vmatmul.mubr.msk.f32.vlgmr.msra.gmra.mrb[10].mxu1 %vm1307_vm6, %v2300_v7 }
 0xac3   :  { %v2372_v16 = vpop.f32.mrb[4].mxu0 }
 0xac4   :  { %v11424_v17 = vpop.f32.mrb[5].mxu0  ;;  %11438 = vmatprep.mubr.msk.f32.mxu0 %vm890_vm0, %v2372_v16 }
 0xac5   :  { %v10501_v17 = vld [vmem:[#allocation20] ss:$0 sm:$0xff] }
 0xacb   :  { %v2445_v18 = vpop.f32.mrb[10].mxu1 }
 0xacc   :  { %v11429_v19 = vpop.f32.mrb[11].mxu1  ;;  %11439 = vmatmul.mubr.msk.f32.vlgmr.msra.gmra.mrb[10].mxu0 %vm890_vm0, %v2445_v18 }
 0xacd   :  { %12240 = vmatpush3.bf16.msra.mxu0 %v12237_v55 }
 0xace   :  { %12242 = vmatprep.subr.bf16.mxu0 %v12241_v49 }
 0xad1   :  { %12244 = vmatpush3.bf16.msra.mxu0 %v12241_v49 }
 0xad2   :  { %11474 = vmatprep.subr.mxu0 %v13952_v27 }
 0xb9f   :  { %v11440_v21 = vpop.f32.mrb[10].mxu0 }
 0xba0   :  { %v2535_v22 = vadd.f32 %v11440_v21, %v10497_v20  ;;  %v2529_v23 = vpop.f32.mrb[11].mxu0 }
 0xba1   :  { %v2530_v24 = vadd.f32 %v10497_v20, %v2529_v23  ;;  %v628_v23 = vld [vmem:[#allocation22 + $0x18] sm:$0xff] }
 0xba2   :  { %v2539_v25 = vadd.f32 %v2535_v22, %v14416_v11  ;;  %v627_v22 = vld [vmem:[#allocation22 + $0x10] sm:$0xff] }
 0xba3   :  { %v2538_v26 = vadd.f32 %v2530_v24, %v14407_v5  ;;  %v618_v5 = vld [vmem:[%s16566_s25 + $0x8] sm:$0xff] }
 0xba4   :  { %v2543_v28 = vsel %vm890_vm0, %v2539_v25, 0.0  ;;  %v2550_v30 = vmul.f32 %v2539_v25, %v2539_v25  ;;  %v12229_v39 = vpack.c.bf16 %v618_v5, %v617_v38 }
 0xba5   :  { %2544 = vadd.xlane.f32.xlu1 %v2543_v28  ;;  %v2540_v33 = vsel %vm890_vm0, %v2538_v26, 0.0  ;;  %v2549_v34 = vmul.f32 %v2538_v26, %v2538_v26 }
 0xba6   :  { %2541 = vadd.xlane.f32.xlu0 %v2540_v33  ;;  %v2554_v35 = vsel %vm890_vm0, %v2550_v30, 0.0  ;;  %12230 = vmatprep.subr.bf16.mxu1 %v12229_v39 }
 0xba7   :  { %v2551_v11 = vsel %vm890_vm0, %v2549_v34, 0.0  ;;  %12232 = vmatpush3.bf16.msra.mxu1 %v12229_v39 }
 0xba8   :  { %12234 = vmatprep.subr.bf16.mxu1 %v12233_v47 }
 0xba9   :  { %2555 = vadd.xlane.f32.xlu1 %v2554_v35 }
 0xbaa   :  { %2552 = vadd.xlane.f32.xlu0 %v2551_v11 }
 0xbab   :  { %12236 = vmatpush3.bf16.msra.mxu1 %v12233_v47 }
 0xbac   :  { %12246 = vmatprep.subr.bf16.mxu1 %v12245_v51 }
 0xc32   :  { %v2545_v52 = vpop.xlane.xlu1 %2544 }
 0xc33   :  { %v2548_v56 = vmul.f32 0.03125, %v2545_v52  ;;  %v2542_v59 = vpop.xlane.xlu0 %2541  ;;  %v14710_v52 = vld [vmem:[#allocation11] sm:$0xff] }
 0xc34   :  { %v2547_v60 = vmul.f32 0.03125, %v2542_v59 }
 0xc35   :  { %v2560_v62 = vmul.f32 %v2548_v56, %v2548_v56  ;;  %v2564_v8 = vsub.f32 %v2539_v25, %v2548_v56 }
 0xc36   :  { %v2556_v61 = vpop.xlane.xlu1 %2555  ;;  %v2559_v0 = vmul.f32 %v2547_v60, %v2547_v60  ;;  %v2563_v10 = vsub.f32 %v2538_v26, %v2547_v60  ;;  %v12249_v26 = vpack.c.bf16 %v628_v23, %v627_v22 }
 0xc37   :  { %v2558_v63 = vmul.f32 0.03125, %v2556_v61  ;;  %v2553_v58 = vpop.xlane.xlu0 %2552 }
 0xc38   :  { %v2557_v1 = vmul.f32 0.03125, %v2553_v58 }
 0xc39   :  { %v2562_v2 = vsub.f32 %v2558_v63, %v2560_v62 }
 0xc3a   :  { %v2561_v3 = vsub.f32 %v2557_v1, %v2559_v0 }
 0xc3b   :  { %v2566_v4 = vadd.f32 1e-05, %v2562_v2 }
 0xc3c   :  { %v2565_v7 = vadd.f32 1e-05, %v2561_v3 }
 0xc3d   :  { %12817 = vrsqrt.f32 %v2566_v4 }
 0xc3e   :  { %12819 = vrsqrt.f32 %v2565_v7 }
 0xc47   :  { %v12818_v9 = vpop.eup %12817 }
 0xc48   :  { %v12820_v14 = vpop.eup %12819  ;;  %v2570_v15 = vmul.f32 %v12818_v9, %v2564_v8 }
 0xc49   :  { %v2569_v16 = vmul.f32 %v12820_v14, %v2563_v10 }
 0xc4a   :  { %v2578_v18 = vmul.f32 %v10500_v13, %v2570_v15 }
 0xc4b   :  { %v2577_v19 = vmul.f32 %v10500_v13, %v2569_v16 }
 0xc4c   :  { %v14639_v20 = vadd.f32 %v10501_v17, %v2578_v18 }
 0xc4d   :  { %v14641_v21 = vadd.f32 %v10501_v17, %v2577_v19 }
 0xc4e   :  { %v2588_v25 = vadd.f32 %v14639_v20, %v14418_v12  ;;  %v10505_v12 = vld [vmem:[#allocation25] ss:$0 sm:$0xff] }
 0xc4f   :  { %v2587_v24 = vadd.f32 %v14641_v21, %v14409_v6  ;;  %v10502_v6 = vld [vmem:[#allocation23] ss:$0 sm:$0xff] }
 0xc51   :  { %11449 = vmatprep.mubr.msk.f32.mxu1 %vm890_vm0, %v2587_v24  ;;  %11460 = vmatprep.mubr.msk.f32.mxu0 %vm890_vm0, %v2587_v24 }
 0xc52   :  { %11450 = vmatmul.mubr.msk.f32.vlgmr.msra.gmra.mrb[16].mxu1 %vm890_vm0, %v2588_v25  ;;  %11461 = vmatmul.mubr.msk.f32.vlgmr.msra.gmra.mrb[12].mxu0 %vm890_vm0, %v2588_v25 }
 0xc53   :  { %12248 = vmatpush3.bf16.msra.mxu1 %v12245_v51  ;;  %11471 = vmatprep.mubr.msk.f32.mxu1 %vm890_vm0, %v14641_v21 }
 0xc54   :  { %12250 = vmatprep.subr.bf16.mxu1 %v12249_v26  ;;  %11476 = vmatprep.mubr.msk.f32.mxu0 %vm13953_vm1, %v13952_v27 }
 0xc57   :  { %12252 = vmatpush3.bf16.msra.mxu1 %v12249_v26 }
 0xc58   :  { %11479 = vmatprep.subr.mxu1 %v13952_v27 }
 0xc5a   :  { %11472 = vmatmul.mubr.msk.f32.vlgmr.msra.gmra.mrb[18].mxu1 %vm890_vm0, %v14639_v20 }
 0xc5b   :  { %11481 = vmatprep.mubr.msk.f32.mxu1 %vm13953_vm1, %v13952_v27 }
 0xd25   :  { %v11451_v28 = vpop.f32.mrb[16].mxu1  ;;  %v11462_v30 = vpop.f32.mrb[12].mxu0 }
 0xd26   :  { %v14660_v33 = vadd.f32 %v11451_v28, %v10502_v6  ;;  %v14662_v34 = vadd.f32 %v11462_v30, %v10505_v12  ;;  %v2667_v35 = vpop.f32.mrb[17].mxu1  ;;  %v2748_v11 = vpop.f32.mrb[13].mxu0 }
 0xd27   :  { %v14664_v38 = vadd.f32 %v10502_v6, %v2667_v35  ;;  %v14666_v5 = vadd.f32 %v10505_v12, %v2748_v11 }
 0xd28   :  { %v2845_v39 = vmul.f32 %v14660_v33, %v14453_v40  ;;  %11480 = vmatpush3.xpose.msk.msra.mxu1 %vm890_vm0, %v14662_v34  ;;  %v3023_v55 = vmul.f32 %v14660_v33, %v14456_v41 }
 0xd29   :  { %v2844_v42 = vmul.f32 %v14664_v38, %v14453_v40  ;;  %11475 = vmatpush3.xpose.msk.msra.mxu0 %vm890_vm0, %v14666_v5  ;;  %11489 = vmatprep.subr.mxu1 %v13952_v27  ;;  %v3022_v40 = vmul.f32 %v14664_v38, %v14456_v41 }
 0xd2a   :  { %11484 = vmatprep.subr.mxu0 %v13952_v27 }
 0xd2b   :  { %11482 = vmatmul.mubr.msk.f32.vlgmr.msra.gmra.mrb[20].mxu1 %vm890_vm0, %v2845_v39 }
 0xd2c   :  { %11477 = vmatmul.mubr.msk.f32.vlgmr.msra.gmra.mrb[14].mxu0 %vm890_vm0, %v2844_v42  ;;  %11490 = vmatpush3.xpose.msk.msra.mxu1 %vm890_vm0, %v14662_v34 }
 0xd2d   :  { %v11473_v48 = vpop.f32.mrb[18].mxu1  ;;  %11485 = vmatpush3.xpose.msk.msra.mxu0 %vm890_vm0, %v14666_v5  ;;  %11491 = vmatprep.mubr.msk.f32.mxu1 %vm13953_vm1, %v13952_v27 }
 0xd2e   :  { %v14690_v43 = vadd.f32 %v11473_v48, %v10508_v44  ;;  %v2835_v46 = vpop.f32.mrb[19].mxu1  ;;  %11486 = vmatprep.mubr.msk.f32.mxu0 %vm13953_vm1, %v13952_v27  ;;  %11499 = vmatprep.subr.mxu1 %v13952_v27 }
 0xd2f   :  { %v14695_v47 = vadd.f32 %v10508_v44, %v2835_v46  ;;  %11492 = vmatmul.mubr.msk.f32.vlgmr.msra.gmra.mrb[22].mxu1 %vm890_vm0, %v3023_v55  ;;  %11494 = vmatprep.subr.mxu0 %v13952_v27 }
 0xd30   :  { %11487 = vmatmul.mubr.msk.f32.vlgmr.msra.gmra.mrb[16].mxu0 %vm890_vm0, %v3022_v40  ;;  %v3193_v45 = vmul.f32 %v14690_v43, %v14450_v37  ;;  %11501 = vmatprep.mubr.msk.f32.mxu1 %vm13953_vm1, %v13952_v27  ;;  %v3021_v48 = vmul.f32 %v14690_v43, %v14447_v36 }
 0xd31   :  { %v3192_v41 = vmul.f32 %v14695_v47, %v14450_v37  ;;  %11496 = vmatprep.mubr.msk.f32.mxu0 %vm13953_vm1, %v13952_v27  ;;  %v3020_v46 = vmul.f32 %v14695_v47, %v14447_v36  ;;  %v3487_v36 = vmul.f32 %v14660_v33, %v14534_v57 }
 0xd32   :  { %11500 = vmatpush3.msra.mxu1 %v3193_v45 }
 0xd33   :  { %11495 = vmatpush3.msra.mxu0 %v3192_v41  ;;  %11509 = vmatprep.subr.mxu1 %v13952_v27 }
 0xd34   :  { %11504 = vmatprep.subr.mxu0 %v13952_v27 }
 0xdfe   :  { %v2994_v49 = vpop.f32.mrb[20].mxu1 }
 0xdff   :  { %v2918_v50 = vpop.f32.mrb[14].mxu0  ;;  %v11483_v54 = vpop.f32.mrb[21].mxu1  ;;  %v2995_v63 = vadd.f32 %v2994_v49, %v14710_v52 }
 0xe00   :  { %v11478_v51 = vpop.f32.mrb[15].mxu0  ;;  %v2919_v0 = vadd.f32 %v2918_v50, %v14710_v52  ;;  %v3486_v54 = vmul.f32 %v14664_v38, %v14534_v57 }
 0xe01   :  { %v3001_v2 = vsel %vm1307_vm6, %v2995_v63, -inf  ;;  %v3657_v51 = vmul.f32 %v14690_v43, %v14531_v53 }
 0xe02   :  { %v3166_v56 = vpop.f32.mrb[22].mxu1  ;;  %v2998_v3 = vsel %vm1307_vm6, %v2919_v0, -inf }
 0xe03   :  { %v3167_v59 = vadd.f32 %v3166_v56, %v14710_v52  ;;  %v3093_v60 = vpop.f32.mrb[16].mxu0  ;;  %v11493_v37 = vpop.f32.mrb[23].mxu1  ;;  %v3656_v56 = vmul.f32 %v14695_v47, %v14531_v53 }
 0xe04   :  { %v3094_v61 = vadd.f32 %v3093_v60, %v14710_v52  ;;  %v11488_v62 = vpop.f32.mrb[17].mxu0 }
 0xe05   :  { %v3173_v58 = vsel %vm1307_vm6, %v3167_v59, -inf }
 0xe06   :  { %3174 = vmax.xlane.f32.xlu1 %v3173_v58  ;;  %v3170_v1 = vsel %vm1307_vm6, %v3094_v61, -inf }
 0xe07   :  { %3171 = vmax.xlane.f32.xlu0 %v3170_v1 }
 0xe0a   :  { %3002 = vmax.xlane.f32.xlu1 %v3001_v2 }
 0xe0b   :  { %2999 = vmax.xlane.f32.xlu0 %v2998_v3 }
 0xe93   :  { %v3175_v4 = vpop.xlane.xlu1 %3174 }
 0xe94   :  { %v3177_v7 = vsub.f32 %v3167_v59, %v3175_v4  ;;  %v3172_v8 = vpop.xlane.xlu0 %3171 }
 0xe95   :  { %v3176_v9 = vsub.f32 %v3094_v61, %v3172_v8 }
 0xe96   :  { %v3180_v10 = vmul.f32 1.442695, %v3177_v7 }
 0xe97   :  { %v3178_v13 = vmul.f32 1.442695, %v3176_v9  ;;  %v3003_v14 = vpop.xlane.xlu1 %3002 }
 0xe98   :  { %12821 = vpow2.f32 %v3180_v10  ;;  %v3005_v15 = vsub.f32 %v2995_v63, %v3003_v14  ;;  %v3000_v16 = vpop.xlane.xlu0 %2999 }
 0xe99   :  { %12823 = vpow2.f32 %v3178_v13  ;;  %v3004_v17 = vsub.f32 %v2919_v0, %v3000_v16 }
 0xe9a   :  { %v3008_v18 = vmul.f32 1.442695, %v3005_v15 }
 0xe9b   :  { %v3006_v19 = vmul.f32 1.442695, %v3004_v17 }
 0xe9c   :  { %12825 = vpow2.f32 %v3008_v18 }
 0xe9d   :  { %12827 = vpow2.f32 %v3006_v19  ;;  %v3807_v19 = vmul.f32 %v14660_v33, %v14582_v31  ;;  %v3976_v33 = vmul.f32 %v14695_v47, %v14579_v29 }
 0xea2   :  { %v12822_v22 = vpop.eup %12821 }
 0xea3   :  { %v12824_v23 = vpop.eup %12823  ;;  %v3185_v24 = vsel %vm1307_vm6, %v12822_v22, 0.0 }
 0xea4   :  { %3186 = vadd.xlane.f32.xlu1 %v3185_v24  ;;  %v3182_v25 = vsel %vm1307_vm6, %v12824_v23, 0.0 }
 0xea5   :  { %3183 = vadd.xlane.f32.xlu0 %v3182_v25 }
 0xea6   :  { %v12826_v26 = vpop.eup %12825 }
 0xea7   :  { %v12828_v6 = vpop.eup %12827  ;;  %v3013_v12 = vsel %vm1307_vm6, %v12826_v26, 0.0 }
 0xea8   :  { %3014 = vadd.xlane.f32.xlu1 %v3013_v12  ;;  %v3010_v28 = vsel %vm1307_vm6, %v12828_v6, 0.0 }
 0xea9   :  { %3011 = vadd.xlane.f32.xlu0 %v3010_v28 }
 0xf31   :  { %v3187_v30 = vpop.xlane.xlu1 %3186 }
 0xf32   :  { %12829 = vrcp.f32 %v3187_v30  ;;  %v3184_v35 = vpop.xlane.xlu0 %3183 }
 0xf33   :  { %12831 = vrcp.f32 %v3184_v35 }
 0xf35   :  { %v3015_v11 = vpop.xlane.xlu1 %3014 }
 0xf36   :  { %v3012_v39 = vpop.xlane.xlu0 %3011  ;;  %12833 = vrcp.f32 %v3015_v11 }
 0xf37   :  { %12835 = vrcp.f32 %v3012_v39 }
 0xf3c   :  { %v12830_v42 = vpop.eup %12829 }
 0xf3d   :  { %v12832_v44 = vpop.eup %12831  ;;  %v3191_v55 = vmul.f32 %v12830_v42, %v12822_v22  ;;  %v3806_v22 = vmul.f32 %v14664_v38, %v14582_v31  ;;  %v632_v42 = vld [vmem:[#allocation28] sm:$0xff] }
 0xf3e   :  { %v3190_v40 = vmul.f32 %v12832_v44, %v12824_v23  ;;  %v633_v44 = vld [vmem:[#allocation28 + $0x8] sm:$0xff] }
 0xf3f   :  { %11502 = vmatmul.mubr.msk.f32.vlgmr.msra.gmra.mrb[24].mxu1 %vm1307_vm6, %v3191_v55  ;;  %v12253_v55 = vpack.c.bf16 %v633_v44, %v632_v42 }
 0xf40   :  { %11510 = vmatpush3.msra.mxu1 %v3021_v48  ;;  %11497 = vmatmul.mubr.msk.f32.vlgmr.msra.gmra.mrb[18].mxu0 %vm1307_vm6, %v3190_v40  ;;  %v12834_v45 = vpop.eup %12833 }
 0xf41   :  { %11505 = vmatpush3.msra.mxu0 %v3020_v46  ;;  %11511 = vmatprep.mubr.msk.f32.mxu1 %vm13953_vm1, %v13952_v27  ;;  %v12836_v41 = vpop.eup %12835  ;;  %v3019_v49 = vmul.f32 %v12834_v45, %v12826_v26  ;;  %v634_v46 = vld [vmem:[#allocation28 + $0x10] sm:$0xff]  ;;  %v635_v45 = vld [vmem:[#allocation28 + $0x18] sm:$0xff] }
 0xf42   :  { %11519 = vmatprep.subr.mxu1 %v13952_v27  ;;  %11506 = vmatprep.mubr.msk.f32.mxu0 %vm13953_vm1, %v13952_v27  ;;  %v3018_v50 = vmul.f32 %v12836_v41, %v12828_v6 }
 0xf43   :  { %11514 = vmatprep.subr.mxu0 %v13952_v27 }
 0xf47   :  { %11512 = vmatmul.mubr.msk.f32.vlgmr.msra.gmra.mrb[24].mxu1 %vm1307_vm6, %v3019_v49 }
 0xf48   :  { %11520 = vmatpush3.xpose.msk.msra.mxu1 %vm890_vm0, %v14662_v34  ;;  %11507 = vmatmul.mubr.msk.f32.vlgmr.msra.gmra.mrb[18].mxu0 %vm1307_vm6, %v3018_v50 }
 0xf49   :  { %11515 = vmatpush3.xpose.msk.msra.mxu0 %vm890_vm0, %v14666_v5  ;;  %11521 = vmatprep.mubr.msk.f32.mxu1 %vm13953_vm1, %v13952_v27 }
 0xf4a   :  { %11529 = vmatprep.subr.mxu1 %v13952_v27  ;;  %11516 = vmatprep.mubr.msk.f32.mxu0 %vm13953_vm1, %v13952_v27 }
 0xf4b   :  { %11522 = vmatmul.mubr.msk.f32.vlgmr.msra.gmra.mrb[26].mxu1 %vm890_vm0, %v3487_v36  ;;  %11524 = vmatprep.subr.mxu0 %v13952_v27 }
 0xf4c   :  { %11530 = vmatpush3.msra.mxu1 %v3657_v51  ;;  %11517 = vmatmul.mubr.msk.f32.vlgmr.msra.gmra.mrb[20].mxu0 %vm890_vm0, %v3486_v54  ;;  %v12257_v54 = vpack.c.bf16 %v635_v45, %v634_v46  ;;  %v10538_v45 = vld [vmem:[#allocation31] ss:$0 sm:$0xff] }
 0xf4d   :  { %11525 = vmatpush3.msra.mxu0 %v3656_v56  ;;  %11531 = vmatprep.mubr.msk.f32.mxu1 %vm13953_vm1, %v13952_v27 }
 0xf4e   :  { %11539 = vmatprep.subr.mxu1 %v13952_v27  ;;  %11526 = vmatprep.mubr.msk.f32.mxu0 %vm13953_vm1, %v13952_v27 }
 0xf4f   :  { %11534 = vmatprep.subr.mxu0 %v13952_v27 }
0x101e   :  { %v3630_v57 = vpop.f32.mrb[26].mxu1 }
0x101f   :  { %v3631_v59 = vadd.f32 %v3630_v57, %v14710_v52  ;;  %v3557_v60 = vpop.f32.mrb[20].mxu0  ;;  %v11523_v37 = vpop.f32.mrb[27].mxu1 }
0x1020   :  { %v3558_v53 = vadd.f32 %v3557_v60, %v14710_v52  ;;  %v11518_v61 = vpop.f32.mrb[21].mxu0  ;;  %v10535_v60 = vld [vmem:[#allocation29] ss:$0 sm:$0xff] }
0x1021   :  { %v3637_v62 = vsel %vm1307_vm6, %v3631_v59, -inf }
0x1022   :  { %3638 = vmax.xlane.f32.xlu1 %v3637_v62  ;;  %v3634_v63 = vsel %vm1307_vm6, %v3558_v53, -inf }
0x1023   :  { %3635 = vmax.xlane.f32.xlu0 %v3634_v63 }
0x10af   :  { %v3639_v58 = vpop.xlane.xlu1 %3638 }
0x10b0   :  { %v3641_v0 = vsub.f32 %v3631_v59, %v3639_v58  ;;  %v3636_v1 = vpop.xlane.xlu0 %3635 }
0x10b1   :  { %v3640_v2 = vsub.f32 %v3558_v53, %v3636_v1 }
0x10b2   :  { %v3644_v3 = vmul.f32 1.442695, %v3641_v0 }
0x10b3   :  { %v3642_v4 = vmul.f32 1.442695, %v3640_v2 }
0x10b4   :  { %12837 = vpow2.f32 %v3644_v3 }
0x10b5   :  { %12839 = vpow2.f32 %v3642_v4  ;;  %v639_v4 = vld [vmem:[%s16568_s24] sm:$0xff] }
0x10be   :  { %v12838_v7 = vpop.eup %12837 }
0x10bf   :  { %v12840_v8 = vpop.eup %12839  ;;  %v3649_v9 = vsel %vm1307_vm6, %v12838_v7, 0.0 }
0x10c0   :  { %3650 = vadd.xlane.f32.xlu1 %v3649_v9  ;;  %v3646_v10 = vsel %vm1307_vm6, %v12840_v8, 0.0 }
0x10c1   :  { %3647 = vadd.xlane.f32.xlu0 %v3646_v10  ;;  %v642_v10 = vld [vmem:[%s16568_s24 + $0x18] sm:$0xff] }
0x114d   :  { %v3651_v13 = vpop.xlane.xlu1 %3650 }
0x114e   :  { %12841 = vrcp.f32 %v3651_v13  ;;  %v3648_v14 = vpop.xlane.xlu0 %3647 }
0x114f   :  { %12843 = vrcp.f32 %v3648_v14  ;;  %v13165_v14 = vld [vmem:[#allocation5] sm:$0xff] }
0x1158   :  { %v12842_v15 = vpop.eup %12841 }
0x1159   :  { %v12844_v16 = vpop.eup %12843  ;;  %v3655_v17 = vmul.f32 %v12842_v15, %v12838_v7  ;;  %v640_v7 = vld [vmem:[%s16568_s24 + $0x8] sm:$0xff]  ;;  %v13166_v15 = vld [vmem:[#allocation7] sm:$0xff] }
0x115a   :  { %v3654_v18 = vmul.f32 %v12844_v16, %v12840_v8  ;;  %v641_v8 = vld [vmem:[%s16568_s24 + $0x10] sm:$0xff]  ;;  %v12261_v9 = vpack.c.bf16 %v640_v7, %v639_v4  ;;  %v13167_v16 = vld [vmem:[#allocation5 + $0x8] sm:$0xff] }
0x115b   :  { %11532 = vmatmul.mubr.msk.f32.vlgmr.msra.gmra.mrb[24].mxu1 %vm1307_vm6, %v3655_v17  ;;  %v12265_v13 = vpack.c.bf16 %v642_v10, %v641_v8  ;;  %v13168_v17 = vld [vmem:[#allocation7 + $0x8] sm:$0xff] }
0x115c   :  { %11540 = vmatpush3.xpose.msk.msra.mxu1 %vm890_vm0, %v14662_v34  ;;  %11527 = vmatmul.mubr.msk.f32.vlgmr.msra.gmra.mrb[18].mxu0 %vm1307_vm6, %v3654_v18  ;;  %v3977_v34 = vmul.f32 %v14690_v43, %v14579_v29  ;;  %v13169_v18 = vld [vmem:[#allocation2] sm:$0xff] }
0x115d   :  { %11535 = vmatpush3.xpose.msk.msra.mxu0 %vm890_vm0, %v14666_v5  ;;  %11541 = vmatprep.mubr.msk.f32.mxu1 %vm13953_vm1, %v13952_v27 }
0x115e   :  { %11549 = vmatprep.subr.mxu1 %v13952_v27  ;;  %11536 = vmatprep.mubr.msk.f32.mxu0 %vm13953_vm1, %v13952_v27 }
0x115f   :  { %11542 = vmatmul.mubr.msk.f32.vlgmr.msra.gmra.mrb[28].mxu1 %vm890_vm0, %v3807_v19  ;;  %11544 = vmatprep.subr.mxu0 %v13952_v27  ;;  %v13170_v19 = vld [vmem:[#allocation2 + $0x8] sm:$0xff] }
0x1160   :  { %11550 = vmatpush3.msra.mxu1 %v3977_v34  ;;  %11537 = vmatmul.mubr.msk.f32.vlgmr.msra.gmra.mrb[22].mxu0 %vm890_vm0, %v3806_v22  ;;  %v655_v22 = vld [vmem:[%s16569_s1] sm:$0xff] }
0x1161   :  { %11545 = vmatpush3.msra.mxu0 %v3976_v33  ;;  %11551 = vmatprep.mubr.msk.f32.mxu1 %vm13953_vm1, %v13952_v27  ;;  %v644_v34 = vld [vmem:[%s16570_s8] sm:$0xff]  ;;  %v645_v33 = vld [vmem:[%s16570_s8 + $0x8] sm:$0xff] }
0x1162   :  { %11546 = vmatprep.mubr.msk.f32.mxu0 %vm13953_vm1, %v13952_v27  ;;  %12254 = vmatprep.subr.bf16.mxu0 %v12253_v55  ;;  %vm5226_vm1 = vcmp.lt.s32.totalorder %v14439_v32, 4 }
0x1163   :  { %12262 = vmatprep.subr.bf16.mxu1 %v12261_v9  ;;  %vm5227_vm8 = vmand %vm5225_vm15, %vm5226_vm1 }
0x1232   :  { %v3950_v31 = vpop.f32.mrb[28].mxu1 }
0x1233   :  { %v3951_v38 = vadd.f32 %v3950_v31, %v14710_v52  ;;  %v3877_v5 = vpop.f32.mrb[22].mxu0  ;;  %v11543_v43 = vpop.f32.mrb[29].mxu1  ;;  %v12269_v31 = vpack.c.bf16 %v645_v33, %v644_v34  ;;  %v656_v33 = vld [vmem:[%s16578_s9] sm:$0xff] }
0x1234   :  { %v3878_v23 = vadd.f32 %v3877_v5, %v14710_v52  ;;  %v11538_v24 = vpop.f32.mrb[23].mxu0  ;;  %v647_v5 = vld [vmem:[%s16570_s8 + $0x18] sm:$0xff] }
0x1235   :  { %v3957_v29 = vsel %vm1307_vm6, %v3951_v38, -inf  ;;  %v649_v24 = vld [vmem:[%s16570_s8 + $0x28] sm:$0xff] }
0x1236   :  { %3958 = vmax.xlane.f32.xlu1 %v3957_v29  ;;  %v3954_v47 = vsel %vm1307_vm6, %v3878_v23, -inf }
0x1237   :  { %3955 = vmax.xlane.f32.xlu0 %v3954_v47 }
0x12c3   :  { %v3959_v25 = vpop.xlane.xlu1 %3958 }
0x12c4   :  { %v3961_v26 = vsub.f32 %v3951_v38, %v3959_v25  ;;  %v3956_v6 = vpop.xlane.xlu0 %3955  ;;  %v646_v38 = vld [vmem:[%s16570_s8 + $0x10] sm:$0xff] }
0x12c5   :  { %v3960_v12 = vsub.f32 %v3878_v23, %v3956_v6  ;;  %v12273_v43 = vpack.c.bf16 %v647_v5, %v646_v38  ;;  %v648_v23 = vld [vmem:[%s16570_s8 + $0x20] sm:$0xff] }
0x12c6   :  { %v3964_v28 = vmul.f32 1.442695, %v3961_v26  ;;  %v12277_v29 = vpack.c.bf16 %v649_v24, %v648_v23 }
0x12c7   :  { %v3962_v30 = vmul.f32 1.442695, %v3960_v12 }
0x12c8   :  { %12845 = vpow2.f32 %v3964_v28 }
0x12c9   :  { %12847 = vpow2.f32 %v3962_v30 }
0x12d2   :  { %v12846_v35 = vpop.eup %12845 }
0x12d3   :  { %v12848_v11 = vpop.eup %12847  ;;  %v3969_v39 = vsel %vm1307_vm6, %v12846_v35, 0.0 }
0x12d4   :  { %3970 = vadd.xlane.f32.xlu1 %v3969_v39  ;;  %v3966_v52 = vsel %vm1307_vm6, %v12848_v11, 0.0 }
0x12d5   :  { %3967 = vadd.xlane.f32.xlu0 %v3966_v52 }
0x1361   :  { %v3971_v48 = vpop.xlane.xlu1 %3970 }
0x1362   :  { %12849 = vrcp.f32 %v3971_v48  ;;  %v3968_v40 = vpop.xlane.xlu0 %3967 }
0x1363   :  { %12851 = vrcp.f32 %v3968_v40 }
0x136c   :  { %v12850_v41 = vpop.eup %12849 }
0x136d   :  { %v12852_v49 = vpop.eup %12851  ;;  %v3975_v50 = vmul.f32 %v12850_v41, %v12846_v35 }
0x136e   :  { %v3974_v36 = vmul.f32 %v12852_v49, %v12848_v11 }
0x136f   :  { %11552 = vmatmul.mubr.msk.f32.vlgmr.msra.gmra.mrb[24].mxu1 %vm1307_vm6, %v3975_v50 }
0x1370   :  { %11547 = vmatmul.mubr.msk.f32.vlgmr.msra.gmra.mrb[18].mxu0 %vm1307_vm6, %v3974_v36  ;;  %12264 = vmatpush3.bf16.msra.mxu1 %v12261_v9  ;;  %v10539_v36 = vld [vmem:[#allocation32] ss:$0 sm:$0xff] }
0x1371   :  { %12256 = vmatpush3.bf16.msra.mxu0 %v12253_v55  ;;  %12266 = vmatprep.subr.bf16.mxu1 %v12265_v13 }
0x1372   :  { %12258 = vmatprep.subr.bf16.mxu0 %v12257_v54 }
0x1374   :  { %12268 = vmatpush3.bf16.msra.mxu1 %v12265_v13 }
0x1375   :  { %12260 = vmatpush3.bf16.msra.mxu0 %v12257_v54  ;;  %11595 = vmatprep.subr.mxu1 %v655_v22 }
0x1376   :  { %12270 = vmatprep.subr.bf16.mxu0 %v12269_v31 }
0x1442   :  { %v4120_v51 = vpop.f32.mrb[24].mxu1 }
0x1443   :  { %v4047_v56 = vpop.f32.mrb[18].mxu0  ;;  %v11553_v57 = vpop.f32.mrb[25].mxu1 }
0x1444   :  { %v11548_v59 = vpop.f32.mrb[19].mxu0  ;;  %11562 = vmatprep.mubr.msk.f32.mxu0 %vm890_vm0, %v4047_v56 }
0x1445   :  { %11563 = vmatmul.mubr.msk.f32.vlgmr.msra.gmra.mrb[24].mxu0 %vm890_vm0, %v4120_v51  ;;  %v657_v59 = vld [vmem:[%s16571_s2] sm:$0xff] }
0x1446   :  { %12272 = vmatpush3.bf16.msra.mxu0 %v12269_v31  ;;  %v10540_v31 = vld [vmem:[#allocation34] ss:$0 sm:$0xff] }
0x1447   :  { %12274 = vmatprep.subr.bf16.mxu0 %v12273_v43 }
0x144a   :  { %12276 = vmatpush3.bf16.msra.mxu0 %v12273_v43 }
0x144b   :  { %12278 = vmatprep.subr.bf16.mxu0 %v12277_v29 }
0x144e   :  { %12280 = vmatpush3.bf16.msra.mxu0 %v12277_v29 }
0x1518   :  { %v11564_v37 = vpop.f32.mrb[24].mxu0 }
0x1519   :  { %v4210_v53 = vadd.f32 %v11564_v37, %v10535_v60  ;;  %v4204_v61 = vpop.f32.mrb[25].mxu0 }
0x151a   :  { %v4205_v62 = vadd.f32 %v10535_v60, %v4204_v61 }
0x151b   :  { %v14807_v63 = vadd.f32 %v4210_v53, %v14639_v20 }
0x151c   :  { %v14810_v58 = vadd.f32 %v4205_v62, %v14641_v21 }
0x151d   :  { %v4218_v0 = vsel %vm890_vm0, %v14807_v63, 0.0  ;;  %v4224_v1 = vmul.f32 %v14807_v63, %v14807_v63 }
0x151e   :  { %4219 = vadd.xlane.f32.xlu1 %v4218_v0  ;;  %v4215_v2 = vsel %vm890_vm0, %v14810_v58, 0.0  ;;  %v4223_v3 = vmul.f32 %v14810_v58, %v14810_v58 }
0x151f   :  { %4216 = vadd.xlane.f32.xlu0 %v4215_v2  ;;  %v4228_v20 = vsel %vm890_vm0, %v4224_v1, 0.0 }
0x1520   :  { %v4225_v21 = vsel %vm890_vm0, %v4223_v3, 0.0 }
0x1522   :  { %4229 = vadd.xlane.f32.xlu1 %v4228_v20 }
0x1523   :  { %4226 = vadd.xlane.f32.xlu0 %v4225_v21 }
0x1550   :  { %752 = vxpose.xlu0.b32.start.end [1/1] (short) (narrow) %v13165_v14, 32 }
0x1555   :  { %816 = vxpose.xlu1.b32.start.end [1/1] (short) (narrow) %v13166_v15, 32 }
0x155d   :  { %784 = vxpose.xlu0.b32.start.end [1/1] (short) (narrow) %v13167_v16, 32 }
0x1562   :  { %848 = vxpose.xlu1.b32.start.end [1/1] (short) (narrow) %v13168_v17, 32 }
0x156a   :  { %688 = vxpose.xlu0.b32.start.end [1/1] (short) (narrow) %v13169_v18, 32 }
0x156f   :  { %720 = vxpose.xlu1.b32.start.end [1/1] (short) (narrow) %v13170_v19, 32  ;;  %v650_v19 = vld [vmem:[%s16570_s8 + $0x30] sm:$0xff] }
0x15ab   :  { %v4220_v47 = vpop.xlane.xlu1 %4219 }
0x15ac   :  { %v4222_v25 = vmul.f32 0.03125, %v4220_v47  ;;  %v4217_v26 = vpop.xlane.xlu0 %4216 }
0x15ad   :  { %v4221_v6 = vmul.f32 0.03125, %v4217_v26 }
0x15ae   :  { %v4234_v28 = vmul.f32 %v4222_v25, %v4222_v25  ;;  %v4238_v48 = vsub.f32 %v14807_v63, %v4222_v25 }
0x15af   :  { %v4230_v12 = vpop.xlane.xlu1 %4229  ;;  %v4233_v11 = vmul.f32 %v4221_v6, %v4221_v6  ;;  %v4237_v46 = vsub.f32 %v14810_v58, %v4221_v6 }
0x15b0   :  { %v4232_v30 = vmul.f32 0.03125, %v4230_v12  ;;  %v4227_v35 = vpop.xlane.xlu0 %4226 }
0x15b1   :  { %v4231_v39 = vmul.f32 0.03125, %v4227_v35 }
0x15b2   :  { %v4236_v52 = vsub.f32 %v4232_v30, %v4234_v28 }
0x15b3   :  { %v4235_v42 = vsub.f32 %v4231_v39, %v4233_v11  ;;  %v14897_v11 = vld [vmem:[#allocation40] ss:$0 sm:$0xff] }
0x15b4   :  { %v4240_v44 = vadd.f32 1e-05, %v4236_v52 }
0x15b5   :  { %v4239_v55 = vadd.f32 1e-05, %v4235_v42 }
0x15b6   :  { %12853 = vrsqrt.f32 %v4240_v44 }
0x15b7   :  { %12855 = vrsqrt.f32 %v4239_v55 }
0x15c0   :  { %v12854_v40 = vpop.eup %12853 }
0x15c1   :  { %v12856_v41 = vpop.eup %12855  ;;  %v4244_v49 = vmul.f32 %v12854_v40, %v4238_v48 }
0x15c2   :  { %v4243_v50 = vmul.f32 %v12856_v41, %v4237_v46 }
0x15c3   :  { %v4252_v54 = vmul.f32 %v10538_v45, %v4244_v49 }
0x15c4   :  { %v4251_v51 = vmul.f32 %v10538_v45, %v4243_v50 }
0x15c5   :  { %v14837_v57 = vadd.f32 %v10539_v36, %v4252_v54 }
0x15c6   :  { %v14835_v56 = vadd.f32 %v10539_v36, %v4251_v51 }
0x15c7   :  { %16573 = vst [vmem:[#allocation106_spill] sm:$0xff] %v14837_v57 }
0x15c8   :  { %16572 = vst [vmem:[#allocation105_spill] sm:$0xff] %v14835_v56  ;;  %11573 = vmatprep.mubr.msk.f32.mxu1 %vm890_vm0, %v14835_v56 }
0x15c9   :  { %11574 = vmatmul.mubr.msk.f32.vlgmr.msra.gmra.mrb[30].mxu1 %vm890_vm0, %v14837_v57 }
0x15ca   :  { %11596 = vmatpush3.msra.mxu1 %v655_v22  ;;  %v651_v22 = vld [vmem:[%s16570_s8 + $0x38] sm:$0xff] }
0x15cb   :  { %11623 = vmatprep.subr.mxu1 %v657_v59  ;;  %v12281_v34 = vpack.c.bf16 %v651_v22, %v650_v19 }
0x15cd   :  { %12282 = vmatprep.subr.bf16.mxu0 %v12281_v34 }
0x15ce   :  { %12284 = vmatpush3.bf16.msra.mxu0 %v12281_v34 }
0x15cf   :  { %11609 = vmatprep.subr.mxu0 %v656_v33 }
0x15d0   :  { %v768_v60 = vpop.trf.xlu0 }
0x15d4   :  { %v769_v37 = vpop.trf.xlu0 }
0x15d5   :  { %v832_v53 = vpop.trf.xlu1 }
0x15d6   :  { %v4486_v47 = vadd.f32 %v832_v53, %v768_v60  ;;  %v10566_v53 = vld [vmem:[%s16579_s7] ss:$0 sm:$0xff] }
0x15d8   :  { %v770_v61 = vpop.trf.xlu0 }
0x15d9   :  { %v833_v62 = vpop.trf.xlu1 }
0x15da   :  { %v4487_v25 = vadd.f32 %v833_v62, %v769_v37 }
0x15dc   :  { %v771_v63 = vpop.trf.xlu0 }
0x15dd   :  { %v834_v58 = vpop.trf.xlu1 }
0x15de   :  { %v4488_v26 = vadd.f32 %v834_v58, %v770_v61  ;;  %v14934_v58 = vsel %vm5227_vm8, 1.0, %v13952_v27 }
0x15df   :  { %16581 = vst [vmem:[#allocation112_spill] sm:$0xff] %v14934_v58 }
0x15e0   :  { %v800_v0 = vpop.trf.xlu0 }
0x15e1   :  { %v835_v1 = vpop.trf.xlu1 }
0x15e2   :  { %v4489_v6 = vadd.f32 %v835_v1, %v771_v63  ;;  %v14940_v1 = vsel %vm5918_vm9, 1.0, %v13952_v27 }
0x15e4   :  { %v801_v2 = vpop.trf.xlu0 }
0x15e5   :  { %v864_v3 = vpop.trf.xlu1 }
0x15e6   :  { %v4490_v12 = vadd.f32 %v864_v3, %v800_v0 }
0x15e8   :  { %v802_v20 = vpop.trf.xlu0 }
0x15e9   :  { %v865_v21 = vpop.trf.xlu1 }
0x15ea   :  { %v4491_v28 = vadd.f32 %v865_v21, %v801_v2 }
0x15ec   :  { %v803_v4 = vpop.trf.xlu0 }
0x15ed   :  { %v866_v7 = vpop.trf.xlu1 }
0x15ee   :  { %v4492_v30 = vadd.f32 %v866_v7, %v802_v20 }
0x15f0   :  { %v14844_v8 = vpop.trf.xlu0 }
0x15f1   :  { %v867_v9 = vpop.trf.xlu1  ;;  %11597 = vmatprep.mubr.msk.f32.mxu1 %vm1307_vm6, %v14844_v8 }
0x15f2   :  { %v4493_v35 = vadd.f32 %v867_v9, %v803_v4 }
0x15f4   :  { %v14848_v10 = vpop.trf.xlu0 }
0x15f5   :  { %v14850_v13 = vpop.trf.xlu1  ;;  %11598 = vmatmul.mubr.msk.f32.vlgmr.msra.gmra.mrb[32].mxu1 %vm1307_vm6, %v14848_v10 }
0x15f6   :  { %16574 = vst [vmem:[#allocation107_spill] sm:$0xff] %v14850_v13  ;;  %11624 = vmatpush3.msra.mxu1 %v657_v59 }
0x15f8   :  { %v14854_v14 = vpop.trf.xlu0 }
0x15f9   :  { %v14856_v15 = vpop.trf.xlu1  ;;  %11600 = vmatprep.mubr.msk.f32.mxu1 %vm1307_vm6, %v14854_v14 }
0x15fa   :  { %16575 = vst [vmem:[#allocation108_spill] sm:$0xff] %v14856_v15 }
0x15fc   :  { %v14860_v16 = vpop.trf.xlu0 }
0x15fd   :  { %11601 = vmatmul.mubr.msk.f32.gmra.mrb[34].mxu1 %vm1307_vm6, %v14860_v16  ;;  %v14864_v17 = vpop.trf.xlu1 }
0x15fe   :  { %16576 = vst [vmem:[#allocation109_spill] sm:$0xff] %v14864_v17  ;;  %11603 = vmatprep.mubr.msk.f32.mxu1 %vm1307_vm6, %v14850_v13 }
0x1601   :  { %11604 = vmatmul.mubr.msk.f32.gmra.mrb[36].mxu1 %vm1307_vm6, %v14856_v15  ;;  %v14870_v18 = vpop.trf.xlu1 }
0x1602   :  { %16577 = vst [vmem:[#allocation110_spill] sm:$0xff] %v14870_v18  ;;  %11606 = vmatprep.mubr.msk.f32.mxu1 %vm1307_vm6, %v14864_v17 }
0x1605   :  { %11607 = vmatmul.mubr.msk.f32.gmra.mrb[38].mxu1 %vm1307_vm6, %v14870_v18 }
0x1606   :  { %11625 = vmatprep.mubr.msk.f32.mxu1 %vm1307_vm6, %v768_v60 }
0x1609   :  { %11626 = vmatmul.mubr.msk.f32.vlgmr.msra.gmra.mrb[40].mxu1 %vm1307_vm6, %v769_v37 }
0x160a   :  { %11628 = vmatprep.mubr.msk.f32.mxu1 %vm1307_vm6, %v770_v61 }
0x160d   :  { %11629 = vmatmul.mubr.msk.f32.gmra.mrb[42].mxu1 %vm1307_vm6, %v771_v63  ;;  %v14931_v63 = vsel %vm4899_vm7, 1.0, %v13952_v27 }
0x160e   :  { %11631 = vmatprep.mubr.msk.f32.mxu1 %vm1307_vm6, %v800_v0  ;;  %16580 = vst [vmem:[#allocation111_spill] sm:$0xff] %v14931_v63  ;;  %v14937_v0 = vsel %vm6422_vm5, 1.0, %v13952_v27 }
0x1611   :  { %11632 = vmatmul.mubr.msk.f32.gmra.mrb[44].mxu1 %vm1307_vm6, %v801_v2 }
0x1612   :  { %11634 = vmatprep.mubr.msk.f32.mxu1 %vm1307_vm6, %v802_v20 }
0x1615   :  { %11635 = vmatmul.mubr.msk.f32.gmra.mrb[46].mxu1 %vm1307_vm6, %v803_v4 }
0x169c   :  { %v11575_v38 = vpop.f32.mrb[30].mxu1 }
0x169d   :  { %v4345_v5 = vadd.f32 %v11575_v38, %v10540_v31  ;;  %v4339_v43 = vpop.f32.mrb[31].mxu1 }
0x169e   :  { %v4340_v23 = vadd.f32 %v10540_v31, %v4339_v43 }
0x169f   :  { %v4349_v29 = vmax.f32 %v4345_v5, 0.0 }
0x16a0   :  { %v4348_v24 = vmax.f32 %v4340_v23, 0.0 }
0x16a2   :  { %11592 = vmatprep.mubr.msk.f32.mxu0 %vm4356_vm13, %v4348_v24 }
0x16a3   :  { %11593 = vmatmul.mubr.msk.f32.vlgmr.msra.gmra.mrb[26].mxu0 %vm4356_vm13, %v4349_v29 }
0x16a4   :  { %11610 = vmatpush3.msra.mxu0 %v656_v33  ;;  %11611 = vmatprep.mubr.msk.f32.mxu0 %vm1307_vm6, %v4486_v47 }
0x16a7   :  { %11612 = vmatmul.mubr.msk.f32.vlgmr.msra.gmra.mrb[28].mxu0 %vm1307_vm6, %v4487_v25 }
0x16a8   :  { %11614 = vmatprep.mubr.msk.f32.mxu0 %vm1307_vm6, %v4488_v26 }
0x16ab   :  { %11615 = vmatmul.mubr.msk.f32.gmra.mrb[30].mxu0 %vm1307_vm6, %v4489_v6 }
0x16ac   :  { %11617 = vmatprep.mubr.msk.f32.mxu0 %vm1307_vm6, %v4490_v12 }
0x16af   :  { %11618 = vmatmul.mubr.msk.f32.gmra.mrb[32].mxu0 %vm1307_vm6, %v4491_v28 }
0x16b0   :  { %11620 = vmatprep.mubr.msk.f32.mxu0 %vm1307_vm6, %v4492_v30 }
0x16b3   :  { %11621 = vmatmul.mubr.msk.f32.gmra.mrb[34].mxu0 %vm1307_vm6, %v4493_v35 }
0x16c8   :  { %v11599_v39 = vpop.f32.mrb[32].mxu1 }
0x16c9   :  { %v14900_v52 = vadd.f32 %v11599_v39, %v14897_v11  ;;  %v14902_v42 = vpop.f32.mrb[33].mxu1 }
0x16d0   :  { %v11602_v44 = vpop.f32.mrb[34].mxu1 }
0x16d1   :  { %v14905_v55 = vadd.f32 %v11602_v44, %v14897_v11  ;;  %v4600_v48 = vpop.f32.mrb[35].mxu1 }
0x16d2   :  { %v14908_v40 = vadd.f32 %v14897_v11, %v4600_v48 }
0x16d4   :  { %v11605_v46 = vpop.f32.mrb[36].mxu1 }
0x16d5   :  { %v14911_v45 = vadd.f32 %v11605_v46, %v14897_v11  ;;  %v14913_v41 = vpop.f32.mrb[37].mxu1 }
0x16d8   :  { %v11608_v49 = vpop.f32.mrb[38].mxu1 }
0x16d9   :  { %v14916_v50 = vadd.f32 %v11608_v49, %v14897_v11  ;;  %v4620_v36 = vpop.f32.mrb[39].mxu1 }
0x16da   :  { %v14919_v54 = vadd.f32 %v14897_v11, %v4620_v36 }
0x16dc   :  { %v11627_v51 = vpop.f32.mrb[40].mxu1 }
0x16dd   :  { %v4860_v59 = vpop.f32.mrb[41].mxu1  ;;  %v4866_v61 = vadd.f32 %v11627_v51, %v10566_v53 }
0x16de   :  { %v4861_v62 = vadd.f32 %v10566_v53, %v4860_v59 }
0x16df   :  { %v5521_v32 = vmul.f32 %v14934_v58, %v4866_v61  ;;  %v5218_v20 = vmul.f32 %v14931_v63, %v4866_v61  ;;  %v6212_v4 = vmul.f32 %v14940_v1, %v4866_v61  ;;  %v6716_v9 = vmul.f32 %v14937_v0, %v4866_v61 }
0x16e0   :  { %v11630_v60 = vpop.f32.mrb[42].mxu1  ;;  %v5520_v2 = vmul.f32 %v14934_v58, %v4861_v62  ;;  %v5217_v3 = vmul.f32 %v14931_v63, %v4861_v62  ;;  %v6211_v21 = vmul.f32 %v14940_v1, %v4861_v62  ;;  %v6715_v7 = vmul.f32 %v14937_v0, %v4861_v62 }
0x16e1   :  { %v4870_v37 = vpop.f32.mrb[43].mxu1  ;;  %v4876_v33 = vadd.f32 %v11630_v60, %v10566_v53 }
0x16e2   :  { %v14950_v19 = vpack.c.bf16 %v5521_v32, %v5520_v2  ;;  %v14952_v27 = vpack.c.bf16 %v5218_v20, %v5217_v3  ;;  %v14954_v22 = vpack.c.bf16 %v6212_v4, %v6211_v21  ;;  %v14956_v34 = vpack.c.bf16 %v6716_v9, %v6715_v7 }
0x16e3   :  { %v4871_v31 = vadd.f32 %v10566_v53, %v4870_v37  ;;  %v5523_v5 = vmul.f32 %v14934_v58, %v4876_v33  ;;  %v5220_v23 = vmul.f32 %v14931_v63, %v4876_v33  ;;  %v6214_v29 = vmul.f32 %v14940_v1, %v4876_v33 }
0x16e4   :  { %v6718_v25 = vmul.f32 %v14937_v0, %v4876_v33  ;;  %v11633_v30 = vpop.f32.mrb[44].mxu1 }
0x16e5   :  { %v5522_v38 = vmul.f32 %v14934_v58, %v4871_v31  ;;  %v5219_v43 = vmul.f32 %v14931_v63, %v4871_v31  ;;  %v6213_v24 = vmul.f32 %v14940_v1, %v4871_v31  ;;  %v6717_v47 = vmul.f32 %v14937_v0, %v4871_v31  ;;  %v4880_v35 = vpop.f32.mrb[45].mxu1 }
0x16e6   :  { %v4886_v39 = vadd.f32 %v11633_v30, %v10566_v53  ;;  %v4881_v44 = vadd.f32 %v10566_v53, %v4880_v35 }
0x16e7   :  { %v14966_v26 = vpack.c.bf16 %v5523_v5, %v5522_v38  ;;  %v14968_v6 = vpack.c.bf16 %v5220_v23, %v5219_v43  ;;  %v14970_v12 = vpack.c.bf16 %v6214_v29, %v6213_v24  ;;  %v14972_v28 = vpack.c.bf16 %v6718_v25, %v6717_v47 }
0x16e8   :  { %v5524_v48 = vmul.f32 %v14934_v58, %v4881_v44  ;;  %v5525_v46 = vmul.f32 %v14934_v58, %v4886_v39  ;;  %v5221_v49 = vmul.f32 %v14931_v63, %v4881_v44  ;;  %v5222_v36 = vmul.f32 %v14931_v63, %v4886_v39  ;;  %v11636_v3 = vpop.f32.mrb[46].mxu1 }
0x16e9   :  { %v6215_v51 = vmul.f32 %v14940_v1, %v4881_v44  ;;  %v6216_v59 = vmul.f32 %v14940_v1, %v4886_v39  ;;  %v6719_v60 = vmul.f32 %v14937_v0, %v4881_v44  ;;  %v6720_v37 = vmul.f32 %v14937_v0, %v4886_v39  ;;  %v4890_v21 = vpop.f32.mrb[47].mxu1 }
0x16ea   :  { %v14982_v61 = vpack.c.bf16 %v5525_v46, %v5524_v48  ;;  %v14984_v62 = vpack.c.bf16 %v5222_v36, %v5221_v49  ;;  %v4896_v20 = vadd.f32 %v11636_v3, %v10566_v53  ;;  %v4891_v4 = vadd.f32 %v10566_v53, %v4890_v21  ;;  %v10557_v46 = vld [vmem:[#allocation41] ss:$0 sm:$0xff] }
0x16eb   :  { %v14986_v2 = vpack.c.bf16 %v6216_v59, %v6215_v51  ;;  %v14988_v32 = vpack.c.bf16 %v6720_v37, %v6719_v60  ;;  %v15003_v29 = vmul.f32 0.70710677, %v14931_v63  ;;  %v15007_v47 = vadd.f32 %v14897_v11, %v14902_v42 }
0x16ec   :  { %v5526_v7 = vmul.f32 %v14934_v58, %v4891_v4  ;;  %v5527_v9 = vmul.f32 %v14934_v58, %v4896_v20  ;;  %v5223_v33 = vmul.f32 %v14931_v63, %v4891_v4  ;;  %v5224_v31 = vmul.f32 %v14931_v63, %v4896_v20 }
0x16ed   :  { %v6217_v38 = vmul.f32 %v14940_v1, %v4891_v4  ;;  %v6218_v5 = vmul.f32 %v14940_v1, %v4896_v20  ;;  %v6721_v24 = vmul.f32 %v14937_v0, %v4891_v4  ;;  %v6722_v53 = vmul.f32 %v14937_v0, %v4896_v20  ;;  %16582 = vst [vmem:[#allocation113_spill] sm:$0xff] %v15003_v29 }
0x16ee   :  { %v14996_v43 = vpack.c.bf16 %v5527_v9, %v5526_v7  ;;  %v14998_v23 = vpack.c.bf16 %v5224_v31, %v5223_v33  ;;  %v4903_v35 = vmul.f32 %v15003_v29, %v15007_v47  ;;  %v15018_v39 = vadd.f32 %v14897_v11, %v14913_v41 }
0x16ef   :  { %v15009_v25 = vpack.c.bf16 %v6218_v5, %v6217_v38  ;;  %v15011_v30 = vpack.c.bf16 %v6722_v53, %v6721_v24 }
0x16f0   :  { %11645 = vmatprep.mubr.msk.f32.mxu0 %vm1307_vm6, %v4903_v35  ;;  %v4907_v44 = vmul.f32 %v15003_v29, %v15018_v39 }
0x16f2   :  { %11659 = vmatprep.mubr.msk.f32.mxu1 %vm1307_vm6, %v4907_v44  ;;  %v4904_v44 = vmul.f32 %v15003_v29, %v14900_v52 }
0x1776   :  { %v15023_v42 = vpop.f32.mrb[26].mxu0 }
0x1777   :  { %16583 = vst [vmem:[#allocation114_spill] sm:$0xff] %v15023_v42  ;;  %v15025_v48 = vpop.f32.mrb[27].mxu0 }
0x1778   :  { %16584 = vst [vmem:[#allocation115_spill] sm:$0xff] %v15025_v48 }
0x177a   :  { %v11613_v49 = vpop.f32.mrb[28].mxu0 }
0x177b   :  { %v4731_v36 = vadd.f32 %v11613_v49, %v10557_v46  ;;  %v4725_v51 = vpop.f32.mrb[29].mxu0  ;;  %v4905_v49 = vmul.f32 %v15003_v29, %v14908_v40 }
0x177c   :  { %v4726_v59 = vadd.f32 %v10557_v46, %v4725_v51 }
0x177e   :  { %v15033_v11 = vpack.c.bf16 %v4731_v36, %v4726_v59  ;;  %v11616_v41 = vpop.f32.mrb[30].mxu0  ;;  %v4906_v36 = vmul.f32 %v15003_v29, %v14905_v55  ;;  %v4908_v59 = vmul.f32 %v15003_v29, %v14911_v45 }
0x177f   :  { %v4741_v37 = vadd.f32 %v11616_v41, %v10557_v46  ;;  %v4735_v3 = vpop.f32.mrb[31].mxu0  ;;  %v4909_v41 = vmul.f32 %v15003_v29, %v14919_v54 }
0x1780   :  { %v4736_v20 = vadd.f32 %v10557_v46, %v4735_v3  ;;  %12287 = vmatprep.subr.msk.bf16.mxu0 %vm15029_vm4, %v15033_v11 }
0x1781   :  { %12290 = vmatpush3.bf16.xpose.msk.msra.mxu0 %vm15029_vm4, %v15033_v11 }
0x1782   :  { %v15041_v21 = vpack.c.bf16 %v4741_v37, %v4736_v20  ;;  %v11619_v4 = vpop.f32.mrb[32].mxu0  ;;  %v4910_v37 = vmul.f32 %v15003_v29, %v14916_v50 }
0x1783   :  { %v4751_v7 = vadd.f32 %v11619_v4, %v10557_v46  ;;  %v4745_v9 = vpop.f32.mrb[33].mxu0 }
0x1784   :  { %v4746_v33 = vadd.f32 %v10557_v46, %v4745_v9  ;;  %12293 = vmatprep.subr.msk.bf16.mxu0 %vm15029_vm4, %v15041_v21 }
0x1786   :  { %v15046_v31 = vpack.c.bf16 %v4751_v7, %v4746_v33  ;;  %v11622_v38 = vpop.f32.mrb[34].mxu0 }
0x1787   :  { %v4761_v5 = vadd.f32 %v11622_v38, %v10557_v46  ;;  %v4755_v24 = vpop.f32.mrb[35].mxu0 }
0x1788   :  { %v4756_v53 = vadd.f32 %v10557_v46, %v4755_v24  ;;  %12299 = vmatprep.subr.msk.bf16.mxu1 %vm15029_vm4, %v15046_v31  ;;  %v15068_v46 = vmul.f32 0.70710677, %v14934_v58 }
0x1789   :  { %12296 = vmatpush3.bf16.xpose.msk.msra.mxu0 %vm15029_vm4, %v15041_v21  ;;  %12302 = vmatpush3.bf16.xpose.msk.msra.mxu1 %vm15029_vm4, %v15046_v31 }
0x178a   :  { %v15057_v35 = vpack.c.bf16 %v4761_v5, %v4756_v53  ;;  %12311 = vmatprep.subr.msk.bf16.mxu0 %vm15029_vm4, %v15033_v11  ;;  %16587 = vst [vmem:[#allocation116_spill] sm:$0xff] %v15068_v46  ;;  %v5230_v51 = vmul.f32 %v15068_v46, %v15007_v47  ;;  %v5234_v3 = vmul.f32 %v15068_v46, %v15018_v39 }
0x178b   :  { %v5231_v20 = vmul.f32 %v15068_v46, %v14900_v52  ;;  %v5232_v4 = vmul.f32 %v15068_v46, %v14908_v40  ;;  %v5233_v7 = vmul.f32 %v15068_v46, %v14905_v55  ;;  %v5235_v9 = vmul.f32 %v15068_v46, %v14911_v45 }
0x178c   :  { %12305 = vmatprep.subr.msk.bf16.mxu1 %vm15029_vm4, %v15057_v35  ;;  %v5236_v33 = vmul.f32 %v15068_v46, %v14919_v54 }
0x1790   :  { %11646 = vmatmul.mubr.msk.f32.vlgmr.msra.gmra.mrb[36].mxu0 %vm1307_vm6, %v4904_v44 }
0x1791   :  { %12308 = vmatpush3.bf16.xpose.msk.msra.mxu1 %vm15029_vm4, %v15057_v35  ;;  %12314 = vmatpush3.bf16.xpose.msk.msra.mxu0 %vm15029_vm4, %v15033_v11 }
0x1792   :  { %12317 = vmatprep.subr.msk.bf16.mxu0 %vm15029_vm4, %v15041_v21  ;;  %12323 = vmatprep.subr.msk.bf16.mxu1 %vm15029_vm4, %v15046_v31 }
0x1793   :  { %11648 = vmatprep.mubr.msk.f32.mxu0 %vm1307_vm6, %v4905_v49 }
0x1794   :  { %11649 = vmatmul.mubr.msk.f32.gmra.mrb[38].mxu0 %vm1307_vm6, %v4906_v36 }
0x1795   :  { %11673 = vmatprep.mubr.msk.f32.mxu0 %vm1307_vm6, %v5230_v51 }
0x1798   :  { %11660 = vmatmul.mubr.msk.f32.vlgmr.msra.gmra.mrb[48].mxu1 %vm1307_vm6, %v4908_v59 }
0x1799   :  { %12320 = vmatpush3.bf16.xpose.msk.msra.mxu0 %vm15029_vm4, %v15041_v21  ;;  %12326 = vmatpush3.bf16.xpose.msk.msra.mxu1 %vm15029_vm4, %v15046_v31 }
0x179a   :  { %12329 = vmatprep.subr.msk.bf16.mxu1 %vm15029_vm4, %v15057_v35  ;;  %12334 = vmatprep.subr.bf16.mxu0 %v14950_v19 }
0x179b   :  { %11662 = vmatprep.mubr.msk.f32.mxu1 %vm1307_vm6, %v4909_v41 }
0x179c   :  { %11663 = vmatmul.mubr.msk.f32.gmra.mrb[50].mxu1 %vm1307_vm6, %v4910_v37 }
0x179d   :  { %11687 = vmatprep.mubr.msk.f32.mxu1 %vm1307_vm6, %v5234_v3 }
0x17a0   :  { %11674 = vmatmul.mubr.msk.f32.vlgmr.msra.gmra.mrb[40].mxu0 %vm1307_vm6, %v5231_v20 }
0x17a1   :  { %11676 = vmatprep.mubr.msk.f32.mxu0 %vm1307_vm6, %v5232_v4  ;;  %12332 = vmatpush3.bf16.xpose.msk.msra.mxu1 %vm15029_vm4, %v15057_v35 }
0x17a2   :  { %12336 = vmatpush3.bf16.msra.mxu0 %v14950_v19  ;;  %12342 = vmatprep.subr.bf16.mxu1 %v14982_v61  ;;  %v5237_v19 = vmul.f32 %v15068_v46, %v14916_v50 }
0x17a3   :  { %12338 = vmatprep.subr.bf16.mxu0 %v14966_v26 }
0x17a4   :  { %11677 = vmatmul.mubr.msk.f32.gmra.mrb[42].mxu0 %vm1307_vm6, %v5233_v7 }
0x17a6   :  { %12340 = vmatpush3.bf16.msra.mxu0 %v14966_v26 }
0x17a7   :  { %12350 = vmatprep.subr.bf16.mxu0 %v14952_v27 }
0x17a8   :  { %11688 = vmatmul.mubr.msk.f32.vlgmr.msra.gmra.mrb[52].mxu1 %vm1307_vm6, %v5235_v9 }
0x17a9   :  { %11690 = vmatprep.mubr.msk.f32.mxu1 %vm1307_vm6, %v5236_v33  ;;  %12344 = vmatpush3.bf16.msra.mxu1 %v14982_v61 }
0x17aa   :  { %12346 = vmatprep.subr.bf16.mxu1 %v14996_v43 }
0x17ac   :  { %11691 = vmatmul.mubr.msk.f32.gmra.mrb[54].mxu1 %vm1307_vm6, %v5237_v19 }
0x17ad   :  { %12348 = vmatpush3.bf16.msra.mxu1 %v14996_v43 }
0x17ae   :  { %12358 = vmatprep.subr.bf16.mxu1 %v14984_v62 }
0x1863   :  { %v15144_v26 = vpop.f32.mrb[36].mxu0 }
0x1864   :  { %v15146_v38 = vpop.f32.mrb[37].mxu0 }
0x1867   :  { %v15148_v5 = vpop.f32.mrb[38].mxu0 }
0x1868   :  { %v15150_v24 = vpop.f32.mrb[39].mxu0 }
0x186b   :  { %v15152_v61 = vpop.f32.mrb[48].mxu1 }
0x186c   :  { %v15154_v53 = vpop.f32.mrb[49].mxu1 }
0x186f   :  { %v15156_v44 = vpop.f32.mrb[50].mxu1 }
0x1870   :  { %v15158_v49 = vpop.f32.mrb[51].mxu1 }
0x1873   :  { %v11675_v36 = vpop.f32.mrb[40].mxu0 }
0x1874   :  { %v5316_v43 = vpop.f32.mrb[41].mxu0  ;;  %v5435_v51 = vsel %vm890_vm0, %v11675_v36, -inf }
0x1875   :  { %5436 = vmax.xlane.f32.xlu1 %v5435_v51  ;;  %v5432_v59 = vsel %vm890_vm0, %v5316_v43, -inf }
0x1876   :  { %5433 = vmax.xlane.f32.xlu0 %v5432_v59  ;;  %v5132_v59 = vsel %vm890_vm0, %v15144_v26, -inf }
0x1877   :  { %v11678_v41 = vpop.f32.mrb[42].mxu0 }
0x1878   :  { %v5326_v37 = vpop.f32.mrb[43].mxu0  ;;  %v5441_v3 = vsel %vm890_vm0, %v11678_v41, -inf }
0x1879   :  { %5442 = vmax.xlane.f32.xlu1 %v5441_v3  ;;  %v5438_v9 = vsel %vm890_vm0, %v5326_v37, -inf  ;;  %v5129_v3 = vsel %vm890_vm0, %v15146_v38, -inf }
0x187b   :  { %v11689_v20 = vpop.f32.mrb[52].mxu1 }
0x187c   :  { %v5413_v4 = vpop.f32.mrb[53].mxu1  ;;  %v5447_v7 = vsel %vm890_vm0, %v11689_v20, -inf }
0x187d   :  { %5448 = vmax.xlane.f32.xlu0 %v5447_v7  ;;  %5439 = vmax.xlane.f32.xlu1 %v5438_v9  ;;  %v5444_v51 = vsel %vm890_vm0, %v5413_v4, -inf  ;;  %v5144_v9 = vsel %vm890_vm0, %v15152_v61, -inf }
0x187f   :  { %v15165_v33 = vpop.f32.mrb[54].mxu1 }
0x1880   :  { %v15167_v19 = vpop.f32.mrb[55].mxu1  ;;  %v5453_v57 = vsel %vm890_vm0, %v15165_v33, -inf }
0x1881   :  { %5445 = vmax.xlane.f32.xlu0 %v5444_v51  ;;  %5133 = vmax.xlane.f32.xlu1 %v5132_v59  ;;  %v5450_v7 = vsel %vm890_vm0, %v15167_v19, -inf  ;;  %v5141_v51 = vsel %vm890_vm0, %v15154_v53, -inf  ;;  %v5138_v59 = vsel %vm890_vm0, %v15148_v5, -inf }
0x1885   :  { %5130 = vmax.xlane.f32.xlu0 %v5129_v3  ;;  %5454 = vmax.xlane.f32.xlu1 %v5453_v57  ;;  %v5150_v3 = vsel %vm890_vm0, %v15156_v44, -inf  ;;  %v5135_v57 = vsel %vm890_vm0, %v15150_v24, -inf }
0x1889   :  { %5451 = vmax.xlane.f32.xlu0 %v5450_v7  ;;  %5145 = vmax.xlane.f32.xlu1 %v5144_v9  ;;  %v5147_v7 = vsel %vm890_vm0, %v15158_v49, -inf }
0x188d   :  { %5142 = vmax.xlane.f32.xlu0 %v5141_v51  ;;  %5139 = vmax.xlane.f32.xlu1 %v5138_v59 }
0x1891   :  { %5151 = vmax.xlane.f32.xlu1 %v5150_v3  ;;  %5136 = vmax.xlane.f32.xlu0 %v5135_v57 }
0x1895   :  { %5148 = vmax.xlane.f32.xlu0 %v5147_v7 }
0x1902   :  { %v5437_v9 = vpop.xlane.xlu1 %5436 }
0x1903   :  { %v5457_v42 = vsub.f32 %v11675_v36, %v5437_v9  ;;  %v5434_v56 = vpop.xlane.xlu0 %5433 }
0x1904   :  { %v5456_v48 = vsub.f32 %v5316_v43, %v5434_v56 }
0x1905   :  { %v5466_v63 = vmul.f32 1.442695, %v5457_v42 }
0x1906   :  { %v5464_v58 = vmul.f32 1.442695, %v5456_v48  ;;  %v5443_v51 = vpop.xlane.xlu1 %5442 }
0x1907   :  { %12857 = vpow2.f32 %v5466_v63  ;;  %v5459_v59 = vsub.f32 %v11678_v41, %v5443_v51 }
0x1908   :  { %12859 = vpow2.f32 %v5464_v58 }
0x1909   :  { %v5470_v46 = vmul.f32 1.442695, %v5459_v59 }
0x190a   :  { %v5449_v29 = vpop.xlane.xlu0 %5448  ;;  %v5440_v17 = vpop.xlane.xlu1 %5439 }
0x190b   :  { %12861 = vpow2.f32 %v5470_v46  ;;  %v5461_v3 = vsub.f32 %v11689_v20, %v5449_v29  ;;  %v5458_v57 = vsub.f32 %v5326_v37, %v5440_v17 }
0x190d   :  { %v5474_v18 = vmul.f32 1.442695, %v5461_v3  ;;  %v5468_v13 = vmul.f32 1.442695, %v5458_v57 }
0x190e   :  { %v5446_v15 = vpop.xlane.xlu0 %5445  ;;  %v5134_v7 = vpop.xlane.xlu1 %5133 }
0x190f   :  { %12863 = vpow2.f32 %v5474_v18  ;;  %v5460_v36 = vsub.f32 %v5413_v4, %v5446_v15  ;;  %v5154_v56 = vsub.f32 %v15144_v26, %v5134_v7 }
0x1910   :  { %12865 = vpow2.f32 %v5468_v13 }
0x1911   :  { %v15191_v42 = vpop.eup %12857  ;;  %v5472_v63 = vmul.f32 1.442695, %v5460_v36  ;;  %v5163_v48 = vmul.f32 1.442695, %v5154_v56 }
0x1912   :  { %v15193_v58 = vpop.eup %12859  ;;  %v5131_v43 = vpop.xlane.xlu0 %5130  ;;  %v5483_v17 = vsel %vm890_vm0, %v15191_v42, 0.0 }
0x1913   :  { %v5455_v41 = vpop.xlane.xlu1 %5454  ;;  %12867 = vpow2.f32 %v5472_v63  ;;  %v5153_v29 = vsub.f32 %v15146_v38, %v5131_v43  ;;  %5484 = vadd.xlane.f32.xlu1 %v5483_v17  ;;  %v5480_v13 = vsel %vm890_vm0, %v15193_v58, 0.0 }
0x1914   :  { %v5463_v18 = vsub.f32 %v15165_v33, %v5455_v41  ;;  %12869 = vpow2.f32 %v5163_v48  ;;  %5481 = vadd.xlane.f32.xlu0 %v5480_v13 }
0x1915   :  { %v15201_v15 = vpop.eup %12861  ;;  %v5161_v46 = vmul.f32 1.442695, %v5153_v29 }
0x1916   :  { %v5478_v26 = vmul.f32 1.442695, %v5463_v18  ;;  %v5452_v37 = vpop.xlane.xlu0 %5451  ;;  %v5489_v4 = vsel %vm890_vm0, %v15201_v15, 0.0 }
0x1917   :  { %v5146_v20 = vpop.xlane.xlu1 %5145  ;;  %12871 = vpow2.f32 %v5161_v46  ;;  %v5462_v38 = vsub.f32 %v15167_v19, %v5452_v37  ;;  %5490 = vadd.xlane.f32.xlu1 %v5489_v4 }
0x1918   :  { %v5158_v33 = vsub.f32 %v15152_v61, %v5146_v20  ;;  %12873 = vpow2.f32 %v5478_v26 }
0x1919   :  { %v15207_v9 = vpop.eup %12863  ;;  %v5476_v51 = vmul.f32 1.442695, %v5462_v38 }
0x191a   :  { %v5171_v59 = vmul.f32 1.442695, %v5158_v33  ;;  %v15209_v3 = vpop.eup %12865  ;;  %v5143_v57 = vpop.xlane.xlu0 %5142  ;;  %v5495_v36 = vsel %vm890_vm0, %v15207_v9, 0.0 }
0x191b   :  { %v5140_v7 = vpop.xlane.xlu1 %5139  ;;  %12875 = vpow2.f32 %v5476_v51  ;;  %v5157_v56 = vsub.f32 %v15154_v53, %v5143_v57  ;;  %v5486_v61 = vsel %vm890_vm0, %v15209_v3, 0.0  ;;  %5496 = vadd.xlane.f32.xlu0 %v5495_v36 }
0x191c   :  { %v5156_v19 = vsub.f32 %v15148_v5, %v5140_v7  ;;  %12877 = vpow2.f32 %v5171_v59  ;;  %5487 = vadd.xlane.f32.xlu1 %v5486_v61 }
0x191d   :  { %v15217_v63 = vpop.eup %12867  ;;  %v5169_v48 = vmul.f32 1.442695, %v5157_v56 }
0x191e   :  { %v5167_v43 = vmul.f32 1.442695, %v5156_v19  ;;  %v15219_v41 = vpop.eup %12869  ;;  %v5137_v29 = vpop.xlane.xlu0 %5136  ;;  %v5492_v18 = vsel %vm890_vm0, %v15217_v63, 0.0 }
0x191f   :  { %v5152_v17 = vpop.xlane.xlu1 %5151  ;;  %12879 = vpow2.f32 %v5169_v48  ;;  %v5155_v53 = vsub.f32 %v15150_v24, %v5137_v29  ;;  %v5180_v13 = vsel %vm890_vm0, %v15219_v41, 0.0  ;;  %5493 = vadd.xlane.f32.xlu0 %v5492_v18 }
0x1920   :  { %v5160_v5 = vsub.f32 %v15156_v44, %v5152_v17  ;;  %12881 = vpow2.f32 %v5167_v43  ;;  %5181 = vadd.xlane.f32.xlu1 %v5180_v13 }
0x1921   :  { %v15227_v46 = vpop.eup %12871  ;;  %v5165_v37 = vmul.f32 1.442695, %v5155_v53 }
0x1922   :  { %v5175_v26 = vmul.f32 1.442695, %v5160_v5  ;;  %v15229_v20 = vpop.eup %12873  ;;  %v5149_v4 = vpop.xlane.xlu0 %5148  ;;  %v5177_v38 = vsel %vm890_vm0, %v15227_v46, 0.0 }
0x1923   :  { %v5159_v44 = vsub.f32 %v15158_v49, %v5149_v4  ;;  %v5501_v24 = vsel %vm890_vm0, %v15229_v20, 0.0  ;;  %5178 = vadd.xlane.f32.xlu0 %v5177_v38 }
0x1924   :  { %12883 = vpow2.f32 %v5175_v26  ;;  %5502 = vadd.xlane.f32.xlu1 %v5501_v24 }
0x1925   :  { %12885 = vpow2.f32 %v5165_v37  ;;  %v15236_v33 = vpop.eup %12875  ;;  %v5173_v51 = vmul.f32 1.442695, %v5159_v44 }
0x1926   :  { %v15238_v59 = vpop.eup %12877  ;;  %v5498_v57 = vsel %vm890_vm0, %v15236_v33, 0.0 }
0x1927   :  { %12887 = vpow2.f32 %v5173_v51  ;;  %v5192_v7 = vsel %vm890_vm0, %v15238_v59, 0.0  ;;  %5499 = vadd.xlane.f32.xlu0 %v5498_v57 }
0x1928   :  { %5193 = vadd.xlane.f32.xlu1 %v5192_v7 }
0x1929   :  { %v15244_v49 = vpop.eup %12879 }
0x192a   :  { %v15246_v36 = vpop.eup %12881  ;;  %v5189_v56 = vsel %vm890_vm0, %v15244_v49, 0.0 }
0x192b   :  { %v5186_v19 = vsel %vm890_vm0, %v15246_v36, 0.0  ;;  %5190 = vadd.xlane.f32.xlu0 %v5189_v56 }
0x192c   :  { %5187 = vadd.xlane.f32.xlu1 %v5186_v19 }
0x192e   :  { %v15252_v61 = vpop.eup %12883 }
0x192f   :  { %v15254_v48 = vpop.eup %12885  ;;  %v5198_v43 = vsel %vm890_vm0, %v15252_v61, 0.0 }
0x1930   :  { %v5183_v17 = vsel %vm890_vm0, %v15254_v48, 0.0  ;;  %5199 = vadd.xlane.f32.xlu1 %v5198_v43 }
0x1931   :  { %5184 = vadd.xlane.f32.xlu0 %v5183_v17  ;;  %v15260_v29 = vpop.eup %12887 }
0x1932   :  { %v5195_v18 = vsel %vm890_vm0, %v15260_v29, 0.0 }
0x1935   :  { %5196 = vadd.xlane.f32.xlu0 %v5195_v18 }
0x19a0   :  { %v5485_v5 = vpop.xlane.xlu1 %5484 }
0x19a1   :  { %12889 = vrcp.f32 %v5485_v5  ;;  %v5482_v53 = vpop.xlane.xlu0 %5481 }
0x19a2   :  { %12891 = vrcp.f32 %v5482_v53 }
0x19a4   :  { %v5491_v13 = vpop.xlane.xlu1 %5490 }
0x19a5   :  { %12893 = vrcp.f32 %v5491_v13 }
0x19a8   :  { %v5497_v26 = vpop.xlane.xlu0 %5496 }
0x19a9   :  { %v5488_v37 = vpop.xlane.xlu1 %5487 }
0x19aa   :  { %12895 = vrcp.f32 %v5488_v37 }
0x19ab   :  { %v12890_v4 = vpop.eup %12889  ;;  %12897 = vrcp.f32 %v5497_v26 }
0x19ac   :  { %v12892_v38 = vpop.eup %12891  ;;  %v5494_v44 = vpop.xlane.xlu0 %5493  ;;  %v5513_v57 = vmul.f32 %v12890_v4, %v15191_v42 }
0x19ad   :  { %v5182_v24 = vpop.xlane.xlu1 %5181  ;;  %12899 = vrcp.f32 %v5494_v44  ;;  %v5512_v51 = vmul.f32 %v12892_v38, %v15193_v58 }
0x19ae   :  { %12901 = vrcp.f32 %v5182_v24 }
0x19af   :  { %11701 = vmatprep.mubr.msk.f32.mxu0 %vm890_vm0, %v5512_v51  ;;  %v12894_v19 = vpop.eup %12893 }
0x19b0   :  { %11702 = vmatmul.mubr.msk.f32.vlgmr.msra.gmra.mrb[44].mxu0 %vm890_vm0, %v5513_v57  ;;  %v5179_v7 = vpop.xlane.xlu0 %5178 }
0x19b1   :  { %v5503_v56 = vpop.xlane.xlu1 %5502  ;;  %12352 = vmatpush3.bf16.msra.mxu0 %v14952_v27  ;;  %12903 = vrcp.f32 %v5179_v7  ;;  %v5515_v27 = vmul.f32 %v12894_v19, %v15201_v15  ;;  %v15307_v7 = vmul.f32 0.70710677, %v14940_v1 }
0x19b2   :  { %12354 = vmatprep.subr.bf16.mxu0 %v14968_v6  ;;  %12905 = vrcp.f32 %v5503_v56 }
0x19b4   :  { %v12896_v43 = vpop.eup %12895  ;;  %v5500_v17 = vpop.xlane.xlu0 %5499 }
0x19b5   :  { %v5194_v18 = vpop.xlane.xlu1 %5193  ;;  %12356 = vmatpush3.bf16.msra.mxu0 %v14968_v6  ;;  %12907 = vrcp.f32 %v5500_v17  ;;  %v5514_v42 = vmul.f32 %v12896_v43, %v15209_v3  ;;  %v12898_v58 = vpop.eup %12897  ;;  %v5921_v43 = vmul.f32 %v15307_v7, %v15007_v47 }
0x19b6   :  { %12367 = vmatprep.subr.msk.bf16.mxu0 %vm15029_vm4, %v15033_v11  ;;  %12909 = vrcp.f32 %v5194_v18  ;;  %v5517_v6 = vmul.f32 %v12898_v58, %v15207_v9  ;;  %v5928_v58 = vmul.f32 %v15307_v7, %v14916_v50 }
0x19b7   :  { %v12900_v5 = vpop.eup %12899  ;;  %11704 = vmatprep.mubr.msk.f32.mxu0 %vm890_vm0, %v5514_v42  ;;  %v5926_v42 = vmul.f32 %v15307_v7, %v14911_v45 }
0x19b8   :  { %11705 = vmatmul.mubr.msk.f32.gmra.mrb[46].mxu0 %vm890_vm0, %v5515_v27  ;;  %v5191_v53 = vpop.xlane.xlu0 %5190  ;;  %v5516_v13 = vmul.f32 %v12900_v5, %v15217_v63  ;;  %v12902_v3 = vpop.eup %12901 }
0x19b9   :  { %v5188_v26 = vpop.xlane.xlu1 %5187  ;;  %12911 = vrcp.f32 %v5191_v53  ;;  %v5210_v4 = vmul.f32 %v12902_v3, %v15219_v41 }
0x19ba   :  { %11715 = vmatprep.mubr.msk.f32.mxu1 %vm890_vm0, %v5516_v13  ;;  %12913 = vrcp.f32 %v5188_v26 }
0x19bb   :  { %v12904_v37 = vpop.eup %12903  ;;  %11716 = vmatmul.mubr.msk.f32.vlgmr.msra.gmra.mrb[56].mxu1 %vm890_vm0, %v5517_v6 }
0x19bc   :  { %12360 = vmatpush3.bf16.msra.mxu1 %v14984_v62  ;;  %v5209_v15 = vmul.f32 %v12904_v37, %v15227_v46  ;;  %v12906_v63 = vpop.eup %12905 }
0x19bd   :  { %12362 = vmatprep.subr.bf16.mxu1 %v14998_v23  ;;  %v5200_v9 = vpop.xlane.xlu1 %5199  ;;  %v5519_v46 = vmul.f32 %v12906_v63, %v15229_v20 }
0x19be   :  { %v5185_v38 = vpop.xlane.xlu0 %5184  ;;  %11729 = vmatprep.mubr.msk.f32.mxu0 %vm890_vm0, %v5209_v15 }
0x19bf   :  { %v12908_v44 = vpop.eup %12907  ;;  %12915 = vrcp.f32 %v5185_v38  ;;  %11730 = vmatmul.mubr.msk.f32.vlgmr.msra.gmra.mrb[44].mxu0 %vm890_vm0, %v5210_v4 }
0x19c0   :  { %12364 = vmatpush3.bf16.msra.mxu1 %v14998_v23  ;;  %12370 = vmatpush3.bf16.xpose.msk.msra.mxu0 %vm15029_vm4, %v15033_v11  ;;  %v5518_v62 = vmul.f32 %v12908_v44, %v15236_v33  ;;  %12917 = vrcp.f32 %v5200_v9  ;;  %v12910_v24 = vpop.eup %12909 }
0x19c1   :  { %12373 = vmatprep.subr.msk.bf16.mxu0 %vm15029_vm4, %v15041_v21  ;;  %12379 = vmatprep.subr.msk.bf16.mxu1 %vm15029_vm4, %v15046_v31  ;;  %v5214_v51 = vmul.f32 %v12910_v24, %v15238_v59 }
0x19c2   :  { %v5197_v41 = vpop.xlane.xlu0 %5196  ;;  %11718 = vmatprep.mubr.msk.f32.mxu1 %vm890_vm0, %v5518_v62 }
0x19c3   :  { %12919 = vrcp.f32 %v5197_v41  ;;  %v12912_v23 = vpop.eup %12911  ;;  %11719 = vmatmul.mubr.msk.f32.gmra.mrb[58].mxu1 %vm890_vm0, %v5519_v46 }
0x19c4   :  { %v5213_v33 = vmul.f32 %v12912_v23, %v15244_v49  ;;  %v12914_v57 = vpop.eup %12913 }
0x19c5   :  { %v5212_v56 = vmul.f32 %v12914_v57, %v15246_v36  ;;  %v5923_v36 = vmul.f32 %v15307_v7, %v14908_v40 }
0x19c6   :  { %11743 = vmatprep.mubr.msk.f32.mxu1 %vm890_vm0, %v5213_v33 }
0x19c7   :  { %11744 = vmatmul.mubr.msk.f32.vlgmr.msra.gmra.mrb[56].mxu1 %vm890_vm0, %v5214_v51 }
0x19c8   :  { %12376 = vmatpush3.bf16.xpose.msk.msra.mxu0 %vm15029_vm4, %v15041_v21 }
0x19c9   :  { %v12916_v20 = vpop.eup %12915  ;;  %12382 = vmatpush3.bf16.xpose.msk.msra.mxu1 %vm15029_vm4, %v15046_v31  ;;  %12390 = vmatprep.subr.bf16.mxu0 %v14954_v22 }
0x19ca   :  { %12385 = vmatprep.subr.msk.bf16.mxu1 %vm15029_vm4, %v15057_v35  ;;  %v5211_v59 = vmul.f32 %v12916_v20, %v15254_v48  ;;  %v12918_v49 = vpop.eup %12917  ;;  %v5922_v48 = vmul.f32 %v15307_v7, %v14900_v52 }
0x19cb   :  { %v5216_v18 = vmul.f32 %v12918_v49, %v15252_v61  ;;  %v5924_v61 = vmul.f32 %v15307_v7, %v14905_v55 }
0x19cc   :  { %11732 = vmatprep.mubr.msk.f32.mxu0 %vm890_vm0, %v5211_v59 }
0x19cd   :  { %v12920_v19 = vpop.eup %12919  ;;  %11733 = vmatmul.mubr.msk.f32.gmra.mrb[46].mxu0 %vm890_vm0, %v5212_v56 }
0x19ce   :  { %v5215_v17 = vmul.f32 %v12920_v19, %v15260_v29  ;;  %11757 = vmatprep.mubr.msk.f32.mxu0 %vm1307_vm6, %v5921_v43  ;;  %v5925_v29 = vmul.f32 %v15307_v7, %v15018_v39 }
0x19d0   :  { %11746 = vmatprep.mubr.msk.f32.mxu1 %vm890_vm0, %v5215_v17 }
0x19d1   :  { %11747 = vmatmul.mubr.msk.f32.gmra.mrb[58].mxu1 %vm890_vm0, %v5216_v18  ;;  %11758 = vmatmul.mubr.msk.f32.vlgmr.msra.gmra.mrb[48].mxu0 %vm1307_vm6, %v5922_v48 }
0x19d2   :  { %12388 = vmatpush3.bf16.xpose.msk.msra.mxu1 %vm15029_vm4, %v15057_v35  ;;  %12392 = vmatpush3.bf16.msra.mxu0 %v14954_v22  ;;  %v5927_v22 = vmul.f32 %v15307_v7, %v14919_v54 }
0x19d3   :  { %11760 = vmatprep.mubr.msk.f32.mxu0 %vm1307_vm6, %v5923_v36  ;;  %11771 = vmatprep.mubr.msk.f32.mxu1 %vm1307_vm6, %v5925_v29 }
0x19d4   :  { %12394 = vmatprep.subr.bf16.mxu0 %v14970_v12  ;;  %12398 = vmatprep.subr.bf16.mxu1 %v14986_v2 }
0x19d5   :  { %11761 = vmatmul.mubr.msk.f32.gmra.mrb[50].mxu0 %vm1307_vm6, %v5924_v61 }
0x19d6   :  { %12396 = vmatpush3.bf16.msra.mxu0 %v14970_v12 }
0x19d7   :  { %12407 = vmatprep.subr.msk.bf16.mxu0 %vm15029_vm4, %v15033_v11 }
0x19d9   :  { %11772 = vmatmul.mubr.msk.f32.vlgmr.msra.gmra.mrb[60].mxu1 %vm1307_vm6, %v5926_v42 }
0x19da   :  { %11774 = vmatprep.mubr.msk.f32.mxu1 %vm1307_vm6, %v5927_v22  ;;  %12400 = vmatpush3.bf16.msra.mxu1 %v14986_v2 }
0x19db   :  { %12402 = vmatprep.subr.bf16.mxu1 %v15009_v25 }
0x19dd   :  { %11775 = vmatmul.mubr.msk.f32.gmra.mrb[62].mxu1 %vm1307_vm6, %v5928_v58 }
0x19de   :  { %12404 = vmatpush3.bf16.msra.mxu1 %v15009_v25 }
0x19df   :  { %12419 = vmatprep.subr.msk.bf16.mxu1 %vm15029_vm4, %v15046_v31 }
0x1aa4   :  { %v11759_v12 = vpop.f32.mrb[48].mxu0 }
0x1aa5   :  { %v6007_v27 = vpop.f32.mrb[49].mxu0  ;;  %v6126_v5 = vsel %vm890_vm0, %v11759_v12, -inf }
0x1aa6   :  { %6127 = vmax.xlane.f32.xlu1 %v6126_v5  ;;  %v6123_v2 = vsel %vm890_vm0, %v6007_v27, -inf }
0x1aa7   :  { %6124 = vmax.xlane.f32.xlu0 %v6123_v2 }
0x1aa8   :  { %v11762_v53 = vpop.f32.mrb[50].mxu0 }
0x1aa9   :  { %v6017_v13 = vpop.f32.mrb[51].mxu0  ;;  %v6132_v4 = vsel %vm890_vm0, %v11762_v53, -inf }
0x1aaa   :  { %v6129_v38 = vsel %vm890_vm0, %v6017_v13, -inf }
0x1aac   :  { %v11773_v6 = vpop.f32.mrb[60].mxu1 }
0x1aad   :  { %v6104_v26 = vpop.f32.mrb[61].mxu1  ;;  %v6138_v3 = vsel %vm890_vm0, %v11773_v6, -inf }
0x1aae   :  { %6139 = vmax.xlane.f32.xlu1 %v6138_v3  ;;  %v6135_v25 = vsel %vm890_vm0, %v6104_v26, -inf }
0x1aaf   :  { %6136 = vmax.xlane.f32.xlu0 %v6135_v25 }
0x1ab0   :  { %v11776_v37 = vpop.f32.mrb[62].mxu1 }
0x1ab1   :  { %v6114_v15 = vpop.f32.mrb[63].mxu1  ;;  %v6144_v63 = vsel %vm890_vm0, %v11776_v37, -inf }
0x1ab2   :  { %6133 = vmax.xlane.f32.xlu1 %v6132_v4  ;;  %v6141_v9 = vsel %vm890_vm0, %v6114_v15, -inf }
0x1ab3   :  { %6130 = vmax.xlane.f32.xlu0 %v6129_v38 }
0x1ab6   :  { %6145 = vmax.xlane.f32.xlu1 %v6144_v63 }
0x1ab7   :  { %6142 = vmax.xlane.f32.xlu0 %v6141_v9 }
0x1b33   :  { %v6128_v44 = vpop.xlane.xlu1 %6127 }
0x1b34   :  { %v6148_v62 = vsub.f32 %v11759_v12, %v6128_v44  ;;  %v6125_v41 = vpop.xlane.xlu0 %6124 }
0x1b35   :  { %v6147_v46 = vsub.f32 %v6007_v27, %v6125_v41 }
0x1b36   :  { %v6157_v24 = vmul.f32 1.442695, %v6148_v62 }
0x1b37   :  { %v6155_v23 = vmul.f32 1.442695, %v6147_v46 }
0x1b38   :  { %12921 = vpow2.f32 %v6157_v24 }
0x1b39   :  { %12923 = vpow2.f32 %v6155_v23 }
0x1b3b   :  { %v6140_v33 = vpop.xlane.xlu1 %6139 }
0x1b3c   :  { %v6152_v51 = vsub.f32 %v11773_v6, %v6140_v33  ;;  %v6137_v57 = vpop.xlane.xlu0 %6136 }
0x1b3d   :  { %v6151_v20 = vsub.f32 %v6104_v26, %v6137_v57 }
0x1b3e   :  { %v6165_v59 = vmul.f32 1.442695, %v6152_v51 }
0x1b3f   :  { %v6163_v49 = vmul.f32 1.442695, %v6151_v20  ;;  %v6134_v56 = vpop.xlane.xlu1 %6133 }
0x1b40   :  { %12925 = vpow2.f32 %v6165_v59  ;;  %v6150_v19 = vsub.f32 %v11762_v53, %v6134_v56  ;;  %v6131_v43 = vpop.xlane.xlu0 %6130 }
0x1b41   :  { %12927 = vpow2.f32 %v6163_v49  ;;  %v6149_v17 = vsub.f32 %v6017_v13, %v6131_v43 }
0x1b42   :  { %v6161_v18 = vmul.f32 1.442695, %v6150_v19  ;;  %v12922_v48 = vpop.eup %12921 }
0x1b43   :  { %v6159_v36 = vmul.f32 1.442695, %v6149_v17  ;;  %v6146_v29 = vpop.xlane.xlu1 %6145  ;;  %v12924_v61 = vpop.eup %12923  ;;  %v6174_v22 = vsel %vm890_vm0, %v12922_v48, 0.0 }
0x1b44   :  { %12929 = vpow2.f32 %v6161_v18  ;;  %v6154_v42 = vsub.f32 %v11776_v37, %v6146_v29  ;;  %v6143_v58 = vpop.xlane.xlu0 %6142  ;;  %6175 = vadd.xlane.f32.xlu1 %v6174_v22  ;;  %v6171_v27 = vsel %vm890_vm0, %v12924_v61, 0.0 }
0x1b45   :  { %12931 = vpow2.f32 %v6159_v36  ;;  %v6153_v12 = vsub.f32 %v6114_v15, %v6143_v58  ;;  %6172 = vadd.xlane.f32.xlu0 %v6171_v27 }
0x1b46   :  { %v6169_v5 = vmul.f32 1.442695, %v6154_v42 }
0x1b47   :  { %v6167_v2 = vmul.f32 1.442695, %v6153_v12 }
0x1b48   :  { %12933 = vpow2.f32 %v6169_v5 }
0x1b49   :  { %12935 = vpow2.f32 %v6167_v2 }
0x1b4a   :  { %v12926_v53 = vpop.eup %12925 }
0x1b4b   :  { %v12928_v13 = vpop.eup %12927  ;;  %v6186_v6 = vsel %vm890_vm0, %v12926_v53, 0.0 }
0x1b4c   :  { %6187 = vadd.xlane.f32.xlu1 %v6186_v6  ;;  %v6183_v26 = vsel %vm890_vm0, %v12928_v13, 0.0 }
0x1b4d   :  { %6184 = vadd.xlane.f32.xlu0 %v6183_v26 }
0x1b4e   :  { %v12930_v3 = vpop.eup %12929 }
0x1b4f   :  { %v12932_v25 = vpop.eup %12931  ;;  %v6180_v37 = vsel %vm890_vm0, %v12930_v3, 0.0 }
0x1b50   :  { %6181 = vadd.xlane.f32.xlu1 %v6180_v37  ;;  %v6177_v15 = vsel %vm890_vm0, %v12932_v25, 0.0 }
0x1b51   :  { %6178 = vadd.xlane.f32.xlu0 %v6177_v15 }
0x1b52   :  { %v12934_v4 = vpop.eup %12933 }
0x1b53   :  { %v12936_v38 = vpop.eup %12935  ;;  %v6192_v63 = vsel %vm890_vm0, %v12934_v4, 0.0 }
0x1b54   :  { %6193 = vadd.xlane.f32.xlu1 %v6192_v63  ;;  %v6189_v9 = vsel %vm890_vm0, %v12936_v38, 0.0 }
0x1b55   :  { %6190 = vadd.xlane.f32.xlu0 %v6189_v9 }
0x1bd1   :  { %v6176_v44 = vpop.xlane.xlu1 %6175 }
0x1bd2   :  { %12937 = vrcp.f32 %v6176_v44  ;;  %v6173_v62 = vpop.xlane.xlu0 %6172 }
0x1bd3   :  { %12939 = vrcp.f32 %v6173_v62 }
0x1bd9   :  { %v6188_v41 = vpop.xlane.xlu1 %6187 }
0x1bda   :  { %12941 = vrcp.f32 %v6188_v41  ;;  %v6185_v46 = vpop.xlane.xlu0 %6184 }
0x1bdb   :  { %12943 = vrcp.f32 %v6185_v46 }
0x1bdc   :  { %v12938_v24 = vpop.eup %12937 }
0x1bdd   :  { %v6182_v23 = vpop.xlane.xlu1 %6181  ;;  %v12940_v33 = vpop.eup %12939  ;;  %v6204_v20 = vmul.f32 %v12938_v24, %v12922_v48  ;;  %v15392_v48 = vmul.f32 0.70710677, %v14937_v0 }
0x1bde   :  { %12945 = vrcp.f32 %v6182_v23  ;;  %v6179_v51 = vpop.xlane.xlu0 %6178  ;;  %v6203_v57 = vmul.f32 %v12940_v33, %v12924_v61 }
0x1bdf   :  { %12947 = vrcp.f32 %v6179_v51  ;;  %v6425_v42 = vmul.f32 %v15392_v48, %v15007_v47  ;;  %v6426_v58 = vmul.f32 %v15392_v48, %v14900_v52  ;;  %v6427_v12 = vmul.f32 %v15392_v48, %v14908_v40 }
0x1be0   :  { %11785 = vmatprep.mubr.msk.f32.mxu0 %vm890_vm0, %v6203_v57  ;;  %v6429_v47 = vmul.f32 %v15392_v48, %v15018_v39  ;;  %v6428_v52 = vmul.f32 %v15392_v48, %v14905_v55  ;;  %v6430_v40 = vmul.f32 %v15392_v48, %v14911_v45  ;;  %v6432_v55 = vmul.f32 %v15392_v48, %v14916_v50 }
0x1be1   :  { %v6194_v59 = vpop.xlane.xlu1 %6193  ;;  %11786 = vmatmul.mubr.msk.f32.vlgmr.msra.gmra.mrb[44].mxu0 %vm890_vm0, %v6204_v20 }
0x1be2   :  { %12949 = vrcp.f32 %v6194_v59  ;;  %v6191_v49 = vpop.xlane.xlu0 %6190  ;;  %12410 = vmatpush3.bf16.xpose.msk.msra.mxu0 %vm15029_vm4, %v15033_v11 }
0x1be3   :  { %12951 = vrcp.f32 %v6191_v49  ;;  %12413 = vmatprep.subr.msk.bf16.mxu0 %vm15029_vm4, %v15041_v21 }
0x1be4   :  { %v12942_v56 = vpop.eup %12941 }
0x1be5   :  { %v12944_v19 = vpop.eup %12943  ;;  %v6208_v17 = vmul.f32 %v12942_v56, %v12926_v53 }
0x1be6   :  { %v6207_v43 = vmul.f32 %v12944_v19, %v12928_v13 }
0x1be8   :  { %v12946_v18 = vpop.eup %12945  ;;  %11799 = vmatprep.mubr.msk.f32.mxu1 %vm890_vm0, %v6207_v43 }
0x1be9   :  { %v12948_v36 = vpop.eup %12947  ;;  %11800 = vmatmul.mubr.msk.f32.vlgmr.msra.gmra.mrb[56].mxu1 %vm890_vm0, %v6208_v17  ;;  %v6206_v29 = vmul.f32 %v12946_v18, %v12930_v3 }
0x1bea   :  { %12422 = vmatpush3.bf16.xpose.msk.msra.mxu1 %vm15029_vm4, %v15046_v31  ;;  %v6205_v11 = vmul.f32 %v12948_v36, %v12932_v25  ;;  %12416 = vmatpush3.bf16.xpose.msk.msra.mxu0 %vm15029_vm4, %v15041_v21 }
0x1beb   :  { %12425 = vmatprep.subr.msk.bf16.mxu1 %vm15029_vm4, %v15057_v35  ;;  %12430 = vmatprep.subr.bf16.mxu0 %v14956_v34 }
0x1bec   :  { %v12950_v61 = vpop.eup %12949  ;;  %11788 = vmatprep.mubr.msk.f32.mxu0 %vm890_vm0, %v6205_v11 }
0x1bed   :  { %v12952_v22 = vpop.eup %12951  ;;  %11789 = vmatmul.mubr.msk.f32.gmra.mrb[46].mxu0 %vm890_vm0, %v6206_v29  ;;  %v6210_v21 = vmul.f32 %v12950_v61, %v12934_v4 }
0x1bee   :  { %11813 = vmatprep.mubr.msk.f32.mxu0 %vm1307_vm6, %v6425_v42  ;;  %v6209_v31 = vmul.f32 %v12952_v22, %v12936_v38 }
0x1bf0   :  { %11802 = vmatprep.mubr.msk.f32.mxu1 %vm890_vm0, %v6209_v31 }
0x1bf1   :  { %11803 = vmatmul.mubr.msk.f32.gmra.mrb[58].mxu1 %vm890_vm0, %v6210_v21  ;;  %11814 = vmatmul.mubr.msk.f32.vlgmr.msra.gmra.mrb[52].mxu0 %vm1307_vm6, %v6426_v58 }
0x1bf2   :  { %12428 = vmatpush3.bf16.xpose.msk.msra.mxu1 %vm15029_vm4, %v15057_v35  ;;  %12432 = vmatpush3.bf16.msra.mxu0 %v14956_v34  ;;  %v6431_v34 = vmul.f32 %v15392_v48, %v14919_v54 }
0x1bf3   :  { %11816 = vmatprep.mubr.msk.f32.mxu0 %vm1307_vm6, %v6427_v12  ;;  %11827 = vmatprep.mubr.msk.f32.mxu1 %vm1307_vm6, %v6429_v47 }
0x1bf4   :  { %12434 = vmatprep.subr.bf16.mxu0 %v14972_v28  ;;  %12438 = vmatprep.subr.bf16.mxu1 %v14988_v32 }
0x1bf5   :  { %11817 = vmatmul.mubr.msk.f32.gmra.mrb[54].mxu0 %vm1307_vm6, %v6428_v52 }
0x1bf6   :  { %12436 = vmatpush3.bf16.msra.mxu0 %v14972_v28 }
0x1bf9   :  { %11828 = vmatmul.mubr.msk.f32.vlgmr.msra.gmra.mrb[64].mxu1 %vm1307_vm6, %v6430_v40 }
0x1bfa   :  { %11830 = vmatprep.mubr.msk.f32.mxu1 %vm1307_vm6, %v6431_v34  ;;  %12440 = vmatpush3.bf16.msra.mxu1 %v14988_v32 }
0x1bfb   :  { %12442 = vmatprep.subr.bf16.mxu1 %v15011_v30 }
0x1bfd   :  { %11831 = vmatmul.mubr.msk.f32.gmra.mrb[66].mxu1 %vm1307_vm6, %v6432_v55 }
0x1bfe   :  { %12444 = vmatpush3.bf16.msra.mxu1 %v15011_v30 }
0x1cc4   :  { %v11815_v45 = vpop.f32.mrb[52].mxu0 }
0x1cc5   :  { %v6511_v28 = vpop.f32.mrb[53].mxu0  ;;  %v6630_v39 = vsel %vm890_vm0, %v11815_v45, -inf }
0x1cc6   :  { %6631 = vmax.xlane.f32.xlu1 %v6630_v39  ;;  %v6627_v54 = vsel %vm890_vm0, %v6511_v28, -inf }
0x1cc7   :  { %6628 = vmax.xlane.f32.xlu0 %v6627_v54 }
0x1cc8   :  { %v11818_v35 = vpop.f32.mrb[54].mxu0 }
0x1cc9   :  { %v6521_v27 = vpop.f32.mrb[55].mxu0  ;;  %v6636_v32 = vsel %vm890_vm0, %v11818_v35, -inf }
0x1cca   :  { %6637 = vmax.xlane.f32.xlu1 %v6636_v32  ;;  %v6633_v5 = vsel %vm890_vm0, %v6521_v27, -inf }
0x1ccb   :  { %6634 = vmax.xlane.f32.xlu0 %v6633_v5 }
0x1ccc   :  { %v11829_v50 = vpop.f32.mrb[64].mxu1 }
0x1ccd   :  { %v6608_v2 = vpop.f32.mrb[65].mxu1  ;;  %v6642_v30 = vsel %vm890_vm0, %v11829_v50, -inf }
0x1cce   :  { %v6639_v53 = vsel %vm890_vm0, %v6608_v2, -inf  ;;  %6643 = vmax.xlane.f32.xlu1 %v6642_v30 }
0x1ccf   :  { %6640 = vmax.xlane.f32.xlu0 %v6639_v53 }
0x1cd0   :  { %v11832_v13 = vpop.f32.mrb[66].mxu1 }
0x1cd1   :  { %v6618_v6 = vpop.f32.mrb[67].mxu1  ;;  %v6648_v26 = vsel %vm890_vm0, %v11832_v13, -inf }
0x1cd2   :  { %v6645_v3 = vsel %vm890_vm0, %v6618_v6, -inf  ;;  %6649 = vmax.xlane.f32.xlu1 %v6648_v26 }
0x1cd3   :  { %6646 = vmax.xlane.f32.xlu0 %v6645_v3 }
0x1d53   :  { %v6632_v25 = vpop.xlane.xlu1 %6631 }
0x1d54   :  { %v6652_v37 = vsub.f32 %v11815_v45, %v6632_v25  ;;  %v6629_v15 = vpop.xlane.xlu0 %6628 }
0x1d55   :  { %v6651_v4 = vsub.f32 %v6511_v28, %v6629_v15  ;;  %v661_v28 = vld [vmem:[%s16588_s12] sm:$0xff] }
0x1d56   :  { %v6661_v38 = vmul.f32 1.442695, %v6652_v37  ;;  %11861 = vmatprep.subr.mxu0 %v661_v28 }
0x1d57   :  { %v6659_v63 = vmul.f32 1.442695, %v6651_v4  ;;  %v6638_v9 = vpop.xlane.xlu1 %6637 }
0x1d58   :  { %12953 = vpow2.f32 %v6661_v38  ;;  %v6654_v44 = vsub.f32 %v11818_v35, %v6638_v9  ;;  %v6635_v62 = vpop.xlane.xlu0 %6634 }
0x1d59   :  { %12955 = vpow2.f32 %v6659_v63  ;;  %v6653_v41 = vsub.f32 %v6521_v27, %v6635_v62 }
0x1d5a   :  { %v6665_v46 = vmul.f32 1.442695, %v6654_v44 }
0x1d5b   :  { %v6663_v24 = vmul.f32 1.442695, %v6653_v41  ;;  %v6644_v23 = vpop.xlane.xlu1 %6643 }
0x1d5c   :  { %12957 = vpow2.f32 %v6665_v46  ;;  %v6656_v33 = vsub.f32 %v11829_v50, %v6644_v23  ;;  %v6641_v51 = vpop.xlane.xlu0 %6640 }
0x1d5d   :  { %12959 = vpow2.f32 %v6663_v24  ;;  %v6655_v57 = vsub.f32 %v6608_v2, %v6641_v51 }
0x1d5e   :  { %v6669_v20 = vmul.f32 1.442695, %v6656_v33 }
0x1d5f   :  { %v6667_v59 = vmul.f32 1.442695, %v6655_v57  ;;  %v6650_v49 = vpop.xlane.xlu1 %6649 }
0x1d60   :  { %12961 = vpow2.f32 %v6669_v20  ;;  %v6658_v56 = vsub.f32 %v11832_v13, %v6650_v49  ;;  %v6647_v19 = vpop.xlane.xlu0 %6646  ;;  %v10671_v49 = vld [vmem:[%s16589_s19] ss:$0 sm:$0xff] }
0x1d61   :  { %12963 = vpow2.f32 %v6667_v59  ;;  %v6657_v43 = vsub.f32 %v6618_v6, %v6647_v19 }
0x1d62   :  { %v12954_v17 = vpop.eup %12953  ;;  %v6673_v18 = vmul.f32 1.442695, %v6658_v56 }
0x1d63   :  { %v12956_v36 = vpop.eup %12955  ;;  %v6671_v11 = vmul.f32 1.442695, %v6657_v43  ;;  %v6678_v29 = vsel %vm890_vm0, %v12954_v17, 0.0 }
0x1d64   :  { %12965 = vpow2.f32 %v6673_v18  ;;  %6679 = vadd.xlane.f32.xlu1 %v6678_v29  ;;  %v6675_v61 = vsel %vm890_vm0, %v12956_v36, 0.0 }
0x1d65   :  { %12967 = vpow2.f32 %v6671_v11  ;;  %6676 = vadd.xlane.f32.xlu0 %v6675_v61 }
0x1d66   :  { %v12958_v42 = vpop.eup %12957 }
0x1d67   :  { %v12960_v22 = vpop.eup %12959  ;;  %v6684_v31 = vsel %vm890_vm0, %v12958_v42, 0.0 }
0x1d68   :  { %6685 = vadd.xlane.f32.xlu1 %v6684_v31  ;;  %v6681_v21 = vsel %vm890_vm0, %v12960_v22, 0.0 }
0x1d69   :  { %6682 = vadd.xlane.f32.xlu0 %v6681_v21 }
0x1d6a   :  { %v12962_v58 = vpop.eup %12961 }
0x1d6b   :  { %v12964_v12 = vpop.eup %12963  ;;  %v6690_v47 = vsel %vm890_vm0, %v12962_v58, 0.0 }
0x1d6c   :  { %6691 = vadd.xlane.f32.xlu1 %v6690_v47  ;;  %v6687_v52 = vsel %vm890_vm0, %v12964_v12, 0.0 }
0x1d6d   :  { %6688 = vadd.xlane.f32.xlu0 %v6687_v52 }
0x1d6e   :  { %v12966_v40 = vpop.eup %12965 }
0x1d6f   :  { %v12968_v34 = vpop.eup %12967  ;;  %v6696_v55 = vsel %vm890_vm0, %v12966_v40, 0.0 }
0x1d70   :  { %6697 = vadd.xlane.f32.xlu1 %v6696_v55  ;;  %v6693_v45 = vsel %vm890_vm0, %v12968_v34, 0.0 }
0x1d71   :  { %6694 = vadd.xlane.f32.xlu0 %v6693_v45 }
0x1df1   :  { %v6680_v39 = vpop.xlane.xlu1 %6679 }
0x1df2   :  { %12969 = vrcp.f32 %v6680_v39  ;;  %v6677_v54 = vpop.xlane.xlu0 %6676 }
0x1df3   :  { %12971 = vrcp.f32 %v6677_v54 }
0x1df5   :  { %v6686_v35 = vpop.xlane.xlu1 %6685 }
0x1df6   :  { %12973 = vrcp.f32 %v6686_v35  ;;  %v6683_v27 = vpop.xlane.xlu0 %6682  ;;  %v16590_v35 = vld [vmem:[#allocation108_spill] sm:$0xff] }
0x1df7   :  { %12975 = vrcp.f32 %v6683_v27 }
0x1df9   :  { %v6692_v32 = vpop.xlane.xlu1 %6691 }
0x1dfa   :  { %12977 = vrcp.f32 %v6692_v32  ;;  %v6689_v5 = vpop.xlane.xlu0 %6688 }
0x1dfb   :  { %12979 = vrcp.f32 %v6689_v5  ;;  %v16591_v5 = vld [vmem:[#allocation107_spill] sm:$0xff] }
0x1dfc   :  { %v12970_v50 = vpop.eup %12969 }
0x1dfd   :  { %v12972_v2 = vpop.eup %12971  ;;  %v6698_v30 = vpop.xlane.xlu1 %6697  ;;  %v6708_v6 = vmul.f32 %v12970_v50, %v12954_v17 }
0x1dfe   :  { %12981 = vrcp.f32 %v6698_v30  ;;  %v6695_v53 = vpop.xlane.xlu0 %6694  ;;  %v6707_v13 = vmul.f32 %v12972_v2, %v12956_v36 }
0x1dff   :  { %12983 = vrcp.f32 %v6695_v53 }
0x1e00   :  { %v12974_v26 = vpop.eup %12973  ;;  %11841 = vmatprep.mubr.msk.f32.mxu0 %vm890_vm0, %v6707_v13 }
0x1e01   :  { %v12976_v3 = vpop.eup %12975  ;;  %11842 = vmatmul.mubr.msk.f32.vlgmr.msra.gmra.mrb[44].mxu0 %vm890_vm0, %v6708_v6  ;;  %v6710_v37 = vmul.f32 %v12974_v26, %v12958_v42 }
0x1e02   :  { %v6709_v25 = vmul.f32 %v12976_v3, %v12960_v22  ;;  %11862 = vmatpush3.msra.mxu0 %v661_v28 }
0x1e04   :  { %v12978_v15 = vpop.eup %12977  ;;  %11844 = vmatprep.mubr.msk.f32.mxu0 %vm890_vm0, %v6709_v25  ;;  %v16592_v25 = vld [vmem:[#allocation110_spill] sm:$0xff] }
0x1e05   :  { %v12980_v4 = vpop.eup %12979  ;;  %11845 = vmatmul.mubr.msk.f32.gmra.mrb[46].mxu0 %vm890_vm0, %v6710_v37  ;;  %v6712_v63 = vmul.f32 %v12978_v15, %v12962_v58 }
0x1e06   :  { %v6711_v38 = vmul.f32 %v12980_v4, %v12964_v12  ;;  %v16594_v4 = vld [vmem:[#allocation109_spill] sm:$0xff] }
0x1e08   :  { %v12982_v9 = vpop.eup %12981  ;;  %11855 = vmatprep.mubr.msk.f32.mxu1 %vm890_vm0, %v6711_v38 }
0x1e09   :  { %v12984_v44 = vpop.eup %12983  ;;  %11856 = vmatmul.mubr.msk.f32.vlgmr.msra.gmra.mrb[56].mxu1 %vm890_vm0, %v6712_v63  ;;  %v6714_v41 = vmul.f32 %v12982_v9, %v12966_v40 }
0x1e0a   :  { %v6713_v62 = vmul.f32 %v12984_v44, %v12968_v34 }
0x1e0c   :  { %11858 = vmatprep.mubr.msk.f32.mxu1 %vm890_vm0, %v6713_v62 }
0x1e0d   :  { %11859 = vmatmul.mubr.msk.f32.gmra.mrb[58].mxu1 %vm890_vm0, %v6714_v41 }
0x1ed4   :  { %v11843_v46 = vpop.f32.mrb[44].mxu0 }
0x1ed5   :  { %v6801_v24 = vpop.f32.mrb[45].mxu0 }
0x1ed6   :  { %11863 = vmatprep.mubr.msk.f32.mxu0 %vm1307_vm6, %v6801_v24 }
0x1ed7   :  { %11864 = vmatmul.mubr.msk.f32.vlgmr.msra.gmra.mrb[56].mxu0 %vm1307_vm6, %v11843_v46 }
0x1ed8   :  { %v11846_v23 = vpop.f32.mrb[46].mxu0 }
0x1ed9   :  { %v6811_v33 = vpop.f32.mrb[47].mxu0 }
0x1eda   :  { %11866 = vmatprep.mubr.msk.f32.mxu0 %vm1307_vm6, %v6811_v33  ;;  %v665_v33 = vld [vmem:[%s16595_s4] sm:$0xff] }
0x1edb   :  { %11867 = vmatmul.mubr.msk.f32.gmra.mrb[58].mxu0 %vm1307_vm6, %v11846_v23  ;;  %v666_v23 = vld [vmem:[%s16593_s10] sm:$0xff]  ;;  %11875 = vmatprep.subr.mxu1 %v665_v33 }
0x1edc   :  { %v11857_v51 = vpop.f32.mrb[56].mxu1  ;;  %11889 = vmatprep.subr.mxu0 %v666_v23  ;;  %11876 = vmatpush3.msra.mxu1 %v665_v33 }
0x1edd   :  { %v6898_v57 = vpop.f32.mrb[57].mxu1  ;;  %11890 = vmatpush3.msra.mxu0 %v666_v23 }
0x1ede   :  { %11869 = vmatprep.mubr.msk.f32.mxu0 %vm1307_vm6, %v6898_v57 }
0x1edf   :  { %11870 = vmatmul.mubr.msk.f32.gmra.mrb[60].mxu0 %vm1307_vm6, %v11857_v51  ;;  %v15545_v51 = vld [vmem:[%s16596_s11] sm:$0xff] }
0x1ee0   :  { %v11860_v20 = vpop.f32.mrb[58].mxu1  ;;  %11903 = vmatprep.subr.mxu1 %v15545_v51 }
0x1ee1   :  { %v6908_v59 = vpop.f32.mrb[59].mxu1 }
0x1ee2   :  { %11872 = vmatprep.mubr.msk.f32.mxu0 %vm1307_vm6, %v6908_v59 }
0x1ee3   :  { %11873 = vmatmul.mubr.msk.f32.gmra.mrb[62].mxu0 %vm1307_vm6, %v11860_v20 }
0x1faa   :  { %v11865_v56 = vpop.f32.mrb[56].mxu0 }
0x1fab   :  { %v7027_v19 = vadd.f32 %v11865_v56, %v10671_v49  ;;  %v7021_v43 = vpop.f32.mrb[57].mxu0 }
0x1fac   :  { %v7022_v17 = vadd.f32 %v10671_v49, %v7021_v43 }
0x1fad   :  { %v15479_v18 = vadd.f32 %v7027_v19, %v14848_v10 }
0x1fae   :  { %v15482_v36 = vadd.f32 %v7022_v17, %v14844_v8  ;;  %v11868_v11 = vpop.f32.mrb[58].mxu0 }
0x1faf   :  { %v7037_v29 = vadd.f32 %v11868_v11, %v10671_v49  ;;  %v7031_v61 = vpop.f32.mrb[59].mxu0  ;;  %v7071_v42 = vsel %vm1307_vm6, %v15479_v18, 0.0  ;;  %v7102_v22 = vmul.f32 %v15479_v18, %v15479_v18 }
0x1fb0   :  { %v7032_v31 = vadd.f32 %v10671_v49, %v7031_v61  ;;  %7072 = vadd.xlane.f32.xlu1 %v7071_v42  ;;  %v7068_v21 = vsel %vm1307_vm6, %v15482_v36, 0.0  ;;  %v7101_v10 = vmul.f32 %v15482_v36, %v15482_v36 }
0x1fb1   :  { %7069 = vadd.xlane.f32.xlu0 %v7068_v21  ;;  %v15493_v58 = vadd.f32 %v7037_v29, %v14860_v16  ;;  %v7112_v47 = vsel %vm1307_vm6, %v7102_v22, 0.0 }
0x1fb2   :  { %v11871_v8 = vpop.f32.mrb[60].mxu0  ;;  %v15497_v52 = vadd.f32 %v7032_v31, %v14854_v14  ;;  %v7109_v40 = vsel %vm1307_vm6, %v7101_v10, 0.0 }
0x1fb3   :  { %v7041_v12 = vpop.f32.mrb[61].mxu0  ;;  %v7047_v55 = vadd.f32 %v11871_v8, %v10671_v49  ;;  %v7077_v28 = vsel %vm1307_vm6, %v15493_v58, 0.0  ;;  %v7104_v16 = vmul.f32 %v15493_v58, %v15493_v58 }
0x1fb4   :  { %7113 = vadd.xlane.f32.xlu1 %v7112_v47  ;;  %v7042_v39 = vadd.f32 %v10671_v49, %v7041_v12  ;;  %v7074_v54 = vsel %vm1307_vm6, %v15497_v52, 0.0  ;;  %v7103_v14 = vmul.f32 %v15497_v52, %v15497_v52 }
0x1fb5   :  { %7110 = vadd.xlane.f32.xlu0 %v7109_v40  ;;  %v15509_v27 = vadd.f32 %v7047_v55, %v16590_v35  ;;  %v7118_v32 = vsel %vm1307_vm6, %v7104_v16, 0.0 }
0x1fb6   :  { %v11874_v34 = vpop.f32.mrb[62].mxu0  ;;  %v15513_v50 = vadd.f32 %v7042_v39, %v16591_v5  ;;  %v7115_v2 = vsel %vm1307_vm6, %v7103_v14, 0.0 }
0x1fb7   :  { %v7051_v45 = vpop.f32.mrb[63].mxu0  ;;  %v7057_v30 = vadd.f32 %v11874_v34, %v10671_v49  ;;  %v7083_v53 = vsel %vm1307_vm6, %v15509_v27, 0.0  ;;  %v7106_v13 = vmul.f32 %v15509_v27, %v15509_v27 }
0x1fb8   :  { %7078 = vadd.xlane.f32.xlu1 %v7077_v28  ;;  %v7052_v6 = vadd.f32 %v10671_v49, %v7051_v45  ;;  %v7080_v26 = vsel %vm1307_vm6, %v15513_v50, 0.0  ;;  %v7105_v3 = vmul.f32 %v15513_v50, %v15513_v50 }
0x1fb9   :  { %7075 = vadd.xlane.f32.xlu0 %v7074_v54  ;;  %v15525_v37 = vadd.f32 %v7057_v30, %v16592_v25  ;;  %v7124_v15 = vsel %vm1307_vm6, %v7106_v13, 0.0 }
0x1fba   :  { %v15529_v38 = vadd.f32 %v7052_v6, %v16594_v4  ;;  %v7121_v63 = vsel %vm1307_vm6, %v7105_v3, 0.0 }
0x1fbb   :  { %v7089_v9 = vsel %vm1307_vm6, %v15525_v37, 0.0  ;;  %v7108_v44 = vmul.f32 %v15525_v37, %v15525_v37 }
0x1fbc   :  { %7119 = vadd.xlane.f32.xlu1 %v7118_v32  ;;  %v7086_v62 = vsel %vm1307_vm6, %v15529_v38, 0.0  ;;  %v7107_v41 = vmul.f32 %v15529_v38, %v15529_v38 }
0x1fbd   :  { %7116 = vadd.xlane.f32.xlu0 %v7115_v2  ;;  %v7130_v46 = vsel %vm1307_vm6, %v7108_v44, 0.0 }
0x1fbe   :  { %v7127_v24 = vsel %vm1307_vm6, %v7107_v41, 0.0 }
0x1fc0   :  { %7084 = vadd.xlane.f32.xlu1 %v7083_v53 }
0x1fc1   :  { %7081 = vadd.xlane.f32.xlu0 %v7080_v26  ;;  %v15562_v26 = vld [vmem:[#allocation43] ss:$0 sm:$0xff] }
0x1fc4   :  { %7125 = vadd.xlane.f32.xlu1 %v7124_v15 }
0x1fc5   :  { %7122 = vadd.xlane.f32.xlu0 %v7121_v63 }
0x1fc8   :  { %7090 = vadd.xlane.f32.xlu1 %v7089_v9 }
0x1fc9   :  { %7087 = vadd.xlane.f32.xlu0 %v7086_v62 }
0x1fcc   :  { %7131 = vadd.xlane.f32.xlu1 %v7130_v46 }
0x1fcd   :  { %7128 = vadd.xlane.f32.xlu0 %v7127_v24 }
0x203d   :  { %v7073_v57 = vpop.xlane.xlu1 %7072 }
0x203e   :  { %v7094_v20 = vmul.f32 0.125, %v7073_v57  ;;  %v7070_v59 = vpop.xlane.xlu0 %7069 }
0x203f   :  { %v7093_v49 = vmul.f32 0.125, %v7070_v59 }
0x2040   :  { %v7142_v19 = vmul.f32 %v7094_v20, %v7094_v20  ;;  %v7158_v30 = vsub.f32 %v15479_v18, %v7094_v20 }
0x2041   :  { %v7114_v56 = vpop.xlane.xlu1 %7113  ;;  %v7141_v11 = vmul.f32 %v7093_v49, %v7093_v49  ;;  %v7157_v6 = vsub.f32 %v15482_v36, %v7093_v49  ;;  %v15569_v36 = vld [vmem:[#allocation44] ss:$0 sm:$0xff] }
0x2042   :  { %v7134_v43 = vmul.f32 0.125, %v7114_v56  ;;  %v7111_v17 = vpop.xlane.xlu0 %7110 }
0x2043   :  { %v7133_v29 = vmul.f32 0.125, %v7111_v17 }
0x2044   :  { %v7150_v61 = vsub.f32 %v7134_v43, %v7142_v19 }
0x2045   :  { %v7149_v42 = vsub.f32 %v7133_v29, %v7141_v11  ;;  %v7079_v22 = vpop.xlane.xlu1 %7078 }
0x2046   :  { %v7166_v31 = vadd.f32 1e-05, %v7150_v61  ;;  %v15548_v21 = vmul.f32 0.125, %v7079_v22  ;;  %v7076_v10 = vpop.xlane.xlu0 %7075 }
0x2047   :  { %v7165_v8 = vadd.f32 1e-05, %v7149_v42  ;;  %v15550_v12 = vmul.f32 0.125, %v7076_v10 }
0x2048   :  { %12985 = vrsqrt.f32 %v7166_v31  ;;  %v7144_v40 = vmul.f32 %v15548_v21, %v15548_v21  ;;  %v7160_v19 = vsub.f32 %v15493_v58, %v15548_v21 }
0x2049   :  { %12987 = vrsqrt.f32 %v7165_v8  ;;  %v7120_v47 = vpop.xlane.xlu1 %7119  ;;  %v7143_v45 = vmul.f32 %v15550_v12, %v15550_v12  ;;  %v7159_v29 = vsub.f32 %v15497_v52, %v15550_v12 }
0x204a   :  { %v7136_v34 = vmul.f32 0.125, %v7120_v47  ;;  %v7117_v55 = vpop.xlane.xlu0 %7116 }
0x204b   :  { %v7135_v28 = vmul.f32 0.125, %v7117_v55 }
0x204c   :  { %v7152_v16 = vsub.f32 %v7136_v34, %v7144_v40 }
0x204d   :  { %v7151_v39 = vsub.f32 %v7135_v28, %v7143_v45  ;;  %v7085_v54 = vpop.xlane.xlu1 %7084 }
0x204e   :  { %v7168_v14 = vadd.f32 1e-05, %v7152_v16  ;;  %v15556_v35 = vmul.f32 0.125, %v7085_v54  ;;  %v7082_v32 = vpop.xlane.xlu0 %7081 }
0x204f   :  { %v7167_v5 = vadd.f32 1e-05, %v7151_v39  ;;  %v15558_v2 = vmul.f32 0.125, %v7082_v32 }
0x2050   :  { %12989 = vrsqrt.f32 %v7168_v14  ;;  %v7146_v3 = vmul.f32 %v15556_v35, %v15556_v35  ;;  %v7162_v28 = vsub.f32 %v15509_v27, %v15556_v35 }
0x2051   :  { %12991 = vrsqrt.f32 %v7167_v5  ;;  %v7126_v53 = vpop.xlane.xlu1 %7125  ;;  %v7145_v9 = vmul.f32 %v15558_v2, %v15558_v2 }
0x2052   :  { %v12986_v13 = vpop.eup %12985  ;;  %v7138_v25 = vmul.f32 0.125, %v7126_v53  ;;  %v7123_v15 = vpop.xlane.xlu0 %7122 }
0x2053   :  { %v12988_v4 = vpop.eup %12987  ;;  %v7182_v63 = vmul.f32 %v12986_v13, %v7158_v30  ;;  %v7137_v44 = vmul.f32 0.125, %v7123_v15 }
0x2054   :  { %v7154_v62 = vsub.f32 %v7138_v25, %v7146_v3  ;;  %v7181_v18 = vmul.f32 %v12988_v4, %v7157_v6  ;;  %v15662_v4 = vld [vmem:[#allocation46] ss:$0 sm:$0xff] }
0x2055   :  { %v7196_v41 = vmul.f32 %v15562_v26, %v7182_v63  ;;  %v7153_v46 = vsub.f32 %v7137_v44, %v7145_v9  ;;  %v7091_v24 = vpop.xlane.xlu1 %7090 }
0x2056   :  { %v7170_v23 = vadd.f32 1e-05, %v7154_v62  ;;  %v7100_v33 = vmul.f32 0.125, %v7091_v24  ;;  %v7088_v57 = vpop.xlane.xlu0 %7087  ;;  %v7195_v20 = vmul.f32 %v15562_v26, %v7181_v18 }
0x2057   :  { %v7169_v59 = vadd.f32 1e-05, %v7153_v46  ;;  %v7099_v49 = vmul.f32 0.125, %v7088_v57  ;;  %v15578_v17 = vadd.f32 %v15569_v36, %v7196_v41 }
0x2058   :  { %12993 = vrsqrt.f32 %v7170_v23  ;;  %v15573_v56 = vadd.f32 %v15569_v36, %v7195_v20  ;;  %v7148_v61 = vmul.f32 %v7100_v33, %v7100_v33  ;;  %v7164_v5 = vsub.f32 %v15525_v37, %v7100_v33 }
0x2059   :  { %12995 = vrsqrt.f32 %v7169_v59  ;;  %v7132_v43 = vpop.xlane.xlu1 %7131  ;;  %v7147_v58 = vmul.f32 %v7099_v49, %v7099_v49  ;;  %v7163_v53 = vsub.f32 %v15529_v38, %v7099_v49 }
0x205a   :  { %v12990_v11 = vpop.eup %12989  ;;  %v7140_v42 = vmul.f32 0.125, %v7132_v43  ;;  %11877 = vmatprep.mubr.msk.f32.mxu1 %vm1307_vm6, %v15573_v56  ;;  %11891 = vmatprep.mubr.msk.f32.mxu0 %vm1307_vm6, %v15573_v56  ;;  %v7129_v22 = vpop.xlane.xlu0 %7128 }
0x205b   :  { %v12992_v31 = vpop.eup %12991  ;;  %v7139_v21 = vmul.f32 0.125, %v7129_v22  ;;  %11878 = vmatmul.mubr.msk.f32.vlgmr.msra.gmra.mrb[68].mxu1 %vm1307_vm6, %v15578_v17  ;;  %11892 = vmatmul.mubr.msk.f32.vlgmr.msra.gmra.mrb[64].mxu0 %vm1307_vm6, %v15578_v17  ;;  %v7184_v10 = vmul.f32 %v12990_v11, %v7160_v19 }
0x205c   :  { %v7156_v52 = vsub.f32 %v7140_v42, %v7148_v61  ;;  %v7183_v8 = vmul.f32 %v12992_v31, %v7159_v29  ;;  %11904 = vmatpush3.msra.mxu1 %v15545_v51  ;;  %v7161_v51 = vsub.f32 %v15513_v50, %v15558_v2 }
0x205d   :  { %v7155_v12 = vsub.f32 %v7139_v21, %v7147_v58  ;;  %v7198_v47 = vmul.f32 %v15562_v26, %v7184_v10 }
0x205e   :  { %v7172_v40 = vadd.f32 1e-05, %v7156_v52  ;;  %v7197_v34 = vmul.f32 %v15562_v26, %v7183_v8 }
0x205f   :  { %v7171_v55 = vadd.f32 1e-05, %v7155_v12  ;;  %v15599_v16 = vadd.f32 %v15569_v36, %v7198_v47 }
0x2060   :  { %12997 = vrsqrt.f32 %v7172_v40  ;;  %v15594_v45 = vadd.f32 %v15569_v36, %v7197_v34 }
0x2061   :  { %12999 = vrsqrt.f32 %v7171_v55 }
0x2062   :  { %v12994_v39 = vpop.eup %12993  ;;  %11880 = vmatprep.mubr.msk.f32.mxu1 %vm1307_vm6, %v15594_v45  ;;  %11894 = vmatprep.mubr.msk.f32.mxu0 %vm1307_vm6, %v15594_v45 }
0x2063   :  { %v12996_v54 = vpop.eup %12995  ;;  %11881 = vmatmul.mubr.msk.f32.gmra.mrb[70].mxu1 %vm1307_vm6, %v15599_v16  ;;  %11895 = vmatmul.mubr.msk.f32.gmra.mrb[66].mxu0 %vm1307_vm6, %v15599_v16  ;;  %v7186_v27 = vmul.f32 %v12994_v39, %v7162_v28 }
0x2064   :  { %v7185_v14 = vmul.f32 %v12996_v54, %v7161_v51 }
0x2065   :  { %v7200_v35 = vmul.f32 %v15562_v26, %v7186_v27  ;;  %v16602_v27 = vld [vmem:[#allocation116_spill] sm:$0xff] }
0x2066   :  { %v7199_v32 = vmul.f32 %v15562_v26, %v7185_v14 }
0x2067   :  { %v15618_v2 = vadd.f32 %v15569_v36, %v7200_v35 }
0x2068   :  { %v15614_v50 = vadd.f32 %v15569_v36, %v7199_v32 }
0x206a   :  { %v12998_v30 = vpop.eup %12997  ;;  %11883 = vmatprep.mubr.msk.f32.mxu1 %vm1307_vm6, %v15614_v50  ;;  %11897 = vmatprep.mubr.msk.f32.mxu0 %vm1307_vm6, %v15614_v50 }
0x206b   :  { %v13000_v13 = vpop.eup %12999  ;;  %11884 = vmatmul.mubr.msk.f32.gmra.mrb[72].mxu1 %vm1307_vm6, %v15618_v2  ;;  %11898 = vmatmul.mubr.msk.f32.gmra.mrb[68].mxu0 %vm1307_vm6, %v15618_v2  ;;  %v7188_v37 = vmul.f32 %v12998_v30, %v7164_v5  ;;  %v15733_v5 = vld [vmem:[%s16601_s0] ss:$0 sm:$0xff] }
0x206c   :  { %v7187_v6 = vmul.f32 %v13000_v13, %v7163_v53 }
0x206d   :  { %v7202_v3 = vmul.f32 %v15562_v26, %v7188_v37 }
0x206e   :  { %v7201_v38 = vmul.f32 %v15562_v26, %v7187_v6  ;;  %v10691_v26 = vld [vmem:[%s16597_s27] ss:$0 sm:$0xff] }
0x206f   :  { %v15635_v15 = vadd.f32 %v15569_v36, %v7202_v3 }
0x2070   :  { %v15632_v25 = vadd.f32 %v15569_v36, %v7201_v38  ;;  %v16600_v36 = vld [vmem:[#allocation113_spill] sm:$0xff] }
0x2071   :  { %16599 = vst [vmem:[#allocation107_spill] sm:$0xff] %v15635_v15 }
0x2072   :  { %16598 = vst [vmem:[#allocation108_spill] sm:$0xff] %v15632_v25  ;;  %11886 = vmatprep.mubr.msk.f32.mxu1 %vm1307_vm6, %v15632_v25  ;;  %11900 = vmatprep.mubr.msk.f32.mxu0 %vm1307_vm6, %v15632_v25 }
0x2073   :  { %11887 = vmatmul.mubr.msk.f32.gmra.mrb[74].mxu1 %vm1307_vm6, %v15635_v15  ;;  %11901 = vmatmul.mubr.msk.f32.gmra.mrb[70].mxu0 %vm1307_vm6, %v15635_v15 }
0x2074   :  { %11905 = vmatprep.mubr.msk.f32.mxu1 %vm1307_vm6, %v15573_v56 }
0x2077   :  { %11906 = vmatmul.mubr.msk.f32.vlgmr.msra.gmra.mrb[76].mxu1 %vm1307_vm6, %v15578_v17 }
0x2078   :  { %11908 = vmatprep.mubr.msk.f32.mxu1 %vm1307_vm6, %v15594_v45 }
0x207b   :  { %11909 = vmatmul.mubr.msk.f32.gmra.mrb[78].mxu1 %vm1307_vm6, %v15599_v16 }
0x207c   :  { %11911 = vmatprep.mubr.msk.f32.mxu1 %vm1307_vm6, %v15614_v50 }
0x207f   :  { %11912 = vmatmul.mubr.msk.f32.gmra.mrb[80].mxu1 %vm1307_vm6, %v15618_v2 }
0x2080   :  { %11914 = vmatprep.mubr.msk.f32.mxu1 %vm1307_vm6, %v15632_v25 }
0x2083   :  { %11915 = vmatmul.mubr.msk.f32.gmra.mrb[82].mxu1 %vm1307_vm6, %v15635_v15 }
0x212e   :  { %v11879_v63 = vpop.f32.mrb[68].mxu1  ;;  %v11893_v9 = vpop.f32.mrb[64].mxu0 }
0x212f   :  { %v7430_v44 = vadd.f32 %v11893_v9, %v10691_v26  ;;  %v7313_v62 = vpop.f32.mrb[69].mxu1  ;;  %v7424_v18 = vpop.f32.mrb[65].mxu0  ;;  %v15687_v11 = vadd.f32 %v11879_v63, %v15662_v4 }
0x2130   :  { %v15665_v41 = vadd.f32 %v15662_v4, %v7313_v62  ;;  %v7425_v46 = vadd.f32 %v10691_v26, %v7424_v18  ;;  %v16604_v18 = vld [vmem:[#allocation111_spill] sm:$0xff] }
0x2131   :  { %v7575_v52 = vmul.f32 %v15687_v11, %v16600_v36  ;;  %v7897_v13 = vmul.f32 %v15687_v11, %v16602_v27 }
0x2132   :  { %v15667_v24 = vpack.c.bf16 %v7430_v44, %v7425_v46  ;;  %v7574_v23 = vmul.f32 %v15665_v41, %v16600_v36  ;;  %v7896_v14 = vmul.f32 %v15665_v41, %v16602_v27  ;;  %v16603_v44 = vld [vmem:[#allocation112_spill] sm:$0xff] }
0x2134   :  { %12447 = vmatprep.subr.msk.bf16.mxu0 %vm15029_vm4, %v15667_v24  ;;  %11925 = vmatprep.mubr.msk.f32.mxu0 %vm1307_vm6, %v7574_v23 }
0x2135   :  { %12450 = vmatpush3.bf16.xpose.msk.msra.mxu0 %vm15029_vm4, %v15667_v24 }
0x2136   :  { %v11882_v33 = vpop.f32.mrb[70].mxu1  ;;  %v11896_v57 = vpop.f32.mrb[66].mxu0 }
0x2137   :  { %v7440_v20 = vadd.f32 %v11896_v57, %v10691_v26  ;;  %v7323_v59 = vpop.f32.mrb[71].mxu1  ;;  %v7434_v49 = vpop.f32.mrb[67].mxu0  ;;  %v15701_v8 = vadd.f32 %v11882_v33, %v15662_v4 }
0x2138   :  { %v7435_v19 = vadd.f32 %v10691_v26, %v7434_v49  ;;  %v15693_v42 = vadd.f32 %v15662_v4, %v7323_v59 }
0x2139   :  { %v7577_v28 = vmul.f32 %v15701_v8, %v16600_v36  ;;  %v15743_v3 = vmul.f32 %v15701_v8, %v16602_v27 }
0x213a   :  { %v15678_v43 = vpack.c.bf16 %v7440_v20, %v7435_v19  ;;  %v7576_v40 = vmul.f32 %v15693_v42, %v16600_v36  ;;  %v7898_v9 = vmul.f32 %v15693_v42, %v16602_v27 }
0x213c   :  { %12453 = vmatprep.subr.msk.bf16.mxu0 %vm15029_vm4, %v15678_v43 }
0x213d   :  { %12456 = vmatpush3.bf16.xpose.msk.msra.mxu0 %vm15029_vm4, %v15678_v43 }
0x213e   :  { %v11885_v29 = vpop.f32.mrb[72].mxu1  ;;  %v11899_v61 = vpop.f32.mrb[68].mxu0  ;;  %12471 = vmatprep.subr.msk.bf16.mxu0 %vm15029_vm4, %v15667_v24 }
0x213f   :  { %v7450_v22 = vadd.f32 %v11899_v61, %v10691_v26  ;;  %v7333_v31 = vpop.f32.mrb[73].mxu1  ;;  %v7444_v58 = vpop.f32.mrb[69].mxu0  ;;  %v15729_v35 = vadd.f32 %v11885_v29, %v15662_v4 }
0x2140   :  { %v15696_v21 = vadd.f32 %v15662_v4, %v7333_v31  ;;  %v7445_v10 = vadd.f32 %v10691_v26, %v7444_v58 }
0x2141   :  { %v7579_v38 = vmul.f32 %v15729_v35, %v16600_v36  ;;  %v9087_v60 = vmul.f32 %v15729_v35, %v15392_v48 }
0x2142   :  { %v15703_v12 = vpack.c.bf16 %v7450_v22, %v7445_v10  ;;  %v7578_v47 = vmul.f32 %v15696_v21, %v16600_v36  ;;  %v7900_v22 = vmul.f32 %v15696_v21, %v16602_v27 }
0x2144   :  { %11926 = vmatmul.mubr.msk.f32.vlgmr.msra.gmra.mrb[72].mxu0 %vm1307_vm6, %v7575_v52  ;;  %12459 = vmatprep.subr.msk.bf16.mxu1 %vm15029_vm4, %v15703_v12 }
0x2145   :  { %11939 = vmatprep.mubr.msk.f32.mxu1 %vm1307_vm6, %v7578_v47  ;;  %11928 = vmatprep.mubr.msk.f32.mxu0 %vm1307_vm6, %v7576_v40 }
0x2146   :  { %12462 = vmatpush3.bf16.xpose.msk.msra.mxu1 %vm15029_vm4, %v15703_v12  ;;  %12474 = vmatpush3.bf16.xpose.msk.msra.mxu0 %vm15029_vm4, %v15667_v24  ;;  %v11888_v34 = vpop.f32.mrb[74].mxu1  ;;  %v11902_v55 = vpop.f32.mrb[70].mxu0 }
0x2147   :  { %v7460_v39 = vadd.f32 %v11902_v55, %v10691_v26  ;;  %12477 = vmatprep.subr.msk.bf16.mxu0 %vm15029_vm4, %v15678_v43  ;;  %v7343_v51 = vpop.f32.mrb[75].mxu1  ;;  %v7454_v54 = vpop.f32.mrb[71].mxu0 }
0x2148   :  { %v7455_v32 = vadd.f32 %v10691_v26, %v7454_v54  ;;  %11929 = vmatmul.mubr.msk.f32.gmra.mrb[74].mxu0 %vm1307_vm6, %v7577_v28  ;;  %v15748_v26 = vadd.f32 %v11888_v34, %v15662_v4  ;;  %v15770_v19 = vadd.f32 %v15662_v4, %v7343_v51 }
0x2149   :  { %11953 = vmatprep.mubr.msk.f32.mxu0 %vm1307_vm6, %v7896_v14 }
0x214a   :  { %v15736_v30 = vpack.c.bf16 %v7460_v39, %v7455_v32  ;;  %v11907_v53 = vpop.f32.mrb[76].mxu1  ;;  %v7581_v51 = vmul.f32 %v15748_v26, %v16600_v36 }
0x214b   :  { %v7541_v37 = vadd.f32 %v11907_v53, %v15733_v5  ;;  %v7535_v6 = vpop.f32.mrb[77].mxu1 }
0x214c   :  { %v7536_v63 = vadd.f32 %v15733_v5, %v7535_v6  ;;  %12465 = vmatprep.subr.msk.bf16.mxu1 %vm15029_vm4, %v15736_v30 }
0x214d   :  { %v8187_v62 = vmul.f32 %v7541_v37, %v16603_v44  ;;  %v7889_v46 = vmul.f32 %v7541_v37, %v16604_v18  ;;  %v8873_v23 = vmul.f32 %v7541_v37, %v14940_v1  ;;  %v9373_v33 = vmul.f32 %v7541_v37, %v14937_v0 }
0x214e   :  { %12468 = vmatpush3.bf16.xpose.msk.msra.mxu1 %vm15029_vm4, %v15736_v30  ;;  %12480 = vmatpush3.bf16.xpose.msk.msra.mxu0 %vm15029_vm4, %v15678_v43  ;;  %v11910_v57 = vpop.f32.mrb[78].mxu1  ;;  %v8186_v20 = vmul.f32 %v7536_v63, %v16603_v44  ;;  %v7888_v59 = vmul.f32 %v7536_v63, %v16604_v18  ;;  %v8872_v49 = vmul.f32 %v7536_v63, %v14940_v1 }
0x214f   :  { %v7551_v29 = vadd.f32 %v11910_v57, %v15733_v5  ;;  %12483 = vmatprep.subr.msk.bf16.mxu1 %vm15029_vm4, %v15703_v12  ;;  %v7545_v61 = vpop.f32.mrb[79].mxu1  ;;  %v9372_v31 = vmul.f32 %v7536_v63, %v14937_v0  ;;  %v7580_v37 = vmul.f32 %v15770_v19, %v16600_v36 }
0x2150   :  { %v7546_v58 = vadd.f32 %v15733_v5, %v7545_v61  ;;  %v12493_v10 = vpack.c.bf16 %v8187_v62, %v8186_v20  ;;  %v15780_v52 = vpack.c.bf16 %v7889_v46, %v7888_v59  ;;  %v15782_v47 = vpack.c.bf16 %v8873_v23, %v8872_v49 }
0x2151   :  { %v8189_v4 = vmul.f32 %v7551_v29, %v16603_v44  ;;  %v7891_v40 = vmul.f32 %v7551_v29, %v16604_v18  ;;  %v8875_v34 = vmul.f32 %v7551_v29, %v14940_v1  ;;  %v15787_v55 = vpack.c.bf16 %v9373_v33, %v9372_v31 }
0x2152   :  { %v11913_v28 = vpop.f32.mrb[80].mxu1  ;;  %12494 = vmatprep.subr.bf16.mxu0 %v12493_v10  ;;  %v8188_v39 = vmul.f32 %v7546_v58, %v16603_v44  ;;  %v7890_v54 = vmul.f32 %v7546_v58, %v16604_v18  ;;  %v8874_v14 = vmul.f32 %v7546_v58, %v14940_v1  ;;  %v9374_v6 = vmul.f32 %v7546_v58, %v14937_v0 }
0x2153   :  { %v7561_v32 = vadd.f32 %v11913_v28, %v15733_v5  ;;  %v7555_v53 = vpop.f32.mrb[81].mxu1  ;;  %v9375_v63 = vmul.f32 %v7551_v29, %v14937_v0 }
0x2154   :  { %v7556_v62 = vadd.f32 %v15733_v5, %v7555_v53  ;;  %v12497_v46 = vpack.c.bf16 %v8189_v4, %v8188_v39  ;;  %v15800_v23 = vpack.c.bf16 %v7891_v40, %v7890_v54  ;;  %v15802_v33 = vpack.c.bf16 %v8875_v34, %v8874_v14 }
0x2155   :  { %11940 = vmatmul.mubr.msk.f32.vlgmr.msra.gmra.mrb[84].mxu1 %vm1307_vm6, %v7579_v38  ;;  %11954 = vmatmul.mubr.msk.f32.vlgmr.msra.gmra.mrb[76].mxu0 %vm1307_vm6, %v7897_v13  ;;  %v8191_v57 = vmul.f32 %v7561_v32, %v16603_v44  ;;  %v7893_v20 = vmul.f32 %v7561_v32, %v16604_v18  ;;  %v8877_v36 = vmul.f32 %v7561_v32, %v14940_v1 }
0x2156   :  { %11942 = vmatprep.mubr.msk.f32.mxu1 %vm1307_vm6, %v7580_v37  ;;  %11956 = vmatprep.mubr.msk.f32.mxu0 %vm1307_vm6, %v7898_v9  ;;  %v11916_v59 = vpop.f32.mrb[82].mxu1  ;;  %v8190_v49 = vmul.f32 %v7556_v62, %v16603_v44  ;;  %v7892_v29 = vmul.f32 %v7556_v62, %v16604_v18  ;;  %v8876_v61 = vmul.f32 %v7556_v62, %v14940_v1 }
0x2157   :  { %12486 = vmatpush3.bf16.xpose.msk.msra.mxu1 %vm15029_vm4, %v15703_v12  ;;  %12496 = vmatpush3.bf16.msra.mxu0 %v12493_v10  ;;  %v7571_v13 = vadd.f32 %v11916_v59, %v15733_v5  ;;  %v7565_v38 = vpop.f32.mrb[83].mxu1  ;;  %v15818_v31 = vpack.c.bf16 %v9375_v63, %v9374_v6  ;;  %v9376_v58 = vmul.f32 %v7556_v62, %v14937_v0 }
0x2158   :  { %12489 = vmatprep.subr.msk.bf16.mxu1 %vm15029_vm4, %v15736_v30  ;;  %12498 = vmatprep.subr.bf16.mxu0 %v12497_v46  ;;  %v7566_v9 = vadd.f32 %v15733_v5, %v7565_v38  ;;  %v12501_v4 = vpack.c.bf16 %v8191_v57, %v8190_v49  ;;  %v15825_v40 = vpack.c.bf16 %v7893_v20, %v7892_v29 }
0x2159   :  { %11943 = vmatmul.mubr.msk.f32.gmra.mrb[86].mxu1 %vm1307_vm6, %v7581_v51  ;;  %11957 = vmatmul.mubr.msk.f32.gmra.mrb[78].mxu0 %vm1307_vm6, %v15743_v3  ;;  %v8193_v10 = vmul.f32 %v7571_v13, %v16603_v44  ;;  %v7895_v34 = vmul.f32 %v7571_v13, %v16604_v18  ;;  %v15832_v28 = vpack.c.bf16 %v8877_v36, %v8876_v61 }
0x215a   :  { %11967 = vmatprep.mubr.msk.f32.mxu1 %vm1307_vm6, %v7900_v22  ;;  %v8192_v39 = vmul.f32 %v7566_v9, %v16603_v44  ;;  %v7894_v5 = vmul.f32 %v7566_v9, %v16604_v18  ;;  %v8878_v54 = vmul.f32 %v7566_v9, %v14940_v1  ;;  %v8879_v14 = vmul.f32 %v7571_v13, %v14940_v1 }
0x215b   :  { %12500 = vmatpush3.bf16.msra.mxu0 %v12497_v46  ;;  %v9377_v51 = vmul.f32 %v7561_v32, %v14937_v0  ;;  %v9378_v3 = vmul.f32 %v7566_v9, %v14937_v0  ;;  %v9379_v53 = vmul.f32 %v7571_v13, %v14937_v0  ;;  %v7901_v1 = vmul.f32 %v15729_v35, %v16602_v27 }
0x215c   :  { %12510 = vmatprep.subr.bf16.mxu0 %v15780_v52  ;;  %v12505_v37 = vpack.c.bf16 %v8193_v10, %v8192_v39  ;;  %v15843_v6 = vpack.c.bf16 %v7895_v34, %v7894_v5  ;;  %v15845_v22 = vpack.c.bf16 %v8879_v14, %v8878_v54  ;;  %v7902_v0 = vmul.f32 %v15770_v19, %v16602_v27 }
0x215d   :  { %v15847_v44 = vpack.c.bf16 %v9377_v51, %v9376_v58  ;;  %v15849_v18 = vpack.c.bf16 %v9379_v53, %v9378_v3  ;;  %v7903_v32 = vmul.f32 %v15748_v26, %v16602_v27 }
0x215f   :  { %12492 = vmatpush3.bf16.xpose.msk.msra.mxu1 %vm15029_vm4, %v15736_v30 }
0x2160   :  { %12502 = vmatprep.subr.bf16.mxu1 %v12501_v4 }
0x2166   :  { %11968 = vmatmul.mubr.msk.f32.vlgmr.msra.gmra.mrb[88].mxu1 %vm1307_vm6, %v7901_v1 }
0x2167   :  { %11970 = vmatprep.mubr.msk.f32.mxu1 %vm1307_vm6, %v7902_v0  ;;  %12504 = vmatpush3.bf16.msra.mxu1 %v12501_v4 }
0x2168   :  { %12506 = vmatprep.subr.bf16.mxu1 %v12505_v37 }
0x216a   :  { %11971 = vmatmul.mubr.msk.f32.gmra.mrb[90].mxu1 %vm1307_vm6, %v7903_v32 }
0x216b   :  { %12508 = vmatpush3.bf16.msra.mxu1 %v12505_v37 }
0x216c   :  { %12518 = vmatprep.subr.bf16.mxu1 %v15825_v40 }
0x2217   :  { %v15864_v63 = vpop.f32.mrb[72].mxu0 }
0x2218   :  { %v15866_v62 = vpop.f32.mrb[73].mxu0  ;;  %v7803_v10 = vsel %vm890_vm0, %v15864_v63, -inf }
0x2219   :  { %v7800_v53 = vsel %vm890_vm0, %v15866_v62, -inf }
0x221b   :  { %v15868_v46 = vpop.f32.mrb[74].mxu0 }
0x221c   :  { %v15870_v57 = vpop.f32.mrb[75].mxu0  ;;  %v7809_v1 = vsel %vm890_vm0, %v15868_v46, -inf }
0x2228   :  { %v15872_v20 = vpop.f32.mrb[84].mxu1  ;;  %v11955_v36 = vpop.f32.mrb[76].mxu0 }
0x2229   :  { %v15874_v59 = vpop.f32.mrb[85].mxu1  ;;  %v7982_v49 = vpop.f32.mrb[77].mxu0  ;;  %v8101_v27 = vsel %vm890_vm0, %v11955_v36, -inf  ;;  %v7815_v37 = vsel %vm890_vm0, %v15872_v20, -inf }
0x222a   :  { %8102 = vmax.xlane.f32.xlu1 %v8101_v27  ;;  %v8098_v29 = vsel %vm890_vm0, %v7982_v49, -inf  ;;  %v7812_v27 = vsel %vm890_vm0, %v15874_v59, -inf }
0x222b   :  { %8099 = vmax.xlane.f32.xlu0 %v8098_v29  ;;  %v7806_v29 = vsel %vm890_vm0, %v15870_v57, -inf }
0x222c   :  { %v15878_v61 = vpop.f32.mrb[86].mxu1  ;;  %v11958_v13 = vpop.f32.mrb[78].mxu0 }
0x222d   :  { %v15880_v38 = vpop.f32.mrb[87].mxu1  ;;  %v7992_v58 = vpop.f32.mrb[79].mxu0  ;;  %v8107_v9 = vsel %vm890_vm0, %v11958_v13, -inf  ;;  %v7821_v32 = vsel %vm890_vm0, %v15878_v61, -inf }
0x222e   :  { %8108 = vmax.xlane.f32.xlu1 %v8107_v9  ;;  %v8104_v4 = vsel %vm890_vm0, %v7992_v58, -inf  ;;  %v7818_v9 = vsel %vm890_vm0, %v15880_v38, -inf }
0x2232   :  { %8105 = vmax.xlane.f32.xlu1 %v8104_v4 }
0x2236   :  { %7804 = vmax.xlane.f32.xlu1 %v7803_v10 }
0x2239   :  { %v11969_v34 = vpop.f32.mrb[88].mxu1 }
0x223a   :  { %v15886_v39 = vpop.f32.mrb[89].mxu1  ;;  %v8113_v5 = vsel %vm890_vm0, %v11969_v34, -inf }
0x223b   :  { %8114 = vmax.xlane.f32.xlu0 %v8113_v5  ;;  %v8110_v51 = vsel %vm890_vm0, %v15886_v39, -inf }
0x223d   :  { %v11972_v54 = vpop.f32.mrb[90].mxu1 }
0x223e   :  { %v15889_v14 = vpop.f32.mrb[91].mxu1  ;;  %v8119_v3 = vsel %vm890_vm0, %v11972_v54, -inf }
0x223f   :  { %8111 = vmax.xlane.f32.xlu0 %v8110_v51  ;;  %8120 = vmax.xlane.f32.xlu1 %v8119_v3  ;;  %v8116_v0 = vsel %vm890_vm0, %v15889_v14, -inf }
0x2243   :  { %7801 = vmax.xlane.f32.xlu0 %v7800_v53  ;;  %7816 = vmax.xlane.f32.xlu1 %v7815_v37 }
0x2247   :  { %7810 = vmax.xlane.f32.xlu1 %v7809_v1  ;;  %8117 = vmax.xlane.f32.xlu0 %v8116_v0 }
0x224b   :  { %7822 = vmax.xlane.f32.xlu1 %v7821_v32  ;;  %7813 = vmax.xlane.f32.xlu0 %v7812_v27 }
0x224f   :  { %7807 = vmax.xlane.f32.xlu0 %v7806_v29 }
0x2253   :  { %7819 = vmax.xlane.f32.xlu0 %v7818_v9 }
0x22b7   :  { %v8103_v4 = vpop.xlane.xlu1 %8102 }
0x22b8   :  { %v8123_v10 = vsub.f32 %v11955_v36, %v8103_v4  ;;  %v8100_v5 = vpop.xlane.xlu0 %8099 }
0x22b9   :  { %v8122_v51 = vsub.f32 %v7982_v49, %v8100_v5 }
0x22ba   :  { %v8132_v3 = vmul.f32 1.442695, %v8123_v10 }
0x22bb   :  { %v8130_v53 = vmul.f32 1.442695, %v8122_v51  ;;  %v8109_v37 = vpop.xlane.xlu1 %8108 }
0x22bc   :  { %13001 = vpow2.f32 %v8132_v3  ;;  %v8125_v1 = vsub.f32 %v11958_v13, %v8109_v37 }
0x22bd   :  { %13003 = vpow2.f32 %v8130_v53 }
0x22be   :  { %v8136_v0 = vmul.f32 1.442695, %v8125_v1 }
0x22bf   :  { %v8106_v32 = vpop.xlane.xlu1 %8105 }
0x22c0   :  { %13005 = vpow2.f32 %v8136_v0  ;;  %v8124_v27 = vsub.f32 %v7992_v58, %v8106_v32 }
0x22c2   :  { %v8134_v25 = vmul.f32 1.442695, %v8124_v27 }
0x22c3   :  { %v7805_v29 = vpop.xlane.xlu1 %7804 }
0x22c4   :  { %13007 = vpow2.f32 %v8134_v25  ;;  %v7825_v15 = vsub.f32 %v15864_v63, %v7805_v29 }
0x22c6   :  { %v15911_v9 = vpop.eup %13001  ;;  %v7834_v36 = vmul.f32 1.442695, %v7825_v15 }
0x22c7   :  { %v15913_v4 = vpop.eup %13003  ;;  %v8149_v49 = vsel %vm890_vm0, %v15911_v9, 0.0 }
0x22c8   :  { %13009 = vpow2.f32 %v7834_v36  ;;  %v8115_v13 = vpop.xlane.xlu0 %8114  ;;  %8150 = vadd.xlane.f32.xlu1 %v8149_v49  ;;  %v8146_v10 = vsel %vm890_vm0, %v15913_v4, 0.0 }
0x22c9   :  { %v8127_v58 = vsub.f32 %v11969_v34, %v8115_v13  ;;  %8147 = vadd.xlane.f32.xlu0 %v8146_v10 }
0x22ca   :  { %v15919_v5 = vpop.eup %13005 }
0x22cb   :  { %v8140_v25 = vmul.f32 1.442695, %v8127_v58  ;;  %v8155_v63 = vsel %vm890_vm0, %v15919_v5, 0.0 }
0x22cc   :  { %v8112_v15 = vpop.xlane.xlu0 %8111  ;;  %v8121_v51 = vpop.xlane.xlu1 %8120  ;;  %8156 = vadd.xlane.f32.xlu1 %v8155_v63 }
0x22cd   :  { %13011 = vpow2.f32 %v8140_v25  ;;  %v8126_v3 = vsub.f32 %v15886_v39, %v8112_v15  ;;  %v8129_v53 = vsub.f32 %v11972_v54, %v8121_v51 }
0x22ce   :  { %v15924_v37 = vpop.eup %13007 }
0x22cf   :  { %v8138_v1 = vmul.f32 1.442695, %v8126_v3  ;;  %v8144_v0 = vmul.f32 1.442695, %v8129_v53  ;;  %v8152_v34 = vsel %vm890_vm0, %v15924_v37, 0.0 }
0x22d0   :  { %v7802_v32 = vpop.xlane.xlu0 %7801  ;;  %v7817_v27 = vpop.xlane.xlu1 %7816  ;;  %8153 = vadd.xlane.f32.xlu1 %v8152_v34 }
0x22d1   :  { %13013 = vpow2.f32 %v8138_v1  ;;  %v7824_v29 = vsub.f32 %v15866_v62, %v7802_v32  ;;  %v7829_v36 = vsub.f32 %v15872_v20, %v7817_v27 }
0x22d2   :  { %v15930_v49 = vpop.eup %13009  ;;  %13015 = vpow2.f32 %v8144_v0 }
0x22d3   :  { %v7832_v39 = vmul.f32 1.442695, %v7824_v29  ;;  %v7842_v54 = vmul.f32 1.442695, %v7829_v36  ;;  %v7851_v13 = vsel %vm890_vm0, %v15930_v49, 0.0 }
0x22d4   :  { %v7811_v10 = vpop.xlane.xlu1 %7810  ;;  %v8118_v58 = vpop.xlane.xlu0 %8117  ;;  %7852 = vadd.xlane.f32.xlu1 %v7851_v13 }
0x22d5   :  { %13017 = vpow2.f32 %v7832_v39  ;;  %v7827_v25 = vsub.f32 %v15868_v46, %v7811_v10  ;;  %v8128_v63 = vsub.f32 %v15889_v14, %v8118_v58 }
0x22d6   :  { %13019 = vpow2.f32 %v7842_v54 }
0x22d7   :  { %v15936_v62 = vpop.eup %13011  ;;  %v7838_v20 = vmul.f32 1.442695, %v7827_v25  ;;  %v8142_v15 = vmul.f32 1.442695, %v8128_v63 }
0x22d8   :  { %v7823_v51 = vpop.xlane.xlu1 %7822  ;;  %v7814_v3 = vpop.xlane.xlu0 %7813  ;;  %v8161_v53 = vsel %vm890_vm0, %v15936_v62, 0.0 }
0x22d9   :  { %13021 = vpow2.f32 %v7838_v20  ;;  %v7831_v1 = vsub.f32 %v15878_v61, %v7823_v51  ;;  %v7828_v0 = vsub.f32 %v15874_v59, %v7814_v3  ;;  %8162 = vadd.xlane.f32.xlu0 %v8161_v53 }
0x22da   :  { %13023 = vpow2.f32 %v8142_v15 }
0x22db   :  { %v15942_v46 = vpop.eup %13013  ;;  %v7846_v14 = vmul.f32 1.442695, %v7831_v1  ;;  %v7840_v34 = vmul.f32 1.442695, %v7828_v0 }
0x22dc   :  { %v15944_v32 = vpop.eup %13015  ;;  %v7808_v27 = vpop.xlane.xlu0 %7807  ;;  %v8158_v29 = vsel %vm890_vm0, %v15942_v46, 0.0 }
0x22dd   :  { %13025 = vpow2.f32 %v7846_v14  ;;  %v7826_v36 = vsub.f32 %v15870_v57, %v7808_v27  ;;  %v8167_v61 = vsel %vm890_vm0, %v15944_v32, 0.0  ;;  %8159 = vadd.xlane.f32.xlu0 %v8158_v29 }
0x22de   :  { %13027 = vpow2.f32 %v7840_v34  ;;  %8168 = vadd.xlane.f32.xlu1 %v8167_v61 }
0x22df   :  { %v15951_v59 = vpop.eup %13017  ;;  %v7836_v39 = vmul.f32 1.442695, %v7826_v36 }
0x22e0   :  { %v15953_v54 = vpop.eup %13019  ;;  %v7820_v13 = vpop.xlane.xlu0 %7819  ;;  %v7848_v10 = vsel %vm890_vm0, %v15951_v59, 0.0 }
0x22e1   :  { %13029 = vpow2.f32 %v7836_v39  ;;  %v7830_v58 = vsub.f32 %v15880_v38, %v7820_v13  ;;  %v7863_v57 = vsel %vm890_vm0, %v15953_v54, 0.0  ;;  %7849 = vadd.xlane.f32.xlu0 %v7848_v10 }
0x22e2   :  { %7864 = vadd.xlane.f32.xlu1 %v7863_v57 }
0x22e3   :  { %v15960_v25 = vpop.eup %13021  ;;  %v7844_v63 = vmul.f32 1.442695, %v7830_v58 }
0x22e4   :  { %v15962_v20 = vpop.eup %13023  ;;  %v7857_v15 = vsel %vm890_vm0, %v15960_v25, 0.0 }
0x22e5   :  { %13031 = vpow2.f32 %v7844_v63  ;;  %v8164_v51 = vsel %vm890_vm0, %v15962_v20, 0.0 }
0x22e6   :  { %7858 = vadd.xlane.f32.xlu1 %v7857_v15  ;;  %8165 = vadd.xlane.f32.xlu0 %v8164_v51 }
0x22e7   :  { %v15968_v38 = vpop.eup %13025 }
0x22e8   :  { %v15970_v3 = vpop.eup %13027  ;;  %v7869_v53 = vsel %vm890_vm0, %v15968_v38, 0.0 }
0x22e9   :  { %v7860_v1 = vsel %vm890_vm0, %v15970_v3, 0.0 }
0x22ea   :  { %7870 = vadd.xlane.f32.xlu1 %v7869_v53  ;;  %7861 = vadd.xlane.f32.xlu0 %v7860_v1 }
0x22eb   :  { %v15976_v0 = vpop.eup %13029 }
0x22ec   :  { %v7854_v14 = vsel %vm890_vm0, %v15976_v0, 0.0 }
0x22ee   :  { %7855 = vadd.xlane.f32.xlu0 %v7854_v14 }
0x22ef   :  { %v15980_v34 = vpop.eup %13031 }
0x22f0   :  { %v7866_v27 = vsel %vm890_vm0, %v15980_v34, 0.0 }
0x22f2   :  { %7867 = vadd.xlane.f32.xlu0 %v7866_v27 }
0x2355   :  { %v8151_v29 = vpop.xlane.xlu1 %8150 }
0x2356   :  { %13033 = vrcp.f32 %v8151_v29  ;;  %v8148_v36 = vpop.xlane.xlu0 %8147 }
0x2357   :  { %13035 = vrcp.f32 %v8148_v36 }
0x2359   :  { %v8157_v61 = vpop.xlane.xlu1 %8156 }
0x235a   :  { %13037 = vrcp.f32 %v8157_v61 }
0x235d   :  { %v8154_v39 = vpop.xlane.xlu1 %8153 }
0x235e   :  { %13039 = vrcp.f32 %v8154_v39 }
0x2360   :  { %v13034_v13 = vpop.eup %13033 }
0x2361   :  { %v13036_v10 = vpop.eup %13035  ;;  %v8179_v57 = vmul.f32 %v13034_v13, %v15911_v9  ;;  %v7853_v51 = vpop.xlane.xlu1 %7852 }
0x2362   :  { %v8178_v58 = vmul.f32 %v13036_v10, %v15913_v4 }
0x2364   :  { %11981 = vmatprep.mubr.msk.f32.mxu0 %vm890_vm0, %v8178_v58  ;;  %v13038_v15 = vpop.eup %13037 }
0x2365   :  { %11982 = vmatmul.mubr.msk.f32.vlgmr.msra.gmra.mrb[80].mxu0 %vm890_vm0, %v8179_v57  ;;  %v8181_v9 = vmul.f32 %v13038_v15, %v15919_v5 }
0x2366   :  { %12512 = vmatpush3.bf16.msra.mxu0 %v15780_v52  ;;  %v8163_v63 = vpop.xlane.xlu0 %8162 }
0x2367   :  { %12514 = vmatprep.subr.bf16.mxu0 %v15800_v23  ;;  %13041 = vrcp.f32 %v8163_v63 }
0x2368   :  { %v13040_v53 = vpop.eup %13039 }
0x2369   :  { %v8180_v1 = vmul.f32 %v13040_v53, %v15924_v37 }
0x236a   :  { %12516 = vmatpush3.bf16.msra.mxu0 %v15800_v23  ;;  %v8160_v4 = vpop.xlane.xlu0 %8159 }
0x236b   :  { %v8169_v14 = vpop.xlane.xlu1 %8168  ;;  %13043 = vrcp.f32 %v8160_v4  ;;  %12527 = vmatprep.subr.msk.bf16.mxu0 %vm15029_vm4, %v15667_v24  ;;  %11984 = vmatprep.mubr.msk.f32.mxu0 %vm890_vm0, %v8180_v1 }
0x236c   :  { %11985 = vmatmul.mubr.msk.f32.gmra.mrb[82].mxu0 %vm890_vm0, %v8181_v9  ;;  %13045 = vrcp.f32 %v7853_v51 }
0x236e   :  { %v7850_v52 = vpop.xlane.xlu0 %7849 }
0x236f   :  { %13047 = vrcp.f32 %v7850_v52  ;;  %v7865_v37 = vpop.xlane.xlu1 %7864 }
0x2370   :  { %13049 = vrcp.f32 %v8169_v14 }
0x2371   :  { %v13042_v29 = vpop.eup %13041 }
0x2372   :  { %v8183_v61 = vmul.f32 %v13042_v29, %v15936_v62 }
0x2373   :  { %v8166_v27 = vpop.xlane.xlu0 %8165  ;;  %v7859_v5 = vpop.xlane.xlu1 %7858 }
0x2374   :  { %13051 = vrcp.f32 %v8166_v27  ;;  %v8586_v27 = vmul.f32 %v15696_v21, %v15307_v7 }
0x2375   :  { %v13044_v23 = vpop.eup %13043  ;;  %13053 = vrcp.f32 %v7865_v37  ;;  %v8584_v37 = vmul.f32 %v15693_v42, %v15307_v7 }
0x2376   :  { %v8182_v36 = vmul.f32 %v13044_v23, %v15942_v46  ;;  %v13046_v13 = vpop.eup %13045 }
0x2377   :  { %v7862_v39 = vpop.xlane.xlu0 %7861  ;;  %v7881_v57 = vmul.f32 %v13046_v13, %v15930_v49  ;;  %v7871_v62 = vpop.xlane.xlu1 %7870 }
0x2378   :  { %11995 = vmatprep.mubr.msk.f32.mxu1 %vm890_vm0, %v8182_v36  ;;  %13055 = vrcp.f32 %v7862_v39 }
0x2379   :  { %v13048_v10 = vpop.eup %13047  ;;  %11996 = vmatmul.mubr.msk.f32.vlgmr.msra.gmra.mrb[92].mxu1 %vm890_vm0, %v8183_v61  ;;  %13057 = vrcp.f32 %v7859_v5 }
0x237a   :  { %12520 = vmatpush3.bf16.msra.mxu1 %v15825_v40  ;;  %v7880_v58 = vmul.f32 %v13048_v10, %v15951_v59  ;;  %v13050_v63 = vpop.eup %13049 }
0x237b   :  { %12522 = vmatprep.subr.bf16.mxu1 %v15843_v6  ;;  %v7856_v46 = vpop.xlane.xlu0 %7855 }
0x237c   :  { %13059 = vrcp.f32 %v7856_v46  ;;  %12009 = vmatprep.mubr.msk.f32.mxu0 %vm890_vm0, %v7880_v58 }
0x237d   :  { %12010 = vmatmul.mubr.msk.f32.vlgmr.msra.gmra.mrb[80].mxu0 %vm890_vm0, %v7881_v57  ;;  %13061 = vrcp.f32 %v7871_v62 }
0x237e   :  { %12524 = vmatpush3.bf16.msra.mxu1 %v15843_v6  ;;  %12530 = vmatpush3.bf16.xpose.msk.msra.mxu0 %vm15029_vm4, %v15667_v24  ;;  %v13052_v40 = vpop.eup %13051  ;;  %v8185_v6 = vmul.f32 %v13050_v63, %v15944_v32 }
0x237f   :  { %12533 = vmatprep.subr.msk.bf16.mxu0 %vm15029_vm4, %v15678_v43  ;;  %12539 = vmatprep.subr.msk.bf16.mxu1 %vm15029_vm4, %v15703_v12  ;;  %v7868_v49 = vpop.xlane.xlu0 %7867  ;;  %v8184_v59 = vmul.f32 %v13052_v40, %v15962_v20  ;;  %v13054_v15 = vpop.eup %13053 }
0x2380   :  { %13063 = vrcp.f32 %v7868_v49  ;;  %v7885_v4 = vmul.f32 %v13054_v15, %v15953_v54 }
0x2381   :  { %11998 = vmatprep.mubr.msk.f32.mxu1 %vm890_vm0, %v8184_v59 }
0x2382   :  { %v13056_v51 = vpop.eup %13055  ;;  %11999 = vmatmul.mubr.msk.f32.gmra.mrb[94].mxu1 %vm890_vm0, %v8185_v6 }
0x2383   :  { %v7884_v53 = vmul.f32 %v13056_v51, %v15970_v3  ;;  %v13058_v1 = vpop.eup %13057  ;;  %v8582_v3 = vmul.f32 %v15665_v41, %v15307_v7 }
0x2384   :  { %v7883_v20 = vmul.f32 %v13058_v1, %v15960_v25  ;;  %v8583_v25 = vmul.f32 %v15687_v11, %v15307_v7 }
0x2385   :  { %12023 = vmatprep.mubr.msk.f32.mxu1 %vm890_vm0, %v7884_v53 }
0x2386   :  { %v13060_v9 = vpop.eup %13059  ;;  %12536 = vmatpush3.bf16.xpose.msk.msra.mxu0 %vm15029_vm4, %v15678_v43  ;;  %12024 = vmatmul.mubr.msk.f32.vlgmr.msra.gmra.mrb[92].mxu1 %vm890_vm0, %v7885_v4 }
0x2387   :  { %12550 = vmatprep.subr.bf16.mxu0 %v15782_v47  ;;  %v7882_v32 = vmul.f32 %v13060_v9, %v15976_v0  ;;  %12542 = vmatpush3.bf16.xpose.msk.msra.mxu1 %vm15029_vm4, %v15703_v12  ;;  %v13062_v54 = vpop.eup %13061 }
0x2388   :  { %12545 = vmatprep.subr.msk.bf16.mxu1 %vm15029_vm4, %v15736_v30  ;;  %v7887_v52 = vmul.f32 %v13062_v54, %v15968_v38  ;;  %v8585_v38 = vmul.f32 %v15701_v8, %v15307_v7 }
0x2389   :  { %12012 = vmatprep.mubr.msk.f32.mxu0 %vm890_vm0, %v7882_v32 }
0x238a   :  { %v13064_v14 = vpop.eup %13063  ;;  %12013 = vmatmul.mubr.msk.f32.gmra.mrb[82].mxu0 %vm890_vm0, %v7883_v20 }
0x238b   :  { %12037 = vmatprep.mubr.msk.f32.mxu0 %vm1307_vm6, %v8582_v3  ;;  %v7886_v0 = vmul.f32 %v13064_v14, %v15980_v34  ;;  %v8588_v34 = vmul.f32 %v15770_v19, %v15307_v7 }
0x238d   :  { %12026 = vmatprep.mubr.msk.f32.mxu1 %vm890_vm0, %v7886_v0 }
0x238e   :  { %12027 = vmatmul.mubr.msk.f32.gmra.mrb[94].mxu1 %vm890_vm0, %v7887_v52  ;;  %12038 = vmatmul.mubr.msk.f32.vlgmr.msra.gmra.mrb[84].mxu0 %vm1307_vm6, %v8583_v25 }
0x238f   :  { %12552 = vmatpush3.bf16.msra.mxu0 %v15782_v47  ;;  %12040 = vmatprep.mubr.msk.f32.mxu0 %vm1307_vm6, %v8584_v37  ;;  %v8587_v47 = vmul.f32 %v15729_v35, %v15307_v7 }
0x2390   :  { %12548 = vmatpush3.bf16.xpose.msk.msra.mxu1 %vm15029_vm4, %v15736_v30  ;;  %12051 = vmatprep.mubr.msk.f32.mxu1 %vm1307_vm6, %v8586_v27 }
0x2391   :  { %12554 = vmatprep.subr.bf16.mxu0 %v15802_v33  ;;  %12558 = vmatprep.subr.bf16.mxu1 %v15832_v28 }
0x2392   :  { %12041 = vmatmul.mubr.msk.f32.gmra.mrb[86].mxu0 %vm1307_vm6, %v8585_v38 }
0x2393   :  { %12556 = vmatpush3.bf16.msra.mxu0 %v15802_v33  ;;  %v8589_v33 = vmul.f32 %v15748_v26, %v15307_v7 }
0x2394   :  { %12567 = vmatprep.subr.msk.bf16.mxu0 %vm15029_vm4, %v15667_v24 }
0x2397   :  { %12052 = vmatmul.mubr.msk.f32.vlgmr.msra.gmra.mrb[96].mxu1 %vm1307_vm6, %v8587_v47 }
0x2398   :  { %12054 = vmatprep.mubr.msk.f32.mxu1 %vm1307_vm6, %v8588_v34  ;;  %12560 = vmatpush3.bf16.msra.mxu1 %v15832_v28 }
0x2399   :  { %12562 = vmatprep.subr.bf16.mxu1 %v15845_v22 }
0x239b   :  { %12055 = vmatmul.mubr.msk.f32.gmra.mrb[98].mxu1 %vm1307_vm6, %v8589_v33 }
0x239c   :  { %12564 = vmatpush3.bf16.msra.mxu1 %v15845_v22 }
0x239d   :  { %12579 = vmatprep.subr.msk.bf16.mxu1 %vm15029_vm4, %v15703_v12 }
0x2461   :  { %v12039_v29 = vpop.f32.mrb[84].mxu0 }
0x2462   :  { %v8668_v23 = vpop.f32.mrb[85].mxu0  ;;  %v8787_v5 = vsel %vm890_vm0, %v12039_v29, -inf }
0x2463   :  { %8788 = vmax.xlane.f32.xlu1 %v8787_v5  ;;  %v8784_v28 = vsel %vm890_vm0, %v8668_v23, -inf }
0x2464   :  { %8785 = vmax.xlane.f32.xlu0 %v8784_v28 }
0x2465   :  { %v12042_v36 = vpop.f32.mrb[86].mxu0 }
0x2466   :  { %v8678_v61 = vpop.f32.mrb[87].mxu0  ;;  %v8793_v57 = vsel %vm890_vm0, %v12042_v36, -inf }
0x2467   :  { %v8790_v46 = vsel %vm890_vm0, %v8678_v61, -inf }
0x246a   :  { %v12053_v39 = vpop.f32.mrb[96].mxu1 }
0x246b   :  { %v8765_v7 = vpop.f32.mrb[97].mxu1  ;;  %v8799_v13 = vsel %vm890_vm0, %v12053_v39, -inf }
0x246c   :  { %8800 = vmax.xlane.f32.xlu1 %v8799_v13  ;;  %v8796_v22 = vsel %vm890_vm0, %v8765_v7, -inf }
0x246d   :  { %8797 = vmax.xlane.f32.xlu0 %v8796_v22 }
0x246e   :  { %v12056_v10 = vpop.f32.mrb[98].mxu1 }
0x246f   :  { %v8775_v58 = vpop.f32.mrb[99].mxu1  ;;  %v8805_v62 = vsel %vm890_vm0, %v12056_v10, -inf }
0x2470   :  { %8794 = vmax.xlane.f32.xlu1 %v8793_v57  ;;  %v8802_v63 = vsel %vm890_vm0, %v8775_v58, -inf }
0x2471   :  { %8791 = vmax.xlane.f32.xlu0 %v8790_v46 }
0x2474   :  { %8806 = vmax.xlane.f32.xlu1 %v8805_v62 }
0x2475   :  { %8803 = vmax.xlane.f32.xlu0 %v8802_v63 }
0x24f0   :  { %v8789_v40 = vpop.xlane.xlu1 %8788 }
0x24f1   :  { %v8809_v49 = vsub.f32 %v12039_v29, %v8789_v40  ;;  %v8786_v59 = vpop.xlane.xlu0 %8785 }
0x24f2   :  { %v8808_v6 = vsub.f32 %v8668_v23, %v8786_v59 }
0x24f3   :  { %v8818_v15 = vmul.f32 1.442695, %v8809_v49 }
0x24f4   :  { %v8816_v51 = vmul.f32 1.442695, %v8808_v6 }
0x24f5   :  { %13065 = vpow2.f32 %v8818_v15 }
0x24f6   :  { %13067 = vpow2.f32 %v8816_v51 }
0x24f9   :  { %v8801_v53 = vpop.xlane.xlu1 %8800 }
0x24fa   :  { %v8813_v1 = vsub.f32 %v12053_v39, %v8801_v53  ;;  %v8798_v4 = vpop.xlane.xlu0 %8797 }
0x24fb   :  { %v8812_v9 = vsub.f32 %v8765_v7, %v8798_v4 }
0x24fc   :  { %v8826_v32 = vmul.f32 1.442695, %v8813_v1 }
0x24fd   :  { %v8824_v20 = vmul.f32 1.442695, %v8812_v9  ;;  %v8795_v54 = vpop.xlane.xlu1 %8794 }
0x24fe   :  { %13069 = vpow2.f32 %v8826_v32  ;;  %v8811_v3 = vsub.f32 %v12042_v36, %v8795_v54  ;;  %v8792_v14 = vpop.xlane.xlu0 %8791 }
0x24ff   :  { %v13066_v0 = vpop.eup %13065  ;;  %13071 = vpow2.f32 %v8824_v20  ;;  %v8810_v25 = vsub.f32 %v8678_v61, %v8792_v14 }
0x2500   :  { %v13068_v52 = vpop.eup %13067  ;;  %v8822_v37 = vmul.f32 1.442695, %v8811_v3  ;;  %v8835_v27 = vsel %vm890_vm0, %v13066_v0, 0.0 }
0x2501   :  { %v8820_v38 = vmul.f32 1.442695, %v8810_v25  ;;  %v8807_v47 = vpop.xlane.xlu1 %8806  ;;  %8836 = vadd.xlane.f32.xlu1 %v8835_v27  ;;  %v8832_v34 = vsel %vm890_vm0, %v13068_v52, 0.0 }
0x2502   :  { %13073 = vpow2.f32 %v8822_v37  ;;  %v8815_v33 = vsub.f32 %v12056_v10, %v8807_v47  ;;  %v8804_v29 = vpop.xlane.xlu0 %8803  ;;  %8833 = vadd.xlane.f32.xlu0 %v8832_v34 }
0x2503   :  { %13075 = vpow2.f32 %v8820_v38  ;;  %v8814_v23 = vsub.f32 %v8775_v58, %v8804_v29  ;;  %v9082_v38 = vmul.f32 %v15665_v41, %v15392_v48  ;;  %v9086_v41 = vmul.f32 %v15696_v21, %v15392_v48 }
0x2504   :  { %v8830_v5 = vmul.f32 1.442695, %v8815_v33  ;;  %v9084_v33 = vmul.f32 %v15693_v42, %v15392_v48  ;;  %v9088_v42 = vmul.f32 %v15770_v19, %v15392_v48  ;;  %v9089_v21 = vmul.f32 %v15748_v26, %v15392_v48 }
0x2505   :  { %v8828_v28 = vmul.f32 1.442695, %v8814_v23 }
0x2506   :  { %13077 = vpow2.f32 %v8830_v5 }
0x2507   :  { %13079 = vpow2.f32 %v8828_v28 }
0x2508   :  { %v13070_v36 = vpop.eup %13069 }
0x2509   :  { %v13072_v61 = vpop.eup %13071  ;;  %v8847_v39 = vsel %vm890_vm0, %v13070_v36, 0.0 }
0x250a   :  { %8848 = vadd.xlane.f32.xlu1 %v8847_v39  ;;  %v8844_v7 = vsel %vm890_vm0, %v13072_v61, 0.0 }
0x250b   :  { %8845 = vadd.xlane.f32.xlu0 %v8844_v7 }
0x250c   :  { %v13074_v13 = vpop.eup %13073 }
0x250d   :  { %v13076_v22 = vpop.eup %13075  ;;  %v8841_v10 = vsel %vm890_vm0, %v13074_v13, 0.0 }
0x250e   :  { %8842 = vadd.xlane.f32.xlu1 %v8841_v10  ;;  %v8838_v57 = vsel %vm890_vm0, %v13076_v22, 0.0 }
0x250f   :  { %8839 = vadd.xlane.f32.xlu0 %v8838_v57 }
0x2510   :  { %v13078_v58 = vpop.eup %13077 }
0x2511   :  { %v13080_v46 = vpop.eup %13079  ;;  %v8853_v62 = vsel %vm890_vm0, %v13078_v58, 0.0 }
0x2512   :  { %8854 = vadd.xlane.f32.xlu1 %v8853_v62  ;;  %v8850_v63 = vsel %vm890_vm0, %v13080_v46, 0.0 }
0x2513   :  { %8851 = vadd.xlane.f32.xlu0 %v8850_v63 }
0x258e   :  { %v8837_v40 = vpop.xlane.xlu1 %8836 }
0x258f   :  { %13081 = vrcp.f32 %v8837_v40  ;;  %v8834_v49 = vpop.xlane.xlu0 %8833 }
0x2590   :  { %13083 = vrcp.f32 %v8834_v49 }
0x2597   :  { %v8849_v59 = vpop.xlane.xlu1 %8848 }
0x2598   :  { %13085 = vrcp.f32 %v8849_v59  ;;  %v8846_v6 = vpop.xlane.xlu0 %8845 }
0x2599   :  { %v13082_v15 = vpop.eup %13081  ;;  %13087 = vrcp.f32 %v8846_v6 }
0x259a   :  { %v13084_v51 = vpop.eup %13083  ;;  %v8865_v4 = vmul.f32 %v13082_v15, %v13066_v0 }
0x259b   :  { %v8843_v53 = vpop.xlane.xlu1 %8842  ;;  %v8864_v1 = vmul.f32 %v13084_v51, %v13068_v52 }
0x259c   :  { %13089 = vrcp.f32 %v8843_v53  ;;  %v8840_v9 = vpop.xlane.xlu0 %8839 }
0x259d   :  { %13091 = vrcp.f32 %v8840_v9  ;;  %12065 = vmatprep.mubr.msk.f32.mxu0 %vm890_vm0, %v8864_v1 }
0x259e   :  { %12066 = vmatmul.mubr.msk.f32.vlgmr.msra.gmra.mrb[80].mxu0 %vm890_vm0, %v8865_v4 }
0x259f   :  { %v8855_v32 = vpop.xlane.xlu1 %8854  ;;  %12570 = vmatpush3.bf16.xpose.msk.msra.mxu0 %vm15029_vm4, %v15667_v24 }
0x25a0   :  { %13093 = vrcp.f32 %v8855_v32  ;;  %12573 = vmatprep.subr.msk.bf16.mxu0 %vm15029_vm4, %v15678_v43  ;;  %v8852_v20 = vpop.xlane.xlu0 %8851 }
0x25a1   :  { %13095 = vrcp.f32 %v8852_v20 }
0x25a2   :  { %v13086_v54 = vpop.eup %13085 }
0x25a3   :  { %v13088_v3 = vpop.eup %13087  ;;  %v8869_v0 = vmul.f32 %v13086_v54, %v13070_v36 }
0x25a4   :  { %v8868_v14 = vmul.f32 %v13088_v3, %v13072_v61 }
0x25a6   :  { %v13090_v25 = vpop.eup %13089  ;;  %12079 = vmatprep.mubr.msk.f32.mxu1 %vm890_vm0, %v8868_v14 }
0x25a7   :  { %v13092_v52 = vpop.eup %13091  ;;  %12080 = vmatmul.mubr.msk.f32.vlgmr.msra.gmra.mrb[92].mxu1 %vm890_vm0, %v8869_v0  ;;  %12576 = vmatpush3.bf16.xpose.msk.msra.mxu0 %vm15029_vm4, %v15678_v43  ;;  %v8867_v37 = vmul.f32 %v13090_v25, %v13074_v13 }
0x25a8   :  { %12582 = vmatpush3.bf16.xpose.msk.msra.mxu1 %vm15029_vm4, %v15703_v12  ;;  %12590 = vmatprep.subr.bf16.mxu0 %v15787_v55  ;;  %v8866_v24 = vmul.f32 %v13092_v52, %v13076_v22  ;;  %v9083_v12 = vmul.f32 %v15687_v11, %v15392_v48  ;;  %v9085_v11 = vmul.f32 %v15701_v8, %v15392_v48 }
0x25a9   :  { %12585 = vmatprep.subr.msk.bf16.mxu1 %vm15029_vm4, %v15736_v30 }
0x25aa   :  { %v13094_v27 = vpop.eup %13093  ;;  %12068 = vmatprep.mubr.msk.f32.mxu0 %vm890_vm0, %v8866_v24 }
0x25ab   :  { %v13096_v47 = vpop.eup %13095  ;;  %12069 = vmatmul.mubr.msk.f32.gmra.mrb[82].mxu0 %vm890_vm0, %v8867_v37  ;;  %v8871_v34 = vmul.f32 %v13094_v27, %v13078_v58 }
0x25ac   :  { %12093 = vmatprep.mubr.msk.f32.mxu0 %vm1307_vm6, %v9082_v38  ;;  %v8870_v43 = vmul.f32 %v13096_v47, %v13080_v46 }
0x25ae   :  { %12082 = vmatprep.mubr.msk.f32.mxu1 %vm890_vm0, %v8870_v43 }
0x25af   :  { %12083 = vmatmul.mubr.msk.f32.gmra.mrb[94].mxu1 %vm890_vm0, %v8871_v34  ;;  %12094 = vmatmul.mubr.msk.f32.vlgmr.msra.gmra.mrb[88].mxu0 %vm1307_vm6, %v9083_v12 }
0x25b0   :  { %12588 = vmatpush3.bf16.xpose.msk.msra.mxu1 %vm15029_vm4, %v15736_v30  ;;  %12592 = vmatpush3.bf16.msra.mxu0 %v15787_v55 }
0x25b1   :  { %12096 = vmatprep.mubr.msk.f32.mxu0 %vm1307_vm6, %v9084_v33  ;;  %12107 = vmatprep.mubr.msk.f32.mxu1 %vm1307_vm6, %v9086_v41 }
0x25b2   :  { %12594 = vmatprep.subr.bf16.mxu0 %v15818_v31  ;;  %12598 = vmatprep.subr.bf16.mxu1 %v15847_v44 }
0x25b3   :  { %12097 = vmatmul.mubr.msk.f32.gmra.mrb[90].mxu0 %vm1307_vm6, %v9085_v11 }
0x25b4   :  { %12596 = vmatpush3.bf16.msra.mxu0 %v15818_v31 }
0x25b7   :  { %12108 = vmatmul.mubr.msk.f32.vlgmr.msra.gmra.mrb[100].mxu1 %vm1307_vm6, %v9087_v60 }
0x25b8   :  { %12110 = vmatprep.mubr.msk.f32.mxu1 %vm1307_vm6, %v9088_v42  ;;  %12600 = vmatpush3.bf16.msra.mxu1 %v15847_v44  ;;  %v671_v42 = vld [vmem:[%s16605_s6] sm:$0xff] }
0x25b9   :  { %12602 = vmatprep.subr.bf16.mxu1 %v15849_v18  ;;  %12141 = vmatprep.subr.mxu0 %v671_v42 }
0x25bb   :  { %12111 = vmatmul.mubr.msk.f32.gmra.mrb[102].mxu1 %vm1307_vm6, %v9089_v21 }
0x25bc   :  { %12604 = vmatpush3.bf16.msra.mxu1 %v15849_v18 }
0x2682   :  { %v12095_v8 = vpop.f32.mrb[88].mxu0 }
0x2683   :  { %v9168_v35 = vpop.f32.mrb[89].mxu0  ;;  %v9287_v30 = vsel %vm890_vm0, %v12095_v8, -inf }
0x2684   :  { %9288 = vmax.xlane.f32.xlu1 %v9287_v30  ;;  %v9284_v19 = vsel %vm890_vm0, %v9168_v35, -inf }
0x2685   :  { %9285 = vmax.xlane.f32.xlu0 %v9284_v19 }
0x2686   :  { %v12098_v55 = vpop.f32.mrb[90].mxu0 }
0x2687   :  { %v9178_v31 = vpop.f32.mrb[91].mxu0  ;;  %v9293_v44 = vsel %vm890_vm0, %v12098_v55, -inf }
0x2688   :  { %9294 = vmax.xlane.f32.xlu1 %v9293_v44  ;;  %v9290_v29 = vsel %vm890_vm0, %v9178_v31, -inf }
0x2689   :  { %9291 = vmax.xlane.f32.xlu0 %v9290_v29 }
0x268a   :  { %v12109_v48 = vpop.f32.mrb[100].mxu1 }
0x268b   :  { %v9265_v26 = vpop.f32.mrb[101].mxu1  ;;  %v9299_v18 = vsel %vm890_vm0, %v12109_v48, -inf }
0x268c   :  { %9300 = vmax.xlane.f32.xlu1 %v9299_v18  ;;  %v9296_v23 = vsel %vm890_vm0, %v9265_v26, -inf }
0x268d   :  { %9297 = vmax.xlane.f32.xlu0 %v9296_v23 }
0x268e   :  { %v12112_v5 = vpop.f32.mrb[102].mxu1 }
0x268f   :  { %v9275_v28 = vpop.f32.mrb[103].mxu1  ;;  %v9305_v36 = vsel %vm890_vm0, %v12112_v5, -inf }
0x2690   :  { %9306 = vmax.xlane.f32.xlu1 %v9305_v36  ;;  %v9302_v61 = vsel %vm890_vm0, %v9275_v28, -inf }
0x2691   :  { %9303 = vmax.xlane.f32.xlu0 %v9302_v61 }
0x2711   :  { %v9289_v39 = vpop.xlane.xlu1 %9288 }
0x2712   :  { %v9309_v7 = vsub.f32 %v12095_v8, %v9289_v39  ;;  %v9286_v13 = vpop.xlane.xlu0 %9285 }
0x2713   :  { %v9308_v22 = vsub.f32 %v9168_v35, %v9286_v13 }
0x2714   :  { %v9318_v10 = vmul.f32 1.442695, %v9309_v7 }
0x2715   :  { %v9316_v57 = vmul.f32 1.442695, %v9308_v22  ;;  %v9295_v58 = vpop.xlane.xlu1 %9294 }
0x2716   :  { %13097 = vpow2.f32 %v9318_v10  ;;  %v9311_v46 = vsub.f32 %v12098_v55, %v9295_v58  ;;  %v9292_v62 = vpop.xlane.xlu0 %9291 }
0x2717   :  { %13099 = vpow2.f32 %v9316_v57  ;;  %v9310_v63 = vsub.f32 %v9178_v31, %v9292_v62 }
0x2718   :  { %v9322_v40 = vmul.f32 1.442695, %v9311_v46 }
0x2719   :  { %v9320_v49 = vmul.f32 1.442695, %v9310_v63  ;;  %v9301_v59 = vpop.xlane.xlu1 %9300 }
0x271a   :  { %13101 = vpow2.f32 %v9322_v40  ;;  %v9313_v6 = vsub.f32 %v12109_v48, %v9301_v59  ;;  %v9298_v15 = vpop.xlane.xlu0 %9297 }
0x271b   :  { %13103 = vpow2.f32 %v9320_v49  ;;  %v9312_v51 = vsub.f32 %v9265_v26, %v9298_v15 }
0x271c   :  { %v9326_v53 = vmul.f32 1.442695, %v9313_v6 }
0x271d   :  { %v9324_v1 = vmul.f32 1.442695, %v9312_v51  ;;  %v9307_v4 = vpop.xlane.xlu1 %9306  ;;  %v10805_v51 = vld [vmem:[%s16606_s29] ss:$0 sm:$0xff] }
0x271e   :  { %13105 = vpow2.f32 %v9326_v53  ;;  %v9315_v9 = vsub.f32 %v12112_v5, %v9307_v4  ;;  %v9304_v32 = vpop.xlane.xlu0 %9303 }
0x271f   :  { %13107 = vpow2.f32 %v9324_v1  ;;  %v9314_v20 = vsub.f32 %v9275_v28, %v9304_v32 }
0x2720   :  { %v13098_v54 = vpop.eup %13097  ;;  %v9330_v3 = vmul.f32 1.442695, %v9315_v9 }
0x2721   :  { %v13100_v14 = vpop.eup %13099  ;;  %v9328_v0 = vmul.f32 1.442695, %v9314_v20  ;;  %v9335_v25 = vsel %vm890_vm0, %v13098_v54, 0.0 }
0x2722   :  { %13109 = vpow2.f32 %v9330_v3  ;;  %9336 = vadd.xlane.f32.xlu1 %v9335_v25  ;;  %v9332_v52 = vsel %vm890_vm0, %v13100_v14, 0.0 }
0x2723   :  { %13111 = vpow2.f32 %v9328_v0  ;;  %9333 = vadd.xlane.f32.xlu0 %v9332_v52 }
0x2724   :  { %v13102_v24 = vpop.eup %13101 }
0x2725   :  { %v13104_v37 = vpop.eup %13103  ;;  %v9341_v27 = vsel %vm890_vm0, %v13102_v24, 0.0 }
0x2726   :  { %9342 = vadd.xlane.f32.xlu1 %v9341_v27  ;;  %v9338_v38 = vsel %vm890_vm0, %v13104_v37, 0.0 }
0x2727   :  { %9339 = vadd.xlane.f32.xlu0 %v9338_v38 }
0x2728   :  { %v13106_v47 = vpop.eup %13105 }
0x2729   :  { %v13108_v43 = vpop.eup %13107  ;;  %v9347_v12 = vsel %vm890_vm0, %v13106_v47, 0.0 }
0x272a   :  { %9348 = vadd.xlane.f32.xlu1 %v9347_v12  ;;  %v9344_v34 = vsel %vm890_vm0, %v13108_v43, 0.0 }
0x272b   :  { %9345 = vadd.xlane.f32.xlu0 %v9344_v34 }
0x272c   :  { %v13110_v33 = vpop.eup %13109 }
0x272d   :  { %v13112_v41 = vpop.eup %13111  ;;  %v9353_v11 = vsel %vm890_vm0, %v13110_v33, 0.0 }
0x272e   :  { %9354 = vadd.xlane.f32.xlu1 %v9353_v11  ;;  %v9350_v60 = vsel %vm890_vm0, %v13112_v41, 0.0 }
0x272f   :  { %9351 = vadd.xlane.f32.xlu0 %v9350_v60 }
0x27af   :  { %v9337_v21 = vpop.xlane.xlu1 %9336 }
0x27b0   :  { %13113 = vrcp.f32 %v9337_v21  ;;  %v9334_v8 = vpop.xlane.xlu0 %9333 }
0x27b1   :  { %13115 = vrcp.f32 %v9334_v8 }
0x27b3   :  { %v9343_v35 = vpop.xlane.xlu1 %9342 }
0x27b4   :  { %13117 = vrcp.f32 %v9343_v35  ;;  %v9340_v30 = vpop.xlane.xlu0 %9339 }
0x27b5   :  { %13119 = vrcp.f32 %v9340_v30 }
0x27b7   :  { %v9349_v19 = vpop.xlane.xlu1 %9348 }
0x27b8   :  { %13121 = vrcp.f32 %v9349_v19  ;;  %v9346_v55 = vpop.xlane.xlu0 %9345 }
0x27b9   :  { %13123 = vrcp.f32 %v9346_v55 }
0x27ba   :  { %v13114_v31 = vpop.eup %13113 }
0x27bb   :  { %v13116_v44 = vpop.eup %13115  ;;  %v9355_v29 = vpop.xlane.xlu1 %9354  ;;  %v9365_v18 = vmul.f32 %v13114_v31, %v13098_v54 }
0x27bc   :  { %13125 = vrcp.f32 %v9355_v29  ;;  %v9352_v48 = vpop.xlane.xlu0 %9351  ;;  %v9364_v26 = vmul.f32 %v13116_v44, %v13100_v14  ;;  %v16607_v44 = vld [vmem:[#allocation107_spill] sm:$0xff] }
0x27bd   :  { %13127 = vrcp.f32 %v9352_v48 }
0x27be   :  { %v13118_v23 = vpop.eup %13117  ;;  %12121 = vmatprep.mubr.msk.f32.mxu0 %vm890_vm0, %v9364_v26  ;;  %v16609_v26 = vld [vmem:[#allocation108_spill] sm:$0xff] }
0x27bf   :  { %v13120_v5 = vpop.eup %13119  ;;  %12122 = vmatmul.mubr.msk.f32.vlgmr.msra.gmra.mrb[80].mxu0 %vm890_vm0, %v9365_v18  ;;  %v9367_v36 = vmul.f32 %v13118_v23, %v13102_v24 }
0x27c0   :  { %v9366_v28 = vmul.f32 %v13120_v5, %v13104_v37  ;;  %12142 = vmatpush3.msra.mxu0 %v671_v42 }
0x27c2   :  { %v13122_v61 = vpop.eup %13121  ;;  %12124 = vmatprep.mubr.msk.f32.mxu0 %vm890_vm0, %v9366_v28 }
0x27c3   :  { %v13124_v39 = vpop.eup %13123  ;;  %12125 = vmatmul.mubr.msk.f32.gmra.mrb[82].mxu0 %vm890_vm0, %v9367_v36  ;;  %v9369_v13 = vmul.f32 %v13122_v61, %v13106_v47 }
0x27c4   :  { %v9368_v7 = vmul.f32 %v13124_v39, %v13108_v43 }
0x27c6   :  { %v13126_v22 = vpop.eup %13125  ;;  %12135 = vmatprep.mubr.msk.f32.mxu1 %vm890_vm0, %v9368_v7 }
0x27c7   :  { %v13128_v10 = vpop.eup %13127  ;;  %12136 = vmatmul.mubr.msk.f32.vlgmr.msra.gmra.mrb[92].mxu1 %vm890_vm0, %v9369_v13  ;;  %v9371_v58 = vmul.f32 %v13126_v22, %v13110_v33  ;;  %v675_v13 = vld [vmem:[%s16608_s15] sm:$0xff] }
0x27c8   :  { %v9370_v57 = vmul.f32 %v13128_v10, %v13112_v41  ;;  %12155 = vmatprep.subr.mxu1 %v675_v13  ;;  %v677_v22 = vld [vmem:[%s16610_s14] sm:$0xff]  ;;  %v678_v10 = vld [vmem:[%s16610_s14 + $0x8] sm:$0xff] }
0x27c9   :  { %12156 = vmatpush3.msra.mxu1 %v675_v13 }
0x27ca   :  { %12138 = vmatprep.mubr.msk.f32.mxu1 %vm890_vm0, %v9370_v57  ;;  %v679_v57 = vld [vmem:[%s16610_s14 + $0x10] sm:$0xff] }
0x27cb   :  { %12139 = vmatmul.mubr.msk.f32.gmra.mrb[94].mxu1 %vm890_vm0, %v9371_v58  ;;  %v12605_v58 = vpack.c.bf16 %v678_v10, %v677_v22 }
0x27cd   :  { %12606 = vmatprep.subr.bf16.mxu0 %v12605_v58 }
0x2892   :  { %v12123_v46 = vpop.f32.mrb[80].mxu0 }
0x2893   :  { %v9458_v62 = vpop.f32.mrb[81].mxu0 }
0x2894   :  { %12143 = vmatprep.mubr.msk.f32.mxu0 %vm1307_vm6, %v9458_v62 }
0x2895   :  { %12144 = vmatmul.mubr.msk.f32.vlgmr.msra.gmra.mrb[92].mxu0 %vm1307_vm6, %v12123_v46  ;;  %v680_v46 = vld [vmem:[%s16610_s14 + $0x18] sm:$0xff] }
0x2896   :  { %v12126_v63 = vpop.f32.mrb[82].mxu0  ;;  %v12609_v62 = vpack.c.bf16 %v680_v46, %v679_v57  ;;  %12608 = vmatpush3.bf16.msra.mxu0 %v12605_v58 }
0x2897   :  { %v9468_v40 = vpop.f32.mrb[83].mxu0 }
0x2898   :  { %12146 = vmatprep.mubr.msk.f32.mxu0 %vm1307_vm6, %v9468_v40  ;;  %v682_v40 = vld [vmem:[%s16610_s14 + $0x28] sm:$0xff]  ;;  %12610 = vmatprep.subr.bf16.mxu0 %v12609_v62 }
0x2899   :  { %12147 = vmatmul.mubr.msk.f32.gmra.mrb[94].mxu0 %vm1307_vm6, %v12126_v63  ;;  %v681_v63 = vld [vmem:[%s16610_s14 + $0x20] sm:$0xff] }
0x289a   :  { %v12137_v49 = vpop.f32.mrb[92].mxu1  ;;  %12612 = vmatpush3.bf16.msra.mxu0 %v12609_v62 }
0x289b   :  { %v9555_v59 = vpop.f32.mrb[93].mxu1 }
0x289c   :  { %12149 = vmatprep.mubr.msk.f32.mxu0 %vm1307_vm6, %v9555_v59 }
0x289d   :  { %12150 = vmatmul.mubr.msk.f32.gmra.mrb[96].mxu0 %vm1307_vm6, %v12137_v49  ;;  %v12613_v49 = vpack.c.bf16 %v682_v40, %v681_v63 }
0x289e   :  { %v12140_v6 = vpop.f32.mrb[94].mxu1 }
0x289f   :  { %v9565_v15 = vpop.f32.mrb[95].mxu1  ;;  %12614 = vmatprep.subr.bf16.mxu0 %v12613_v49 }
0x28a0   :  { %12152 = vmatprep.mubr.msk.f32.mxu0 %vm1307_vm6, %v9565_v15  ;;  %12616 = vmatpush3.bf16.msra.mxu0 %v12613_v49 }
0x28a1   :  { %12153 = vmatmul.mubr.msk.f32.gmra.mrb[98].mxu0 %vm1307_vm6, %v12140_v6 }
0x2968   :  { %v12145_v53 = vpop.f32.mrb[92].mxu0 }
0x2969   :  { %v9684_v1 = vadd.f32 %v12145_v53, %v10805_v51  ;;  %v9678_v4 = vpop.f32.mrb[93].mxu0 }
0x296a   :  { %v9679_v9 = vadd.f32 %v10805_v51, %v9678_v4 }
0x296b   :  { %v16193_v32 = vadd.f32 %v9684_v1, %v15578_v17 }
0x296c   :  { %v16196_v20 = vadd.f32 %v9679_v9, %v15573_v56  ;;  %v12148_v54 = vpop.f32.mrb[94].mxu0 }
0x296d   :  { %v9694_v3 = vadd.f32 %v12148_v54, %v10805_v51  ;;  %v9688_v14 = vpop.f32.mrb[95].mxu0  ;;  %v9728_v0 = vsel %vm1307_vm6, %v16193_v32, 0.0  ;;  %v9758_v25 = vmul.f32 %v16193_v32, %v16193_v32 }
0x296e   :  { %v9689_v52 = vadd.f32 %v10805_v51, %v9688_v14  ;;  %9729 = vadd.xlane.f32.xlu1 %v9728_v0  ;;  %v9725_v24 = vsel %vm1307_vm6, %v16196_v20, 0.0  ;;  %v9757_v17 = vmul.f32 %v16196_v20, %v16196_v20 }
0x296f   :  { %9726 = vadd.xlane.f32.xlu0 %v9725_v24  ;;  %v16207_v37 = vadd.f32 %v9694_v3, %v15599_v16  ;;  %v9768_v38 = vsel %vm1307_vm6, %v9758_v25, 0.0 }
0x2970   :  { %v12151_v56 = vpop.f32.mrb[96].mxu0  ;;  %v16211_v47 = vadd.f32 %v9689_v52, %v15594_v45  ;;  %v9765_v43 = vsel %vm1307_vm6, %v9757_v17, 0.0 }
0x2971   :  { %v9698_v27 = vpop.f32.mrb[97].mxu0  ;;  %v9704_v34 = vadd.f32 %v12151_v56, %v10805_v51  ;;  %v9734_v41 = vsel %vm1307_vm6, %v16207_v37, 0.0  ;;  %v9760_v16 = vmul.f32 %v16207_v37, %v16207_v37 }
0x2972   :  { %9769 = vadd.xlane.f32.xlu1 %v9768_v38  ;;  %v9699_v11 = vadd.f32 %v10805_v51, %v9698_v27  ;;  %v9731_v60 = vsel %vm1307_vm6, %v16211_v47, 0.0  ;;  %v9759_v45 = vmul.f32 %v16211_v47, %v16211_v47 }
0x2973   :  { %9766 = vadd.xlane.f32.xlu0 %v9765_v43  ;;  %v16223_v42 = vadd.f32 %v9704_v34, %v15618_v2  ;;  %v9774_v21 = vsel %vm1307_vm6, %v9760_v16, 0.0 }
0x2974   :  { %v12154_v12 = vpop.f32.mrb[98].mxu0  ;;  %v16227_v8 = vadd.f32 %v9699_v11, %v15614_v50  ;;  %v9771_v35 = vsel %vm1307_vm6, %v9759_v45, 0.0 }
0x2975   :  { %v9708_v33 = vpop.f32.mrb[99].mxu0  ;;  %v9714_v30 = vadd.f32 %v12154_v12, %v10805_v51  ;;  %v9740_v19 = vsel %vm1307_vm6, %v16223_v42, 0.0  ;;  %v9762_v55 = vmul.f32 %v16223_v42, %v16223_v42 }
0x2976   :  { %9735 = vadd.xlane.f32.xlu1 %v9734_v41  ;;  %v9709_v31 = vadd.f32 %v10805_v51, %v9708_v33  ;;  %v9737_v2 = vsel %vm1307_vm6, %v16227_v8, 0.0  ;;  %v9761_v50 = vmul.f32 %v16227_v8, %v16227_v8 }
0x2977   :  { %9732 = vadd.xlane.f32.xlu0 %v9731_v60  ;;  %v16239_v29 = vadd.f32 %v9714_v30, %v16607_v44  ;;  %v9780_v48 = vsel %vm1307_vm6, %v9762_v55, 0.0  ;;  %v16274_v44 = vld [vmem:[%s16611_s17] ss:$0 sm:$0xff] }
0x2978   :  { %v16243_v18 = vadd.f32 %v9709_v31, %v16609_v26  ;;  %v9777_v23 = vsel %vm1307_vm6, %v9761_v50, 0.0 }
0x2979   :  { %v9746_v5 = vsel %vm1307_vm6, %v16239_v29, 0.0  ;;  %v9764_v28 = vmul.f32 %v16239_v29, %v16239_v29 }
0x297a   :  { %9775 = vadd.xlane.f32.xlu1 %v9774_v21  ;;  %v9743_v36 = vsel %vm1307_vm6, %v16243_v18, 0.0  ;;  %v9763_v61 = vmul.f32 %v16243_v18, %v16243_v18 }
0x297b   :  { %9772 = vadd.xlane.f32.xlu0 %v9771_v35  ;;  %v9786_v39 = vsel %vm1307_vm6, %v9764_v28, 0.0 }
0x297c   :  { %v9783_v7 = vsel %vm1307_vm6, %v9763_v61, 0.0 }
0x297e   :  { %9741 = vadd.xlane.f32.xlu1 %v9740_v19 }
0x297f   :  { %9738 = vadd.xlane.f32.xlu0 %v9737_v2 }
0x2982   :  { %9781 = vadd.xlane.f32.xlu1 %v9780_v48 }
0x2983   :  { %9778 = vadd.xlane.f32.xlu0 %v9777_v23 }
0x2986   :  { %9747 = vadd.xlane.f32.xlu1 %v9746_v5 }
0x2987   :  { %9744 = vadd.xlane.f32.xlu0 %v9743_v36 }
0x298a   :  { %9787 = vadd.xlane.f32.xlu1 %v9786_v39 }
0x298b   :  { %9784 = vadd.xlane.f32.xlu0 %v9783_v7 }
0x29fb   :  { %v9730_v59 = vpop.xlane.xlu1 %9729 }
0x29fc   :  { %v9750_v6 = vmul.f32 0.125, %v9730_v59  ;;  %v9727_v15 = vpop.xlane.xlu0 %9726 }
0x29fd   :  { %v9749_v51 = vmul.f32 0.125, %v9727_v15 }
0x29fe   :  { %v9798_v1 = vmul.f32 %v9750_v6, %v9750_v6  ;;  %v9814_v55 = vsub.f32 %v16193_v32, %v9750_v6 }
0x29ff   :  { %v9770_v53 = vpop.xlane.xlu1 %9769  ;;  %v9797_v54 = vmul.f32 %v9749_v51, %v9749_v51  ;;  %v9813_v50 = vsub.f32 %v16196_v20, %v9749_v51  ;;  %v10815_v20 = vld [vmem:[%s16612_s16] ss:$0 sm:$0xff] }
0x2a00   :  { %v9790_v4 = vmul.f32 0.125, %v9770_v53  ;;  %v9767_v9 = vpop.xlane.xlu0 %9766 }
0x2a01   :  { %v9789_v3 = vmul.f32 0.125, %v9767_v9 }
0x2a02   :  { %v9806_v14 = vsub.f32 %v9790_v4, %v9798_v1 }
0x2a03   :  { %v9805_v0 = vsub.f32 %v9789_v3, %v9797_v54  ;;  %v9736_v25 = vpop.xlane.xlu1 %9735 }
0x2a04   :  { %v9822_v52 = vadd.f32 1e-05, %v9806_v14  ;;  %v16263_v24 = vmul.f32 0.125, %v9736_v25  ;;  %v9733_v17 = vpop.xlane.xlu0 %9732 }
0x2a05   :  { %v9821_v56 = vadd.f32 1e-05, %v9805_v0  ;;  %v9751_v27 = vmul.f32 0.125, %v9733_v17 }
0x2a06   :  { %13129 = vrsqrt.f32 %v9822_v52  ;;  %v9800_v43 = vmul.f32 %v16263_v24, %v16263_v24  ;;  %v9816_v49 = vsub.f32 %v16207_v37, %v16263_v24 }
0x2a07   :  { %13131 = vrsqrt.f32 %v9821_v56  ;;  %v9776_v38 = vpop.xlane.xlu1 %9775  ;;  %v9799_v33 = vmul.f32 %v9751_v27, %v9751_v27  ;;  %v9815_v51 = vsub.f32 %v16211_v47, %v9751_v27 }
0x2a08   :  { %v9792_v12 = vmul.f32 0.125, %v9776_v38  ;;  %v9773_v34 = vpop.xlane.xlu0 %9772 }
0x2a09   :  { %v9791_v41 = vmul.f32 0.125, %v9773_v34 }
0x2a0a   :  { %v9808_v16 = vsub.f32 %v9792_v12, %v9800_v43 }
0x2a0b   :  { %v9807_v11 = vsub.f32 %v9791_v41, %v9799_v33  ;;  %v9742_v60 = vpop.xlane.xlu1 %9741 }
0x2a0c   :  { %v9824_v45 = vadd.f32 1e-05, %v9808_v16  ;;  %v16267_v21 = vmul.f32 0.125, %v9742_v60  ;;  %v9739_v35 = vpop.xlane.xlu0 %9738 }
0x2a0d   :  { %v9823_v30 = vadd.f32 1e-05, %v9807_v11  ;;  %v16269_v19 = vmul.f32 0.125, %v9739_v35 }
0x2a0e   :  { %13133 = vrsqrt.f32 %v9824_v45  ;;  %v9802_v48 = vmul.f32 %v16267_v21, %v16267_v21  ;;  %v9818_v27 = vsub.f32 %v16223_v42, %v16267_v21 }
0x2a0f   :  { %13135 = vrsqrt.f32 %v9823_v30  ;;  %v9782_v31 = vpop.xlane.xlu1 %9781  ;;  %v9801_v36 = vmul.f32 %v16269_v19, %v16269_v19  ;;  %v9817_v12 = vsub.f32 %v16227_v8, %v16269_v19 }
0x2a10   :  { %v13130_v2 = vpop.eup %13129  ;;  %v9794_v26 = vmul.f32 0.125, %v9782_v31  ;;  %v9779_v23 = vpop.xlane.xlu0 %9778 }
0x2a11   :  { %v13132_v5 = vpop.eup %13131  ;;  %v9838_v28 = vmul.f32 %v13130_v2, %v9814_v55  ;;  %v9793_v61 = vmul.f32 0.125, %v9779_v23 }
0x2a12   :  { %v9810_v32 = vsub.f32 %v9794_v26, %v9802_v48  ;;  %v9837_v39 = vmul.f32 %v13132_v5, %v9813_v50  ;;  %v684_v50 = vld [vmem:[%s16610_s14 + $0x38] sm:$0xff]  ;;  %v10816_v26 = vld [vmem:[%s16613_s18] ss:$0 sm:$0xff] }
0x2a13   :  { %v9852_v7 = vmul.f32 %v16274_v44, %v9838_v28  ;;  %v9809_v13 = vsub.f32 %v9793_v61, %v9801_v36  ;;  %v9748_v22 = vpop.xlane.xlu1 %9747 }
0x2a14   :  { %v9826_v10 = vadd.f32 1e-05, %v9810_v32  ;;  %v9756_v57 = vmul.f32 0.125, %v9748_v22  ;;  %v9745_v58 = vpop.xlane.xlu0 %9744  ;;  %v9851_v46 = vmul.f32 %v16274_v44, %v9837_v39 }
0x2a15   :  { %v9825_v62 = vadd.f32 1e-05, %v9809_v13  ;;  %v9755_v63 = vmul.f32 0.125, %v9745_v58  ;;  %v16287_v6 = vadd.f32 %v10815_v20, %v9852_v7 }
0x2a16   :  { %13137 = vrsqrt.f32 %v9826_v10  ;;  %v16283_v40 = vadd.f32 %v10815_v20, %v9851_v46  ;;  %v9804_v53 = vmul.f32 %v9756_v57, %v9756_v57  ;;  %v9820_v60 = vsub.f32 %v16239_v29, %v9756_v57 }
0x2a17   :  { %13139 = vrsqrt.f32 %v9825_v62  ;;  %v9788_v59 = vpop.xlane.xlu1 %9787  ;;  %v9803_v54 = vmul.f32 %v9755_v63, %v9755_v63  ;;  %v9819_v21 = vsub.f32 %v16243_v18, %v9755_v63  ;;  %v683_v18 = vld [vmem:[%s16610_s14 + $0x30] sm:$0xff] }
0x2a18   :  { %v13134_v15 = vpop.eup %13133  ;;  %v9796_v1 = vmul.f32 0.125, %v9788_v59  ;;  %12157 = vmatprep.mubr.msk.f32.mxu1 %vm1307_vm6, %v16283_v40  ;;  %v9785_v4 = vpop.xlane.xlu0 %9784  ;;  %v12617_v48 = vpack.c.bf16 %v684_v50, %v683_v18  ;;  %v16614_v18 = vld [vmem:[#allocation115_spill] sm:$0xff] }
0x2a19   :  { %v13136_v9 = vpop.eup %13135  ;;  %v9795_v3 = vmul.f32 0.125, %v9785_v4  ;;  %12158 = vmatmul.mubr.msk.f32.vlgmr.msra.gmra.mrb[104].mxu1 %vm1307_vm6, %v16287_v6  ;;  %v9840_v37 = vmul.f32 %v13134_v15, %v9816_v49  ;;  %v10825_v4 = vld [vmem:[%s14238_s21] ss:$0 sm:$0xff] }
0x2a1a   :  { %v9812_v14 = vsub.f32 %v9796_v1, %v9804_v53  ;;  %v9839_v0 = vmul.f32 %v13136_v9, %v9815_v51  ;;  %12618 = vmatprep.subr.bf16.mxu0 %v12617_v48 }
0x2a1b   :  { %v9811_v25 = vsub.f32 %v9795_v3, %v9803_v54  ;;  %v9854_v52 = vmul.f32 %v16274_v44, %v9840_v37  ;;  %12620 = vmatpush3.bf16.msra.mxu0 %v12617_v48 }
0x2a1c   :  { %v9828_v24 = vadd.f32 1e-05, %v9812_v14  ;;  %v9853_v47 = vmul.f32 %v16274_v44, %v9839_v0 }
0x2a1d   :  { %v9827_v17 = vadd.f32 1e-05, %v9811_v25  ;;  %v16300_v38 = vadd.f32 %v10815_v20, %v9854_v52 }
0x2a1e   :  { %13141 = vrsqrt.f32 %v9828_v24  ;;  %v16296_v56 = vadd.f32 %v10815_v20, %v9853_v47 }
0x2a1f   :  { %13143 = vrsqrt.f32 %v9827_v17 }
0x2a20   :  { %v13138_v43 = vpop.eup %13137  ;;  %12160 = vmatprep.mubr.msk.f32.mxu1 %vm1307_vm6, %v16296_v56 }
0x2a21   :  { %v13140_v34 = vpop.eup %13139  ;;  %12161 = vmatmul.mubr.msk.f32.gmra.mrb[106].mxu1 %vm1307_vm6, %v16300_v38  ;;  %v9842_v33 = vmul.f32 %v13138_v43, %v9818_v27 }
0x2a22   :  { %v9841_v41 = vmul.f32 %v13140_v34, %v9817_v12 }
0x2a23   :  { %v9856_v16 = vmul.f32 %v16274_v44, %v9842_v33 }
0x2a24   :  { %v9855_v42 = vmul.f32 %v16274_v44, %v9841_v41 }
0x2a25   :  { %v16313_v8 = vadd.f32 %v10815_v20, %v9856_v16 }
0x2a26   :  { %v16310_v11 = vadd.f32 %v10815_v20, %v9855_v42 }
0x2a28   :  { %v13142_v45 = vpop.eup %13141  ;;  %12163 = vmatprep.mubr.msk.f32.mxu1 %vm1307_vm6, %v16310_v11 }
0x2a29   :  { %v13144_v35 = vpop.eup %13143  ;;  %12164 = vmatmul.mubr.msk.f32.gmra.mrb[108].mxu1 %vm1307_vm6, %v16313_v8  ;;  %v9844_v30 = vmul.f32 %v13142_v45, %v9820_v60 }
0x2a2a   :  { %v9843_v19 = vmul.f32 %v13144_v35, %v9819_v21 }
0x2a2b   :  { %v9858_v55 = vmul.f32 %v16274_v44, %v9844_v30 }
0x2a2c   :  { %v9857_v29 = vmul.f32 %v16274_v44, %v9843_v19  ;;  %v10543_v19 = vld [vmem:[#allocation35] ss:$0 sm:$0xff] }
0x2a2d   :  { %v16324_v2 = vadd.f32 %v10815_v20, %v9858_v55  ;;  %v4430_v50 = vadd.f32 %v10543_v19, %v16614_v18 }
0x2a2e   :  { %v16322_v31 = vadd.f32 %v10815_v20, %v9857_v29 }
0x2a30   :  { %12166 = vmatprep.mubr.msk.f32.mxu1 %vm1307_vm6, %v16322_v31 }
0x2a31   :  { %12167 = vmatmul.mubr.msk.f32.gmra.mrb[110].mxu1 %vm1307_vm6, %v16324_v2 }
0x2aec   :  { %v12159_v23 = vpop.f32.mrb[104].mxu1 }
0x2aed   :  { %v9975_v5 = vadd.f32 %v12159_v23, %v10816_v26  ;;  %v9969_v28 = vpop.f32.mrb[105].mxu1 }
0x2aee   :  { %v9970_v44 = vadd.f32 %v10816_v26, %v9969_v28 }
0x2aef   :  { %v10009_v61 = vmax.f32 %v9975_v5, 0.0 }
0x2af0   :  { %v10008_v36 = vmax.f32 %v9970_v44, 0.0  ;;  %v16615_v44 = vld [vmem:[#allocation105_spill] sm:$0xff] }
0x2af2   :  { %12185 = vmatprep.mubr.msk.f32.mxu0 %vm4356_vm13, %v10008_v36  ;;  %v16390_v36 = vadd.f32 %v4430_v50, %v16615_v44 }
0x2af3   :  { %12186 = vmatmul.mubr.msk.f32.vlgmr.msra.gmra.mrb[100].mxu0 %vm4356_vm13, %v10009_v61 }
0x2af4   :  { %v12162_v32 = vpop.f32.mrb[106].mxu1 }
0x2af5   :  { %v9985_v39 = vadd.f32 %v12162_v32, %v10816_v26  ;;  %v9979_v7 = vpop.f32.mrb[107].mxu1 }
0x2af6   :  { %v9980_v13 = vadd.f32 %v10816_v26, %v9979_v7 }
0x2af7   :  { %v10011_v20 = vmax.f32 %v9985_v39, 0.0 }
0x2af8   :  { %v10010_v22 = vmax.f32 %v9980_v13, 0.0 }
0x2afa   :  { %12188 = vmatprep.mubr.msk.f32.mxu0 %vm4356_vm13, %v10010_v22  ;;  %v4440_v22 = vsel %vm890_vm0, %v16390_v36, 0.0 }
0x2afb   :  { %12189 = vmatmul.mubr.msk.f32.gmra.mrb[102].mxu0 %vm4356_vm13, %v10011_v20 }
0x2afc   :  { %v12165_v10 = vpop.f32.mrb[108].mxu1 }
0x2afd   :  { %v9995_v57 = vadd.f32 %v12165_v10, %v10816_v26  ;;  %v9989_v58 = vpop.f32.mrb[109].mxu1 }
0x2afe   :  { %v9990_v46 = vadd.f32 %v10816_v26, %v9989_v58  ;;  %v16616_v58 = vld [vmem:[#allocation114_spill] sm:$0xff] }
0x2aff   :  { %v10013_v63 = vmax.f32 %v9995_v57, 0.0 }
0x2b00   :  { %v10012_v62 = vmax.f32 %v9990_v46, 0.0  ;;  %v4435_v46 = vadd.f32 %v16616_v58, %v10543_v19 }
0x2b02   :  { %12191 = vmatprep.mubr.msk.f32.mxu0 %vm4356_vm13, %v10012_v62 }
0x2b03   :  { %12192 = vmatmul.mubr.msk.f32.gmra.mrb[104].mxu0 %vm4356_vm13, %v10013_v63 }
0x2b04   :  { %v12168_v49 = vpop.f32.mrb[110].mxu1 }
0x2b05   :  { %v10005_v59 = vadd.f32 %v12168_v49, %v10816_v26  ;;  %v9999_v15 = vpop.f32.mrb[111].mxu1  ;;  %v16617_v49 = vld [vmem:[#allocation106_spill] sm:$0xff] }
0x2b06   :  { %v10000_v51 = vadd.f32 %v10816_v26, %v9999_v15 }
0x2b07   :  { %v10015_v1 = vmax.f32 %v10005_v59, 0.0  ;;  %v16416_v59 = vadd.f32 %v4435_v46, %v16617_v49  ;;  %v16435_v46 = vld [vmem:[%s14243_s13] ss:$0 sm:$0xff] }
0x2b08   :  { %v10014_v53 = vmax.f32 %v10000_v51, 0.0  ;;  %v10835_v49 = vld [vmem:[%s14248_s5] ss:$0 sm:$0xff]  ;;  %s13954_s5 = smov [#allocation47]  }
0x2b09   :  { %v4443_v51 = vsel %vm890_vm0, %v16416_v59, 0.0  ;;  %s10380_s13 = sshll.u32 %s13954_s5, 4  ;;  %s10381_s13 = int_to_ptr.vmem [resolvable:$true] %s10380_s13 }
0x2b0a   :  { %12194 = vmatprep.mubr.msk.f32.mxu0 %vm4356_vm13, %v10014_v53  ;;  %v4449_v53 = vmul.f32 %v16416_v59, %v16416_v59  ;;  %s13809_s21 = scalar_lea.vmem %s10381_s13, 256  ;;  %p13814_p9 = scmp.lt.s32.totalorder %s10381_s13, %s10381_s13 }
0x2b0b   :  { %12195 = vmatmul.mubr.msk.f32.gmra.mrb[106].mxu0 %vm4356_vm13, %v10015_v1  ;;  %p13810_p8 = scmp.ne.s32.totalorder %s10381_s13, %s13809_s21  ;;  %p13815_p10 = scmp.lt.s32.totalorder %s13809_s21, %s13809_s21 }
0x2b0c   :  { %v4453_v1 = vsel %vm890_vm0, %v4449_v53, 0.0 }
0x2b0d   :  { %p13816_p11 = por %p13815_p10, %p13814_p9 }
0x2b0f   :  { %p13817_p12 = pnand %p13816_p11, %p13810_p8 }
0x2bc6   :  { %v12187_v9 = vpop.f32.mrb[100].mxu0 }
0x2bc7   :  { %v10118_v54 = vadd.f32 %v12187_v9, %v10825_v4  ;;  %v10112_v3 = vpop.f32.mrb[101].mxu0 }
0x2bc8   :  { %v10113_v37 = vadd.f32 %v10825_v4, %v10112_v3 }
0x2bc9   :  { %v16343_v14 = vadd.f32 %v10118_v54, %v16287_v6 }
0x2bca   :  { %v16346_v0 = vadd.f32 %v10113_v37, %v16283_v40 }
0x2bcb   :  { %v10162_v25 = vsel %vm1307_vm6, %v16343_v14, 0.0  ;;  %v10192_v17 = vmul.f32 %v16343_v14, %v16343_v14 }
0x2bcc   :  { %10163 = vadd.xlane.f32.xlu0 %v10162_v25  ;;  %v10159_v47 = vsel %vm1307_vm6, %v16346_v0, 0.0  ;;  %v10191_v40 = vmul.f32 %v16346_v0, %v16346_v0 }
0x2bcd   :  { %v10202_v6 = vsel %vm1307_vm6, %v10192_v17, 0.0 }
0x2bce   :  { %v12190_v52 = vpop.f32.mrb[102].mxu0  ;;  %v10199_v16 = vsel %vm1307_vm6, %v10191_v40, 0.0 }
0x2bcf   :  { %v10122_v24 = vpop.f32.mrb[103].mxu0  ;;  %v10128_v27 = vadd.f32 %v12190_v52, %v10825_v4 }
0x2bd0   :  { %10160 = vadd.xlane.f32.xlu0 %v10159_v47  ;;  %v10123_v34 = vadd.f32 %v10825_v4, %v10122_v24 }
0x2bd1   :  { %v16358_v12 = vadd.f32 %v10128_v27, %v16300_v38 }
0x2bd2   :  { %v16365_v45 = vadd.f32 %v10123_v34, %v16296_v56 }
0x2bd3   :  { %v10168_v38 = vsel %vm1307_vm6, %v16358_v12, 0.0  ;;  %v10194_v48 = vmul.f32 %v16358_v12, %v16358_v12 }
0x2bd4   :  { %10203 = vadd.xlane.f32.xlu0 %v10202_v6 }
0x2bd5   :  { %v10208_v39 = vsel %vm1307_vm6, %v10194_v48, 0.0 }
0x2bd6   :  { %v12193_v43 = vpop.f32.mrb[104].mxu0 }
0x2bd7   :  { %v10138_v33 = vadd.f32 %v12193_v43, %v10825_v4  ;;  %v10132_v41 = vpop.f32.mrb[105].mxu0 }
0x2bd8   :  { %v10133_v42 = vadd.f32 %v10825_v4, %v10132_v41  ;;  %10200 = vadd.xlane.f32.xlu0 %v10199_v16 }
0x2bd9   :  { %v16362_v60 = vadd.f32 %v10138_v33, %v16313_v8  ;;  %v10165_v8 = vsel %vm1307_vm6, %v16365_v45, 0.0 }
0x2bda   :  { %v16368_v21 = vadd.f32 %v10133_v42, %v16310_v11  ;;  %v10193_v11 = vmul.f32 %v16365_v45, %v16365_v45 }
0x2bdb   :  { %v10174_v35 = vsel %vm1307_vm6, %v16362_v60, 0.0  ;;  %v10196_v29 = vmul.f32 %v16362_v60, %v16362_v60 }
0x2bdc   :  { %10169 = vadd.xlane.f32.xlu0 %v10168_v38  ;;  %10175 = vadd.xlane.f32.xlu1 %v10174_v35  ;;  %v10171_v56 = vsel %vm1307_vm6, %v16368_v21, 0.0  ;;  %v10205_v23 = vsel %vm1307_vm6, %v10193_v11, 0.0  ;;  %v10195_v28 = vmul.f32 %v16368_v21, %v16368_v21 }
0x2bdd   :  { %v10214_v5 = vsel %vm1307_vm6, %v10196_v29, 0.0 }
0x2bde   :  { %v12196_v30 = vpop.f32.mrb[106].mxu0  ;;  %v10211_v7 = vsel %vm1307_vm6, %v10195_v28, 0.0 }
0x2bdf   :  { %v10142_v55 = vpop.f32.mrb[107].mxu0  ;;  %v10148_v26 = vadd.f32 %v12196_v30, %v10825_v4 }
0x2be0   :  { %10166 = vadd.xlane.f32.xlu0 %v10165_v8  ;;  %10172 = vadd.xlane.f32.xlu1 %v10171_v56  ;;  %v10143_v32 = vadd.f32 %v10825_v4, %v10142_v55 }
0x2be1   :  { %v16393_v61 = vadd.f32 %v10148_v26, %v16324_v2  ;;  %v4448_v2 = vmul.f32 %v16390_v36, %v16390_v36 }
0x2be2   :  { %v16398_v13 = vadd.f32 %v10143_v32, %v16322_v31 }
0x2be3   :  { %v10180_v20 = vsel %vm1307_vm6, %v16393_v61, 0.0  ;;  %v4450_v10 = vsel %vm890_vm0, %v4448_v2, 0.0  ;;  %v10198_v63 = vmul.f32 %v16393_v61, %v16393_v61 }
0x2be4   :  { %10206 = vadd.xlane.f32.xlu0 %v10205_v23  ;;  %10215 = vadd.xlane.f32.xlu1 %v10214_v5  ;;  %v10177_v57 = vsel %vm1307_vm6, %v16398_v13, 0.0  ;;  %v10197_v31 = vmul.f32 %v16398_v13, %v16398_v13 }
0x2be5   :  { %v10220_v15 = vsel %vm1307_vm6, %v10198_v63, 0.0 }
0x2be6   :  { %v10217_v62 = vsel %vm1307_vm6, %v10197_v31, 0.0 }
0x2be8   :  { %10209 = vadd.xlane.f32.xlu0 %v10208_v39  ;;  %10212 = vadd.xlane.f32.xlu1 %v10211_v7 }
0x2bec   :  { %4441 = vadd.xlane.f32.xlu0 %v4440_v22  ;;  %10181 = vadd.xlane.f32.xlu1 %v10180_v20 }
0x2bf0   :  { %4451 = vadd.xlane.f32.xlu0 %v4450_v10  ;;  %10178 = vadd.xlane.f32.xlu1 %v10177_v57 }
0x2bf4   :  { %10218 = vadd.xlane.f32.xlu1 %v10217_v62 }
0x2bf8   :  { %10221 = vadd.xlane.f32.xlu1 %v10220_v15 }
0x2bfc   :  { %4444 = vadd.xlane.f32.xlu1 %v4443_v51 }
0x2c00   :  { %4454 = vadd.xlane.f32.xlu1 %v4453_v1 }
0x2c59   :  { %v10164_v4 = vpop.xlane.xlu0 %10163 }
0x2c5a   :  { %v10184_v54 = vmul.f32 0.125, %v10164_v4 }
0x2c5c   :  { %v10232_v37 = vmul.f32 %v10184_v54, %v10184_v54  ;;  %v10248_v26 = vsub.f32 %v16343_v14, %v10184_v54 }
0x2c5d   :  { %v10161_v9 = vpop.xlane.xlu0 %10160 }
0x2c5e   :  { %v10183_v25 = vmul.f32 0.125, %v10161_v9 }
0x2c60   :  { %v10231_v17 = vmul.f32 %v10183_v25, %v10183_v25  ;;  %v10247_v23 = vsub.f32 %v16346_v0, %v10183_v25 }
0x2c61   :  { %v10204_v3 = vpop.xlane.xlu0 %10203 }
0x2c62   :  { %v10224_v52 = vmul.f32 0.125, %v10204_v3 }
0x2c64   :  { %v10240_v24 = vsub.f32 %v10224_v52, %v10232_v37 }
0x2c65   :  { %v10201_v47 = vpop.xlane.xlu0 %10200 }
0x2c66   :  { %v10256_v27 = vadd.f32 1e-05, %v10240_v24  ;;  %v10223_v6 = vmul.f32 0.125, %v10201_v47 }
0x2c68   :  { %v10239_v40 = vsub.f32 %v10223_v6, %v10231_v17  ;;  %13145 = vrsqrt.f32 %v10256_v27 }
0x2c69   :  { %v10176_v43 = vpop.xlane.xlu1 %10175  ;;  %v10170_v34 = vpop.xlane.xlu0 %10169 }
0x2c6a   :  { %v10255_v33 = vadd.f32 1e-05, %v10239_v40  ;;  %v16424_v42 = vmul.f32 0.125, %v10176_v43  ;;  %v16426_v35 = vmul.f32 0.125, %v10170_v34 }
0x2c6c   :  { %13147 = vrsqrt.f32 %v10255_v33  ;;  %v10236_v8 = vmul.f32 %v16424_v42, %v16424_v42  ;;  %v10234_v5 = vmul.f32 %v16426_v35, %v16426_v35  ;;  %v10252_v27 = vsub.f32 %v16362_v60, %v16424_v42 }
0x2c6d   :  { %v10173_v41 = vpop.xlane.xlu1 %10172  ;;  %v10167_v16 = vpop.xlane.xlu0 %10166  ;;  %v10250_v6 = vsub.f32 %v16358_v12, %v16426_v35 }
0x2c6e   :  { %v10185_v38 = vmul.f32 0.125, %v10167_v16  ;;  %v10187_v30 = vmul.f32 0.125, %v10173_v41 }
0x2c70   :  { %v10233_v56 = vmul.f32 %v10185_v38, %v10185_v38  ;;  %v10235_v28 = vmul.f32 %v10187_v30, %v10187_v30  ;;  %v10249_v54 = vsub.f32 %v16365_v45, %v10185_v38  ;;  %v10251_v40 = vsub.f32 %v16368_v21, %v10187_v30 }
0x2c71   :  { %v10216_v19 = vpop.xlane.xlu1 %10215  ;;  %v10207_v55 = vpop.xlane.xlu0 %10206 }
0x2c72   :  { %v10228_v11 = vmul.f32 0.125, %v10216_v19  ;;  %v10225_v29 = vmul.f32 0.125, %v10207_v55  ;;  %v13146_v18 = vpop.eup %13145 }
0x2c73   :  { %v10272_v57 = vmul.f32 %v13146_v18, %v10248_v26 }
0x2c74   :  { %v10244_v50 = vsub.f32 %v10228_v11, %v10236_v8  ;;  %v10241_v48 = vsub.f32 %v10225_v29, %v10233_v56 }
0x2c75   :  { %v10213_v44 = vpop.xlane.xlu1 %10212  ;;  %v10210_v32 = vpop.xlane.xlu0 %10209  ;;  %v10286_v51 = vmul.f32 %v16435_v46, %v10272_v57 }
0x2c76   :  { %v13148_v39 = vpop.eup %13147  ;;  %v10260_v7 = vadd.f32 1e-05, %v10244_v50  ;;  %v10257_v22 = vadd.f32 1e-05, %v10241_v48  ;;  %v10227_v20 = vmul.f32 0.125, %v10213_v44  ;;  %v10226_v2 = vmul.f32 0.125, %v10210_v32 }
0x2c77   :  { %v10271_v10 = vmul.f32 %v13148_v39, %v10247_v23  ;;  %v10300_v4 = vadd.f32 %v10835_v49, %v10286_v51  ;;  %v10546_v51 = vld [vmem:[#allocation37] ss:$0 sm:$0xff] }
0x2c78   :  { %v10243_v31 = vsub.f32 %v10227_v20, %v10235_v28  ;;  %v10242_v58 = vsub.f32 %v10226_v2, %v10234_v5  ;;  %13149 = vrsqrt.f32 %v10257_v22 }
0x2c79   :  { %v10182_v14 = vpop.xlane.xlu1 %10181  ;;  %v10285_v0 = vmul.f32 %v16435_v46, %v10271_v10  ;;  %13151 = vrsqrt.f32 %v10260_v7  ;;  %v4442_v7 = vpop.xlane.xlu0 %4441 }
0x2c7a   :  { %v10259_v62 = vadd.f32 1e-05, %v10243_v31  ;;  %v10258_v63 = vadd.f32 1e-05, %v10242_v58  ;;  %v10190_v3 = vmul.f32 0.125, %v10182_v14  ;;  %v4446_v20 = vmul.f32 0.03125, %v4442_v7 }
0x2c7b   :  { %v10299_v15 = vadd.f32 %v10835_v49, %v10285_v0 }
0x2c7c   :  { %13153 = vrsqrt.f32 %v10259_v62  ;;  %v10238_v33 = vmul.f32 %v10190_v3, %v10190_v3  ;;  %v10254_v26 = vsub.f32 %v16393_v61, %v10190_v3 }
0x2c7d   :  { %13155 = vrsqrt.f32 %v10258_v63  ;;  %v10179_v53 = vpop.xlane.xlu1 %10178  ;;  %10307 = vxpose.xlu0.b32.start [1/4] (short) (narrow) %v10299_v15, 8  ;;  %v4452_v22 = vpop.xlane.xlu0 %4451  ;;  %v4462_v15 = vsub.f32 %v16390_v36, %v4446_v20 }
0x2c7e   :  { %v10189_v1 = vmul.f32 0.125, %v10179_v53  ;;  %v4456_v2 = vmul.f32 0.03125, %v4452_v22 }
0x2c80   :  { %v10237_v37 = vmul.f32 %v10189_v1, %v10189_v1  ;;  %v10253_v18 = vsub.f32 %v16398_v13, %v10189_v1  ;;  %v4458_v13 = vmul.f32 %v4446_v20, %v4446_v20  ;;  %v10547_v1 = vld [vmem:[#allocation38] ss:$0 sm:$0xff] }
0x2c81   :  { %v10219_v9 = vpop.xlane.xlu1 %10218  ;;  %10308 = vxpose.xlu0.b32.cont [2/4] (short) (narrow) %v10300_v4, 8 }
0x2c82   :  { %v10229_v25 = vmul.f32 0.125, %v10219_v9  ;;  %v13150_v52 = vpop.eup %13149  ;;  %v4460_v10 = vsub.f32 %v4456_v2, %v4458_v13 }
0x2c83   :  { %v13152_v24 = vpop.eup %13151  ;;  %v10273_v17 = vmul.f32 %v13150_v52, %v10249_v54 }
0x2c84   :  { %v10245_v47 = vsub.f32 %v10229_v25, %v10237_v37  ;;  %v10276_v55 = vmul.f32 %v13152_v24, %v10252_v27  ;;  %v4464_v31 = vadd.f32 1e-05, %v4460_v10 }
0x2c85   :  { %v10222_v43 = vpop.xlane.xlu1 %10221  ;;  %v10287_v16 = vmul.f32 %v16435_v46, %v10273_v17 }
0x2c86   :  { %v13154_v34 = vpop.eup %13153  ;;  %v10261_v41 = vadd.f32 1e-05, %v10245_v47  ;;  %v10230_v45 = vmul.f32 0.125, %v10222_v43  ;;  %v10290_v35 = vmul.f32 %v16435_v46, %v10276_v55 }
0x2c87   :  { %v13156_v38 = vpop.eup %13155  ;;  %v10275_v19 = vmul.f32 %v13154_v34, %v10251_v40  ;;  %v10301_v56 = vadd.f32 %v10835_v49, %v10287_v16 }
0x2c88   :  { %13157 = vrsqrt.f32 %v10261_v41  ;;  %v10246_v8 = vsub.f32 %v10230_v45, %v10238_v33  ;;  %v10274_v11 = vmul.f32 %v13156_v38, %v10250_v6  ;;  %v10304_v29 = vadd.f32 %v10835_v49, %v10290_v35 }
0x2c89   :  { %v10289_v60 = vmul.f32 %v16435_v46, %v10275_v19  ;;  %10309 = vxpose.xlu0.b32.cont [3/4] (short) (narrow) %v10301_v56, 8  ;;  %v4445_v57 = vpop.xlane.xlu1 %4444 }
0x2c8a   :  { %v10262_v42 = vadd.f32 1e-05, %v10246_v8  ;;  %v10288_v12 = vmul.f32 %v16435_v46, %v10274_v11  ;;  %v4447_v58 = vmul.f32 0.03125, %v4445_v57 }
0x2c8b   :  { %v10303_v21 = vadd.f32 %v10835_v49, %v10289_v60 }
0x2c8c   :  { %13159 = vrsqrt.f32 %v10262_v42  ;;  %v10302_v30 = vadd.f32 %v10835_v49, %v10288_v12  ;;  %v4459_v0 = vmul.f32 %v4447_v58, %v4447_v58  ;;  %v4463_v37 = vsub.f32 %v16416_v59, %v4447_v58 }
0x2c8d   :  { %10339 = vxpose.xlu1.b32.start [1/4] (short) (narrow) %v10303_v21, 8  ;;  %13161 = vrsqrt.f32 %v4464_v31  ;;  %v4455_v61 = vpop.xlane.xlu1 %4454 }
0x2c8e   :  { %10310 = vxpose.xlu0.b32.end [4/4] (short) (narrow) %v10302_v30, 8  ;;  %v4457_v14 = vmul.f32 0.03125, %v4455_v61 }
0x2c90   :  { %v4461_v62 = vsub.f32 %v4457_v14, %v4459_v0 }
0x2c91   :  { %10340 = vxpose.xlu1.b32.cont [2/4] (short) (narrow) %v10304_v29, 8 }
0x2c92   :  { %v13158_v50 = vpop.eup %13157 }
0x2c93   :  { %v10277_v48 = vmul.f32 %v13158_v50, %v10253_v18 }
0x2c95   :  { %v10291_v23 = vmul.f32 %v16435_v46, %v10277_v48 }
0x2c96   :  { %v13160_v5 = vpop.eup %13159 }
0x2c97   :  { %v10305_v28 = vadd.f32 %v10835_v49, %v10291_v23  ;;  %v10278_v44 = vmul.f32 %v13160_v5, %v10254_v26  ;;  %v13162_v63 = vpop.eup %13161 }
0x2c99   :  { %10341 = vxpose.xlu1.b32.cont [3/4] (short) (narrow) %v10305_v28, 8  ;;  %v10292_v32 = vmul.f32 %v16435_v46, %v10278_v44  ;;  %v4465_v46 = vadd.f32 1e-05, %v4461_v62 }
0x2c9b   :  { %v10306_v39 = vadd.f32 %v10835_v49, %v10292_v32  ;;  %v4468_v49 = vmul.f32 %v13162_v63, %v4462_v15  ;;  %13163 = vrsqrt.f32 %v4465_v46 }
0x2c9d   :  { %10342 = vxpose.xlu1.b32.end [4/4] (short) (narrow) %v10306_v39, 8  ;;  %v4476_v53 = vmul.f32 %v10546_v51, %v4468_v49 }
0x2c9f   :  { %v4484_v4 = vadd.f32 %v10547_v1, %v4476_v53 }
0x2ca5   :  { %v13164_v3 = vpop.eup %13163 }
0x2ca6   :  { %v4469_v25 = vmul.f32 %v13164_v3, %v4463_v37 }
0x2ca8   :  { %v4477_v52 = vmul.f32 %v10546_v51, %v4469_v25 }
0x2caa   :  { %v4485_v24 = vadd.f32 %v10547_v1, %v4477_v52 }
0x2d02   :  { %v10323_v9 = vpop.trf.xlu0 }
0x2d03   :  { %v10371_v54 = vadd.f32 %v10323_v9, %v4484_v4 }
0x2d05   :  { %10373 = vst.msk [vmem:[#allocation47] sm:$0xff] %vm890_vm0, %v10371_v54 }
0x2d11   :  { %v10355_v36 = vpop.trf.xlu1 }
0x2d12   :  { %v10372_v47 = vadd.f32 %v10355_v36, %v4485_v24 }
0x2d14   :  { %10374 = vst.msk [vmem:[#allocation47 + $0x8] sm:$0xff] %vm890_vm0, %v10372_v47 }
0x2d15   :  { %13820 = shalt.err (!%p13817_p12)
}
0x2d16   :  { %s13821_s22 = scalar_lea.hbm %s14253_s3, 256 }
0x2d17   :  { %p13822_p13 = scmp.ne.s32.totalorder %s14253_s3, %s13821_s22  ;;  %p13825_p0 = scmp.lt.u32.totalorder %s13821_s22, %s14253_s3 }
0x2d19   :  { %p13827_p1 = pnand %p13825_p0, %p13822_p13 }
0x2d1b   :  { %13830 = shalt.err (!%p13827_p1)
}
0x2d1c   :  { %10386 = dma.vmem_to_hbm [thread:$0]  %s10381_s13, 256, %s14253_s3, [#allocation4], %s13923_s26, %s13923_s26, %s13924_s28  }
0x2d1d   :  { %13861 = dma.done.wait [#allocation4], 256  }
0x2d1e   :  { %13862 = vsyncadd [#allocation4], 4294967040 }
0x2d1f   :  { %10390 = vsyncpa [#allocation3], 1 }
0x2d20   :  { %10391 = vsyncpa [#allocation6], 1 }
0x2d21   :  { %10392 = vsyncpa [#allocation9], 1 }
0x2d22   :  { %10393 = vsyncpa [#allocation12], 1 }
0x2d23   :  { %10394 = vsyncpa [#allocation15], 1 }
0x2d24   :  { %10395 = vsyncpa [#allocation18], 1 }
0x2d25   :  { %10396 = vsyncpa [#allocation21], 1 }
0x2d26   :  { %10397 = vsyncpa [#allocation24], 1 }
0x2d27   :  { %10398 = vsyncpa [#allocation27], 1 }
0x2d28   :  { %10399 = vsyncpa [#allocation30], 1 }
0x2d29   :  { %10400 = vsyncpa [#allocation33], 1 }
0x2d2a   :  { %10401 = vsyncpa [#allocation36], 1 }
0x2d2b   :  { %10402 = vsyncpa [#allocation39], 1 }
0x2d2c   :  { %10403 = vsyncpa [#allocation42], 1 }
0x2d2d   :  { %10404 = vsyncpa [#allocation45], 1 }
0x2d2e   :  { %10405 = vsyncpa [#allocation4], 1 }

</bundles_post_ra>
